<compile_context>
chip_gen: v6e
topology: v6e:2x2x1
jax: 0.10.0
libtpu: 0.0.40
codegen_flags: <defaults>
</compile_context>

<pallas_src>
import jax
import jax.numpy as jnp
from jax.experimental import pallas as pl
from jax.experimental.pallas import tpu as pltpu

_INV_LN10 = 0.43429448190325176  # 1 / ln(10)
_LANE = 128
_SMALL_BYPASS_BYTES = 64 * 1024        # below this, fused XLA log10 wins
_TARGET_BLOCK_BYTES = 4 * 1024 * 1024  # ~4 MiB per block
_VMEM_LIMIT_BYTES = 32 * 1024 * 1024   # room for in+out double buffers + scratch


def _min_sublane(dtype) -> int:
    # Minimum second-to-last tile dim per dtype: 8 (f32), 16 (bf16/f16), 32 (int8/fp8).
    return max(8, 32 // jnp.dtype(dtype).itemsize)


def _log10_xla(x):
    # Small / tail path: same math, let XLA fuse it.
    return (jnp.log(x.astype(jnp.float32)) * jnp.float32(_INV_LN10)).astype(x.dtype)


def _log10_kernel(x_ref, o_ref):
    # EUP handles the transcendental (jnp.log); the 1/ln(10) scale is one VPU
    # multiply riding in a free VALU slot.  Compute in f32 (v5e has no bf16
    # VPU/EUP path), cast back only on the store.
    x = x_ref[...].astype(jnp.float32)
    o_ref[...] = (jnp.log(x) * jnp.float32(_INV_LN10)).astype(o_ref.dtype)


def _log10_pallas_2d(x2d):
    """Run the Pallas kernel over a lane-dense 2-D slab (rows, W)."""
    rows, W = x2d.shape
    itemsize = jnp.dtype(x2d.dtype).itemsize
    sublane = _min_sublane(x2d.dtype)

    # Row tile sized for ~4 MiB blocks, rounded to the dtype's sublane minimum.
    tr = (_TARGET_BLOCK_BYTES // (W * itemsize)) // sublane * sublane
    tr = max(sublane, tr)
    if rows >= 2 * sublane:
        # Keep grid length >= 2 so the "parallel" axis can actually shard
        # across both TensorCores on v7x even when everything fits one block.
        half = pl.cdiv(pl.cdiv(rows, 2), sublane) * sublane
        tr = min(tr, half)
    tr = min(tr, rows)

    grid = (pl.cdiv(rows, tr),)  # partial last block: stores are masked by Pallas

    return pl.pallas_call(
        _log10_kernel,
        out_shape=jax.ShapeDtypeStruct((rows, W), x2d.dtype),
        grid_spec=pltpu.PrefetchScalarGridSpec(
            num_scalar_prefetch=0,
            grid=grid,
            in_specs=[pl.BlockSpec((tr, W), lambda i: (i, 0))],
            out_specs=pl.BlockSpec((tr, W), lambda i: (i, 0)),
        ),
        compiler_params=pltpu.CompilerParams(
            dimension_semantics=("parallel",),       # megacore sharding on v7x
            vmem_limit_bytes=_VMEM_LIMIT_BYTES,      # 4 MiB blocks fit v5e too
        ),
    )(x2d)


def log10_pallas(x):
    """Elementwise log10(x) via a Pallas TPU kernel (matches torch.log10)."""
    orig_shape = x.shape
    dtype = x.dtype
    n = x.size
    itemsize = jnp.dtype(dtype).itemsize
    sublane = _min_sublane(dtype)
    slab = sublane * _LANE  # minimum tile, in elements

    # Tiny inputs: custom-call + grid-step overhead dominates; bypass.
    if n * itemsize < _SMALL_BYPASS_BYTES or n < slab:
        return _log10_xla(x)

    x_flat = x.reshape(-1)

    # Largest slab-aligned prefix goes through the kernel (reshape is a free
    # bitcast).  The < slab tail is a tiny fused XLA op.
    n_pref = (n // slab) * slab

    # Widest lane dim W (multiple of 128) keeping rows a multiple of sublane:
    # lane-dense blocks give unmasked, contiguous vld/vst and large DMAs.
    W = _LANE
    for cand in (4096, 2048, 1024, 512, 256, 128):
        if n_pref % (cand * sublane) == 0:
            W = cand
            break
    rows = n_pref // W

    pref_out = _log10_pallas_2d(x_flat[:n_pref].reshape(rows, W)).reshape(-1)

    if n_pref == n:
        return pref_out.reshape(orig_shape)

    # TODO(synk): fold this tail into the kernel as a masked final block to
    # also remove the concatenate copy on unaligned flat sizes.
    tail_out = _log10_xla(x_flat[n_pref:])
    return jnp.concatenate([pref_out, tail_out]).reshape(orig_shape)


if __name__ == "__main__":
    key = jax.random.PRNGKey(0)
    k1, k2, k3 = jax.random.split(key, 3)

    # Primary module-shaped input [2, 4, 16, 16] (positive values: log10 domain).
    x = jax.random.uniform(k1, (2, 4, 16, 16), dtype=jnp.float32,
                           minval=0.1, maxval=10.0)
    y = jax.block_until_ready(log10_pallas(x))
    assert y.shape == x.shape and y.dtype == x.dtype
    assert jnp.allclose(y, jnp.log10(x), rtol=1e-6, atol=1e-6)

    # Larger, slab-aligned input: exercises the Pallas kernel path (multi-block grid).
    x_big = jax.random.uniform(k2, (8, 64, 64, 64), dtype=jnp.float32,
                               minval=0.1, maxval=10.0)
    y_big = jax.block_until_ready(log10_pallas(x_big))
    assert jnp.allclose(y_big, jnp.log10(x_big), rtol=1e-6, atol=1e-6)

    # Unaligned flat size: aligned-prefix kernel + tiny XLA tail (no pad/slice).
    x_odd = jax.random.uniform(k3, (3, 5, 37, 41), dtype=jnp.float32,
                               minval=0.1, maxval=10.0)
    y_odd = jax.block_until_ready(log10_pallas(x_odd))
    assert jnp.allclose(y_odd, jnp.log10(x_odd), rtol=1e-6, atol=1e-6)

    print("KERNEL_OK")
</pallas_src>

<mosaic_0001>
module attributes {stable_mosaic.version = 11 : i64} {
  func.func @_log10_kernel(%arg0: i32, %arg1: memref<256x4096xf32, #tpu.memory_space<vmem>>, %arg2: memref<256x4096xf32, #tpu.memory_space<vmem>>) attributes {dimension_semantics = [#tpu.dimension_semantics<parallel>], iteration_bounds = array<i64: 2>, scalar_prefetch = 0 : i64, scratch_operands = 0 : i64, tpu.core_type = #tpu.core_type<tc>, window_params = [{transform_indices = @transform_0, window_bounds = array<i64: 256, 4096>}, {transform_indices = @transform_1, window_bounds = array<i64: 256, 4096>}]} {
    %c0 = arith.constant 0 : index
    %c0_0 = arith.constant 0 : index
    %0 = vector.load %arg1[%c0, %c0_0] : memref<256x4096xf32, #tpu.memory_space<vmem>>, vector<256x4096xf32>
    %1 = math.log %0 : vector<256x4096xf32>
    %cst = arith.constant 0.434294492 : f32
    %2 = vector.broadcast %cst : f32 to vector<256x4096xf32>
    %3 = arith.mulf %1, %2 : vector<256x4096xf32>
    %c0_1 = arith.constant 0 : index
    %c0_2 = arith.constant 0 : index
    %4 = vector.load %arg2[%c0_1, %c0_2] : memref<256x4096xf32, #tpu.memory_space<vmem>>, vector<256x4096xf32>
    tpu.vector_store %arg2[%c0_1, %c0_2], %3 {strides = array<i32>} : memref<256x4096xf32, #tpu.memory_space<vmem>>, vector<256x4096xf32>,
    return
  }
  func.func @transform_0(%arg0: i32) -> (i32, i32) {
    %c0_i32 = arith.constant 0 : i32
    %c0_i32_0 = arith.constant 0 : i32
    return %arg0, %c0_i32 : i32, i32
  }
  func.func @transform_1(%arg0: i32) -> (i32, i32) {
    %c0_i32 = arith.constant 0 : i32
    %c0_i32_0 = arith.constant 0 : i32
    return %arg0, %c0_i32 : i32, i32
  }
}

</mosaic_0001>

<bundles_post_ra>
// kernel: tpu_custom_call.1
= control target key start
LH: loop header
LB: loop body
LE: loop exit
PB: predicated region body
PF: predicated region fallthrough
CT: control target
= control target key end

     0   :  { %6 = vsyncpa [#allocation3], 0  ;;  %s9785_s0 = inlined_call_operand.hbm [shape: f32[512,4096], index: 0, kind: input, shape index: {}]   ;;  %s9786_s1 = inlined_call_operand.hbm [shape: f32[512,4096], index: 1, kind: output, shape index: {}]  }
   0x1   :  { %8 = vsyncpa [#allocation3 + $0x1], 0 }
   0x2   :  { %9 = vsyncpa [#allocation4], 0 }
   0x3   :  { %11 = vsyncpa [#allocation4 + $0x1], 0  ;;  %s7574_s6 = smov 0   ;;  %s7576_s7 = smov 0  }
   0x4   :  { %s7578_s8 = smov 0   ;;  %s7580_s9 = smov 0  }
   0x5 LB: > { %s7595_s10 = sadd.s32 4294967295, %s7556_s9   ;;  %s5346_s11 = sadd.s32 4294967294, %s7556_s9   ;;  %s7556_s9 = sphi %s7580_s9, %s9801_s9   ;;  %s7552_s8 = sphi %s7578_s8, %s9800_s8   ;;  %s7548_s7 = sphi %s7576_s7, %s9799_s7   ;;  %s7544_s6 = sphi %s7574_s6, %s9798_s6  }
   0x6   : > { %s7599_s12 = sadd.s32 1, %s7556_s9   ;;  %s24_s13 = sadd.s32 1, %s7552_s8 }
   0x7   : > { %s21_s14 = ssub.s32 %s7556_s9, %s7599_s12  ;;  %p31_p0 = scmp.ne.s32.totalorder %s7552_s8, %s7548_s7 }
   0x8   : > { %p22_p1 = scmp.eq.s32.totalorder %s21_s14, 0  ;;  %p32_p2 = scmp.eq.s32.totalorder %s7556_s9, 0 }
   0x9   : > { %p37_p3 = scmp.ne.s32.totalorder %s7548_s7, %s7544_s6  ;;  %p38_p4 = scmp.eq.s32.totalorder %s7595_s10, 0 }
   0xa   : > { %s7611_s15 = scalar_select %p22_p1, %s7552_s8, %s24_s13  }
   0xb   : > { %p7613_p5 = por %p32_p2, %p31_p0  ;;  %p7617_p6 = por %p38_p4, %p37_p3 }
   0xc   : > { %p61_p7 = scmp.eq.s32.totalorder %s7595_s10, 1  ;;  %p67_p8 = scmp.eq.s32.totalorder %s5346_s11, 1 }
   0xd   : > { %s9790_s17 = scalar_select %p7617_p6, 1, 0 }
   0xe   : > { %p5378_p10 = scmp.lt.s32.totalorder %s7556_s9, 2  ;;  %p7624_p11 = por %p61_p7, %p31_p0 }
   0xf   : > { %p7628_p12 = por %p67_p8, %p37_p3  ;;  %s87_s20 = sand.u32 1, %s7552_s8  }
  0x10   : > { %s9791_s18 = scalar_select %p7624_p11, 1, 0 }
  0x11   : > { %s9792_s19 = scalar_select %p7628_p12, 1, 0 }
  0x12   : > { %s5363_s21 = sshll.u32 %s7556_s9, 17  ;;  %s5349_s22 = sshll.u32 %s87_s20, 13 }
  0x13   : > { %s7637_s25 = scalar_lea.hbm %s9785_s0, %s5363_s21  ;;  %s91_s26 = scalar_lea.vmem [#allocation2], %s5349_s22 }
  0x14   : > { %s99_s27 = sshll.u32 %s91_s26, 4  ;;  %p7641_p13 = pnand %p5378_p10, %p7613_p5  ;;  %s7645_s27 = int_to_ptr.vmem [resolvable:$true] %s99_s27 }
  0x15   : > { %s7647_s29 = scalar_lea.sflag [#allocation3], %s87_s20  ;;  %s7464_s30 = scalar_lea.hbm %s7637_s25, 131072 }
  0x16   : > { %p7465_p0 = scmp.ne.s32.totalorder %s7637_s25, %s7464_s30  ;;  %p7466_p1 = pneg %p7641_p13 }
  0x17   : > { %s7469_s4 = scalar_lea.hbm %s9785_s0, 262144  ;;  %p7470_p4 = scmp.lt.s32.totalorder %s7637_s25, %s9785_s0 }
  0x18   : > { %p7467_p2 = pnand %p7466_p1, %p7465_p0  ;;  %p7471_p5 = scmp.lt.s32.totalorder %s7469_s4, %s7464_s30 }
  0x1a   : > { %p7468_p3 = pneg %p7467_p2  ;;  %p7472_p7 = por %p7471_p5, %p7470_p4 }
  0x1c   : > { %p7473_p8 = pnand %p7472_p7, %p7468_p3 }
  0x1e   : > { %7476 = shalt.err (!%p7473_p8)
}
  0x1f   : > { %s7477_s13 = scalar_lea.vmem %s7645_s27, 131072  ;;  %s7558_s14 = smov [#allocation2]  }
  0x20   : > { %p7478_p10 = scmp.ne.s32.totalorder %s7645_s27, %s7477_s13  ;;  %s7482_s16 = sshll.u32 %s7558_s14, 4  ;;  %s7483_s16 = int_to_ptr.vmem [resolvable:$false] %s7482_s16 }
  0x21   : > { %s7484_s20 = scalar_lea.vmem %s7483_s16, 262144  ;;  %p7485_p2 = scmp.lt.s32.totalorder %s7645_s27, %s7483_s16 }
  0x22   : > { %p7480_p9 = pnand %p7478_p10, %p7466_p1  ;;  %p7486_p12 = scmp.lt.s32.totalorder %s7484_s20, %s7477_s13 }
  0x24   : > { %p7481_p0 = pneg %p7480_p9  ;;  %p7487_p11 = por %p7486_p12, %p7485_p2 }
  0x26   : > { %p7488_p6 = pnand %p7487_p11, %p7481_p0 }
  0x28   : > { %7491 = shalt.err (!%p7488_p6)
}
  0x29   : > { %s7559_s21 = smov 4096   ;;  %s7560_s22 = smov 256  }
  0x2a   : > { %5373 = dma.hbm_to_vmem [thread:$0]  (!%p7641_p13), %s7637_s25, 131072, %s7645_s27, %s7647_s29, %s7559_s21, %s7559_s21, %s7560_s22  }
  0x2b   : > { %p5353_p9 = scmp.ge.s32.totalorder %s7556_s9, 1  ;;  %p107_p1 = scmp.lt.s32.totalorder %s7556_s9, 3 }
  0x2d   : > { %p108_p3 = pnand %p5353_p9, %p107_p1 }
  0x2e   : > { %s7671_s23 = sand.u32 (!%p108_p3), 1, %s7548_s7   ;;  %p9794_p6 = scmp.ne.s32.totalorder (!%p108_p3), %s9790_s17, 0 }
  0x2f   : > { %111 = sbr.rel (%p108_p3) target bundleno = 1109 (0x455), region = 24  ;;  %s5354_s24 = sshll.u32 (!%p108_p3), %s7671_s23, 13 }
  0x30   : > { %s114_s26 = scalar_lea.sflag (!%p108_p3), [#allocation3], %s7671_s23  ;;  %s7677_s30 = scalar_lea.vmem (!%p108_p3), [#allocation2], %s5354_s24 }
  0x34   : > { %7535 = dma.done.wait (%p9794_p6), %s114_s26, 131072  }
  0x35   : > { %7537 = vsyncadd (%p9794_p6), %s114_s26, 4294836224  ;;  %v138_v0 = vld [vmem:[%s7677_s30] sm:$0xff]  ;;  %v139_v1 = vld [vmem:[%s7677_s30 + $0x8] sm:$0xff]  ;;  %s7706_s17 = scalar_lea.vmem [#allocation5], %s5354_s24  ;;  %s5365_s25 = sshll.u32 %s7595_s10, 17 }
  0x36   : > { %v140_v2 = vld [vmem:[%s7677_s30 + $0x10] sm:$0xff]  ;;  %5416 = vlog2.f32 %v138_v0  ;;  %v141_v3 = vld [vmem:[%s7677_s30 + $0x18] sm:$0xff]  ;;  %v142_v4 = vld [vmem:[%s7677_s30 + $0x20] sm:$0xff]  ;;  %s5273_s27 = sshll.u32 %s7706_s17, 4  ;;  %s9737_s2 = scalar_lea.hbm %s9786_s1, %s5365_s25  ;;  %s9739_s27 = int_to_ptr.vmem [resolvable:$true] %s5273_s27 }
  0x37   : > { %5418 = vlog2.f32 %v139_v1  ;;  %v143_v5 = vld [vmem:[%s7677_s30 + $0x28] sm:$0xff]  ;;  %v144_v6 = vld [vmem:[%s7677_s30 + $0x30] sm:$0xff]  ;;  %v145_v7 = vld [vmem:[%s7677_s30 + $0x38] sm:$0xff]  ;;  %s5259_s10 = scalar_lea.sflag [#allocation4], %s7671_s23  ;;  %s7492_s3 = scalar_lea.vmem %s9739_s27, 131072 }
  0x38   : > { %5420 = vlog2.f32 %v140_v2  ;;  %v146_v8 = vld [vmem:[%s7677_s30 + $0x40] sm:$0xff]  ;;  %v147_v9 = vld [vmem:[%s7677_s30 + $0x48] sm:$0xff]  ;;  %v148_v10 = vld [vmem:[%s7677_s30 + $0x50] sm:$0xff]  ;;  %p7493_p11 = scmp.ne.s32.totalorder %s9739_s27, %s7492_s3  ;;  %p9795_p12 = scmp.ne.s32.totalorder %s9791_s18, 0 }
  0x39   : > { %5422 = vlog2.f32 %v141_v3  ;;  %v149_v11 = vld [vmem:[%s7677_s30 + $0x58] sm:$0xff]  ;;  %v150_v12 = vld [vmem:[%s7677_s30 + $0x60] sm:$0xff]  ;;  %v151_v13 = vld [vmem:[%s7677_s30 + $0x68] sm:$0xff]  ;;  %s7561_s4 = smov [#allocation5]  }
  0x3a   : > { %5424 = vlog2.f32 %v142_v4  ;;  %v152_v14 = vld [vmem:[%s7677_s30 + $0x70] sm:$0xff]  ;;  %v153_v15 = vld [vmem:[%s7677_s30 + $0x78] sm:$0xff]  ;;  %v154_v17 = vld [vmem:[%s7677_s30 + $0x80] sm:$0xff]  ;;  %p7494_p13 = pnand %p7493_p11, %p9795_p12  ;;  %s7496_s5 = sshll.u32 %s7561_s4, 4  ;;  %s7497_s5 = int_to_ptr.vmem [resolvable:$false] %s7496_s5 }
  0x3b   : > { %5426 = vlog2.f32 %v143_v5  ;;  %v155_v20 = vld [vmem:[%s7677_s30 + $0x88] sm:$0xff]  ;;  %v156_v23 = vld [vmem:[%s7677_s30 + $0x90] sm:$0xff]  ;;  %v157_v27 = vld [vmem:[%s7677_s30 + $0x98] sm:$0xff]  ;;  %s7498_s11 = scalar_lea.vmem %s7497_s5, 262144  ;;  %p7499_p5 = scmp.lt.s32.totalorder %s9739_s27, %s7497_s5 }
  0x3c   : > { %5428 = vlog2.f32 %v144_v6  ;;  %v158_v31 = vld [vmem:[%s7677_s30 + $0xa0] sm:$0xff]  ;;  %v159_v35 = vld [vmem:[%s7677_s30 + $0xa8] sm:$0xff]  ;;  %v160_v39 = vld [vmem:[%s7677_s30 + $0xb0] sm:$0xff]  ;;  %p7495_p4 = pneg %p7494_p13  ;;  %p7500_p7 = scmp.lt.s32.totalorder %s7498_s11, %s7492_s3 }
  0x3d   : > { %5430 = vlog2.f32 %v145_v7  ;;  %v161_v43 = vld [vmem:[%s7677_s30 + $0xb8] sm:$0xff]  ;;  %v162_v47 = vld [vmem:[%s7677_s30 + $0xc0] sm:$0xff]  ;;  %v163_v51 = vld [vmem:[%s7677_s30 + $0xc8] sm:$0xff] }
  0x3e   : > { %5432 = vlog2.f32 %v146_v8  ;;  %v164_v55 = vld [vmem:[%s7677_s30 + $0xd0] sm:$0xff]  ;;  %v165_v59 = vld [vmem:[%s7677_s30 + $0xd8] sm:$0xff]  ;;  %v166_v63 = vld [vmem:[%s7677_s30 + $0xe0] sm:$0xff]  ;;  %p7501_p8 = por %p7500_p7, %p7499_p5 }
  0x3f   : > { %5434 = vlog2.f32 %v147_v9  ;;  %v167_v3 = vld [vmem:[%s7677_s30 + $0xe8] sm:$0xff]  ;;  %v168_v7 = vld [vmem:[%s7677_s30 + $0xf0] sm:$0xff] }
  0x40   : > { %5436 = vlog2.f32 %v148_v10  ;;  %p7502_p10 = pnand %p7501_p8, %p7495_p4 }
  0x41   : > { %5438 = vlog2.f32 %v149_v11  ;;  %v169_v11 = vld [vmem:[%s7677_s30 + $0xf8] sm:$0xff] }
  0x42   : > { %5440 = vlog2.f32 %v150_v12 }
  0x43   : > { %v5417_v16 = vpop.eup %5416  ;;  %5442 = vlog2.f32 %v151_v13 }
  0x44   : > { %v5419_v18 = vpop.eup %5418  ;;  %v1163_v19 = vmul.f32 0.6931472, %v5417_v16  ;;  %5444 = vlog2.f32 %v152_v14 }
  0x45   : > { %v5421_v21 = vpop.eup %5420  ;;  %v1165_v22 = vmul.f32 0.6931472, %v5419_v18  ;;  %5446 = vlog2.f32 %v153_v15  ;;  %v170_v15 = vld [vmem:[%s7677_s30 + $0x100] sm:$0xff] }
  0x46   : > { %v5423_v24 = vpop.eup %5422  ;;  %v3210_v25 = vmul.f32 0.4342945, %v1163_v19  ;;  %v1167_v26 = vmul.f32 0.6931472, %v5421_v21  ;;  %5448 = vlog2.f32 %v154_v17  ;;  %v171_v19 = vld [vmem:[%s7677_s30 + $0x108] sm:$0xff] }
  0x47   : > { %v5425_v28 = vpop.eup %5424  ;;  %v3211_v29 = vmul.f32 0.4342945, %v1165_v22  ;;  %v1169_v30 = vmul.f32 0.6931472, %v5423_v24  ;;  %5450 = vlog2.f32 %v155_v20 }
  0x48   : > { %v5427_v32 = vpop.eup %5426  ;;  %4234 = vst [vmem:[%s7706_s17] sm:$0xff] %v3210_v25  ;;  %v3212_v33 = vmul.f32 0.4342945, %v1167_v26  ;;  %v1171_v34 = vmul.f32 0.6931472, %v5425_v28  ;;  %5452 = vlog2.f32 %v156_v23  ;;  %v172_v23 = vld [vmem:[%s7677_s30 + $0x110] sm:$0xff] }
  0x49   : > { %v5429_v36 = vpop.eup %5428  ;;  %4235 = vst [vmem:[%s7706_s17 + $0x8] sm:$0xff] %v3211_v29  ;;  %v3213_v37 = vmul.f32 0.4342945, %v1169_v30  ;;  %v1173_v38 = vmul.f32 0.6931472, %v5427_v32  ;;  %5454 = vlog2.f32 %v157_v27  ;;  %v173_v27 = vld [vmem:[%s7677_s30 + $0x118] sm:$0xff] }
  0x4a   : > { %v5431_v40 = vpop.eup %5430  ;;  %4236 = vst [vmem:[%s7706_s17 + $0x10] sm:$0xff] %v3212_v33  ;;  %v3214_v41 = vmul.f32 0.4342945, %v1171_v34  ;;  %v1175_v42 = vmul.f32 0.6931472, %v5429_v36  ;;  %5456 = vlog2.f32 %v158_v31  ;;  %v174_v31 = vld [vmem:[%s7677_s30 + $0x120] sm:$0xff] }
  0x4b   : > { %v5433_v44 = vpop.eup %5432  ;;  %4237 = vst [vmem:[%s7706_s17 + $0x18] sm:$0xff] %v3213_v37  ;;  %v3215_v45 = vmul.f32 0.4342945, %v1173_v38  ;;  %v1177_v46 = vmul.f32 0.6931472, %v5431_v40  ;;  %5458 = vlog2.f32 %v159_v35  ;;  %v175_v35 = vld [vmem:[%s7677_s30 + $0x128] sm:$0xff] }
  0x4c   : > { %v5435_v48 = vpop.eup %5434  ;;  %4238 = vst [vmem:[%s7706_s17 + $0x20] sm:$0xff] %v3214_v41  ;;  %v3216_v49 = vmul.f32 0.4342945, %v1175_v42  ;;  %v1179_v50 = vmul.f32 0.6931472, %v5433_v44  ;;  %5460 = vlog2.f32 %v160_v39  ;;  %v176_v39 = vld [vmem:[%s7677_s30 + $0x130] sm:$0xff] }
  0x4d   : > { %v5437_v52 = vpop.eup %5436  ;;  %4239 = vst [vmem:[%s7706_s17 + $0x28] sm:$0xff] %v3215_v45  ;;  %v3217_v53 = vmul.f32 0.4342945, %v1177_v46  ;;  %v1181_v54 = vmul.f32 0.6931472, %v5435_v48  ;;  %5462 = vlog2.f32 %v161_v43  ;;  %v177_v43 = vld [vmem:[%s7677_s30 + $0x138] sm:$0xff] }
  0x4e   : > { %v5439_v56 = vpop.eup %5438  ;;  %4240 = vst [vmem:[%s7706_s17 + $0x30] sm:$0xff] %v3216_v49  ;;  %v3218_v57 = vmul.f32 0.4342945, %v1179_v50  ;;  %v1183_v58 = vmul.f32 0.6931472, %v5437_v52  ;;  %5464 = vlog2.f32 %v162_v47  ;;  %v178_v47 = vld [vmem:[%s7677_s30 + $0x140] sm:$0xff] }
  0x4f   : > { %v5441_v60 = vpop.eup %5440  ;;  %4241 = vst [vmem:[%s7706_s17 + $0x38] sm:$0xff] %v3217_v53  ;;  %v3219_v61 = vmul.f32 0.4342945, %v1181_v54  ;;  %v1185_v62 = vmul.f32 0.6931472, %v5439_v56  ;;  %5466 = vlog2.f32 %v163_v51  ;;  %v179_v51 = vld [vmem:[%s7677_s30 + $0x148] sm:$0xff] }
  0x50   : > { %v5443_v0 = vpop.eup %5442  ;;  %4242 = vst [vmem:[%s7706_s17 + $0x40] sm:$0xff] %v3218_v57  ;;  %v3220_v1 = vmul.f32 0.4342945, %v1183_v58  ;;  %v1187_v2 = vmul.f32 0.6931472, %v5441_v60  ;;  %5468 = vlog2.f32 %v164_v55  ;;  %v180_v55 = vld [vmem:[%s7677_s30 + $0x150] sm:$0xff] }
  0x51   : > { %v5445_v4 = vpop.eup %5444  ;;  %4243 = vst [vmem:[%s7706_s17 + $0x48] sm:$0xff] %v3219_v61  ;;  %v3221_v5 = vmul.f32 0.4342945, %v1185_v62  ;;  %v1189_v6 = vmul.f32 0.6931472, %v5443_v0  ;;  %5470 = vlog2.f32 %v165_v59  ;;  %v181_v59 = vld [vmem:[%s7677_s30 + $0x158] sm:$0xff] }
  0x52   : > { %v5447_v8 = vpop.eup %5446  ;;  %4244 = vst [vmem:[%s7706_s17 + $0x50] sm:$0xff] %v3220_v1  ;;  %v3222_v9 = vmul.f32 0.4342945, %v1187_v2  ;;  %v1191_v10 = vmul.f32 0.6931472, %v5445_v4  ;;  %5472 = vlog2.f32 %v166_v63  ;;  %v182_v63 = vld [vmem:[%s7677_s30 + $0x160] sm:$0xff] }
  0x53   : > { %v5449_v12 = vpop.eup %5448  ;;  %4245 = vst [vmem:[%s7706_s17 + $0x58] sm:$0xff] %v3221_v5  ;;  %v3223_v13 = vmul.f32 0.4342945, %v1189_v6  ;;  %v1193_v14 = vmul.f32 0.6931472, %v5447_v8  ;;  %5474 = vlog2.f32 %v167_v3  ;;  %v183_v3 = vld [vmem:[%s7677_s30 + $0x168] sm:$0xff] }
  0x54   : > { %v5451_v16 = vpop.eup %5450  ;;  %4246 = vst [vmem:[%s7706_s17 + $0x60] sm:$0xff] %v3222_v9  ;;  %v3224_v17 = vmul.f32 0.4342945, %v1191_v10  ;;  %v1195_v18 = vmul.f32 0.6931472, %v5449_v12  ;;  %5476 = vlog2.f32 %v168_v7  ;;  %v184_v7 = vld [vmem:[%s7677_s30 + $0x170] sm:$0xff] }
  0x55   : > { %v5453_v20 = vpop.eup %5452  ;;  %4247 = vst [vmem:[%s7706_s17 + $0x68] sm:$0xff] %v3223_v13  ;;  %v3225_v21 = vmul.f32 0.4342945, %v1193_v14  ;;  %v1197_v22 = vmul.f32 0.6931472, %v5451_v16  ;;  %5478 = vlog2.f32 %v169_v11  ;;  %v185_v11 = vld [vmem:[%s7677_s30 + $0x178] sm:$0xff] }
  0x56   : > { %v5455_v24 = vpop.eup %5454  ;;  %4248 = vst [vmem:[%s7706_s17 + $0x70] sm:$0xff] %v3224_v17  ;;  %v3226_v25 = vmul.f32 0.4342945, %v1195_v18  ;;  %v1199_v26 = vmul.f32 0.6931472, %v5453_v20  ;;  %5480 = vlog2.f32 %v170_v15  ;;  %v186_v15 = vld [vmem:[%s7677_s30 + $0x180] sm:$0xff] }
  0x57   : > { %v5457_v28 = vpop.eup %5456  ;;  %4249 = vst [vmem:[%s7706_s17 + $0x78] sm:$0xff] %v3225_v21  ;;  %v3227_v29 = vmul.f32 0.4342945, %v1197_v22  ;;  %v1201_v30 = vmul.f32 0.6931472, %v5455_v24  ;;  %5482 = vlog2.f32 %v171_v19  ;;  %v187_v19 = vld [vmem:[%s7677_s30 + $0x188] sm:$0xff] }
  0x58   : > { %v5459_v32 = vpop.eup %5458  ;;  %4250 = vst [vmem:[%s7706_s17 + $0x80] sm:$0xff] %v3226_v25  ;;  %v3228_v33 = vmul.f32 0.4342945, %v1199_v26  ;;  %v1203_v34 = vmul.f32 0.6931472, %v5457_v28  ;;  %5484 = vlog2.f32 %v172_v23  ;;  %v188_v23 = vld [vmem:[%s7677_s30 + $0x190] sm:$0xff] }
  0x59   : > { %v5461_v36 = vpop.eup %5460  ;;  %4251 = vst [vmem:[%s7706_s17 + $0x88] sm:$0xff] %v3227_v29  ;;  %v3229_v37 = vmul.f32 0.4342945, %v1201_v30  ;;  %v1205_v38 = vmul.f32 0.6931472, %v5459_v32  ;;  %5486 = vlog2.f32 %v173_v27  ;;  %v189_v27 = vld [vmem:[%s7677_s30 + $0x198] sm:$0xff] }
  0x5a   : > { %v5463_v40 = vpop.eup %5462  ;;  %4252 = vst [vmem:[%s7706_s17 + $0x90] sm:$0xff] %v3228_v33  ;;  %v3230_v41 = vmul.f32 0.4342945, %v1203_v34  ;;  %v1207_v42 = vmul.f32 0.6931472, %v5461_v36  ;;  %5488 = vlog2.f32 %v174_v31  ;;  %v190_v31 = vld [vmem:[%s7677_s30 + $0x1a0] sm:$0xff] }
  0x5b   : > { %v5465_v44 = vpop.eup %5464  ;;  %4253 = vst [vmem:[%s7706_s17 + $0x98] sm:$0xff] %v3229_v37  ;;  %v3231_v45 = vmul.f32 0.4342945, %v1205_v38  ;;  %v1209_v46 = vmul.f32 0.6931472, %v5463_v40  ;;  %5490 = vlog2.f32 %v175_v35  ;;  %v191_v35 = vld [vmem:[%s7677_s30 + $0x1a8] sm:$0xff] }
  0x5c   : > { %v5467_v48 = vpop.eup %5466  ;;  %4254 = vst [vmem:[%s7706_s17 + $0xa0] sm:$0xff] %v3230_v41  ;;  %v3232_v49 = vmul.f32 0.4342945, %v1207_v42  ;;  %v1211_v50 = vmul.f32 0.6931472, %v5465_v44  ;;  %5492 = vlog2.f32 %v176_v39  ;;  %v192_v39 = vld [vmem:[%s7677_s30 + $0x1b0] sm:$0xff] }
  0x5d   : > { %v5469_v52 = vpop.eup %5468  ;;  %4255 = vst [vmem:[%s7706_s17 + $0xa8] sm:$0xff] %v3231_v45  ;;  %v3233_v53 = vmul.f32 0.4342945, %v1209_v46  ;;  %v1213_v54 = vmul.f32 0.6931472, %v5467_v48  ;;  %5494 = vlog2.f32 %v177_v43  ;;  %v193_v43 = vld [vmem:[%s7677_s30 + $0x1b8] sm:$0xff] }
  0x5e   : > { %v5471_v56 = vpop.eup %5470  ;;  %4256 = vst [vmem:[%s7706_s17 + $0xb0] sm:$0xff] %v3232_v49  ;;  %v3234_v57 = vmul.f32 0.4342945, %v1211_v50  ;;  %v1215_v58 = vmul.f32 0.6931472, %v5469_v52  ;;  %5496 = vlog2.f32 %v178_v47  ;;  %v194_v47 = vld [vmem:[%s7677_s30 + $0x1c0] sm:$0xff] }
  0x5f   : > { %v5473_v60 = vpop.eup %5472  ;;  %4257 = vst [vmem:[%s7706_s17 + $0xb8] sm:$0xff] %v3233_v53  ;;  %v3235_v61 = vmul.f32 0.4342945, %v1213_v54  ;;  %v1217_v62 = vmul.f32 0.6931472, %v5471_v56  ;;  %5498 = vlog2.f32 %v179_v51  ;;  %v195_v51 = vld [vmem:[%s7677_s30 + $0x1c8] sm:$0xff] }
  0x60   : > { %v5475_v0 = vpop.eup %5474  ;;  %4258 = vst [vmem:[%s7706_s17 + $0xc0] sm:$0xff] %v3234_v57  ;;  %v3236_v1 = vmul.f32 0.4342945, %v1215_v58  ;;  %v1219_v2 = vmul.f32 0.6931472, %v5473_v60  ;;  %5500 = vlog2.f32 %v180_v55  ;;  %v196_v55 = vld [vmem:[%s7677_s30 + $0x1d0] sm:$0xff] }
  0x61   : > { %v5477_v4 = vpop.eup %5476  ;;  %4259 = vst [vmem:[%s7706_s17 + $0xc8] sm:$0xff] %v3235_v61  ;;  %v3237_v5 = vmul.f32 0.4342945, %v1217_v62  ;;  %v1221_v6 = vmul.f32 0.6931472, %v5475_v0  ;;  %5502 = vlog2.f32 %v181_v59  ;;  %v197_v59 = vld [vmem:[%s7677_s30 + $0x1d8] sm:$0xff] }
  0x62   : > { %v5479_v8 = vpop.eup %5478  ;;  %4260 = vst [vmem:[%s7706_s17 + $0xd0] sm:$0xff] %v3236_v1  ;;  %v3238_v9 = vmul.f32 0.4342945, %v1219_v2  ;;  %v1223_v10 = vmul.f32 0.6931472, %v5477_v4  ;;  %5504 = vlog2.f32 %v182_v63  ;;  %v198_v63 = vld [vmem:[%s7677_s30 + $0x1e0] sm:$0xff] }
  0x63   : > { %v5481_v12 = vpop.eup %5480  ;;  %4261 = vst [vmem:[%s7706_s17 + $0xd8] sm:$0xff] %v3237_v5  ;;  %v3239_v13 = vmul.f32 0.4342945, %v1221_v6  ;;  %v1225_v14 = vmul.f32 0.6931472, %v5479_v8  ;;  %5506 = vlog2.f32 %v183_v3  ;;  %v199_v3 = vld [vmem:[%s7677_s30 + $0x1e8] sm:$0xff] }
  0x64   : > { %v5483_v16 = vpop.eup %5482  ;;  %4262 = vst [vmem:[%s7706_s17 + $0xe0] sm:$0xff] %v3238_v9  ;;  %v3240_v17 = vmul.f32 0.4342945, %v1223_v10  ;;  %v1227_v18 = vmul.f32 0.6931472, %v5481_v12  ;;  %5508 = vlog2.f32 %v184_v7  ;;  %v200_v7 = vld [vmem:[%s7677_s30 + $0x1f0] sm:$0xff] }
  0x65   : > { %v5485_v20 = vpop.eup %5484  ;;  %4263 = vst [vmem:[%s7706_s17 + $0xe8] sm:$0xff] %v3239_v13  ;;  %v3241_v21 = vmul.f32 0.4342945, %v1225_v14  ;;  %v1229_v22 = vmul.f32 0.6931472, %v5483_v16  ;;  %5510 = vlog2.f32 %v185_v11  ;;  %v201_v11 = vld [vmem:[%s7677_s30 + $0x1f8] sm:$0xff] }
  0x66   : > { %v5487_v24 = vpop.eup %5486  ;;  %4264 = vst [vmem:[%s7706_s17 + $0xf0] sm:$0xff] %v3240_v17  ;;  %v3242_v25 = vmul.f32 0.4342945, %v1227_v18  ;;  %v1231_v26 = vmul.f32 0.6931472, %v5485_v20  ;;  %5512 = vlog2.f32 %v186_v15  ;;  %v202_v15 = vld [vmem:[%s7677_s30 + $0x200] sm:$0xff] }
  0x67   : > { %v5489_v28 = vpop.eup %5488  ;;  %4265 = vst [vmem:[%s7706_s17 + $0xf8] sm:$0xff] %v3241_v21  ;;  %v3243_v29 = vmul.f32 0.4342945, %v1229_v22  ;;  %v1233_v30 = vmul.f32 0.6931472, %v5487_v24  ;;  %5514 = vlog2.f32 %v187_v19  ;;  %v203_v19 = vld [vmem:[%s7677_s30 + $0x208] sm:$0xff] }
  0x68   : > { %v5491_v32 = vpop.eup %5490  ;;  %4266 = vst [vmem:[%s7706_s17 + $0x100] sm:$0xff] %v3242_v25  ;;  %v3244_v33 = vmul.f32 0.4342945, %v1231_v26  ;;  %v1235_v34 = vmul.f32 0.6931472, %v5489_v28  ;;  %5516 = vlog2.f32 %v188_v23  ;;  %v204_v23 = vld [vmem:[%s7677_s30 + $0x210] sm:$0xff] }
  0x69   : > { %v5493_v36 = vpop.eup %5492  ;;  %4267 = vst [vmem:[%s7706_s17 + $0x108] sm:$0xff] %v3243_v29  ;;  %v3245_v37 = vmul.f32 0.4342945, %v1233_v30  ;;  %v1237_v38 = vmul.f32 0.6931472, %v5491_v32  ;;  %5518 = vlog2.f32 %v189_v27  ;;  %v205_v27 = vld [vmem:[%s7677_s30 + $0x218] sm:$0xff] }
  0x6a   : > { %v5495_v40 = vpop.eup %5494  ;;  %4268 = vst [vmem:[%s7706_s17 + $0x110] sm:$0xff] %v3244_v33  ;;  %v3246_v41 = vmul.f32 0.4342945, %v1235_v34  ;;  %v1239_v42 = vmul.f32 0.6931472, %v5493_v36  ;;  %5520 = vlog2.f32 %v190_v31  ;;  %v206_v31 = vld [vmem:[%s7677_s30 + $0x220] sm:$0xff] }
  0x6b   : > { %v5497_v44 = vpop.eup %5496  ;;  %4269 = vst [vmem:[%s7706_s17 + $0x118] sm:$0xff] %v3245_v37  ;;  %v3247_v45 = vmul.f32 0.4342945, %v1237_v38  ;;  %v1241_v46 = vmul.f32 0.6931472, %v5495_v40  ;;  %5522 = vlog2.f32 %v191_v35  ;;  %v207_v35 = vld [vmem:[%s7677_s30 + $0x228] sm:$0xff] }
  0x6c   : > { %v5499_v48 = vpop.eup %5498  ;;  %4270 = vst [vmem:[%s7706_s17 + $0x120] sm:$0xff] %v3246_v41  ;;  %v3248_v49 = vmul.f32 0.4342945, %v1239_v42  ;;  %v1243_v50 = vmul.f32 0.6931472, %v5497_v44  ;;  %5524 = vlog2.f32 %v192_v39  ;;  %v208_v39 = vld [vmem:[%s7677_s30 + $0x230] sm:$0xff] }
  0x6d   : > { %v5501_v52 = vpop.eup %5500  ;;  %4271 = vst [vmem:[%s7706_s17 + $0x128] sm:$0xff] %v3247_v45  ;;  %v3249_v53 = vmul.f32 0.4342945, %v1241_v46  ;;  %v1245_v54 = vmul.f32 0.6931472, %v5499_v48  ;;  %5526 = vlog2.f32 %v193_v43  ;;  %v209_v43 = vld [vmem:[%s7677_s30 + $0x238] sm:$0xff] }
  0x6e   : > { %v5503_v56 = vpop.eup %5502  ;;  %4272 = vst [vmem:[%s7706_s17 + $0x130] sm:$0xff] %v3248_v49  ;;  %v3250_v57 = vmul.f32 0.4342945, %v1243_v50  ;;  %v1247_v58 = vmul.f32 0.6931472, %v5501_v52  ;;  %5528 = vlog2.f32 %v194_v47  ;;  %v210_v47 = vld [vmem:[%s7677_s30 + $0x240] sm:$0xff] }
  0x6f   : > { %v5505_v60 = vpop.eup %5504  ;;  %4273 = vst [vmem:[%s7706_s17 + $0x138] sm:$0xff] %v3249_v53  ;;  %v3251_v61 = vmul.f32 0.4342945, %v1245_v54  ;;  %v1249_v62 = vmul.f32 0.6931472, %v5503_v56  ;;  %5530 = vlog2.f32 %v195_v51  ;;  %v211_v51 = vld [vmem:[%s7677_s30 + $0x248] sm:$0xff] }
  0x70   : > { %v5507_v0 = vpop.eup %5506  ;;  %4274 = vst [vmem:[%s7706_s17 + $0x140] sm:$0xff] %v3250_v57  ;;  %v3252_v1 = vmul.f32 0.4342945, %v1247_v58  ;;  %v1251_v2 = vmul.f32 0.6931472, %v5505_v60  ;;  %5532 = vlog2.f32 %v196_v55  ;;  %v212_v55 = vld [vmem:[%s7677_s30 + $0x250] sm:$0xff] }
  0x71   : > { %v5509_v4 = vpop.eup %5508  ;;  %4275 = vst [vmem:[%s7706_s17 + $0x148] sm:$0xff] %v3251_v61  ;;  %v3253_v5 = vmul.f32 0.4342945, %v1249_v62  ;;  %v1253_v6 = vmul.f32 0.6931472, %v5507_v0  ;;  %5534 = vlog2.f32 %v197_v59  ;;  %v213_v59 = vld [vmem:[%s7677_s30 + $0x258] sm:$0xff] }
  0x72   : > { %v5511_v8 = vpop.eup %5510  ;;  %4276 = vst [vmem:[%s7706_s17 + $0x150] sm:$0xff] %v3252_v1  ;;  %v3254_v9 = vmul.f32 0.4342945, %v1251_v2  ;;  %v1255_v10 = vmul.f32 0.6931472, %v5509_v4  ;;  %5536 = vlog2.f32 %v198_v63  ;;  %v214_v63 = vld [vmem:[%s7677_s30 + $0x260] sm:$0xff] }
  0x73   : > { %v5513_v12 = vpop.eup %5512  ;;  %4277 = vst [vmem:[%s7706_s17 + $0x158] sm:$0xff] %v3253_v5  ;;  %v3255_v13 = vmul.f32 0.4342945, %v1253_v6  ;;  %v1257_v14 = vmul.f32 0.6931472, %v5511_v8  ;;  %5538 = vlog2.f32 %v199_v3  ;;  %v215_v3 = vld [vmem:[%s7677_s30 + $0x268] sm:$0xff] }
  0x74   : > { %v5515_v16 = vpop.eup %5514  ;;  %4278 = vst [vmem:[%s7706_s17 + $0x160] sm:$0xff] %v3254_v9  ;;  %v3256_v17 = vmul.f32 0.4342945, %v1255_v10  ;;  %v1259_v18 = vmul.f32 0.6931472, %v5513_v12  ;;  %5540 = vlog2.f32 %v200_v7  ;;  %v216_v7 = vld [vmem:[%s7677_s30 + $0x270] sm:$0xff] }
  0x75   : > { %v5517_v20 = vpop.eup %5516  ;;  %4279 = vst [vmem:[%s7706_s17 + $0x168] sm:$0xff] %v3255_v13  ;;  %v3257_v21 = vmul.f32 0.4342945, %v1257_v14  ;;  %v1261_v22 = vmul.f32 0.6931472, %v5515_v16  ;;  %5542 = vlog2.f32 %v201_v11  ;;  %v217_v11 = vld [vmem:[%s7677_s30 + $0x278] sm:$0xff] }
  0x76   : > { %v5519_v24 = vpop.eup %5518  ;;  %4280 = vst [vmem:[%s7706_s17 + $0x170] sm:$0xff] %v3256_v17  ;;  %v3258_v25 = vmul.f32 0.4342945, %v1259_v18  ;;  %v1263_v26 = vmul.f32 0.6931472, %v5517_v20  ;;  %5544 = vlog2.f32 %v202_v15  ;;  %v218_v15 = vld [vmem:[%s7677_s30 + $0x280] sm:$0xff] }
  0x77   : > { %v5521_v28 = vpop.eup %5520  ;;  %4281 = vst [vmem:[%s7706_s17 + $0x178] sm:$0xff] %v3257_v21  ;;  %v3259_v29 = vmul.f32 0.4342945, %v1261_v22  ;;  %v1265_v30 = vmul.f32 0.6931472, %v5519_v24  ;;  %5546 = vlog2.f32 %v203_v19  ;;  %v219_v19 = vld [vmem:[%s7677_s30 + $0x288] sm:$0xff] }
  0x78   : > { %v5523_v32 = vpop.eup %5522  ;;  %4282 = vst [vmem:[%s7706_s17 + $0x180] sm:$0xff] %v3258_v25  ;;  %v3260_v33 = vmul.f32 0.4342945, %v1263_v26  ;;  %v1267_v34 = vmul.f32 0.6931472, %v5521_v28  ;;  %5548 = vlog2.f32 %v204_v23  ;;  %v220_v23 = vld [vmem:[%s7677_s30 + $0x290] sm:$0xff] }
  0x79   : > { %v5525_v36 = vpop.eup %5524  ;;  %4283 = vst [vmem:[%s7706_s17 + $0x188] sm:$0xff] %v3259_v29  ;;  %v3261_v37 = vmul.f32 0.4342945, %v1265_v30  ;;  %v1269_v38 = vmul.f32 0.6931472, %v5523_v32  ;;  %5550 = vlog2.f32 %v205_v27  ;;  %v221_v27 = vld [vmem:[%s7677_s30 + $0x298] sm:$0xff] }
  0x7a   : > { %v5527_v40 = vpop.eup %5526  ;;  %4284 = vst [vmem:[%s7706_s17 + $0x190] sm:$0xff] %v3260_v33  ;;  %v3262_v41 = vmul.f32 0.4342945, %v1267_v34  ;;  %v1271_v42 = vmul.f32 0.6931472, %v5525_v36  ;;  %5552 = vlog2.f32 %v206_v31  ;;  %v222_v31 = vld [vmem:[%s7677_s30 + $0x2a0] sm:$0xff] }
  0x7b   : > { %v5529_v44 = vpop.eup %5528  ;;  %4285 = vst [vmem:[%s7706_s17 + $0x198] sm:$0xff] %v3261_v37  ;;  %v3263_v45 = vmul.f32 0.4342945, %v1269_v38  ;;  %v1273_v46 = vmul.f32 0.6931472, %v5527_v40  ;;  %5554 = vlog2.f32 %v207_v35  ;;  %v223_v35 = vld [vmem:[%s7677_s30 + $0x2a8] sm:$0xff] }
  0x7c   : > { %v5531_v48 = vpop.eup %5530  ;;  %4286 = vst [vmem:[%s7706_s17 + $0x1a0] sm:$0xff] %v3262_v41  ;;  %v3264_v49 = vmul.f32 0.4342945, %v1271_v42  ;;  %v1275_v50 = vmul.f32 0.6931472, %v5529_v44  ;;  %5556 = vlog2.f32 %v208_v39  ;;  %v224_v39 = vld [vmem:[%s7677_s30 + $0x2b0] sm:$0xff] }
  0x7d   : > { %v5533_v52 = vpop.eup %5532  ;;  %4287 = vst [vmem:[%s7706_s17 + $0x1a8] sm:$0xff] %v3263_v45  ;;  %v3265_v53 = vmul.f32 0.4342945, %v1273_v46  ;;  %v1277_v54 = vmul.f32 0.6931472, %v5531_v48  ;;  %5558 = vlog2.f32 %v209_v43  ;;  %v225_v43 = vld [vmem:[%s7677_s30 + $0x2b8] sm:$0xff] }
  0x7e   : > { %v5535_v56 = vpop.eup %5534  ;;  %4288 = vst [vmem:[%s7706_s17 + $0x1b0] sm:$0xff] %v3264_v49  ;;  %v3266_v57 = vmul.f32 0.4342945, %v1275_v50  ;;  %v1279_v58 = vmul.f32 0.6931472, %v5533_v52  ;;  %5560 = vlog2.f32 %v210_v47  ;;  %v226_v47 = vld [vmem:[%s7677_s30 + $0x2c0] sm:$0xff] }
  0x7f   : > { %v5537_v60 = vpop.eup %5536  ;;  %4289 = vst [vmem:[%s7706_s17 + $0x1b8] sm:$0xff] %v3265_v53  ;;  %v3267_v61 = vmul.f32 0.4342945, %v1277_v54  ;;  %v1281_v62 = vmul.f32 0.6931472, %v5535_v56  ;;  %5562 = vlog2.f32 %v211_v51  ;;  %v227_v51 = vld [vmem:[%s7677_s30 + $0x2c8] sm:$0xff] }
  0x80   : > { %v5539_v0 = vpop.eup %5538  ;;  %4290 = vst [vmem:[%s7706_s17 + $0x1c0] sm:$0xff] %v3266_v57  ;;  %v3268_v1 = vmul.f32 0.4342945, %v1279_v58  ;;  %v1283_v2 = vmul.f32 0.6931472, %v5537_v60  ;;  %5564 = vlog2.f32 %v212_v55  ;;  %v228_v55 = vld [vmem:[%s7677_s30 + $0x2d0] sm:$0xff] }
  0x81   : > { %v5541_v4 = vpop.eup %5540  ;;  %4291 = vst [vmem:[%s7706_s17 + $0x1c8] sm:$0xff] %v3267_v61  ;;  %v3269_v5 = vmul.f32 0.4342945, %v1281_v62  ;;  %v1285_v6 = vmul.f32 0.6931472, %v5539_v0  ;;  %5566 = vlog2.f32 %v213_v59  ;;  %v229_v59 = vld [vmem:[%s7677_s30 + $0x2d8] sm:$0xff] }
  0x82   : > { %v5543_v8 = vpop.eup %5542  ;;  %4292 = vst [vmem:[%s7706_s17 + $0x1d0] sm:$0xff] %v3268_v1  ;;  %v3270_v9 = vmul.f32 0.4342945, %v1283_v2  ;;  %v1287_v10 = vmul.f32 0.6931472, %v5541_v4  ;;  %5568 = vlog2.f32 %v214_v63  ;;  %v230_v63 = vld [vmem:[%s7677_s30 + $0x2e0] sm:$0xff] }
  0x83   : > { %v5545_v12 = vpop.eup %5544  ;;  %4293 = vst [vmem:[%s7706_s17 + $0x1d8] sm:$0xff] %v3269_v5  ;;  %v3271_v13 = vmul.f32 0.4342945, %v1285_v6  ;;  %v1289_v14 = vmul.f32 0.6931472, %v5543_v8  ;;  %5570 = vlog2.f32 %v215_v3  ;;  %v231_v3 = vld [vmem:[%s7677_s30 + $0x2e8] sm:$0xff] }
  0x84   : > { %v5547_v16 = vpop.eup %5546  ;;  %4294 = vst [vmem:[%s7706_s17 + $0x1e0] sm:$0xff] %v3270_v9  ;;  %v3272_v17 = vmul.f32 0.4342945, %v1287_v10  ;;  %v1291_v18 = vmul.f32 0.6931472, %v5545_v12  ;;  %5572 = vlog2.f32 %v216_v7  ;;  %v232_v7 = vld [vmem:[%s7677_s30 + $0x2f0] sm:$0xff] }
  0x85   : > { %v5549_v20 = vpop.eup %5548  ;;  %4295 = vst [vmem:[%s7706_s17 + $0x1e8] sm:$0xff] %v3271_v13  ;;  %v3273_v21 = vmul.f32 0.4342945, %v1289_v14  ;;  %v1293_v22 = vmul.f32 0.6931472, %v5547_v16  ;;  %5574 = vlog2.f32 %v217_v11  ;;  %v233_v11 = vld [vmem:[%s7677_s30 + $0x2f8] sm:$0xff] }
  0x86   : > { %v5551_v24 = vpop.eup %5550  ;;  %4296 = vst [vmem:[%s7706_s17 + $0x1f0] sm:$0xff] %v3272_v17  ;;  %v3274_v25 = vmul.f32 0.4342945, %v1291_v18  ;;  %v1295_v26 = vmul.f32 0.6931472, %v5549_v20  ;;  %5576 = vlog2.f32 %v218_v15  ;;  %v234_v15 = vld [vmem:[%s7677_s30 + $0x300] sm:$0xff] }
  0x87   : > { %v5553_v28 = vpop.eup %5552  ;;  %4297 = vst [vmem:[%s7706_s17 + $0x1f8] sm:$0xff] %v3273_v21  ;;  %v3275_v29 = vmul.f32 0.4342945, %v1293_v22  ;;  %v1297_v30 = vmul.f32 0.6931472, %v5551_v24  ;;  %5578 = vlog2.f32 %v219_v19  ;;  %v235_v19 = vld [vmem:[%s7677_s30 + $0x308] sm:$0xff] }
  0x88   : > { %v5555_v32 = vpop.eup %5554  ;;  %4298 = vst [vmem:[%s7706_s17 + $0x200] sm:$0xff] %v3274_v25  ;;  %v3276_v33 = vmul.f32 0.4342945, %v1295_v26  ;;  %v1299_v34 = vmul.f32 0.6931472, %v5553_v28  ;;  %5580 = vlog2.f32 %v220_v23  ;;  %v236_v23 = vld [vmem:[%s7677_s30 + $0x310] sm:$0xff] }
  0x89   : > { %v5557_v36 = vpop.eup %5556  ;;  %4299 = vst [vmem:[%s7706_s17 + $0x208] sm:$0xff] %v3275_v29  ;;  %v3277_v37 = vmul.f32 0.4342945, %v1297_v30  ;;  %v1301_v38 = vmul.f32 0.6931472, %v5555_v32  ;;  %5582 = vlog2.f32 %v221_v27  ;;  %v237_v27 = vld [vmem:[%s7677_s30 + $0x318] sm:$0xff] }
  0x8a   : > { %v5559_v40 = vpop.eup %5558  ;;  %4300 = vst [vmem:[%s7706_s17 + $0x210] sm:$0xff] %v3276_v33  ;;  %v3278_v41 = vmul.f32 0.4342945, %v1299_v34  ;;  %v1303_v42 = vmul.f32 0.6931472, %v5557_v36  ;;  %5584 = vlog2.f32 %v222_v31  ;;  %v238_v31 = vld [vmem:[%s7677_s30 + $0x320] sm:$0xff] }
  0x8b   : > { %v5561_v44 = vpop.eup %5560  ;;  %4301 = vst [vmem:[%s7706_s17 + $0x218] sm:$0xff] %v3277_v37  ;;  %v3279_v45 = vmul.f32 0.4342945, %v1301_v38  ;;  %v1305_v46 = vmul.f32 0.6931472, %v5559_v40  ;;  %5586 = vlog2.f32 %v223_v35  ;;  %v239_v35 = vld [vmem:[%s7677_s30 + $0x328] sm:$0xff] }
  0x8c   : > { %v5563_v48 = vpop.eup %5562  ;;  %4302 = vst [vmem:[%s7706_s17 + $0x220] sm:$0xff] %v3278_v41  ;;  %v3280_v49 = vmul.f32 0.4342945, %v1303_v42  ;;  %v1307_v50 = vmul.f32 0.6931472, %v5561_v44  ;;  %5588 = vlog2.f32 %v224_v39  ;;  %v240_v39 = vld [vmem:[%s7677_s30 + $0x330] sm:$0xff] }
  0x8d   : > { %v5565_v52 = vpop.eup %5564  ;;  %4303 = vst [vmem:[%s7706_s17 + $0x228] sm:$0xff] %v3279_v45  ;;  %v3281_v53 = vmul.f32 0.4342945, %v1305_v46  ;;  %v1309_v54 = vmul.f32 0.6931472, %v5563_v48  ;;  %5590 = vlog2.f32 %v225_v43  ;;  %v241_v43 = vld [vmem:[%s7677_s30 + $0x338] sm:$0xff] }
  0x8e   : > { %v5567_v56 = vpop.eup %5566  ;;  %4304 = vst [vmem:[%s7706_s17 + $0x230] sm:$0xff] %v3280_v49  ;;  %v3282_v57 = vmul.f32 0.4342945, %v1307_v50  ;;  %v1311_v58 = vmul.f32 0.6931472, %v5565_v52  ;;  %5592 = vlog2.f32 %v226_v47  ;;  %v242_v47 = vld [vmem:[%s7677_s30 + $0x340] sm:$0xff] }
  0x8f   : > { %v5569_v60 = vpop.eup %5568  ;;  %4305 = vst [vmem:[%s7706_s17 + $0x238] sm:$0xff] %v3281_v53  ;;  %v3283_v61 = vmul.f32 0.4342945, %v1309_v54  ;;  %v1313_v62 = vmul.f32 0.6931472, %v5567_v56  ;;  %5594 = vlog2.f32 %v227_v51  ;;  %v243_v51 = vld [vmem:[%s7677_s30 + $0x348] sm:$0xff] }
  0x90   : > { %v5571_v0 = vpop.eup %5570  ;;  %4306 = vst [vmem:[%s7706_s17 + $0x240] sm:$0xff] %v3282_v57  ;;  %v3284_v1 = vmul.f32 0.4342945, %v1311_v58  ;;  %v1315_v2 = vmul.f32 0.6931472, %v5569_v60  ;;  %5596 = vlog2.f32 %v228_v55  ;;  %v244_v55 = vld [vmem:[%s7677_s30 + $0x350] sm:$0xff] }
  0x91   : > { %v5573_v4 = vpop.eup %5572  ;;  %4307 = vst [vmem:[%s7706_s17 + $0x248] sm:$0xff] %v3283_v61  ;;  %v3285_v5 = vmul.f32 0.4342945, %v1313_v62  ;;  %v1317_v6 = vmul.f32 0.6931472, %v5571_v0  ;;  %5598 = vlog2.f32 %v229_v59  ;;  %v245_v59 = vld [vmem:[%s7677_s30 + $0x358] sm:$0xff] }
  0x92   : > { %v5575_v8 = vpop.eup %5574  ;;  %4308 = vst [vmem:[%s7706_s17 + $0x250] sm:$0xff] %v3284_v1  ;;  %v3286_v9 = vmul.f32 0.4342945, %v1315_v2  ;;  %v1319_v10 = vmul.f32 0.6931472, %v5573_v4  ;;  %5600 = vlog2.f32 %v230_v63  ;;  %v246_v63 = vld [vmem:[%s7677_s30 + $0x360] sm:$0xff] }
  0x93   : > { %v5577_v12 = vpop.eup %5576  ;;  %4309 = vst [vmem:[%s7706_s17 + $0x258] sm:$0xff] %v3285_v5  ;;  %v3287_v13 = vmul.f32 0.4342945, %v1317_v6  ;;  %v1321_v14 = vmul.f32 0.6931472, %v5575_v8  ;;  %5602 = vlog2.f32 %v231_v3  ;;  %v247_v3 = vld [vmem:[%s7677_s30 + $0x368] sm:$0xff] }
  0x94   : > { %v5579_v16 = vpop.eup %5578  ;;  %4310 = vst [vmem:[%s7706_s17 + $0x260] sm:$0xff] %v3286_v9  ;;  %v3288_v17 = vmul.f32 0.4342945, %v1319_v10  ;;  %v1323_v18 = vmul.f32 0.6931472, %v5577_v12  ;;  %5604 = vlog2.f32 %v232_v7  ;;  %v248_v7 = vld [vmem:[%s7677_s30 + $0x370] sm:$0xff] }
  0x95   : > { %v5581_v20 = vpop.eup %5580  ;;  %4311 = vst [vmem:[%s7706_s17 + $0x268] sm:$0xff] %v3287_v13  ;;  %v3289_v21 = vmul.f32 0.4342945, %v1321_v14  ;;  %v1325_v22 = vmul.f32 0.6931472, %v5579_v16  ;;  %5606 = vlog2.f32 %v233_v11  ;;  %v249_v11 = vld [vmem:[%s7677_s30 + $0x378] sm:$0xff] }
  0x96   : > { %v5583_v24 = vpop.eup %5582  ;;  %4312 = vst [vmem:[%s7706_s17 + $0x270] sm:$0xff] %v3288_v17  ;;  %v3290_v25 = vmul.f32 0.4342945, %v1323_v18  ;;  %v1327_v26 = vmul.f32 0.6931472, %v5581_v20  ;;  %5608 = vlog2.f32 %v234_v15  ;;  %v250_v15 = vld [vmem:[%s7677_s30 + $0x380] sm:$0xff] }
  0x97   : > { %v5585_v28 = vpop.eup %5584  ;;  %4313 = vst [vmem:[%s7706_s17 + $0x278] sm:$0xff] %v3289_v21  ;;  %v3291_v29 = vmul.f32 0.4342945, %v1325_v22  ;;  %v1329_v30 = vmul.f32 0.6931472, %v5583_v24  ;;  %5610 = vlog2.f32 %v235_v19  ;;  %v251_v19 = vld [vmem:[%s7677_s30 + $0x388] sm:$0xff] }
  0x98   : > { %v5587_v32 = vpop.eup %5586  ;;  %4314 = vst [vmem:[%s7706_s17 + $0x280] sm:$0xff] %v3290_v25  ;;  %v3292_v33 = vmul.f32 0.4342945, %v1327_v26  ;;  %v1331_v34 = vmul.f32 0.6931472, %v5585_v28  ;;  %5612 = vlog2.f32 %v236_v23  ;;  %v252_v23 = vld [vmem:[%s7677_s30 + $0x390] sm:$0xff] }
  0x99   : > { %v5589_v36 = vpop.eup %5588  ;;  %4315 = vst [vmem:[%s7706_s17 + $0x288] sm:$0xff] %v3291_v29  ;;  %v3293_v37 = vmul.f32 0.4342945, %v1329_v30  ;;  %v1333_v38 = vmul.f32 0.6931472, %v5587_v32  ;;  %5614 = vlog2.f32 %v237_v27  ;;  %v253_v27 = vld [vmem:[%s7677_s30 + $0x398] sm:$0xff] }
  0x9a   : > { %v5591_v40 = vpop.eup %5590  ;;  %4316 = vst [vmem:[%s7706_s17 + $0x290] sm:$0xff] %v3292_v33  ;;  %v3294_v41 = vmul.f32 0.4342945, %v1331_v34  ;;  %v1335_v42 = vmul.f32 0.6931472, %v5589_v36  ;;  %5616 = vlog2.f32 %v238_v31  ;;  %v254_v31 = vld [vmem:[%s7677_s30 + $0x3a0] sm:$0xff] }
  0x9b   : > { %v5593_v44 = vpop.eup %5592  ;;  %4317 = vst [vmem:[%s7706_s17 + $0x298] sm:$0xff] %v3293_v37  ;;  %v3295_v45 = vmul.f32 0.4342945, %v1333_v38  ;;  %v1337_v46 = vmul.f32 0.6931472, %v5591_v40  ;;  %5618 = vlog2.f32 %v239_v35  ;;  %v255_v35 = vld [vmem:[%s7677_s30 + $0x3a8] sm:$0xff] }
  0x9c   : > { %v5595_v48 = vpop.eup %5594  ;;  %4318 = vst [vmem:[%s7706_s17 + $0x2a0] sm:$0xff] %v3294_v41  ;;  %v3296_v49 = vmul.f32 0.4342945, %v1335_v42  ;;  %v1339_v50 = vmul.f32 0.6931472, %v5593_v44  ;;  %5620 = vlog2.f32 %v240_v39  ;;  %v256_v39 = vld [vmem:[%s7677_s30 + $0x3b0] sm:$0xff] }
  0x9d   : > { %v5597_v52 = vpop.eup %5596  ;;  %4319 = vst [vmem:[%s7706_s17 + $0x2a8] sm:$0xff] %v3295_v45  ;;  %v3297_v53 = vmul.f32 0.4342945, %v1337_v46  ;;  %v1341_v54 = vmul.f32 0.6931472, %v5595_v48  ;;  %5622 = vlog2.f32 %v241_v43  ;;  %v257_v43 = vld [vmem:[%s7677_s30 + $0x3b8] sm:$0xff] }
  0x9e   : > { %v5599_v56 = vpop.eup %5598  ;;  %4320 = vst [vmem:[%s7706_s17 + $0x2b0] sm:$0xff] %v3296_v49  ;;  %v3298_v57 = vmul.f32 0.4342945, %v1339_v50  ;;  %v1343_v58 = vmul.f32 0.6931472, %v5597_v52  ;;  %5624 = vlog2.f32 %v242_v47  ;;  %v258_v47 = vld [vmem:[%s7677_s30 + $0x3c0] sm:$0xff] }
  0x9f   : > { %v5601_v60 = vpop.eup %5600  ;;  %4321 = vst [vmem:[%s7706_s17 + $0x2b8] sm:$0xff] %v3297_v53  ;;  %v3299_v61 = vmul.f32 0.4342945, %v1341_v54  ;;  %v1345_v62 = vmul.f32 0.6931472, %v5599_v56  ;;  %5626 = vlog2.f32 %v243_v51  ;;  %v259_v51 = vld [vmem:[%s7677_s30 + $0x3c8] sm:$0xff] }
  0xa0   : > { %v5603_v0 = vpop.eup %5602  ;;  %4322 = vst [vmem:[%s7706_s17 + $0x2c0] sm:$0xff] %v3298_v57  ;;  %v3300_v1 = vmul.f32 0.4342945, %v1343_v58  ;;  %v1347_v2 = vmul.f32 0.6931472, %v5601_v60  ;;  %5628 = vlog2.f32 %v244_v55  ;;  %v260_v55 = vld [vmem:[%s7677_s30 + $0x3d0] sm:$0xff] }
  0xa1   : > { %v5605_v4 = vpop.eup %5604  ;;  %4323 = vst [vmem:[%s7706_s17 + $0x2c8] sm:$0xff] %v3299_v61  ;;  %v3301_v5 = vmul.f32 0.4342945, %v1345_v62  ;;  %v1349_v6 = vmul.f32 0.6931472, %v5603_v0  ;;  %5630 = vlog2.f32 %v245_v59  ;;  %v261_v59 = vld [vmem:[%s7677_s30 + $0x3d8] sm:$0xff] }
  0xa2   : > { %v5607_v8 = vpop.eup %5606  ;;  %4324 = vst [vmem:[%s7706_s17 + $0x2d0] sm:$0xff] %v3300_v1  ;;  %v3302_v9 = vmul.f32 0.4342945, %v1347_v2  ;;  %v1351_v10 = vmul.f32 0.6931472, %v5605_v4  ;;  %5632 = vlog2.f32 %v246_v63  ;;  %v262_v63 = vld [vmem:[%s7677_s30 + $0x3e0] sm:$0xff] }
  0xa3   : > { %v5609_v12 = vpop.eup %5608  ;;  %4325 = vst [vmem:[%s7706_s17 + $0x2d8] sm:$0xff] %v3301_v5  ;;  %v3303_v13 = vmul.f32 0.4342945, %v1349_v6  ;;  %v1353_v14 = vmul.f32 0.6931472, %v5607_v8  ;;  %5634 = vlog2.f32 %v247_v3  ;;  %v263_v3 = vld [vmem:[%s7677_s30 + $0x3e8] sm:$0xff] }
  0xa4   : > { %v5611_v16 = vpop.eup %5610  ;;  %4326 = vst [vmem:[%s7706_s17 + $0x2e0] sm:$0xff] %v3302_v9  ;;  %v3304_v17 = vmul.f32 0.4342945, %v1351_v10  ;;  %v1355_v18 = vmul.f32 0.6931472, %v5609_v12  ;;  %5636 = vlog2.f32 %v248_v7  ;;  %v264_v7 = vld [vmem:[%s7677_s30 + $0x3f0] sm:$0xff] }
  0xa5   : > { %v5613_v20 = vpop.eup %5612  ;;  %4327 = vst [vmem:[%s7706_s17 + $0x2e8] sm:$0xff] %v3303_v13  ;;  %v3305_v21 = vmul.f32 0.4342945, %v1353_v14  ;;  %v1357_v22 = vmul.f32 0.6931472, %v5611_v16  ;;  %5638 = vlog2.f32 %v249_v11  ;;  %v265_v11 = vld [vmem:[%s7677_s30 + $0x3f8] sm:$0xff] }
  0xa6   : > { %v5615_v24 = vpop.eup %5614  ;;  %4328 = vst [vmem:[%s7706_s17 + $0x2f0] sm:$0xff] %v3304_v17  ;;  %v3306_v25 = vmul.f32 0.4342945, %v1355_v18  ;;  %v1359_v26 = vmul.f32 0.6931472, %v5613_v20  ;;  %5640 = vlog2.f32 %v250_v15  ;;  %v266_v15 = vld [vmem:[%s7677_s30 + $0x400] sm:$0xff] }
  0xa7   : > { %v5617_v28 = vpop.eup %5616  ;;  %4329 = vst [vmem:[%s7706_s17 + $0x2f8] sm:$0xff] %v3305_v21  ;;  %v3307_v29 = vmul.f32 0.4342945, %v1357_v22  ;;  %v1361_v30 = vmul.f32 0.6931472, %v5615_v24  ;;  %5642 = vlog2.f32 %v251_v19  ;;  %v267_v19 = vld [vmem:[%s7677_s30 + $0x408] sm:$0xff] }
  0xa8   : > { %v5619_v32 = vpop.eup %5618  ;;  %4330 = vst [vmem:[%s7706_s17 + $0x300] sm:$0xff] %v3306_v25  ;;  %v3308_v33 = vmul.f32 0.4342945, %v1359_v26  ;;  %v1363_v34 = vmul.f32 0.6931472, %v5617_v28  ;;  %5644 = vlog2.f32 %v252_v23  ;;  %v268_v23 = vld [vmem:[%s7677_s30 + $0x410] sm:$0xff] }
  0xa9   : > { %v5621_v36 = vpop.eup %5620  ;;  %4331 = vst [vmem:[%s7706_s17 + $0x308] sm:$0xff] %v3307_v29  ;;  %v3309_v37 = vmul.f32 0.4342945, %v1361_v30  ;;  %v1365_v38 = vmul.f32 0.6931472, %v5619_v32  ;;  %5646 = vlog2.f32 %v253_v27  ;;  %v269_v27 = vld [vmem:[%s7677_s30 + $0x418] sm:$0xff] }
  0xaa   : > { %v5623_v40 = vpop.eup %5622  ;;  %4332 = vst [vmem:[%s7706_s17 + $0x310] sm:$0xff] %v3308_v33  ;;  %v3310_v41 = vmul.f32 0.4342945, %v1363_v34  ;;  %v1367_v42 = vmul.f32 0.6931472, %v5621_v36  ;;  %5648 = vlog2.f32 %v254_v31  ;;  %v270_v31 = vld [vmem:[%s7677_s30 + $0x420] sm:$0xff] }
  0xab   : > { %v5625_v44 = vpop.eup %5624  ;;  %4333 = vst [vmem:[%s7706_s17 + $0x318] sm:$0xff] %v3309_v37  ;;  %v3311_v45 = vmul.f32 0.4342945, %v1365_v38  ;;  %v1369_v46 = vmul.f32 0.6931472, %v5623_v40  ;;  %5650 = vlog2.f32 %v255_v35  ;;  %v271_v35 = vld [vmem:[%s7677_s30 + $0x428] sm:$0xff] }
  0xac   : > { %v5627_v48 = vpop.eup %5626  ;;  %4334 = vst [vmem:[%s7706_s17 + $0x320] sm:$0xff] %v3310_v41  ;;  %v3312_v49 = vmul.f32 0.4342945, %v1367_v42  ;;  %v1371_v50 = vmul.f32 0.6931472, %v5625_v44  ;;  %5652 = vlog2.f32 %v256_v39  ;;  %v272_v39 = vld [vmem:[%s7677_s30 + $0x430] sm:$0xff] }
  0xad   : > { %v5629_v52 = vpop.eup %5628  ;;  %4335 = vst [vmem:[%s7706_s17 + $0x328] sm:$0xff] %v3311_v45  ;;  %v3313_v53 = vmul.f32 0.4342945, %v1369_v46  ;;  %v1373_v54 = vmul.f32 0.6931472, %v5627_v48  ;;  %5654 = vlog2.f32 %v257_v43  ;;  %v273_v43 = vld [vmem:[%s7677_s30 + $0x438] sm:$0xff] }
  0xae   : > { %v5631_v56 = vpop.eup %5630  ;;  %4336 = vst [vmem:[%s7706_s17 + $0x330] sm:$0xff] %v3312_v49  ;;  %v3314_v57 = vmul.f32 0.4342945, %v1371_v50  ;;  %v1375_v58 = vmul.f32 0.6931472, %v5629_v52  ;;  %5656 = vlog2.f32 %v258_v47  ;;  %v274_v47 = vld [vmem:[%s7677_s30 + $0x440] sm:$0xff] }
  0xaf   : > { %v5633_v60 = vpop.eup %5632  ;;  %4337 = vst [vmem:[%s7706_s17 + $0x338] sm:$0xff] %v3313_v53  ;;  %v3315_v61 = vmul.f32 0.4342945, %v1373_v54  ;;  %v1377_v62 = vmul.f32 0.6931472, %v5631_v56  ;;  %5658 = vlog2.f32 %v259_v51  ;;  %v275_v51 = vld [vmem:[%s7677_s30 + $0x448] sm:$0xff] }
  0xb0   : > { %v5635_v0 = vpop.eup %5634  ;;  %4338 = vst [vmem:[%s7706_s17 + $0x340] sm:$0xff] %v3314_v57  ;;  %v3316_v1 = vmul.f32 0.4342945, %v1375_v58  ;;  %v1379_v2 = vmul.f32 0.6931472, %v5633_v60  ;;  %5660 = vlog2.f32 %v260_v55  ;;  %v276_v55 = vld [vmem:[%s7677_s30 + $0x450] sm:$0xff] }
  0xb1   : > { %v5637_v4 = vpop.eup %5636  ;;  %4339 = vst [vmem:[%s7706_s17 + $0x348] sm:$0xff] %v3315_v61  ;;  %v3317_v5 = vmul.f32 0.4342945, %v1377_v62  ;;  %v1381_v6 = vmul.f32 0.6931472, %v5635_v0  ;;  %5662 = vlog2.f32 %v261_v59  ;;  %v277_v59 = vld [vmem:[%s7677_s30 + $0x458] sm:$0xff] }
  0xb2   : > { %v5639_v8 = vpop.eup %5638  ;;  %4340 = vst [vmem:[%s7706_s17 + $0x350] sm:$0xff] %v3316_v1  ;;  %v3318_v9 = vmul.f32 0.4342945, %v1379_v2  ;;  %v1383_v10 = vmul.f32 0.6931472, %v5637_v4  ;;  %5664 = vlog2.f32 %v262_v63  ;;  %v278_v63 = vld [vmem:[%s7677_s30 + $0x460] sm:$0xff] }
  0xb3   : > { %v5641_v12 = vpop.eup %5640  ;;  %4341 = vst [vmem:[%s7706_s17 + $0x358] sm:$0xff] %v3317_v5  ;;  %v3319_v13 = vmul.f32 0.4342945, %v1381_v6  ;;  %v1385_v14 = vmul.f32 0.6931472, %v5639_v8  ;;  %5666 = vlog2.f32 %v263_v3  ;;  %v279_v3 = vld [vmem:[%s7677_s30 + $0x468] sm:$0xff] }
  0xb4   : > { %v5643_v16 = vpop.eup %5642  ;;  %4342 = vst [vmem:[%s7706_s17 + $0x360] sm:$0xff] %v3318_v9  ;;  %v3320_v17 = vmul.f32 0.4342945, %v1383_v10  ;;  %v1387_v18 = vmul.f32 0.6931472, %v5641_v12  ;;  %5668 = vlog2.f32 %v264_v7  ;;  %v280_v7 = vld [vmem:[%s7677_s30 + $0x470] sm:$0xff] }
  0xb5   : > { %v5645_v20 = vpop.eup %5644  ;;  %4343 = vst [vmem:[%s7706_s17 + $0x368] sm:$0xff] %v3319_v13  ;;  %v3321_v21 = vmul.f32 0.4342945, %v1385_v14  ;;  %v1389_v22 = vmul.f32 0.6931472, %v5643_v16  ;;  %5670 = vlog2.f32 %v265_v11  ;;  %v281_v11 = vld [vmem:[%s7677_s30 + $0x478] sm:$0xff] }
  0xb6   : > { %v5647_v24 = vpop.eup %5646  ;;  %4344 = vst [vmem:[%s7706_s17 + $0x370] sm:$0xff] %v3320_v17  ;;  %v3322_v25 = vmul.f32 0.4342945, %v1387_v18  ;;  %v1391_v26 = vmul.f32 0.6931472, %v5645_v20  ;;  %5672 = vlog2.f32 %v266_v15  ;;  %v282_v15 = vld [vmem:[%s7677_s30 + $0x480] sm:$0xff] }
  0xb7   : > { %v5649_v28 = vpop.eup %5648  ;;  %4345 = vst [vmem:[%s7706_s17 + $0x378] sm:$0xff] %v3321_v21  ;;  %v3323_v29 = vmul.f32 0.4342945, %v1389_v22  ;;  %v1393_v30 = vmul.f32 0.6931472, %v5647_v24  ;;  %5674 = vlog2.f32 %v267_v19  ;;  %v283_v19 = vld [vmem:[%s7677_s30 + $0x488] sm:$0xff] }
  0xb8   : > { %v5651_v32 = vpop.eup %5650  ;;  %4346 = vst [vmem:[%s7706_s17 + $0x380] sm:$0xff] %v3322_v25  ;;  %v3324_v33 = vmul.f32 0.4342945, %v1391_v26  ;;  %v1395_v34 = vmul.f32 0.6931472, %v5649_v28  ;;  %5676 = vlog2.f32 %v268_v23  ;;  %v284_v23 = vld [vmem:[%s7677_s30 + $0x490] sm:$0xff] }
  0xb9   : > { %v5653_v36 = vpop.eup %5652  ;;  %4347 = vst [vmem:[%s7706_s17 + $0x388] sm:$0xff] %v3323_v29  ;;  %v3325_v37 = vmul.f32 0.4342945, %v1393_v30  ;;  %v1397_v38 = vmul.f32 0.6931472, %v5651_v32  ;;  %5678 = vlog2.f32 %v269_v27  ;;  %v285_v27 = vld [vmem:[%s7677_s30 + $0x498] sm:$0xff] }
  0xba   : > { %v5655_v40 = vpop.eup %5654  ;;  %4348 = vst [vmem:[%s7706_s17 + $0x390] sm:$0xff] %v3324_v33  ;;  %v3326_v41 = vmul.f32 0.4342945, %v1395_v34  ;;  %v1399_v42 = vmul.f32 0.6931472, %v5653_v36  ;;  %5680 = vlog2.f32 %v270_v31  ;;  %v286_v31 = vld [vmem:[%s7677_s30 + $0x4a0] sm:$0xff] }
  0xbb   : > { %v5657_v44 = vpop.eup %5656  ;;  %4349 = vst [vmem:[%s7706_s17 + $0x398] sm:$0xff] %v3325_v37  ;;  %v3327_v45 = vmul.f32 0.4342945, %v1397_v38  ;;  %v1401_v46 = vmul.f32 0.6931472, %v5655_v40  ;;  %5682 = vlog2.f32 %v271_v35  ;;  %v287_v35 = vld [vmem:[%s7677_s30 + $0x4a8] sm:$0xff] }
  0xbc   : > { %v5659_v48 = vpop.eup %5658  ;;  %4350 = vst [vmem:[%s7706_s17 + $0x3a0] sm:$0xff] %v3326_v41  ;;  %v3328_v49 = vmul.f32 0.4342945, %v1399_v42  ;;  %v1403_v50 = vmul.f32 0.6931472, %v5657_v44  ;;  %5684 = vlog2.f32 %v272_v39  ;;  %v288_v39 = vld [vmem:[%s7677_s30 + $0x4b0] sm:$0xff] }
  0xbd   : > { %v5661_v52 = vpop.eup %5660  ;;  %4351 = vst [vmem:[%s7706_s17 + $0x3a8] sm:$0xff] %v3327_v45  ;;  %v3329_v53 = vmul.f32 0.4342945, %v1401_v46  ;;  %v1405_v54 = vmul.f32 0.6931472, %v5659_v48  ;;  %5686 = vlog2.f32 %v273_v43  ;;  %v289_v43 = vld [vmem:[%s7677_s30 + $0x4b8] sm:$0xff] }
  0xbe   : > { %v5663_v56 = vpop.eup %5662  ;;  %4352 = vst [vmem:[%s7706_s17 + $0x3b0] sm:$0xff] %v3328_v49  ;;  %v3330_v57 = vmul.f32 0.4342945, %v1403_v50  ;;  %v1407_v58 = vmul.f32 0.6931472, %v5661_v52  ;;  %5688 = vlog2.f32 %v274_v47  ;;  %v290_v47 = vld [vmem:[%s7677_s30 + $0x4c0] sm:$0xff] }
  0xbf   : > { %v5665_v60 = vpop.eup %5664  ;;  %4353 = vst [vmem:[%s7706_s17 + $0x3b8] sm:$0xff] %v3329_v53  ;;  %v3331_v61 = vmul.f32 0.4342945, %v1405_v54  ;;  %v1409_v62 = vmul.f32 0.6931472, %v5663_v56  ;;  %5690 = vlog2.f32 %v275_v51  ;;  %v291_v51 = vld [vmem:[%s7677_s30 + $0x4c8] sm:$0xff] }
  0xc0   : > { %v5667_v0 = vpop.eup %5666  ;;  %4354 = vst [vmem:[%s7706_s17 + $0x3c0] sm:$0xff] %v3330_v57  ;;  %v3332_v1 = vmul.f32 0.4342945, %v1407_v58  ;;  %v1411_v2 = vmul.f32 0.6931472, %v5665_v60  ;;  %5692 = vlog2.f32 %v276_v55  ;;  %v292_v55 = vld [vmem:[%s7677_s30 + $0x4d0] sm:$0xff] }
  0xc1   : > { %v5669_v4 = vpop.eup %5668  ;;  %4355 = vst [vmem:[%s7706_s17 + $0x3c8] sm:$0xff] %v3331_v61  ;;  %v3333_v5 = vmul.f32 0.4342945, %v1409_v62  ;;  %v1413_v6 = vmul.f32 0.6931472, %v5667_v0  ;;  %5694 = vlog2.f32 %v277_v59  ;;  %v293_v59 = vld [vmem:[%s7677_s30 + $0x4d8] sm:$0xff] }
  0xc2   : > { %v5671_v8 = vpop.eup %5670  ;;  %4356 = vst [vmem:[%s7706_s17 + $0x3d0] sm:$0xff] %v3332_v1  ;;  %v3334_v9 = vmul.f32 0.4342945, %v1411_v2  ;;  %v1415_v10 = vmul.f32 0.6931472, %v5669_v4  ;;  %5696 = vlog2.f32 %v278_v63  ;;  %v294_v63 = vld [vmem:[%s7677_s30 + $0x4e0] sm:$0xff] }
  0xc3   : > { %v5673_v12 = vpop.eup %5672  ;;  %4357 = vst [vmem:[%s7706_s17 + $0x3d8] sm:$0xff] %v3333_v5  ;;  %v3335_v13 = vmul.f32 0.4342945, %v1413_v6  ;;  %v1417_v14 = vmul.f32 0.6931472, %v5671_v8  ;;  %5698 = vlog2.f32 %v279_v3  ;;  %v295_v3 = vld [vmem:[%s7677_s30 + $0x4e8] sm:$0xff] }
  0xc4   : > { %v5675_v16 = vpop.eup %5674  ;;  %4358 = vst [vmem:[%s7706_s17 + $0x3e0] sm:$0xff] %v3334_v9  ;;  %v3336_v17 = vmul.f32 0.4342945, %v1415_v10  ;;  %v1419_v18 = vmul.f32 0.6931472, %v5673_v12  ;;  %5700 = vlog2.f32 %v280_v7  ;;  %v296_v7 = vld [vmem:[%s7677_s30 + $0x4f0] sm:$0xff] }
  0xc5   : > { %v5677_v20 = vpop.eup %5676  ;;  %4359 = vst [vmem:[%s7706_s17 + $0x3e8] sm:$0xff] %v3335_v13  ;;  %v3337_v21 = vmul.f32 0.4342945, %v1417_v14  ;;  %v1421_v22 = vmul.f32 0.6931472, %v5675_v16  ;;  %5702 = vlog2.f32 %v281_v11  ;;  %v297_v11 = vld [vmem:[%s7677_s30 + $0x4f8] sm:$0xff] }
  0xc6   : > { %v5679_v24 = vpop.eup %5678  ;;  %4360 = vst [vmem:[%s7706_s17 + $0x3f0] sm:$0xff] %v3336_v17  ;;  %v3338_v25 = vmul.f32 0.4342945, %v1419_v18  ;;  %v1423_v26 = vmul.f32 0.6931472, %v5677_v20  ;;  %5704 = vlog2.f32 %v282_v15  ;;  %v298_v15 = vld [vmem:[%s7677_s30 + $0x500] sm:$0xff] }
  0xc7   : > { %v5681_v28 = vpop.eup %5680  ;;  %4361 = vst [vmem:[%s7706_s17 + $0x3f8] sm:$0xff] %v3337_v21  ;;  %v3339_v29 = vmul.f32 0.4342945, %v1421_v22  ;;  %v1425_v30 = vmul.f32 0.6931472, %v5679_v24  ;;  %5706 = vlog2.f32 %v283_v19  ;;  %v299_v19 = vld [vmem:[%s7677_s30 + $0x508] sm:$0xff] }
  0xc8   : > { %v5683_v32 = vpop.eup %5682  ;;  %4362 = vst [vmem:[%s7706_s17 + $0x400] sm:$0xff] %v3338_v25  ;;  %v3340_v33 = vmul.f32 0.4342945, %v1423_v26  ;;  %v1427_v34 = vmul.f32 0.6931472, %v5681_v28  ;;  %5708 = vlog2.f32 %v284_v23  ;;  %v300_v23 = vld [vmem:[%s7677_s30 + $0x510] sm:$0xff] }
  0xc9   : > { %v5685_v36 = vpop.eup %5684  ;;  %4363 = vst [vmem:[%s7706_s17 + $0x408] sm:$0xff] %v3339_v29  ;;  %v3341_v37 = vmul.f32 0.4342945, %v1425_v30  ;;  %v1429_v38 = vmul.f32 0.6931472, %v5683_v32  ;;  %5710 = vlog2.f32 %v285_v27  ;;  %v301_v27 = vld [vmem:[%s7677_s30 + $0x518] sm:$0xff] }
  0xca   : > { %v5687_v40 = vpop.eup %5686  ;;  %4364 = vst [vmem:[%s7706_s17 + $0x410] sm:$0xff] %v3340_v33  ;;  %v3342_v41 = vmul.f32 0.4342945, %v1427_v34  ;;  %v1431_v42 = vmul.f32 0.6931472, %v5685_v36  ;;  %5712 = vlog2.f32 %v286_v31  ;;  %v302_v31 = vld [vmem:[%s7677_s30 + $0x520] sm:$0xff] }
  0xcb   : > { %v5689_v44 = vpop.eup %5688  ;;  %4365 = vst [vmem:[%s7706_s17 + $0x418] sm:$0xff] %v3341_v37  ;;  %v3343_v45 = vmul.f32 0.4342945, %v1429_v38  ;;  %v1433_v46 = vmul.f32 0.6931472, %v5687_v40  ;;  %5714 = vlog2.f32 %v287_v35  ;;  %v303_v35 = vld [vmem:[%s7677_s30 + $0x528] sm:$0xff] }
  0xcc   : > { %v5691_v48 = vpop.eup %5690  ;;  %4366 = vst [vmem:[%s7706_s17 + $0x420] sm:$0xff] %v3342_v41  ;;  %v3344_v49 = vmul.f32 0.4342945, %v1431_v42  ;;  %v1435_v50 = vmul.f32 0.6931472, %v5689_v44  ;;  %5716 = vlog2.f32 %v288_v39  ;;  %v304_v39 = vld [vmem:[%s7677_s30 + $0x530] sm:$0xff] }
  0xcd   : > { %v5693_v52 = vpop.eup %5692  ;;  %4367 = vst [vmem:[%s7706_s17 + $0x428] sm:$0xff] %v3343_v45  ;;  %v3345_v53 = vmul.f32 0.4342945, %v1433_v46  ;;  %v1437_v54 = vmul.f32 0.6931472, %v5691_v48  ;;  %5718 = vlog2.f32 %v289_v43  ;;  %v305_v43 = vld [vmem:[%s7677_s30 + $0x538] sm:$0xff] }
  0xce   : > { %v5695_v56 = vpop.eup %5694  ;;  %4368 = vst [vmem:[%s7706_s17 + $0x430] sm:$0xff] %v3344_v49  ;;  %v3346_v57 = vmul.f32 0.4342945, %v1435_v50  ;;  %v1439_v58 = vmul.f32 0.6931472, %v5693_v52  ;;  %5720 = vlog2.f32 %v290_v47  ;;  %v306_v47 = vld [vmem:[%s7677_s30 + $0x540] sm:$0xff] }
  0xcf   : > { %v5697_v60 = vpop.eup %5696  ;;  %4369 = vst [vmem:[%s7706_s17 + $0x438] sm:$0xff] %v3345_v53  ;;  %v3347_v61 = vmul.f32 0.4342945, %v1437_v54  ;;  %v1441_v62 = vmul.f32 0.6931472, %v5695_v56  ;;  %5722 = vlog2.f32 %v291_v51  ;;  %v307_v51 = vld [vmem:[%s7677_s30 + $0x548] sm:$0xff] }
  0xd0   : > { %v5699_v0 = vpop.eup %5698  ;;  %4370 = vst [vmem:[%s7706_s17 + $0x440] sm:$0xff] %v3346_v57  ;;  %v3348_v1 = vmul.f32 0.4342945, %v1439_v58  ;;  %v1443_v2 = vmul.f32 0.6931472, %v5697_v60  ;;  %5724 = vlog2.f32 %v292_v55  ;;  %v308_v55 = vld [vmem:[%s7677_s30 + $0x550] sm:$0xff] }
  0xd1   : > { %v5701_v4 = vpop.eup %5700  ;;  %4371 = vst [vmem:[%s7706_s17 + $0x448] sm:$0xff] %v3347_v61  ;;  %v3349_v5 = vmul.f32 0.4342945, %v1441_v62  ;;  %v1445_v6 = vmul.f32 0.6931472, %v5699_v0  ;;  %5726 = vlog2.f32 %v293_v59  ;;  %v309_v59 = vld [vmem:[%s7677_s30 + $0x558] sm:$0xff] }
  0xd2   : > { %v5703_v8 = vpop.eup %5702  ;;  %4372 = vst [vmem:[%s7706_s17 + $0x450] sm:$0xff] %v3348_v1  ;;  %v3350_v9 = vmul.f32 0.4342945, %v1443_v2  ;;  %v1447_v10 = vmul.f32 0.6931472, %v5701_v4  ;;  %5728 = vlog2.f32 %v294_v63  ;;  %v310_v63 = vld [vmem:[%s7677_s30 + $0x560] sm:$0xff] }
  0xd3   : > { %v5705_v12 = vpop.eup %5704  ;;  %4373 = vst [vmem:[%s7706_s17 + $0x458] sm:$0xff] %v3349_v5  ;;  %v3351_v13 = vmul.f32 0.4342945, %v1445_v6  ;;  %v1449_v14 = vmul.f32 0.6931472, %v5703_v8  ;;  %5730 = vlog2.f32 %v295_v3  ;;  %v311_v3 = vld [vmem:[%s7677_s30 + $0x568] sm:$0xff] }
  0xd4   : > { %v5707_v16 = vpop.eup %5706  ;;  %4374 = vst [vmem:[%s7706_s17 + $0x460] sm:$0xff] %v3350_v9  ;;  %v3352_v17 = vmul.f32 0.4342945, %v1447_v10  ;;  %v1451_v18 = vmul.f32 0.6931472, %v5705_v12  ;;  %5732 = vlog2.f32 %v296_v7  ;;  %v312_v7 = vld [vmem:[%s7677_s30 + $0x570] sm:$0xff] }
  0xd5   : > { %v5709_v20 = vpop.eup %5708  ;;  %4375 = vst [vmem:[%s7706_s17 + $0x468] sm:$0xff] %v3351_v13  ;;  %v3353_v21 = vmul.f32 0.4342945, %v1449_v14  ;;  %v1453_v22 = vmul.f32 0.6931472, %v5707_v16  ;;  %5734 = vlog2.f32 %v297_v11  ;;  %v313_v11 = vld [vmem:[%s7677_s30 + $0x578] sm:$0xff] }
  0xd6   : > { %v5711_v24 = vpop.eup %5710  ;;  %4376 = vst [vmem:[%s7706_s17 + $0x470] sm:$0xff] %v3352_v17  ;;  %v3354_v25 = vmul.f32 0.4342945, %v1451_v18  ;;  %v1455_v26 = vmul.f32 0.6931472, %v5709_v20  ;;  %5736 = vlog2.f32 %v298_v15  ;;  %v314_v15 = vld [vmem:[%s7677_s30 + $0x580] sm:$0xff] }
  0xd7   : > { %v5713_v28 = vpop.eup %5712  ;;  %4377 = vst [vmem:[%s7706_s17 + $0x478] sm:$0xff] %v3353_v21  ;;  %v3355_v29 = vmul.f32 0.4342945, %v1453_v22  ;;  %v1457_v30 = vmul.f32 0.6931472, %v5711_v24  ;;  %5738 = vlog2.f32 %v299_v19  ;;  %v315_v19 = vld [vmem:[%s7677_s30 + $0x588] sm:$0xff] }
  0xd8   : > { %v5715_v32 = vpop.eup %5714  ;;  %4378 = vst [vmem:[%s7706_s17 + $0x480] sm:$0xff] %v3354_v25  ;;  %v3356_v33 = vmul.f32 0.4342945, %v1455_v26  ;;  %v1459_v34 = vmul.f32 0.6931472, %v5713_v28  ;;  %5740 = vlog2.f32 %v300_v23  ;;  %v316_v23 = vld [vmem:[%s7677_s30 + $0x590] sm:$0xff] }
  0xd9   : > { %v5717_v36 = vpop.eup %5716  ;;  %4379 = vst [vmem:[%s7706_s17 + $0x488] sm:$0xff] %v3355_v29  ;;  %v3357_v37 = vmul.f32 0.4342945, %v1457_v30  ;;  %v1461_v38 = vmul.f32 0.6931472, %v5715_v32  ;;  %5742 = vlog2.f32 %v301_v27  ;;  %v317_v27 = vld [vmem:[%s7677_s30 + $0x598] sm:$0xff] }
  0xda   : > { %v5719_v40 = vpop.eup %5718  ;;  %4380 = vst [vmem:[%s7706_s17 + $0x490] sm:$0xff] %v3356_v33  ;;  %v3358_v41 = vmul.f32 0.4342945, %v1459_v34  ;;  %v1463_v42 = vmul.f32 0.6931472, %v5717_v36  ;;  %5744 = vlog2.f32 %v302_v31  ;;  %v318_v31 = vld [vmem:[%s7677_s30 + $0x5a0] sm:$0xff] }
  0xdb   : > { %v5721_v44 = vpop.eup %5720  ;;  %4381 = vst [vmem:[%s7706_s17 + $0x498] sm:$0xff] %v3357_v37  ;;  %v3359_v45 = vmul.f32 0.4342945, %v1461_v38  ;;  %v1465_v46 = vmul.f32 0.6931472, %v5719_v40  ;;  %5746 = vlog2.f32 %v303_v35  ;;  %v319_v35 = vld [vmem:[%s7677_s30 + $0x5a8] sm:$0xff] }
  0xdc   : > { %v5723_v48 = vpop.eup %5722  ;;  %4382 = vst [vmem:[%s7706_s17 + $0x4a0] sm:$0xff] %v3358_v41  ;;  %v3360_v49 = vmul.f32 0.4342945, %v1463_v42  ;;  %v1467_v50 = vmul.f32 0.6931472, %v5721_v44  ;;  %5748 = vlog2.f32 %v304_v39  ;;  %v320_v39 = vld [vmem:[%s7677_s30 + $0x5b0] sm:$0xff] }
  0xdd   : > { %v5725_v52 = vpop.eup %5724  ;;  %4383 = vst [vmem:[%s7706_s17 + $0x4a8] sm:$0xff] %v3359_v45  ;;  %v3361_v53 = vmul.f32 0.4342945, %v1465_v46  ;;  %v1469_v54 = vmul.f32 0.6931472, %v5723_v48  ;;  %5750 = vlog2.f32 %v305_v43  ;;  %v321_v43 = vld [vmem:[%s7677_s30 + $0x5b8] sm:$0xff] }
  0xde   : > { %v5727_v56 = vpop.eup %5726  ;;  %4384 = vst [vmem:[%s7706_s17 + $0x4b0] sm:$0xff] %v3360_v49  ;;  %v3362_v57 = vmul.f32 0.4342945, %v1467_v50  ;;  %v1471_v58 = vmul.f32 0.6931472, %v5725_v52  ;;  %5752 = vlog2.f32 %v306_v47  ;;  %v322_v47 = vld [vmem:[%s7677_s30 + $0x5c0] sm:$0xff] }
  0xdf   : > { %v5729_v60 = vpop.eup %5728  ;;  %4385 = vst [vmem:[%s7706_s17 + $0x4b8] sm:$0xff] %v3361_v53  ;;  %v3363_v61 = vmul.f32 0.4342945, %v1469_v54  ;;  %v1473_v62 = vmul.f32 0.6931472, %v5727_v56  ;;  %5754 = vlog2.f32 %v307_v51  ;;  %v323_v51 = vld [vmem:[%s7677_s30 + $0x5c8] sm:$0xff] }
  0xe0   : > { %v5731_v0 = vpop.eup %5730  ;;  %4386 = vst [vmem:[%s7706_s17 + $0x4c0] sm:$0xff] %v3362_v57  ;;  %v3364_v1 = vmul.f32 0.4342945, %v1471_v58  ;;  %v1475_v2 = vmul.f32 0.6931472, %v5729_v60  ;;  %5756 = vlog2.f32 %v308_v55  ;;  %v324_v55 = vld [vmem:[%s7677_s30 + $0x5d0] sm:$0xff] }
  0xe1   : > { %v5733_v4 = vpop.eup %5732  ;;  %4387 = vst [vmem:[%s7706_s17 + $0x4c8] sm:$0xff] %v3363_v61  ;;  %v3365_v5 = vmul.f32 0.4342945, %v1473_v62  ;;  %v1477_v6 = vmul.f32 0.6931472, %v5731_v0  ;;  %5758 = vlog2.f32 %v309_v59  ;;  %v325_v59 = vld [vmem:[%s7677_s30 + $0x5d8] sm:$0xff] }
  0xe2   : > { %v5735_v8 = vpop.eup %5734  ;;  %4388 = vst [vmem:[%s7706_s17 + $0x4d0] sm:$0xff] %v3364_v1  ;;  %v3366_v9 = vmul.f32 0.4342945, %v1475_v2  ;;  %v1479_v10 = vmul.f32 0.6931472, %v5733_v4  ;;  %5760 = vlog2.f32 %v310_v63  ;;  %v326_v63 = vld [vmem:[%s7677_s30 + $0x5e0] sm:$0xff] }
  0xe3   : > { %v5737_v12 = vpop.eup %5736  ;;  %4389 = vst [vmem:[%s7706_s17 + $0x4d8] sm:$0xff] %v3365_v5  ;;  %v3367_v13 = vmul.f32 0.4342945, %v1477_v6  ;;  %v1481_v14 = vmul.f32 0.6931472, %v5735_v8  ;;  %5762 = vlog2.f32 %v311_v3  ;;  %v327_v3 = vld [vmem:[%s7677_s30 + $0x5e8] sm:$0xff] }
  0xe4   : > { %v5739_v16 = vpop.eup %5738  ;;  %4390 = vst [vmem:[%s7706_s17 + $0x4e0] sm:$0xff] %v3366_v9  ;;  %v3368_v17 = vmul.f32 0.4342945, %v1479_v10  ;;  %v1483_v18 = vmul.f32 0.6931472, %v5737_v12  ;;  %5764 = vlog2.f32 %v312_v7  ;;  %v328_v7 = vld [vmem:[%s7677_s30 + $0x5f0] sm:$0xff] }
  0xe5   : > { %v5741_v20 = vpop.eup %5740  ;;  %4391 = vst [vmem:[%s7706_s17 + $0x4e8] sm:$0xff] %v3367_v13  ;;  %v3369_v21 = vmul.f32 0.4342945, %v1481_v14  ;;  %v1485_v22 = vmul.f32 0.6931472, %v5739_v16  ;;  %5766 = vlog2.f32 %v313_v11  ;;  %v329_v11 = vld [vmem:[%s7677_s30 + $0x5f8] sm:$0xff] }
  0xe6   : > { %v5743_v24 = vpop.eup %5742  ;;  %4392 = vst [vmem:[%s7706_s17 + $0x4f0] sm:$0xff] %v3368_v17  ;;  %v3370_v25 = vmul.f32 0.4342945, %v1483_v18  ;;  %v1487_v26 = vmul.f32 0.6931472, %v5741_v20  ;;  %5768 = vlog2.f32 %v314_v15  ;;  %v330_v15 = vld [vmem:[%s7677_s30 + $0x600] sm:$0xff] }
  0xe7   : > { %v5745_v28 = vpop.eup %5744  ;;  %4393 = vst [vmem:[%s7706_s17 + $0x4f8] sm:$0xff] %v3369_v21  ;;  %v3371_v29 = vmul.f32 0.4342945, %v1485_v22  ;;  %v1489_v30 = vmul.f32 0.6931472, %v5743_v24  ;;  %5770 = vlog2.f32 %v315_v19  ;;  %v331_v19 = vld [vmem:[%s7677_s30 + $0x608] sm:$0xff] }
  0xe8   : > { %v5747_v32 = vpop.eup %5746  ;;  %4394 = vst [vmem:[%s7706_s17 + $0x500] sm:$0xff] %v3370_v25  ;;  %v3372_v33 = vmul.f32 0.4342945, %v1487_v26  ;;  %v1491_v34 = vmul.f32 0.6931472, %v5745_v28  ;;  %5772 = vlog2.f32 %v316_v23  ;;  %v332_v23 = vld [vmem:[%s7677_s30 + $0x610] sm:$0xff] }
  0xe9   : > { %v5749_v36 = vpop.eup %5748  ;;  %4395 = vst [vmem:[%s7706_s17 + $0x508] sm:$0xff] %v3371_v29  ;;  %v3373_v37 = vmul.f32 0.4342945, %v1489_v30  ;;  %v1493_v38 = vmul.f32 0.6931472, %v5747_v32  ;;  %5774 = vlog2.f32 %v317_v27  ;;  %v333_v27 = vld [vmem:[%s7677_s30 + $0x618] sm:$0xff] }
  0xea   : > { %v5751_v40 = vpop.eup %5750  ;;  %4396 = vst [vmem:[%s7706_s17 + $0x510] sm:$0xff] %v3372_v33  ;;  %v3374_v41 = vmul.f32 0.4342945, %v1491_v34  ;;  %v1495_v42 = vmul.f32 0.6931472, %v5749_v36  ;;  %5776 = vlog2.f32 %v318_v31  ;;  %v334_v31 = vld [vmem:[%s7677_s30 + $0x620] sm:$0xff] }
  0xeb   : > { %v5753_v44 = vpop.eup %5752  ;;  %4397 = vst [vmem:[%s7706_s17 + $0x518] sm:$0xff] %v3373_v37  ;;  %v3375_v45 = vmul.f32 0.4342945, %v1493_v38  ;;  %v1497_v46 = vmul.f32 0.6931472, %v5751_v40  ;;  %5778 = vlog2.f32 %v319_v35  ;;  %v335_v35 = vld [vmem:[%s7677_s30 + $0x628] sm:$0xff] }
  0xec   : > { %v5755_v48 = vpop.eup %5754  ;;  %4398 = vst [vmem:[%s7706_s17 + $0x520] sm:$0xff] %v3374_v41  ;;  %v3376_v49 = vmul.f32 0.4342945, %v1495_v42  ;;  %v1499_v50 = vmul.f32 0.6931472, %v5753_v44  ;;  %5780 = vlog2.f32 %v320_v39  ;;  %v336_v39 = vld [vmem:[%s7677_s30 + $0x630] sm:$0xff] }
  0xed   : > { %v5757_v52 = vpop.eup %5756  ;;  %4399 = vst [vmem:[%s7706_s17 + $0x528] sm:$0xff] %v3375_v45  ;;  %v3377_v53 = vmul.f32 0.4342945, %v1497_v46  ;;  %v1501_v54 = vmul.f32 0.6931472, %v5755_v48  ;;  %5782 = vlog2.f32 %v321_v43  ;;  %v337_v43 = vld [vmem:[%s7677_s30 + $0x638] sm:$0xff] }
  0xee   : > { %v5759_v56 = vpop.eup %5758  ;;  %4400 = vst [vmem:[%s7706_s17 + $0x530] sm:$0xff] %v3376_v49  ;;  %v3378_v57 = vmul.f32 0.4342945, %v1499_v50  ;;  %v1503_v58 = vmul.f32 0.6931472, %v5757_v52  ;;  %5784 = vlog2.f32 %v322_v47  ;;  %v338_v47 = vld [vmem:[%s7677_s30 + $0x640] sm:$0xff] }
  0xef   : > { %v5761_v60 = vpop.eup %5760  ;;  %4401 = vst [vmem:[%s7706_s17 + $0x538] sm:$0xff] %v3377_v53  ;;  %v3379_v61 = vmul.f32 0.4342945, %v1501_v54  ;;  %v1505_v62 = vmul.f32 0.6931472, %v5759_v56  ;;  %5786 = vlog2.f32 %v323_v51  ;;  %v339_v51 = vld [vmem:[%s7677_s30 + $0x648] sm:$0xff] }
  0xf0   : > { %v5763_v0 = vpop.eup %5762  ;;  %4402 = vst [vmem:[%s7706_s17 + $0x540] sm:$0xff] %v3378_v57  ;;  %v3380_v1 = vmul.f32 0.4342945, %v1503_v58  ;;  %v1507_v2 = vmul.f32 0.6931472, %v5761_v60  ;;  %5788 = vlog2.f32 %v324_v55  ;;  %v340_v55 = vld [vmem:[%s7677_s30 + $0x650] sm:$0xff] }
  0xf1   : > { %v5765_v4 = vpop.eup %5764  ;;  %4403 = vst [vmem:[%s7706_s17 + $0x548] sm:$0xff] %v3379_v61  ;;  %v3381_v5 = vmul.f32 0.4342945, %v1505_v62  ;;  %v1509_v6 = vmul.f32 0.6931472, %v5763_v0  ;;  %5790 = vlog2.f32 %v325_v59  ;;  %v341_v59 = vld [vmem:[%s7677_s30 + $0x658] sm:$0xff] }
  0xf2   : > { %v5767_v8 = vpop.eup %5766  ;;  %4404 = vst [vmem:[%s7706_s17 + $0x550] sm:$0xff] %v3380_v1  ;;  %v3382_v9 = vmul.f32 0.4342945, %v1507_v2  ;;  %v1511_v10 = vmul.f32 0.6931472, %v5765_v4  ;;  %5792 = vlog2.f32 %v326_v63  ;;  %v342_v63 = vld [vmem:[%s7677_s30 + $0x660] sm:$0xff] }
  0xf3   : > { %v5769_v12 = vpop.eup %5768  ;;  %4405 = vst [vmem:[%s7706_s17 + $0x558] sm:$0xff] %v3381_v5  ;;  %v3383_v13 = vmul.f32 0.4342945, %v1509_v6  ;;  %v1513_v14 = vmul.f32 0.6931472, %v5767_v8  ;;  %5794 = vlog2.f32 %v327_v3  ;;  %v343_v3 = vld [vmem:[%s7677_s30 + $0x668] sm:$0xff] }
  0xf4   : > { %v5771_v16 = vpop.eup %5770  ;;  %4406 = vst [vmem:[%s7706_s17 + $0x560] sm:$0xff] %v3382_v9  ;;  %v3384_v17 = vmul.f32 0.4342945, %v1511_v10  ;;  %v1515_v18 = vmul.f32 0.6931472, %v5769_v12  ;;  %5796 = vlog2.f32 %v328_v7  ;;  %v344_v7 = vld [vmem:[%s7677_s30 + $0x670] sm:$0xff] }
  0xf5   : > { %v5773_v20 = vpop.eup %5772  ;;  %4407 = vst [vmem:[%s7706_s17 + $0x568] sm:$0xff] %v3383_v13  ;;  %v3385_v21 = vmul.f32 0.4342945, %v1513_v14  ;;  %v1517_v22 = vmul.f32 0.6931472, %v5771_v16  ;;  %5798 = vlog2.f32 %v329_v11  ;;  %v345_v11 = vld [vmem:[%s7677_s30 + $0x678] sm:$0xff] }
  0xf6   : > { %v5775_v24 = vpop.eup %5774  ;;  %4408 = vst [vmem:[%s7706_s17 + $0x570] sm:$0xff] %v3384_v17  ;;  %v3386_v25 = vmul.f32 0.4342945, %v1515_v18  ;;  %v1519_v26 = vmul.f32 0.6931472, %v5773_v20  ;;  %5800 = vlog2.f32 %v330_v15  ;;  %v346_v15 = vld [vmem:[%s7677_s30 + $0x680] sm:$0xff] }
  0xf7   : > { %v5777_v28 = vpop.eup %5776  ;;  %4409 = vst [vmem:[%s7706_s17 + $0x578] sm:$0xff] %v3385_v21  ;;  %v3387_v29 = vmul.f32 0.4342945, %v1517_v22  ;;  %v1521_v30 = vmul.f32 0.6931472, %v5775_v24  ;;  %5802 = vlog2.f32 %v331_v19  ;;  %v347_v19 = vld [vmem:[%s7677_s30 + $0x688] sm:$0xff] }
  0xf8   : > { %v5779_v32 = vpop.eup %5778  ;;  %4410 = vst [vmem:[%s7706_s17 + $0x580] sm:$0xff] %v3386_v25  ;;  %v3388_v33 = vmul.f32 0.4342945, %v1519_v26  ;;  %v1523_v34 = vmul.f32 0.6931472, %v5777_v28  ;;  %5804 = vlog2.f32 %v332_v23  ;;  %v348_v23 = vld [vmem:[%s7677_s30 + $0x690] sm:$0xff] }
  0xf9   : > { %v5781_v36 = vpop.eup %5780  ;;  %4411 = vst [vmem:[%s7706_s17 + $0x588] sm:$0xff] %v3387_v29  ;;  %v3389_v37 = vmul.f32 0.4342945, %v1521_v30  ;;  %v1525_v38 = vmul.f32 0.6931472, %v5779_v32  ;;  %5806 = vlog2.f32 %v333_v27  ;;  %v349_v27 = vld [vmem:[%s7677_s30 + $0x698] sm:$0xff] }
  0xfa   : > { %v5783_v40 = vpop.eup %5782  ;;  %4412 = vst [vmem:[%s7706_s17 + $0x590] sm:$0xff] %v3388_v33  ;;  %v3390_v41 = vmul.f32 0.4342945, %v1523_v34  ;;  %v1527_v42 = vmul.f32 0.6931472, %v5781_v36  ;;  %5808 = vlog2.f32 %v334_v31  ;;  %v350_v31 = vld [vmem:[%s7677_s30 + $0x6a0] sm:$0xff] }
  0xfb   : > { %v5785_v44 = vpop.eup %5784  ;;  %4413 = vst [vmem:[%s7706_s17 + $0x598] sm:$0xff] %v3389_v37  ;;  %v3391_v45 = vmul.f32 0.4342945, %v1525_v38  ;;  %v1529_v46 = vmul.f32 0.6931472, %v5783_v40  ;;  %5810 = vlog2.f32 %v335_v35  ;;  %v351_v35 = vld [vmem:[%s7677_s30 + $0x6a8] sm:$0xff] }
  0xfc   : > { %v5787_v48 = vpop.eup %5786  ;;  %4414 = vst [vmem:[%s7706_s17 + $0x5a0] sm:$0xff] %v3390_v41  ;;  %v3392_v49 = vmul.f32 0.4342945, %v1527_v42  ;;  %v1531_v50 = vmul.f32 0.6931472, %v5785_v44  ;;  %5812 = vlog2.f32 %v336_v39  ;;  %v352_v39 = vld [vmem:[%s7677_s30 + $0x6b0] sm:$0xff] }
  0xfd   : > { %v5789_v52 = vpop.eup %5788  ;;  %4415 = vst [vmem:[%s7706_s17 + $0x5a8] sm:$0xff] %v3391_v45  ;;  %v3393_v53 = vmul.f32 0.4342945, %v1529_v46  ;;  %v1533_v54 = vmul.f32 0.6931472, %v5787_v48  ;;  %5814 = vlog2.f32 %v337_v43  ;;  %v353_v43 = vld [vmem:[%s7677_s30 + $0x6b8] sm:$0xff] }
  0xfe   : > { %v5791_v56 = vpop.eup %5790  ;;  %4416 = vst [vmem:[%s7706_s17 + $0x5b0] sm:$0xff] %v3392_v49  ;;  %v3394_v57 = vmul.f32 0.4342945, %v1531_v50  ;;  %v1535_v58 = vmul.f32 0.6931472, %v5789_v52  ;;  %5816 = vlog2.f32 %v338_v47  ;;  %v354_v47 = vld [vmem:[%s7677_s30 + $0x6c0] sm:$0xff] }
  0xff   : > { %v5793_v60 = vpop.eup %5792  ;;  %4417 = vst [vmem:[%s7706_s17 + $0x5b8] sm:$0xff] %v3393_v53  ;;  %v3395_v61 = vmul.f32 0.4342945, %v1533_v54  ;;  %v1537_v62 = vmul.f32 0.6931472, %v5791_v56  ;;  %5818 = vlog2.f32 %v339_v51  ;;  %v355_v51 = vld [vmem:[%s7677_s30 + $0x6c8] sm:$0xff] }
 0x100   : > { %v5795_v0 = vpop.eup %5794  ;;  %4418 = vst [vmem:[%s7706_s17 + $0x5c0] sm:$0xff] %v3394_v57  ;;  %v3396_v1 = vmul.f32 0.4342945, %v1535_v58  ;;  %v1539_v2 = vmul.f32 0.6931472, %v5793_v60  ;;  %5820 = vlog2.f32 %v340_v55  ;;  %v356_v55 = vld [vmem:[%s7677_s30 + $0x6d0] sm:$0xff] }
 0x101   : > { %v5797_v4 = vpop.eup %5796  ;;  %4419 = vst [vmem:[%s7706_s17 + $0x5c8] sm:$0xff] %v3395_v61  ;;  %v3397_v5 = vmul.f32 0.4342945, %v1537_v62  ;;  %v1541_v6 = vmul.f32 0.6931472, %v5795_v0  ;;  %5822 = vlog2.f32 %v341_v59  ;;  %v357_v59 = vld [vmem:[%s7677_s30 + $0x6d8] sm:$0xff] }
 0x102   : > { %v5799_v8 = vpop.eup %5798  ;;  %4420 = vst [vmem:[%s7706_s17 + $0x5d0] sm:$0xff] %v3396_v1  ;;  %v3398_v9 = vmul.f32 0.4342945, %v1539_v2  ;;  %v1543_v10 = vmul.f32 0.6931472, %v5797_v4  ;;  %5824 = vlog2.f32 %v342_v63  ;;  %v358_v63 = vld [vmem:[%s7677_s30 + $0x6e0] sm:$0xff] }
 0x103   : > { %v5801_v12 = vpop.eup %5800  ;;  %4421 = vst [vmem:[%s7706_s17 + $0x5d8] sm:$0xff] %v3397_v5  ;;  %v3399_v13 = vmul.f32 0.4342945, %v1541_v6  ;;  %v1545_v14 = vmul.f32 0.6931472, %v5799_v8  ;;  %5826 = vlog2.f32 %v343_v3  ;;  %v359_v3 = vld [vmem:[%s7677_s30 + $0x6e8] sm:$0xff] }
 0x104   : > { %v5803_v16 = vpop.eup %5802  ;;  %4422 = vst [vmem:[%s7706_s17 + $0x5e0] sm:$0xff] %v3398_v9  ;;  %v3400_v17 = vmul.f32 0.4342945, %v1543_v10  ;;  %v1547_v18 = vmul.f32 0.6931472, %v5801_v12  ;;  %5828 = vlog2.f32 %v344_v7  ;;  %v360_v7 = vld [vmem:[%s7677_s30 + $0x6f0] sm:$0xff] }
 0x105   : > { %v5805_v20 = vpop.eup %5804  ;;  %4423 = vst [vmem:[%s7706_s17 + $0x5e8] sm:$0xff] %v3399_v13  ;;  %v3401_v21 = vmul.f32 0.4342945, %v1545_v14  ;;  %v1549_v22 = vmul.f32 0.6931472, %v5803_v16  ;;  %5830 = vlog2.f32 %v345_v11  ;;  %v361_v11 = vld [vmem:[%s7677_s30 + $0x6f8] sm:$0xff] }
 0x106   : > { %v5807_v24 = vpop.eup %5806  ;;  %4424 = vst [vmem:[%s7706_s17 + $0x5f0] sm:$0xff] %v3400_v17  ;;  %v3402_v25 = vmul.f32 0.4342945, %v1547_v18  ;;  %v1551_v26 = vmul.f32 0.6931472, %v5805_v20  ;;  %5832 = vlog2.f32 %v346_v15  ;;  %v362_v15 = vld [vmem:[%s7677_s30 + $0x700] sm:$0xff] }
 0x107   : > { %v5809_v28 = vpop.eup %5808  ;;  %4425 = vst [vmem:[%s7706_s17 + $0x5f8] sm:$0xff] %v3401_v21  ;;  %v3403_v29 = vmul.f32 0.4342945, %v1549_v22  ;;  %v1553_v30 = vmul.f32 0.6931472, %v5807_v24  ;;  %5834 = vlog2.f32 %v347_v19  ;;  %v363_v19 = vld [vmem:[%s7677_s30 + $0x708] sm:$0xff] }
 0x108   : > { %v5811_v32 = vpop.eup %5810  ;;  %4426 = vst [vmem:[%s7706_s17 + $0x600] sm:$0xff] %v3402_v25  ;;  %v3404_v33 = vmul.f32 0.4342945, %v1551_v26  ;;  %v1555_v34 = vmul.f32 0.6931472, %v5809_v28  ;;  %5836 = vlog2.f32 %v348_v23  ;;  %v364_v23 = vld [vmem:[%s7677_s30 + $0x710] sm:$0xff] }
 0x109   : > { %v5813_v36 = vpop.eup %5812  ;;  %4427 = vst [vmem:[%s7706_s17 + $0x608] sm:$0xff] %v3403_v29  ;;  %v3405_v37 = vmul.f32 0.4342945, %v1553_v30  ;;  %v1557_v38 = vmul.f32 0.6931472, %v5811_v32  ;;  %5838 = vlog2.f32 %v349_v27  ;;  %v365_v27 = vld [vmem:[%s7677_s30 + $0x718] sm:$0xff] }
 0x10a   : > { %v5815_v40 = vpop.eup %5814  ;;  %4428 = vst [vmem:[%s7706_s17 + $0x610] sm:$0xff] %v3404_v33  ;;  %v3406_v41 = vmul.f32 0.4342945, %v1555_v34  ;;  %v1559_v42 = vmul.f32 0.6931472, %v5813_v36  ;;  %5840 = vlog2.f32 %v350_v31  ;;  %v366_v31 = vld [vmem:[%s7677_s30 + $0x720] sm:$0xff] }
 0x10b   : > { %v5817_v44 = vpop.eup %5816  ;;  %4429 = vst [vmem:[%s7706_s17 + $0x618] sm:$0xff] %v3405_v37  ;;  %v3407_v45 = vmul.f32 0.4342945, %v1557_v38  ;;  %v1561_v46 = vmul.f32 0.6931472, %v5815_v40  ;;  %5842 = vlog2.f32 %v351_v35  ;;  %v367_v35 = vld [vmem:[%s7677_s30 + $0x728] sm:$0xff] }
 0x10c   : > { %v5819_v48 = vpop.eup %5818  ;;  %4430 = vst [vmem:[%s7706_s17 + $0x620] sm:$0xff] %v3406_v41  ;;  %v3408_v49 = vmul.f32 0.4342945, %v1559_v42  ;;  %v1563_v50 = vmul.f32 0.6931472, %v5817_v44  ;;  %5844 = vlog2.f32 %v352_v39  ;;  %v368_v39 = vld [vmem:[%s7677_s30 + $0x730] sm:$0xff] }
 0x10d   : > { %v5821_v52 = vpop.eup %5820  ;;  %4431 = vst [vmem:[%s7706_s17 + $0x628] sm:$0xff] %v3407_v45  ;;  %v3409_v53 = vmul.f32 0.4342945, %v1561_v46  ;;  %v1565_v54 = vmul.f32 0.6931472, %v5819_v48  ;;  %5846 = vlog2.f32 %v353_v43  ;;  %v369_v43 = vld [vmem:[%s7677_s30 + $0x738] sm:$0xff] }
 0x10e   : > { %v5823_v56 = vpop.eup %5822  ;;  %4432 = vst [vmem:[%s7706_s17 + $0x630] sm:$0xff] %v3408_v49  ;;  %v3410_v57 = vmul.f32 0.4342945, %v1563_v50  ;;  %v1567_v58 = vmul.f32 0.6931472, %v5821_v52  ;;  %5848 = vlog2.f32 %v354_v47  ;;  %v370_v47 = vld [vmem:[%s7677_s30 + $0x740] sm:$0xff] }
 0x10f   : > { %v5825_v60 = vpop.eup %5824  ;;  %4433 = vst [vmem:[%s7706_s17 + $0x638] sm:$0xff] %v3409_v53  ;;  %v3411_v61 = vmul.f32 0.4342945, %v1565_v54  ;;  %v1569_v62 = vmul.f32 0.6931472, %v5823_v56  ;;  %5850 = vlog2.f32 %v355_v51  ;;  %v371_v51 = vld [vmem:[%s7677_s30 + $0x748] sm:$0xff] }
 0x110   : > { %v5827_v0 = vpop.eup %5826  ;;  %4434 = vst [vmem:[%s7706_s17 + $0x640] sm:$0xff] %v3410_v57  ;;  %v3412_v1 = vmul.f32 0.4342945, %v1567_v58  ;;  %v1571_v2 = vmul.f32 0.6931472, %v5825_v60  ;;  %5852 = vlog2.f32 %v356_v55  ;;  %v372_v55 = vld [vmem:[%s7677_s30 + $0x750] sm:$0xff] }
 0x111   : > { %v5829_v4 = vpop.eup %5828  ;;  %4435 = vst [vmem:[%s7706_s17 + $0x648] sm:$0xff] %v3411_v61  ;;  %v3413_v5 = vmul.f32 0.4342945, %v1569_v62  ;;  %v1573_v6 = vmul.f32 0.6931472, %v5827_v0  ;;  %5854 = vlog2.f32 %v357_v59  ;;  %v373_v59 = vld [vmem:[%s7677_s30 + $0x758] sm:$0xff] }
 0x112   : > { %v5831_v8 = vpop.eup %5830  ;;  %4436 = vst [vmem:[%s7706_s17 + $0x650] sm:$0xff] %v3412_v1  ;;  %v3414_v9 = vmul.f32 0.4342945, %v1571_v2  ;;  %v1575_v10 = vmul.f32 0.6931472, %v5829_v4  ;;  %5856 = vlog2.f32 %v358_v63  ;;  %v374_v63 = vld [vmem:[%s7677_s30 + $0x760] sm:$0xff] }
 0x113   : > { %v5833_v12 = vpop.eup %5832  ;;  %4437 = vst [vmem:[%s7706_s17 + $0x658] sm:$0xff] %v3413_v5  ;;  %v3415_v13 = vmul.f32 0.4342945, %v1573_v6  ;;  %v1577_v14 = vmul.f32 0.6931472, %v5831_v8  ;;  %5858 = vlog2.f32 %v359_v3  ;;  %v375_v3 = vld [vmem:[%s7677_s30 + $0x768] sm:$0xff] }
 0x114   : > { %v5835_v16 = vpop.eup %5834  ;;  %4438 = vst [vmem:[%s7706_s17 + $0x660] sm:$0xff] %v3414_v9  ;;  %v3416_v17 = vmul.f32 0.4342945, %v1575_v10  ;;  %v1579_v18 = vmul.f32 0.6931472, %v5833_v12  ;;  %5860 = vlog2.f32 %v360_v7  ;;  %v376_v7 = vld [vmem:[%s7677_s30 + $0x770] sm:$0xff] }
 0x115   : > { %v5837_v20 = vpop.eup %5836  ;;  %4439 = vst [vmem:[%s7706_s17 + $0x668] sm:$0xff] %v3415_v13  ;;  %v3417_v21 = vmul.f32 0.4342945, %v1577_v14  ;;  %v1581_v22 = vmul.f32 0.6931472, %v5835_v16  ;;  %5862 = vlog2.f32 %v361_v11  ;;  %v377_v11 = vld [vmem:[%s7677_s30 + $0x778] sm:$0xff] }
 0x116   : > { %v5839_v24 = vpop.eup %5838  ;;  %4440 = vst [vmem:[%s7706_s17 + $0x670] sm:$0xff] %v3416_v17  ;;  %v3418_v25 = vmul.f32 0.4342945, %v1579_v18  ;;  %v1583_v26 = vmul.f32 0.6931472, %v5837_v20  ;;  %5864 = vlog2.f32 %v362_v15  ;;  %v378_v15 = vld [vmem:[%s7677_s30 + $0x780] sm:$0xff] }
 0x117   : > { %v5841_v28 = vpop.eup %5840  ;;  %4441 = vst [vmem:[%s7706_s17 + $0x678] sm:$0xff] %v3417_v21  ;;  %v3419_v29 = vmul.f32 0.4342945, %v1581_v22  ;;  %v1585_v30 = vmul.f32 0.6931472, %v5839_v24  ;;  %5866 = vlog2.f32 %v363_v19  ;;  %v379_v19 = vld [vmem:[%s7677_s30 + $0x788] sm:$0xff] }
 0x118   : > { %v5843_v32 = vpop.eup %5842  ;;  %4442 = vst [vmem:[%s7706_s17 + $0x680] sm:$0xff] %v3418_v25  ;;  %v3420_v33 = vmul.f32 0.4342945, %v1583_v26  ;;  %v1587_v34 = vmul.f32 0.6931472, %v5841_v28  ;;  %5868 = vlog2.f32 %v364_v23  ;;  %v380_v23 = vld [vmem:[%s7677_s30 + $0x790] sm:$0xff] }
 0x119   : > { %v5845_v36 = vpop.eup %5844  ;;  %4443 = vst [vmem:[%s7706_s17 + $0x688] sm:$0xff] %v3419_v29  ;;  %v3421_v37 = vmul.f32 0.4342945, %v1585_v30  ;;  %v1589_v38 = vmul.f32 0.6931472, %v5843_v32  ;;  %5870 = vlog2.f32 %v365_v27  ;;  %v381_v27 = vld [vmem:[%s7677_s30 + $0x798] sm:$0xff] }
 0x11a   : > { %v5847_v40 = vpop.eup %5846  ;;  %4444 = vst [vmem:[%s7706_s17 + $0x690] sm:$0xff] %v3420_v33  ;;  %v3422_v41 = vmul.f32 0.4342945, %v1587_v34  ;;  %v1591_v42 = vmul.f32 0.6931472, %v5845_v36  ;;  %5872 = vlog2.f32 %v366_v31  ;;  %v382_v31 = vld [vmem:[%s7677_s30 + $0x7a0] sm:$0xff] }
 0x11b   : > { %v5849_v44 = vpop.eup %5848  ;;  %4445 = vst [vmem:[%s7706_s17 + $0x698] sm:$0xff] %v3421_v37  ;;  %v3423_v45 = vmul.f32 0.4342945, %v1589_v38  ;;  %v1593_v46 = vmul.f32 0.6931472, %v5847_v40  ;;  %5874 = vlog2.f32 %v367_v35  ;;  %v383_v35 = vld [vmem:[%s7677_s30 + $0x7a8] sm:$0xff] }
 0x11c   : > { %v5851_v48 = vpop.eup %5850  ;;  %4446 = vst [vmem:[%s7706_s17 + $0x6a0] sm:$0xff] %v3422_v41  ;;  %v3424_v49 = vmul.f32 0.4342945, %v1591_v42  ;;  %v1595_v50 = vmul.f32 0.6931472, %v5849_v44  ;;  %5876 = vlog2.f32 %v368_v39  ;;  %v384_v39 = vld [vmem:[%s7677_s30 + $0x7b0] sm:$0xff] }
 0x11d   : > { %v5853_v52 = vpop.eup %5852  ;;  %4447 = vst [vmem:[%s7706_s17 + $0x6a8] sm:$0xff] %v3423_v45  ;;  %v3425_v53 = vmul.f32 0.4342945, %v1593_v46  ;;  %v1597_v54 = vmul.f32 0.6931472, %v5851_v48  ;;  %5878 = vlog2.f32 %v369_v43  ;;  %v385_v43 = vld [vmem:[%s7677_s30 + $0x7b8] sm:$0xff] }
 0x11e   : > { %v5855_v56 = vpop.eup %5854  ;;  %4448 = vst [vmem:[%s7706_s17 + $0x6b0] sm:$0xff] %v3424_v49  ;;  %v3426_v57 = vmul.f32 0.4342945, %v1595_v50  ;;  %v1599_v58 = vmul.f32 0.6931472, %v5853_v52  ;;  %5880 = vlog2.f32 %v370_v47  ;;  %v386_v47 = vld [vmem:[%s7677_s30 + $0x7c0] sm:$0xff] }
 0x11f   : > { %v5857_v60 = vpop.eup %5856  ;;  %4449 = vst [vmem:[%s7706_s17 + $0x6b8] sm:$0xff] %v3425_v53  ;;  %v3427_v61 = vmul.f32 0.4342945, %v1597_v54  ;;  %v1601_v62 = vmul.f32 0.6931472, %v5855_v56  ;;  %5882 = vlog2.f32 %v371_v51  ;;  %v387_v51 = vld [vmem:[%s7677_s30 + $0x7c8] sm:$0xff] }
 0x120   : > { %v5859_v0 = vpop.eup %5858  ;;  %4450 = vst [vmem:[%s7706_s17 + $0x6c0] sm:$0xff] %v3426_v57  ;;  %v3428_v1 = vmul.f32 0.4342945, %v1599_v58  ;;  %v1603_v2 = vmul.f32 0.6931472, %v5857_v60  ;;  %5884 = vlog2.f32 %v372_v55  ;;  %v388_v55 = vld [vmem:[%s7677_s30 + $0x7d0] sm:$0xff] }
 0x121   : > { %v5861_v4 = vpop.eup %5860  ;;  %4451 = vst [vmem:[%s7706_s17 + $0x6c8] sm:$0xff] %v3427_v61  ;;  %v3429_v5 = vmul.f32 0.4342945, %v1601_v62  ;;  %v1605_v6 = vmul.f32 0.6931472, %v5859_v0  ;;  %5886 = vlog2.f32 %v373_v59  ;;  %v389_v59 = vld [vmem:[%s7677_s30 + $0x7d8] sm:$0xff] }
 0x122   : > { %v5863_v8 = vpop.eup %5862  ;;  %4452 = vst [vmem:[%s7706_s17 + $0x6d0] sm:$0xff] %v3428_v1  ;;  %v3430_v9 = vmul.f32 0.4342945, %v1603_v2  ;;  %v1607_v10 = vmul.f32 0.6931472, %v5861_v4  ;;  %5888 = vlog2.f32 %v374_v63  ;;  %v390_v63 = vld [vmem:[%s7677_s30 + $0x7e0] sm:$0xff] }
 0x123   : > { %v5865_v12 = vpop.eup %5864  ;;  %4453 = vst [vmem:[%s7706_s17 + $0x6d8] sm:$0xff] %v3429_v5  ;;  %v3431_v13 = vmul.f32 0.4342945, %v1605_v6  ;;  %v1609_v14 = vmul.f32 0.6931472, %v5863_v8  ;;  %5890 = vlog2.f32 %v375_v3  ;;  %v391_v3 = vld [vmem:[%s7677_s30 + $0x7e8] sm:$0xff] }
 0x124   : > { %v5867_v16 = vpop.eup %5866  ;;  %4454 = vst [vmem:[%s7706_s17 + $0x6e0] sm:$0xff] %v3430_v9  ;;  %v3432_v17 = vmul.f32 0.4342945, %v1607_v10  ;;  %v1611_v18 = vmul.f32 0.6931472, %v5865_v12  ;;  %5892 = vlog2.f32 %v376_v7  ;;  %v392_v7 = vld [vmem:[%s7677_s30 + $0x7f0] sm:$0xff] }
 0x125   : > { %v5869_v20 = vpop.eup %5868  ;;  %4455 = vst [vmem:[%s7706_s17 + $0x6e8] sm:$0xff] %v3431_v13  ;;  %v3433_v21 = vmul.f32 0.4342945, %v1609_v14  ;;  %v1613_v22 = vmul.f32 0.6931472, %v5867_v16  ;;  %5894 = vlog2.f32 %v377_v11  ;;  %v393_v11 = vld [vmem:[%s7677_s30 + $0x7f8] sm:$0xff] }
 0x126   : > { %v5871_v24 = vpop.eup %5870  ;;  %4456 = vst [vmem:[%s7706_s17 + $0x6f0] sm:$0xff] %v3432_v17  ;;  %v3434_v25 = vmul.f32 0.4342945, %v1611_v18  ;;  %v1615_v26 = vmul.f32 0.6931472, %v5869_v20  ;;  %5896 = vlog2.f32 %v378_v15  ;;  %v394_v15 = vld [vmem:[%s7677_s30 + $0x800] sm:$0xff] }
 0x127   : > { %v5873_v28 = vpop.eup %5872  ;;  %4457 = vst [vmem:[%s7706_s17 + $0x6f8] sm:$0xff] %v3433_v21  ;;  %v3435_v29 = vmul.f32 0.4342945, %v1613_v22  ;;  %v1617_v30 = vmul.f32 0.6931472, %v5871_v24  ;;  %5898 = vlog2.f32 %v379_v19  ;;  %v395_v19 = vld [vmem:[%s7677_s30 + $0x808] sm:$0xff] }
 0x128   : > { %v5875_v32 = vpop.eup %5874  ;;  %4458 = vst [vmem:[%s7706_s17 + $0x700] sm:$0xff] %v3434_v25  ;;  %v3436_v33 = vmul.f32 0.4342945, %v1615_v26  ;;  %v1619_v34 = vmul.f32 0.6931472, %v5873_v28  ;;  %5900 = vlog2.f32 %v380_v23  ;;  %v396_v23 = vld [vmem:[%s7677_s30 + $0x810] sm:$0xff] }
 0x129   : > { %v5877_v36 = vpop.eup %5876  ;;  %4459 = vst [vmem:[%s7706_s17 + $0x708] sm:$0xff] %v3435_v29  ;;  %v3437_v37 = vmul.f32 0.4342945, %v1617_v30  ;;  %v1621_v38 = vmul.f32 0.6931472, %v5875_v32  ;;  %5902 = vlog2.f32 %v381_v27  ;;  %v397_v27 = vld [vmem:[%s7677_s30 + $0x818] sm:$0xff] }
 0x12a   : > { %v5879_v40 = vpop.eup %5878  ;;  %4460 = vst [vmem:[%s7706_s17 + $0x710] sm:$0xff] %v3436_v33  ;;  %v3438_v41 = vmul.f32 0.4342945, %v1619_v34  ;;  %v1623_v42 = vmul.f32 0.6931472, %v5877_v36  ;;  %5904 = vlog2.f32 %v382_v31  ;;  %v398_v31 = vld [vmem:[%s7677_s30 + $0x820] sm:$0xff] }
 0x12b   : > { %v5881_v44 = vpop.eup %5880  ;;  %4461 = vst [vmem:[%s7706_s17 + $0x718] sm:$0xff] %v3437_v37  ;;  %v3439_v45 = vmul.f32 0.4342945, %v1621_v38  ;;  %v1625_v46 = vmul.f32 0.6931472, %v5879_v40  ;;  %5906 = vlog2.f32 %v383_v35  ;;  %v399_v35 = vld [vmem:[%s7677_s30 + $0x828] sm:$0xff] }
 0x12c   : > { %v5883_v48 = vpop.eup %5882  ;;  %4462 = vst [vmem:[%s7706_s17 + $0x720] sm:$0xff] %v3438_v41  ;;  %v3440_v49 = vmul.f32 0.4342945, %v1623_v42  ;;  %v1627_v50 = vmul.f32 0.6931472, %v5881_v44  ;;  %5908 = vlog2.f32 %v384_v39  ;;  %v400_v39 = vld [vmem:[%s7677_s30 + $0x830] sm:$0xff] }
 0x12d   : > { %v5885_v52 = vpop.eup %5884  ;;  %4463 = vst [vmem:[%s7706_s17 + $0x728] sm:$0xff] %v3439_v45  ;;  %v3441_v53 = vmul.f32 0.4342945, %v1625_v46  ;;  %v1629_v54 = vmul.f32 0.6931472, %v5883_v48  ;;  %5910 = vlog2.f32 %v385_v43  ;;  %v401_v43 = vld [vmem:[%s7677_s30 + $0x838] sm:$0xff] }
 0x12e   : > { %v5887_v56 = vpop.eup %5886  ;;  %4464 = vst [vmem:[%s7706_s17 + $0x730] sm:$0xff] %v3440_v49  ;;  %v3442_v57 = vmul.f32 0.4342945, %v1627_v50  ;;  %v1631_v58 = vmul.f32 0.6931472, %v5885_v52  ;;  %5912 = vlog2.f32 %v386_v47  ;;  %v402_v47 = vld [vmem:[%s7677_s30 + $0x840] sm:$0xff] }
 0x12f   : > { %v5889_v60 = vpop.eup %5888  ;;  %4465 = vst [vmem:[%s7706_s17 + $0x738] sm:$0xff] %v3441_v53  ;;  %v3443_v61 = vmul.f32 0.4342945, %v1629_v54  ;;  %v1633_v62 = vmul.f32 0.6931472, %v5887_v56  ;;  %5914 = vlog2.f32 %v387_v51  ;;  %v403_v51 = vld [vmem:[%s7677_s30 + $0x848] sm:$0xff] }
 0x130   : > { %v5891_v0 = vpop.eup %5890  ;;  %4466 = vst [vmem:[%s7706_s17 + $0x740] sm:$0xff] %v3442_v57  ;;  %v3444_v1 = vmul.f32 0.4342945, %v1631_v58  ;;  %v1635_v2 = vmul.f32 0.6931472, %v5889_v60  ;;  %5916 = vlog2.f32 %v388_v55  ;;  %v404_v55 = vld [vmem:[%s7677_s30 + $0x850] sm:$0xff] }
 0x131   : > { %v5893_v4 = vpop.eup %5892  ;;  %4467 = vst [vmem:[%s7706_s17 + $0x748] sm:$0xff] %v3443_v61  ;;  %v3445_v5 = vmul.f32 0.4342945, %v1633_v62  ;;  %v1637_v6 = vmul.f32 0.6931472, %v5891_v0  ;;  %5918 = vlog2.f32 %v389_v59  ;;  %v405_v59 = vld [vmem:[%s7677_s30 + $0x858] sm:$0xff] }
 0x132   : > { %v5895_v8 = vpop.eup %5894  ;;  %4468 = vst [vmem:[%s7706_s17 + $0x750] sm:$0xff] %v3444_v1  ;;  %v3446_v9 = vmul.f32 0.4342945, %v1635_v2  ;;  %v1639_v10 = vmul.f32 0.6931472, %v5893_v4  ;;  %5920 = vlog2.f32 %v390_v63  ;;  %v406_v63 = vld [vmem:[%s7677_s30 + $0x860] sm:$0xff] }
 0x133   : > { %v5897_v12 = vpop.eup %5896  ;;  %4469 = vst [vmem:[%s7706_s17 + $0x758] sm:$0xff] %v3445_v5  ;;  %v3447_v13 = vmul.f32 0.4342945, %v1637_v6  ;;  %v1641_v14 = vmul.f32 0.6931472, %v5895_v8  ;;  %5922 = vlog2.f32 %v391_v3  ;;  %v407_v3 = vld [vmem:[%s7677_s30 + $0x868] sm:$0xff] }
 0x134   : > { %v5899_v16 = vpop.eup %5898  ;;  %4470 = vst [vmem:[%s7706_s17 + $0x760] sm:$0xff] %v3446_v9  ;;  %v3448_v17 = vmul.f32 0.4342945, %v1639_v10  ;;  %v1643_v18 = vmul.f32 0.6931472, %v5897_v12  ;;  %5924 = vlog2.f32 %v392_v7  ;;  %v408_v7 = vld [vmem:[%s7677_s30 + $0x870] sm:$0xff] }
 0x135   : > { %v5901_v20 = vpop.eup %5900  ;;  %4471 = vst [vmem:[%s7706_s17 + $0x768] sm:$0xff] %v3447_v13  ;;  %v3449_v21 = vmul.f32 0.4342945, %v1641_v14  ;;  %v1645_v22 = vmul.f32 0.6931472, %v5899_v16  ;;  %5926 = vlog2.f32 %v393_v11  ;;  %v409_v11 = vld [vmem:[%s7677_s30 + $0x878] sm:$0xff] }
 0x136   : > { %v5903_v24 = vpop.eup %5902  ;;  %4472 = vst [vmem:[%s7706_s17 + $0x770] sm:$0xff] %v3448_v17  ;;  %v3450_v25 = vmul.f32 0.4342945, %v1643_v18  ;;  %v1647_v26 = vmul.f32 0.6931472, %v5901_v20  ;;  %5928 = vlog2.f32 %v394_v15  ;;  %v410_v15 = vld [vmem:[%s7677_s30 + $0x880] sm:$0xff] }
 0x137   : > { %v5905_v28 = vpop.eup %5904  ;;  %4473 = vst [vmem:[%s7706_s17 + $0x778] sm:$0xff] %v3449_v21  ;;  %v3451_v29 = vmul.f32 0.4342945, %v1645_v22  ;;  %v1649_v30 = vmul.f32 0.6931472, %v5903_v24  ;;  %5930 = vlog2.f32 %v395_v19  ;;  %v411_v19 = vld [vmem:[%s7677_s30 + $0x888] sm:$0xff] }
 0x138   : > { %v5907_v32 = vpop.eup %5906  ;;  %4474 = vst [vmem:[%s7706_s17 + $0x780] sm:$0xff] %v3450_v25  ;;  %v3452_v33 = vmul.f32 0.4342945, %v1647_v26  ;;  %v1651_v34 = vmul.f32 0.6931472, %v5905_v28  ;;  %5932 = vlog2.f32 %v396_v23  ;;  %v412_v23 = vld [vmem:[%s7677_s30 + $0x890] sm:$0xff] }
 0x139   : > { %v5909_v36 = vpop.eup %5908  ;;  %4475 = vst [vmem:[%s7706_s17 + $0x788] sm:$0xff] %v3451_v29  ;;  %v3453_v37 = vmul.f32 0.4342945, %v1649_v30  ;;  %v1653_v38 = vmul.f32 0.6931472, %v5907_v32  ;;  %5934 = vlog2.f32 %v397_v27  ;;  %v413_v27 = vld [vmem:[%s7677_s30 + $0x898] sm:$0xff] }
 0x13a   : > { %v5911_v40 = vpop.eup %5910  ;;  %4476 = vst [vmem:[%s7706_s17 + $0x790] sm:$0xff] %v3452_v33  ;;  %v3454_v41 = vmul.f32 0.4342945, %v1651_v34  ;;  %v1655_v42 = vmul.f32 0.6931472, %v5909_v36  ;;  %5936 = vlog2.f32 %v398_v31  ;;  %v414_v31 = vld [vmem:[%s7677_s30 + $0x8a0] sm:$0xff] }
 0x13b   : > { %v5913_v44 = vpop.eup %5912  ;;  %4477 = vst [vmem:[%s7706_s17 + $0x798] sm:$0xff] %v3453_v37  ;;  %v3455_v45 = vmul.f32 0.4342945, %v1653_v38  ;;  %v1657_v46 = vmul.f32 0.6931472, %v5911_v40  ;;  %5938 = vlog2.f32 %v399_v35  ;;  %v415_v35 = vld [vmem:[%s7677_s30 + $0x8a8] sm:$0xff] }
 0x13c   : > { %v5915_v48 = vpop.eup %5914  ;;  %4478 = vst [vmem:[%s7706_s17 + $0x7a0] sm:$0xff] %v3454_v41  ;;  %v3456_v49 = vmul.f32 0.4342945, %v1655_v42  ;;  %v1659_v50 = vmul.f32 0.6931472, %v5913_v44  ;;  %5940 = vlog2.f32 %v400_v39  ;;  %v416_v39 = vld [vmem:[%s7677_s30 + $0x8b0] sm:$0xff] }
 0x13d   : > { %v5917_v52 = vpop.eup %5916  ;;  %4479 = vst [vmem:[%s7706_s17 + $0x7a8] sm:$0xff] %v3455_v45  ;;  %v3457_v53 = vmul.f32 0.4342945, %v1657_v46  ;;  %v1661_v54 = vmul.f32 0.6931472, %v5915_v48  ;;  %5942 = vlog2.f32 %v401_v43  ;;  %v417_v43 = vld [vmem:[%s7677_s30 + $0x8b8] sm:$0xff] }
 0x13e   : > { %v5919_v56 = vpop.eup %5918  ;;  %4480 = vst [vmem:[%s7706_s17 + $0x7b0] sm:$0xff] %v3456_v49  ;;  %v3458_v57 = vmul.f32 0.4342945, %v1659_v50  ;;  %v1663_v58 = vmul.f32 0.6931472, %v5917_v52  ;;  %5944 = vlog2.f32 %v402_v47  ;;  %v418_v47 = vld [vmem:[%s7677_s30 + $0x8c0] sm:$0xff] }
 0x13f   : > { %v5921_v60 = vpop.eup %5920  ;;  %4481 = vst [vmem:[%s7706_s17 + $0x7b8] sm:$0xff] %v3457_v53  ;;  %v3459_v61 = vmul.f32 0.4342945, %v1661_v54  ;;  %v1665_v62 = vmul.f32 0.6931472, %v5919_v56  ;;  %5946 = vlog2.f32 %v403_v51  ;;  %v419_v51 = vld [vmem:[%s7677_s30 + $0x8c8] sm:$0xff] }
 0x140   : > { %v5923_v0 = vpop.eup %5922  ;;  %4482 = vst [vmem:[%s7706_s17 + $0x7c0] sm:$0xff] %v3458_v57  ;;  %v3460_v1 = vmul.f32 0.4342945, %v1663_v58  ;;  %v1667_v2 = vmul.f32 0.6931472, %v5921_v60  ;;  %5948 = vlog2.f32 %v404_v55  ;;  %v420_v55 = vld [vmem:[%s7677_s30 + $0x8d0] sm:$0xff] }
 0x141   : > { %v5925_v4 = vpop.eup %5924  ;;  %4483 = vst [vmem:[%s7706_s17 + $0x7c8] sm:$0xff] %v3459_v61  ;;  %v3461_v5 = vmul.f32 0.4342945, %v1665_v62  ;;  %v1669_v6 = vmul.f32 0.6931472, %v5923_v0  ;;  %5950 = vlog2.f32 %v405_v59  ;;  %v421_v59 = vld [vmem:[%s7677_s30 + $0x8d8] sm:$0xff] }
 0x142   : > { %v5927_v8 = vpop.eup %5926  ;;  %4484 = vst [vmem:[%s7706_s17 + $0x7d0] sm:$0xff] %v3460_v1  ;;  %v3462_v9 = vmul.f32 0.4342945, %v1667_v2  ;;  %v1671_v10 = vmul.f32 0.6931472, %v5925_v4  ;;  %5952 = vlog2.f32 %v406_v63  ;;  %v422_v63 = vld [vmem:[%s7677_s30 + $0x8e0] sm:$0xff] }
 0x143   : > { %v5929_v12 = vpop.eup %5928  ;;  %4485 = vst [vmem:[%s7706_s17 + $0x7d8] sm:$0xff] %v3461_v5  ;;  %v3463_v13 = vmul.f32 0.4342945, %v1669_v6  ;;  %v1673_v14 = vmul.f32 0.6931472, %v5927_v8  ;;  %5954 = vlog2.f32 %v407_v3  ;;  %v423_v3 = vld [vmem:[%s7677_s30 + $0x8e8] sm:$0xff] }
 0x144   : > { %v5931_v16 = vpop.eup %5930  ;;  %4486 = vst [vmem:[%s7706_s17 + $0x7e0] sm:$0xff] %v3462_v9  ;;  %v3464_v17 = vmul.f32 0.4342945, %v1671_v10  ;;  %v1675_v18 = vmul.f32 0.6931472, %v5929_v12  ;;  %5956 = vlog2.f32 %v408_v7  ;;  %v424_v7 = vld [vmem:[%s7677_s30 + $0x8f0] sm:$0xff] }
 0x145   : > { %v5933_v20 = vpop.eup %5932  ;;  %4487 = vst [vmem:[%s7706_s17 + $0x7e8] sm:$0xff] %v3463_v13  ;;  %v3465_v21 = vmul.f32 0.4342945, %v1673_v14  ;;  %v1677_v22 = vmul.f32 0.6931472, %v5931_v16  ;;  %5958 = vlog2.f32 %v409_v11  ;;  %v425_v11 = vld [vmem:[%s7677_s30 + $0x8f8] sm:$0xff] }
 0x146   : > { %v5935_v24 = vpop.eup %5934  ;;  %4488 = vst [vmem:[%s7706_s17 + $0x7f0] sm:$0xff] %v3464_v17  ;;  %v3466_v25 = vmul.f32 0.4342945, %v1675_v18  ;;  %v1679_v26 = vmul.f32 0.6931472, %v5933_v20  ;;  %5960 = vlog2.f32 %v410_v15  ;;  %v426_v15 = vld [vmem:[%s7677_s30 + $0x900] sm:$0xff] }
 0x147   : > { %v5937_v28 = vpop.eup %5936  ;;  %4489 = vst [vmem:[%s7706_s17 + $0x7f8] sm:$0xff] %v3465_v21  ;;  %v3467_v29 = vmul.f32 0.4342945, %v1677_v22  ;;  %v1681_v30 = vmul.f32 0.6931472, %v5935_v24  ;;  %5962 = vlog2.f32 %v411_v19  ;;  %v427_v19 = vld [vmem:[%s7677_s30 + $0x908] sm:$0xff] }
 0x148   : > { %v5939_v32 = vpop.eup %5938  ;;  %4490 = vst [vmem:[%s7706_s17 + $0x800] sm:$0xff] %v3466_v25  ;;  %v3468_v33 = vmul.f32 0.4342945, %v1679_v26  ;;  %v1683_v34 = vmul.f32 0.6931472, %v5937_v28  ;;  %5964 = vlog2.f32 %v412_v23  ;;  %v428_v23 = vld [vmem:[%s7677_s30 + $0x910] sm:$0xff] }
 0x149   : > { %v5941_v36 = vpop.eup %5940  ;;  %4491 = vst [vmem:[%s7706_s17 + $0x808] sm:$0xff] %v3467_v29  ;;  %v3469_v37 = vmul.f32 0.4342945, %v1681_v30  ;;  %v1685_v38 = vmul.f32 0.6931472, %v5939_v32  ;;  %5966 = vlog2.f32 %v413_v27  ;;  %v429_v27 = vld [vmem:[%s7677_s30 + $0x918] sm:$0xff] }
 0x14a   : > { %v5943_v40 = vpop.eup %5942  ;;  %4492 = vst [vmem:[%s7706_s17 + $0x810] sm:$0xff] %v3468_v33  ;;  %v3470_v41 = vmul.f32 0.4342945, %v1683_v34  ;;  %v1687_v42 = vmul.f32 0.6931472, %v5941_v36  ;;  %5968 = vlog2.f32 %v414_v31  ;;  %v430_v31 = vld [vmem:[%s7677_s30 + $0x920] sm:$0xff] }
 0x14b   : > { %v5945_v44 = vpop.eup %5944  ;;  %4493 = vst [vmem:[%s7706_s17 + $0x818] sm:$0xff] %v3469_v37  ;;  %v3471_v45 = vmul.f32 0.4342945, %v1685_v38  ;;  %v1689_v46 = vmul.f32 0.6931472, %v5943_v40  ;;  %5970 = vlog2.f32 %v415_v35  ;;  %v431_v35 = vld [vmem:[%s7677_s30 + $0x928] sm:$0xff] }
 0x14c   : > { %v5947_v48 = vpop.eup %5946  ;;  %4494 = vst [vmem:[%s7706_s17 + $0x820] sm:$0xff] %v3470_v41  ;;  %v3472_v49 = vmul.f32 0.4342945, %v1687_v42  ;;  %v1691_v50 = vmul.f32 0.6931472, %v5945_v44  ;;  %5972 = vlog2.f32 %v416_v39  ;;  %v432_v39 = vld [vmem:[%s7677_s30 + $0x930] sm:$0xff] }
 0x14d   : > { %v5949_v52 = vpop.eup %5948  ;;  %4495 = vst [vmem:[%s7706_s17 + $0x828] sm:$0xff] %v3471_v45  ;;  %v3473_v53 = vmul.f32 0.4342945, %v1689_v46  ;;  %v1693_v54 = vmul.f32 0.6931472, %v5947_v48  ;;  %5974 = vlog2.f32 %v417_v43  ;;  %v433_v43 = vld [vmem:[%s7677_s30 + $0x938] sm:$0xff] }
 0x14e   : > { %v5951_v56 = vpop.eup %5950  ;;  %4496 = vst [vmem:[%s7706_s17 + $0x830] sm:$0xff] %v3472_v49  ;;  %v3474_v57 = vmul.f32 0.4342945, %v1691_v50  ;;  %v1695_v58 = vmul.f32 0.6931472, %v5949_v52  ;;  %5976 = vlog2.f32 %v418_v47  ;;  %v434_v47 = vld [vmem:[%s7677_s30 + $0x940] sm:$0xff] }
 0x14f   : > { %v5953_v60 = vpop.eup %5952  ;;  %4497 = vst [vmem:[%s7706_s17 + $0x838] sm:$0xff] %v3473_v53  ;;  %v3475_v61 = vmul.f32 0.4342945, %v1693_v54  ;;  %v1697_v62 = vmul.f32 0.6931472, %v5951_v56  ;;  %5978 = vlog2.f32 %v419_v51  ;;  %v435_v51 = vld [vmem:[%s7677_s30 + $0x948] sm:$0xff] }
 0x150   : > { %v5955_v0 = vpop.eup %5954  ;;  %4498 = vst [vmem:[%s7706_s17 + $0x840] sm:$0xff] %v3474_v57  ;;  %v3476_v1 = vmul.f32 0.4342945, %v1695_v58  ;;  %v1699_v2 = vmul.f32 0.6931472, %v5953_v60  ;;  %5980 = vlog2.f32 %v420_v55  ;;  %v436_v55 = vld [vmem:[%s7677_s30 + $0x950] sm:$0xff] }
 0x151   : > { %v5957_v4 = vpop.eup %5956  ;;  %4499 = vst [vmem:[%s7706_s17 + $0x848] sm:$0xff] %v3475_v61  ;;  %v3477_v5 = vmul.f32 0.4342945, %v1697_v62  ;;  %v1701_v6 = vmul.f32 0.6931472, %v5955_v0  ;;  %5982 = vlog2.f32 %v421_v59  ;;  %v437_v59 = vld [vmem:[%s7677_s30 + $0x958] sm:$0xff] }
 0x152   : > { %v5959_v8 = vpop.eup %5958  ;;  %4500 = vst [vmem:[%s7706_s17 + $0x850] sm:$0xff] %v3476_v1  ;;  %v3478_v9 = vmul.f32 0.4342945, %v1699_v2  ;;  %v1703_v10 = vmul.f32 0.6931472, %v5957_v4  ;;  %5984 = vlog2.f32 %v422_v63  ;;  %v438_v63 = vld [vmem:[%s7677_s30 + $0x960] sm:$0xff] }
 0x153   : > { %v5961_v12 = vpop.eup %5960  ;;  %4501 = vst [vmem:[%s7706_s17 + $0x858] sm:$0xff] %v3477_v5  ;;  %v3479_v13 = vmul.f32 0.4342945, %v1701_v6  ;;  %v1705_v14 = vmul.f32 0.6931472, %v5959_v8  ;;  %5986 = vlog2.f32 %v423_v3  ;;  %v439_v3 = vld [vmem:[%s7677_s30 + $0x968] sm:$0xff] }
 0x154   : > { %v5963_v16 = vpop.eup %5962  ;;  %4502 = vst [vmem:[%s7706_s17 + $0x860] sm:$0xff] %v3478_v9  ;;  %v3480_v17 = vmul.f32 0.4342945, %v1703_v10  ;;  %v1707_v18 = vmul.f32 0.6931472, %v5961_v12  ;;  %5988 = vlog2.f32 %v424_v7  ;;  %v440_v7 = vld [vmem:[%s7677_s30 + $0x970] sm:$0xff] }
 0x155   : > { %v5965_v20 = vpop.eup %5964  ;;  %4503 = vst [vmem:[%s7706_s17 + $0x868] sm:$0xff] %v3479_v13  ;;  %v3481_v21 = vmul.f32 0.4342945, %v1705_v14  ;;  %v1709_v22 = vmul.f32 0.6931472, %v5963_v16  ;;  %5990 = vlog2.f32 %v425_v11  ;;  %v441_v11 = vld [vmem:[%s7677_s30 + $0x978] sm:$0xff] }
 0x156   : > { %v5967_v24 = vpop.eup %5966  ;;  %4504 = vst [vmem:[%s7706_s17 + $0x870] sm:$0xff] %v3480_v17  ;;  %v3482_v25 = vmul.f32 0.4342945, %v1707_v18  ;;  %v1711_v26 = vmul.f32 0.6931472, %v5965_v20  ;;  %5992 = vlog2.f32 %v426_v15  ;;  %v442_v15 = vld [vmem:[%s7677_s30 + $0x980] sm:$0xff] }
 0x157   : > { %v5969_v28 = vpop.eup %5968  ;;  %4505 = vst [vmem:[%s7706_s17 + $0x878] sm:$0xff] %v3481_v21  ;;  %v3483_v29 = vmul.f32 0.4342945, %v1709_v22  ;;  %v1713_v30 = vmul.f32 0.6931472, %v5967_v24  ;;  %5994 = vlog2.f32 %v427_v19  ;;  %v443_v19 = vld [vmem:[%s7677_s30 + $0x988] sm:$0xff] }
 0x158   : > { %v5971_v32 = vpop.eup %5970  ;;  %4506 = vst [vmem:[%s7706_s17 + $0x880] sm:$0xff] %v3482_v25  ;;  %v3484_v33 = vmul.f32 0.4342945, %v1711_v26  ;;  %v1715_v34 = vmul.f32 0.6931472, %v5969_v28  ;;  %5996 = vlog2.f32 %v428_v23  ;;  %v444_v23 = vld [vmem:[%s7677_s30 + $0x990] sm:$0xff] }
 0x159   : > { %v5973_v36 = vpop.eup %5972  ;;  %4507 = vst [vmem:[%s7706_s17 + $0x888] sm:$0xff] %v3483_v29  ;;  %v3485_v37 = vmul.f32 0.4342945, %v1713_v30  ;;  %v1717_v38 = vmul.f32 0.6931472, %v5971_v32  ;;  %5998 = vlog2.f32 %v429_v27  ;;  %v445_v27 = vld [vmem:[%s7677_s30 + $0x998] sm:$0xff] }
 0x15a   : > { %v5975_v40 = vpop.eup %5974  ;;  %4508 = vst [vmem:[%s7706_s17 + $0x890] sm:$0xff] %v3484_v33  ;;  %v3486_v41 = vmul.f32 0.4342945, %v1715_v34  ;;  %v1719_v42 = vmul.f32 0.6931472, %v5973_v36  ;;  %6000 = vlog2.f32 %v430_v31  ;;  %v446_v31 = vld [vmem:[%s7677_s30 + $0x9a0] sm:$0xff] }
 0x15b   : > { %v5977_v44 = vpop.eup %5976  ;;  %4509 = vst [vmem:[%s7706_s17 + $0x898] sm:$0xff] %v3485_v37  ;;  %v3487_v45 = vmul.f32 0.4342945, %v1717_v38  ;;  %v1721_v46 = vmul.f32 0.6931472, %v5975_v40  ;;  %6002 = vlog2.f32 %v431_v35  ;;  %v447_v35 = vld [vmem:[%s7677_s30 + $0x9a8] sm:$0xff] }
 0x15c   : > { %v5979_v48 = vpop.eup %5978  ;;  %4510 = vst [vmem:[%s7706_s17 + $0x8a0] sm:$0xff] %v3486_v41  ;;  %v3488_v49 = vmul.f32 0.4342945, %v1719_v42  ;;  %v1723_v50 = vmul.f32 0.6931472, %v5977_v44  ;;  %6004 = vlog2.f32 %v432_v39  ;;  %v448_v39 = vld [vmem:[%s7677_s30 + $0x9b0] sm:$0xff] }
 0x15d   : > { %v5981_v52 = vpop.eup %5980  ;;  %4511 = vst [vmem:[%s7706_s17 + $0x8a8] sm:$0xff] %v3487_v45  ;;  %v3489_v53 = vmul.f32 0.4342945, %v1721_v46  ;;  %v1725_v54 = vmul.f32 0.6931472, %v5979_v48  ;;  %6006 = vlog2.f32 %v433_v43  ;;  %v449_v43 = vld [vmem:[%s7677_s30 + $0x9b8] sm:$0xff] }
 0x15e   : > { %v5983_v56 = vpop.eup %5982  ;;  %4512 = vst [vmem:[%s7706_s17 + $0x8b0] sm:$0xff] %v3488_v49  ;;  %v3490_v57 = vmul.f32 0.4342945, %v1723_v50  ;;  %v1727_v58 = vmul.f32 0.6931472, %v5981_v52  ;;  %6008 = vlog2.f32 %v434_v47  ;;  %v450_v47 = vld [vmem:[%s7677_s30 + $0x9c0] sm:$0xff] }
 0x15f   : > { %v5985_v60 = vpop.eup %5984  ;;  %4513 = vst [vmem:[%s7706_s17 + $0x8b8] sm:$0xff] %v3489_v53  ;;  %v3491_v61 = vmul.f32 0.4342945, %v1725_v54  ;;  %v1729_v62 = vmul.f32 0.6931472, %v5983_v56  ;;  %6010 = vlog2.f32 %v435_v51  ;;  %v451_v51 = vld [vmem:[%s7677_s30 + $0x9c8] sm:$0xff] }
 0x160   : > { %v5987_v0 = vpop.eup %5986  ;;  %4514 = vst [vmem:[%s7706_s17 + $0x8c0] sm:$0xff] %v3490_v57  ;;  %v3492_v1 = vmul.f32 0.4342945, %v1727_v58  ;;  %v1731_v2 = vmul.f32 0.6931472, %v5985_v60  ;;  %6012 = vlog2.f32 %v436_v55  ;;  %v452_v55 = vld [vmem:[%s7677_s30 + $0x9d0] sm:$0xff] }
 0x161   : > { %v5989_v4 = vpop.eup %5988  ;;  %4515 = vst [vmem:[%s7706_s17 + $0x8c8] sm:$0xff] %v3491_v61  ;;  %v3493_v5 = vmul.f32 0.4342945, %v1729_v62  ;;  %v1733_v6 = vmul.f32 0.6931472, %v5987_v0  ;;  %6014 = vlog2.f32 %v437_v59  ;;  %v453_v59 = vld [vmem:[%s7677_s30 + $0x9d8] sm:$0xff] }
 0x162   : > { %v5991_v8 = vpop.eup %5990  ;;  %4516 = vst [vmem:[%s7706_s17 + $0x8d0] sm:$0xff] %v3492_v1  ;;  %v3494_v9 = vmul.f32 0.4342945, %v1731_v2  ;;  %v1735_v10 = vmul.f32 0.6931472, %v5989_v4  ;;  %6016 = vlog2.f32 %v438_v63  ;;  %v454_v63 = vld [vmem:[%s7677_s30 + $0x9e0] sm:$0xff] }
 0x163   : > { %v5993_v12 = vpop.eup %5992  ;;  %4517 = vst [vmem:[%s7706_s17 + $0x8d8] sm:$0xff] %v3493_v5  ;;  %v3495_v13 = vmul.f32 0.4342945, %v1733_v6  ;;  %v1737_v14 = vmul.f32 0.6931472, %v5991_v8  ;;  %6018 = vlog2.f32 %v439_v3  ;;  %v455_v3 = vld [vmem:[%s7677_s30 + $0x9e8] sm:$0xff] }
 0x164   : > { %v5995_v16 = vpop.eup %5994  ;;  %4518 = vst [vmem:[%s7706_s17 + $0x8e0] sm:$0xff] %v3494_v9  ;;  %v3496_v17 = vmul.f32 0.4342945, %v1735_v10  ;;  %v1739_v18 = vmul.f32 0.6931472, %v5993_v12  ;;  %6020 = vlog2.f32 %v440_v7  ;;  %v456_v7 = vld [vmem:[%s7677_s30 + $0x9f0] sm:$0xff] }
 0x165   : > { %v5997_v20 = vpop.eup %5996  ;;  %4519 = vst [vmem:[%s7706_s17 + $0x8e8] sm:$0xff] %v3495_v13  ;;  %v3497_v21 = vmul.f32 0.4342945, %v1737_v14  ;;  %v1741_v22 = vmul.f32 0.6931472, %v5995_v16  ;;  %6022 = vlog2.f32 %v441_v11  ;;  %v457_v11 = vld [vmem:[%s7677_s30 + $0x9f8] sm:$0xff] }
 0x166   : > { %v5999_v24 = vpop.eup %5998  ;;  %4520 = vst [vmem:[%s7706_s17 + $0x8f0] sm:$0xff] %v3496_v17  ;;  %v3498_v25 = vmul.f32 0.4342945, %v1739_v18  ;;  %v1743_v26 = vmul.f32 0.6931472, %v5997_v20  ;;  %6024 = vlog2.f32 %v442_v15  ;;  %v458_v15 = vld [vmem:[%s7677_s30 + $0xa00] sm:$0xff] }
 0x167   : > { %v6001_v28 = vpop.eup %6000  ;;  %4521 = vst [vmem:[%s7706_s17 + $0x8f8] sm:$0xff] %v3497_v21  ;;  %v3499_v29 = vmul.f32 0.4342945, %v1741_v22  ;;  %v1745_v30 = vmul.f32 0.6931472, %v5999_v24  ;;  %6026 = vlog2.f32 %v443_v19  ;;  %v459_v19 = vld [vmem:[%s7677_s30 + $0xa08] sm:$0xff] }
 0x168   : > { %v6003_v32 = vpop.eup %6002  ;;  %4522 = vst [vmem:[%s7706_s17 + $0x900] sm:$0xff] %v3498_v25  ;;  %v3500_v33 = vmul.f32 0.4342945, %v1743_v26  ;;  %v1747_v34 = vmul.f32 0.6931472, %v6001_v28  ;;  %6028 = vlog2.f32 %v444_v23  ;;  %v460_v23 = vld [vmem:[%s7677_s30 + $0xa10] sm:$0xff] }
 0x169   : > { %v6005_v36 = vpop.eup %6004  ;;  %4523 = vst [vmem:[%s7706_s17 + $0x908] sm:$0xff] %v3499_v29  ;;  %v3501_v37 = vmul.f32 0.4342945, %v1745_v30  ;;  %v1749_v38 = vmul.f32 0.6931472, %v6003_v32  ;;  %6030 = vlog2.f32 %v445_v27  ;;  %v461_v27 = vld [vmem:[%s7677_s30 + $0xa18] sm:$0xff] }
 0x16a   : > { %v6007_v40 = vpop.eup %6006  ;;  %4524 = vst [vmem:[%s7706_s17 + $0x910] sm:$0xff] %v3500_v33  ;;  %v3502_v41 = vmul.f32 0.4342945, %v1747_v34  ;;  %v1751_v42 = vmul.f32 0.6931472, %v6005_v36  ;;  %6032 = vlog2.f32 %v446_v31  ;;  %v462_v31 = vld [vmem:[%s7677_s30 + $0xa20] sm:$0xff] }
 0x16b   : > { %v6009_v44 = vpop.eup %6008  ;;  %4525 = vst [vmem:[%s7706_s17 + $0x918] sm:$0xff] %v3501_v37  ;;  %v3503_v45 = vmul.f32 0.4342945, %v1749_v38  ;;  %v1753_v46 = vmul.f32 0.6931472, %v6007_v40  ;;  %6034 = vlog2.f32 %v447_v35  ;;  %v463_v35 = vld [vmem:[%s7677_s30 + $0xa28] sm:$0xff] }
 0x16c   : > { %v6011_v48 = vpop.eup %6010  ;;  %4526 = vst [vmem:[%s7706_s17 + $0x920] sm:$0xff] %v3502_v41  ;;  %v3504_v49 = vmul.f32 0.4342945, %v1751_v42  ;;  %v1755_v50 = vmul.f32 0.6931472, %v6009_v44  ;;  %6036 = vlog2.f32 %v448_v39  ;;  %v464_v39 = vld [vmem:[%s7677_s30 + $0xa30] sm:$0xff] }
 0x16d   : > { %v6013_v52 = vpop.eup %6012  ;;  %4527 = vst [vmem:[%s7706_s17 + $0x928] sm:$0xff] %v3503_v45  ;;  %v3505_v53 = vmul.f32 0.4342945, %v1753_v46  ;;  %v1757_v54 = vmul.f32 0.6931472, %v6011_v48  ;;  %6038 = vlog2.f32 %v449_v43  ;;  %v465_v43 = vld [vmem:[%s7677_s30 + $0xa38] sm:$0xff] }
 0x16e   : > { %v6015_v56 = vpop.eup %6014  ;;  %4528 = vst [vmem:[%s7706_s17 + $0x930] sm:$0xff] %v3504_v49  ;;  %v3506_v57 = vmul.f32 0.4342945, %v1755_v50  ;;  %v1759_v58 = vmul.f32 0.6931472, %v6013_v52  ;;  %6040 = vlog2.f32 %v450_v47  ;;  %v466_v47 = vld [vmem:[%s7677_s30 + $0xa40] sm:$0xff] }
 0x16f   : > { %v6017_v60 = vpop.eup %6016  ;;  %4529 = vst [vmem:[%s7706_s17 + $0x938] sm:$0xff] %v3505_v53  ;;  %v3507_v61 = vmul.f32 0.4342945, %v1757_v54  ;;  %v1761_v62 = vmul.f32 0.6931472, %v6015_v56  ;;  %6042 = vlog2.f32 %v451_v51  ;;  %v467_v51 = vld [vmem:[%s7677_s30 + $0xa48] sm:$0xff] }
 0x170   : > { %v6019_v0 = vpop.eup %6018  ;;  %4530 = vst [vmem:[%s7706_s17 + $0x940] sm:$0xff] %v3506_v57  ;;  %v3508_v1 = vmul.f32 0.4342945, %v1759_v58  ;;  %v1763_v2 = vmul.f32 0.6931472, %v6017_v60  ;;  %6044 = vlog2.f32 %v452_v55  ;;  %v468_v55 = vld [vmem:[%s7677_s30 + $0xa50] sm:$0xff] }
 0x171   : > { %v6021_v4 = vpop.eup %6020  ;;  %4531 = vst [vmem:[%s7706_s17 + $0x948] sm:$0xff] %v3507_v61  ;;  %v3509_v5 = vmul.f32 0.4342945, %v1761_v62  ;;  %v1765_v6 = vmul.f32 0.6931472, %v6019_v0  ;;  %6046 = vlog2.f32 %v453_v59  ;;  %v469_v59 = vld [vmem:[%s7677_s30 + $0xa58] sm:$0xff] }
 0x172   : > { %v6023_v8 = vpop.eup %6022  ;;  %4532 = vst [vmem:[%s7706_s17 + $0x950] sm:$0xff] %v3508_v1  ;;  %v3510_v9 = vmul.f32 0.4342945, %v1763_v2  ;;  %v1767_v10 = vmul.f32 0.6931472, %v6021_v4  ;;  %6048 = vlog2.f32 %v454_v63  ;;  %v470_v63 = vld [vmem:[%s7677_s30 + $0xa60] sm:$0xff] }
 0x173   : > { %v6025_v12 = vpop.eup %6024  ;;  %4533 = vst [vmem:[%s7706_s17 + $0x958] sm:$0xff] %v3509_v5  ;;  %v3511_v13 = vmul.f32 0.4342945, %v1765_v6  ;;  %v1769_v14 = vmul.f32 0.6931472, %v6023_v8  ;;  %6050 = vlog2.f32 %v455_v3  ;;  %v471_v3 = vld [vmem:[%s7677_s30 + $0xa68] sm:$0xff] }
 0x174   : > { %v6027_v16 = vpop.eup %6026  ;;  %4534 = vst [vmem:[%s7706_s17 + $0x960] sm:$0xff] %v3510_v9  ;;  %v3512_v17 = vmul.f32 0.4342945, %v1767_v10  ;;  %v1771_v18 = vmul.f32 0.6931472, %v6025_v12  ;;  %6052 = vlog2.f32 %v456_v7  ;;  %v472_v7 = vld [vmem:[%s7677_s30 + $0xa70] sm:$0xff] }
 0x175   : > { %v6029_v20 = vpop.eup %6028  ;;  %4535 = vst [vmem:[%s7706_s17 + $0x968] sm:$0xff] %v3511_v13  ;;  %v3513_v21 = vmul.f32 0.4342945, %v1769_v14  ;;  %v1773_v22 = vmul.f32 0.6931472, %v6027_v16  ;;  %6054 = vlog2.f32 %v457_v11  ;;  %v473_v11 = vld [vmem:[%s7677_s30 + $0xa78] sm:$0xff] }
 0x176   : > { %v6031_v24 = vpop.eup %6030  ;;  %4536 = vst [vmem:[%s7706_s17 + $0x970] sm:$0xff] %v3512_v17  ;;  %v3514_v25 = vmul.f32 0.4342945, %v1771_v18  ;;  %v1775_v26 = vmul.f32 0.6931472, %v6029_v20  ;;  %6056 = vlog2.f32 %v458_v15  ;;  %v474_v15 = vld [vmem:[%s7677_s30 + $0xa80] sm:$0xff] }
 0x177   : > { %v6033_v28 = vpop.eup %6032  ;;  %4537 = vst [vmem:[%s7706_s17 + $0x978] sm:$0xff] %v3513_v21  ;;  %v3515_v29 = vmul.f32 0.4342945, %v1773_v22  ;;  %v1777_v30 = vmul.f32 0.6931472, %v6031_v24  ;;  %6058 = vlog2.f32 %v459_v19  ;;  %v475_v19 = vld [vmem:[%s7677_s30 + $0xa88] sm:$0xff] }
 0x178   : > { %v6035_v32 = vpop.eup %6034  ;;  %4538 = vst [vmem:[%s7706_s17 + $0x980] sm:$0xff] %v3514_v25  ;;  %v3516_v33 = vmul.f32 0.4342945, %v1775_v26  ;;  %v1779_v34 = vmul.f32 0.6931472, %v6033_v28  ;;  %6060 = vlog2.f32 %v460_v23  ;;  %v476_v23 = vld [vmem:[%s7677_s30 + $0xa90] sm:$0xff] }
 0x179   : > { %v6037_v36 = vpop.eup %6036  ;;  %4539 = vst [vmem:[%s7706_s17 + $0x988] sm:$0xff] %v3515_v29  ;;  %v3517_v37 = vmul.f32 0.4342945, %v1777_v30  ;;  %v1781_v38 = vmul.f32 0.6931472, %v6035_v32  ;;  %6062 = vlog2.f32 %v461_v27  ;;  %v477_v27 = vld [vmem:[%s7677_s30 + $0xa98] sm:$0xff] }
 0x17a   : > { %v6039_v40 = vpop.eup %6038  ;;  %4540 = vst [vmem:[%s7706_s17 + $0x990] sm:$0xff] %v3516_v33  ;;  %v3518_v41 = vmul.f32 0.4342945, %v1779_v34  ;;  %v1783_v42 = vmul.f32 0.6931472, %v6037_v36  ;;  %6064 = vlog2.f32 %v462_v31  ;;  %v478_v31 = vld [vmem:[%s7677_s30 + $0xaa0] sm:$0xff] }
 0x17b   : > { %v6041_v44 = vpop.eup %6040  ;;  %4541 = vst [vmem:[%s7706_s17 + $0x998] sm:$0xff] %v3517_v37  ;;  %v3519_v45 = vmul.f32 0.4342945, %v1781_v38  ;;  %v1785_v46 = vmul.f32 0.6931472, %v6039_v40  ;;  %6066 = vlog2.f32 %v463_v35  ;;  %v479_v35 = vld [vmem:[%s7677_s30 + $0xaa8] sm:$0xff] }
 0x17c   : > { %v6043_v48 = vpop.eup %6042  ;;  %4542 = vst [vmem:[%s7706_s17 + $0x9a0] sm:$0xff] %v3518_v41  ;;  %v3520_v49 = vmul.f32 0.4342945, %v1783_v42  ;;  %v1787_v50 = vmul.f32 0.6931472, %v6041_v44  ;;  %6068 = vlog2.f32 %v464_v39  ;;  %v480_v39 = vld [vmem:[%s7677_s30 + $0xab0] sm:$0xff] }
 0x17d   : > { %v6045_v52 = vpop.eup %6044  ;;  %4543 = vst [vmem:[%s7706_s17 + $0x9a8] sm:$0xff] %v3519_v45  ;;  %v3521_v53 = vmul.f32 0.4342945, %v1785_v46  ;;  %v1789_v54 = vmul.f32 0.6931472, %v6043_v48  ;;  %6070 = vlog2.f32 %v465_v43  ;;  %v481_v43 = vld [vmem:[%s7677_s30 + $0xab8] sm:$0xff] }
 0x17e   : > { %v6047_v56 = vpop.eup %6046  ;;  %4544 = vst [vmem:[%s7706_s17 + $0x9b0] sm:$0xff] %v3520_v49  ;;  %v3522_v57 = vmul.f32 0.4342945, %v1787_v50  ;;  %v1791_v58 = vmul.f32 0.6931472, %v6045_v52  ;;  %6072 = vlog2.f32 %v466_v47  ;;  %v482_v47 = vld [vmem:[%s7677_s30 + $0xac0] sm:$0xff] }
 0x17f   : > { %v6049_v60 = vpop.eup %6048  ;;  %4545 = vst [vmem:[%s7706_s17 + $0x9b8] sm:$0xff] %v3521_v53  ;;  %v3523_v61 = vmul.f32 0.4342945, %v1789_v54  ;;  %v1793_v62 = vmul.f32 0.6931472, %v6047_v56  ;;  %6074 = vlog2.f32 %v467_v51  ;;  %v483_v51 = vld [vmem:[%s7677_s30 + $0xac8] sm:$0xff] }
 0x180   : > { %v6051_v0 = vpop.eup %6050  ;;  %4546 = vst [vmem:[%s7706_s17 + $0x9c0] sm:$0xff] %v3522_v57  ;;  %v3524_v1 = vmul.f32 0.4342945, %v1791_v58  ;;  %v1795_v2 = vmul.f32 0.6931472, %v6049_v60  ;;  %6076 = vlog2.f32 %v468_v55  ;;  %v484_v55 = vld [vmem:[%s7677_s30 + $0xad0] sm:$0xff] }
 0x181   : > { %v6053_v4 = vpop.eup %6052  ;;  %4547 = vst [vmem:[%s7706_s17 + $0x9c8] sm:$0xff] %v3523_v61  ;;  %v3525_v5 = vmul.f32 0.4342945, %v1793_v62  ;;  %v1797_v6 = vmul.f32 0.6931472, %v6051_v0  ;;  %6078 = vlog2.f32 %v469_v59  ;;  %v485_v59 = vld [vmem:[%s7677_s30 + $0xad8] sm:$0xff] }
 0x182   : > { %v6055_v8 = vpop.eup %6054  ;;  %4548 = vst [vmem:[%s7706_s17 + $0x9d0] sm:$0xff] %v3524_v1  ;;  %v3526_v9 = vmul.f32 0.4342945, %v1795_v2  ;;  %v1799_v10 = vmul.f32 0.6931472, %v6053_v4  ;;  %6080 = vlog2.f32 %v470_v63  ;;  %v486_v63 = vld [vmem:[%s7677_s30 + $0xae0] sm:$0xff] }
 0x183   : > { %v6057_v12 = vpop.eup %6056  ;;  %4549 = vst [vmem:[%s7706_s17 + $0x9d8] sm:$0xff] %v3525_v5  ;;  %v3527_v13 = vmul.f32 0.4342945, %v1797_v6  ;;  %v1801_v14 = vmul.f32 0.6931472, %v6055_v8  ;;  %6082 = vlog2.f32 %v471_v3  ;;  %v487_v3 = vld [vmem:[%s7677_s30 + $0xae8] sm:$0xff] }
 0x184   : > { %v6059_v16 = vpop.eup %6058  ;;  %4550 = vst [vmem:[%s7706_s17 + $0x9e0] sm:$0xff] %v3526_v9  ;;  %v3528_v17 = vmul.f32 0.4342945, %v1799_v10  ;;  %v1803_v18 = vmul.f32 0.6931472, %v6057_v12  ;;  %6084 = vlog2.f32 %v472_v7  ;;  %v488_v7 = vld [vmem:[%s7677_s30 + $0xaf0] sm:$0xff] }
 0x185   : > { %v6061_v20 = vpop.eup %6060  ;;  %4551 = vst [vmem:[%s7706_s17 + $0x9e8] sm:$0xff] %v3527_v13  ;;  %v3529_v21 = vmul.f32 0.4342945, %v1801_v14  ;;  %v1805_v22 = vmul.f32 0.6931472, %v6059_v16  ;;  %6086 = vlog2.f32 %v473_v11  ;;  %v489_v11 = vld [vmem:[%s7677_s30 + $0xaf8] sm:$0xff] }
 0x186   : > { %v6063_v24 = vpop.eup %6062  ;;  %4552 = vst [vmem:[%s7706_s17 + $0x9f0] sm:$0xff] %v3528_v17  ;;  %v3530_v25 = vmul.f32 0.4342945, %v1803_v18  ;;  %v1807_v26 = vmul.f32 0.6931472, %v6061_v20  ;;  %6088 = vlog2.f32 %v474_v15  ;;  %v490_v15 = vld [vmem:[%s7677_s30 + $0xb00] sm:$0xff] }
 0x187   : > { %v6065_v28 = vpop.eup %6064  ;;  %4553 = vst [vmem:[%s7706_s17 + $0x9f8] sm:$0xff] %v3529_v21  ;;  %v3531_v29 = vmul.f32 0.4342945, %v1805_v22  ;;  %v1809_v30 = vmul.f32 0.6931472, %v6063_v24  ;;  %6090 = vlog2.f32 %v475_v19  ;;  %v491_v19 = vld [vmem:[%s7677_s30 + $0xb08] sm:$0xff] }
 0x188   : > { %v6067_v32 = vpop.eup %6066  ;;  %4554 = vst [vmem:[%s7706_s17 + $0xa00] sm:$0xff] %v3530_v25  ;;  %v3532_v33 = vmul.f32 0.4342945, %v1807_v26  ;;  %v1811_v34 = vmul.f32 0.6931472, %v6065_v28  ;;  %6092 = vlog2.f32 %v476_v23  ;;  %v492_v23 = vld [vmem:[%s7677_s30 + $0xb10] sm:$0xff] }
 0x189   : > { %v6069_v36 = vpop.eup %6068  ;;  %4555 = vst [vmem:[%s7706_s17 + $0xa08] sm:$0xff] %v3531_v29  ;;  %v3533_v37 = vmul.f32 0.4342945, %v1809_v30  ;;  %v1813_v38 = vmul.f32 0.6931472, %v6067_v32  ;;  %6094 = vlog2.f32 %v477_v27  ;;  %v493_v27 = vld [vmem:[%s7677_s30 + $0xb18] sm:$0xff] }
 0x18a   : > { %v6071_v40 = vpop.eup %6070  ;;  %4556 = vst [vmem:[%s7706_s17 + $0xa10] sm:$0xff] %v3532_v33  ;;  %v3534_v41 = vmul.f32 0.4342945, %v1811_v34  ;;  %v1815_v42 = vmul.f32 0.6931472, %v6069_v36  ;;  %6096 = vlog2.f32 %v478_v31  ;;  %v494_v31 = vld [vmem:[%s7677_s30 + $0xb20] sm:$0xff] }
 0x18b   : > { %v6073_v44 = vpop.eup %6072  ;;  %4557 = vst [vmem:[%s7706_s17 + $0xa18] sm:$0xff] %v3533_v37  ;;  %v3535_v45 = vmul.f32 0.4342945, %v1813_v38  ;;  %v1817_v46 = vmul.f32 0.6931472, %v6071_v40  ;;  %6098 = vlog2.f32 %v479_v35  ;;  %v495_v35 = vld [vmem:[%s7677_s30 + $0xb28] sm:$0xff] }
 0x18c   : > { %v6075_v48 = vpop.eup %6074  ;;  %4558 = vst [vmem:[%s7706_s17 + $0xa20] sm:$0xff] %v3534_v41  ;;  %v3536_v49 = vmul.f32 0.4342945, %v1815_v42  ;;  %v1819_v50 = vmul.f32 0.6931472, %v6073_v44  ;;  %6100 = vlog2.f32 %v480_v39  ;;  %v496_v39 = vld [vmem:[%s7677_s30 + $0xb30] sm:$0xff] }
 0x18d   : > { %v6077_v52 = vpop.eup %6076  ;;  %4559 = vst [vmem:[%s7706_s17 + $0xa28] sm:$0xff] %v3535_v45  ;;  %v3537_v53 = vmul.f32 0.4342945, %v1817_v46  ;;  %v1821_v54 = vmul.f32 0.6931472, %v6075_v48  ;;  %6102 = vlog2.f32 %v481_v43  ;;  %v497_v43 = vld [vmem:[%s7677_s30 + $0xb38] sm:$0xff] }
 0x18e   : > { %v6079_v56 = vpop.eup %6078  ;;  %4560 = vst [vmem:[%s7706_s17 + $0xa30] sm:$0xff] %v3536_v49  ;;  %v3538_v57 = vmul.f32 0.4342945, %v1819_v50  ;;  %v1823_v58 = vmul.f32 0.6931472, %v6077_v52  ;;  %6104 = vlog2.f32 %v482_v47  ;;  %v498_v47 = vld [vmem:[%s7677_s30 + $0xb40] sm:$0xff] }
 0x18f   : > { %v6081_v60 = vpop.eup %6080  ;;  %4561 = vst [vmem:[%s7706_s17 + $0xa38] sm:$0xff] %v3537_v53  ;;  %v3539_v61 = vmul.f32 0.4342945, %v1821_v54  ;;  %v1825_v62 = vmul.f32 0.6931472, %v6079_v56  ;;  %6106 = vlog2.f32 %v483_v51  ;;  %v499_v51 = vld [vmem:[%s7677_s30 + $0xb48] sm:$0xff] }
 0x190   : > { %v6083_v0 = vpop.eup %6082  ;;  %4562 = vst [vmem:[%s7706_s17 + $0xa40] sm:$0xff] %v3538_v57  ;;  %v3540_v1 = vmul.f32 0.4342945, %v1823_v58  ;;  %v1827_v2 = vmul.f32 0.6931472, %v6081_v60  ;;  %6108 = vlog2.f32 %v484_v55  ;;  %v500_v55 = vld [vmem:[%s7677_s30 + $0xb50] sm:$0xff] }
 0x191   : > { %v6085_v4 = vpop.eup %6084  ;;  %4563 = vst [vmem:[%s7706_s17 + $0xa48] sm:$0xff] %v3539_v61  ;;  %v3541_v5 = vmul.f32 0.4342945, %v1825_v62  ;;  %v1829_v6 = vmul.f32 0.6931472, %v6083_v0  ;;  %6110 = vlog2.f32 %v485_v59  ;;  %v501_v59 = vld [vmem:[%s7677_s30 + $0xb58] sm:$0xff] }
 0x192   : > { %v6087_v8 = vpop.eup %6086  ;;  %4564 = vst [vmem:[%s7706_s17 + $0xa50] sm:$0xff] %v3540_v1  ;;  %v3542_v9 = vmul.f32 0.4342945, %v1827_v2  ;;  %v1831_v10 = vmul.f32 0.6931472, %v6085_v4  ;;  %6112 = vlog2.f32 %v486_v63  ;;  %v502_v63 = vld [vmem:[%s7677_s30 + $0xb60] sm:$0xff] }
 0x193   : > { %v6089_v12 = vpop.eup %6088  ;;  %4565 = vst [vmem:[%s7706_s17 + $0xa58] sm:$0xff] %v3541_v5  ;;  %v3543_v13 = vmul.f32 0.4342945, %v1829_v6  ;;  %v1833_v14 = vmul.f32 0.6931472, %v6087_v8  ;;  %6114 = vlog2.f32 %v487_v3  ;;  %v503_v3 = vld [vmem:[%s7677_s30 + $0xb68] sm:$0xff] }
 0x194   : > { %v6091_v16 = vpop.eup %6090  ;;  %4566 = vst [vmem:[%s7706_s17 + $0xa60] sm:$0xff] %v3542_v9  ;;  %v3544_v17 = vmul.f32 0.4342945, %v1831_v10  ;;  %v1835_v18 = vmul.f32 0.6931472, %v6089_v12  ;;  %6116 = vlog2.f32 %v488_v7  ;;  %v504_v7 = vld [vmem:[%s7677_s30 + $0xb70] sm:$0xff] }
 0x195   : > { %v6093_v20 = vpop.eup %6092  ;;  %4567 = vst [vmem:[%s7706_s17 + $0xa68] sm:$0xff] %v3543_v13  ;;  %v3545_v21 = vmul.f32 0.4342945, %v1833_v14  ;;  %v1837_v22 = vmul.f32 0.6931472, %v6091_v16  ;;  %6118 = vlog2.f32 %v489_v11  ;;  %v505_v11 = vld [vmem:[%s7677_s30 + $0xb78] sm:$0xff] }
 0x196   : > { %v6095_v24 = vpop.eup %6094  ;;  %4568 = vst [vmem:[%s7706_s17 + $0xa70] sm:$0xff] %v3544_v17  ;;  %v3546_v25 = vmul.f32 0.4342945, %v1835_v18  ;;  %v1839_v26 = vmul.f32 0.6931472, %v6093_v20  ;;  %6120 = vlog2.f32 %v490_v15  ;;  %v506_v15 = vld [vmem:[%s7677_s30 + $0xb80] sm:$0xff] }
 0x197   : > { %v6097_v28 = vpop.eup %6096  ;;  %4569 = vst [vmem:[%s7706_s17 + $0xa78] sm:$0xff] %v3545_v21  ;;  %v3547_v29 = vmul.f32 0.4342945, %v1837_v22  ;;  %v1841_v30 = vmul.f32 0.6931472, %v6095_v24  ;;  %6122 = vlog2.f32 %v491_v19  ;;  %v507_v19 = vld [vmem:[%s7677_s30 + $0xb88] sm:$0xff] }
 0x198   : > { %v6099_v32 = vpop.eup %6098  ;;  %4570 = vst [vmem:[%s7706_s17 + $0xa80] sm:$0xff] %v3546_v25  ;;  %v3548_v33 = vmul.f32 0.4342945, %v1839_v26  ;;  %v1843_v34 = vmul.f32 0.6931472, %v6097_v28  ;;  %6124 = vlog2.f32 %v492_v23  ;;  %v508_v23 = vld [vmem:[%s7677_s30 + $0xb90] sm:$0xff] }
 0x199   : > { %v6101_v36 = vpop.eup %6100  ;;  %4571 = vst [vmem:[%s7706_s17 + $0xa88] sm:$0xff] %v3547_v29  ;;  %v3549_v37 = vmul.f32 0.4342945, %v1841_v30  ;;  %v1845_v38 = vmul.f32 0.6931472, %v6099_v32  ;;  %6126 = vlog2.f32 %v493_v27  ;;  %v509_v27 = vld [vmem:[%s7677_s30 + $0xb98] sm:$0xff] }
 0x19a   : > { %v6103_v40 = vpop.eup %6102  ;;  %4572 = vst [vmem:[%s7706_s17 + $0xa90] sm:$0xff] %v3548_v33  ;;  %v3550_v41 = vmul.f32 0.4342945, %v1843_v34  ;;  %v1847_v42 = vmul.f32 0.6931472, %v6101_v36  ;;  %6128 = vlog2.f32 %v494_v31  ;;  %v510_v31 = vld [vmem:[%s7677_s30 + $0xba0] sm:$0xff] }
 0x19b   : > { %v6105_v44 = vpop.eup %6104  ;;  %4573 = vst [vmem:[%s7706_s17 + $0xa98] sm:$0xff] %v3549_v37  ;;  %v3551_v45 = vmul.f32 0.4342945, %v1845_v38  ;;  %v1849_v46 = vmul.f32 0.6931472, %v6103_v40  ;;  %6130 = vlog2.f32 %v495_v35  ;;  %v511_v35 = vld [vmem:[%s7677_s30 + $0xba8] sm:$0xff] }
 0x19c   : > { %v6107_v48 = vpop.eup %6106  ;;  %4574 = vst [vmem:[%s7706_s17 + $0xaa0] sm:$0xff] %v3550_v41  ;;  %v3552_v49 = vmul.f32 0.4342945, %v1847_v42  ;;  %v1851_v50 = vmul.f32 0.6931472, %v6105_v44  ;;  %6132 = vlog2.f32 %v496_v39  ;;  %v512_v39 = vld [vmem:[%s7677_s30 + $0xbb0] sm:$0xff] }
 0x19d   : > { %v6109_v52 = vpop.eup %6108  ;;  %4575 = vst [vmem:[%s7706_s17 + $0xaa8] sm:$0xff] %v3551_v45  ;;  %v3553_v53 = vmul.f32 0.4342945, %v1849_v46  ;;  %v1853_v54 = vmul.f32 0.6931472, %v6107_v48  ;;  %6134 = vlog2.f32 %v497_v43  ;;  %v513_v43 = vld [vmem:[%s7677_s30 + $0xbb8] sm:$0xff] }
 0x19e   : > { %v6111_v56 = vpop.eup %6110  ;;  %4576 = vst [vmem:[%s7706_s17 + $0xab0] sm:$0xff] %v3552_v49  ;;  %v3554_v57 = vmul.f32 0.4342945, %v1851_v50  ;;  %v1855_v58 = vmul.f32 0.6931472, %v6109_v52  ;;  %6136 = vlog2.f32 %v498_v47  ;;  %v514_v47 = vld [vmem:[%s7677_s30 + $0xbc0] sm:$0xff] }
 0x19f   : > { %v6113_v60 = vpop.eup %6112  ;;  %4577 = vst [vmem:[%s7706_s17 + $0xab8] sm:$0xff] %v3553_v53  ;;  %v3555_v61 = vmul.f32 0.4342945, %v1853_v54  ;;  %v1857_v62 = vmul.f32 0.6931472, %v6111_v56  ;;  %6138 = vlog2.f32 %v499_v51  ;;  %v515_v51 = vld [vmem:[%s7677_s30 + $0xbc8] sm:$0xff] }
 0x1a0   : > { %v6115_v0 = vpop.eup %6114  ;;  %4578 = vst [vmem:[%s7706_s17 + $0xac0] sm:$0xff] %v3554_v57  ;;  %v3556_v1 = vmul.f32 0.4342945, %v1855_v58  ;;  %v1859_v2 = vmul.f32 0.6931472, %v6113_v60  ;;  %6140 = vlog2.f32 %v500_v55  ;;  %v516_v55 = vld [vmem:[%s7677_s30 + $0xbd0] sm:$0xff] }
 0x1a1   : > { %v6117_v4 = vpop.eup %6116  ;;  %4579 = vst [vmem:[%s7706_s17 + $0xac8] sm:$0xff] %v3555_v61  ;;  %v3557_v5 = vmul.f32 0.4342945, %v1857_v62  ;;  %v1861_v6 = vmul.f32 0.6931472, %v6115_v0  ;;  %6142 = vlog2.f32 %v501_v59  ;;  %v517_v59 = vld [vmem:[%s7677_s30 + $0xbd8] sm:$0xff] }
 0x1a2   : > { %v6119_v8 = vpop.eup %6118  ;;  %4580 = vst [vmem:[%s7706_s17 + $0xad0] sm:$0xff] %v3556_v1  ;;  %v3558_v9 = vmul.f32 0.4342945, %v1859_v2  ;;  %v1863_v10 = vmul.f32 0.6931472, %v6117_v4  ;;  %6144 = vlog2.f32 %v502_v63  ;;  %v518_v63 = vld [vmem:[%s7677_s30 + $0xbe0] sm:$0xff] }
 0x1a3   : > { %v6121_v12 = vpop.eup %6120  ;;  %4581 = vst [vmem:[%s7706_s17 + $0xad8] sm:$0xff] %v3557_v5  ;;  %v3559_v13 = vmul.f32 0.4342945, %v1861_v6  ;;  %v1865_v14 = vmul.f32 0.6931472, %v6119_v8  ;;  %6146 = vlog2.f32 %v503_v3  ;;  %v519_v3 = vld [vmem:[%s7677_s30 + $0xbe8] sm:$0xff] }
 0x1a4   : > { %v6123_v16 = vpop.eup %6122  ;;  %4582 = vst [vmem:[%s7706_s17 + $0xae0] sm:$0xff] %v3558_v9  ;;  %v3560_v17 = vmul.f32 0.4342945, %v1863_v10  ;;  %v1867_v18 = vmul.f32 0.6931472, %v6121_v12  ;;  %6148 = vlog2.f32 %v504_v7  ;;  %v520_v7 = vld [vmem:[%s7677_s30 + $0xbf0] sm:$0xff] }
 0x1a5   : > { %v6125_v20 = vpop.eup %6124  ;;  %4583 = vst [vmem:[%s7706_s17 + $0xae8] sm:$0xff] %v3559_v13  ;;  %v3561_v21 = vmul.f32 0.4342945, %v1865_v14  ;;  %v1869_v22 = vmul.f32 0.6931472, %v6123_v16  ;;  %6150 = vlog2.f32 %v505_v11  ;;  %v521_v11 = vld [vmem:[%s7677_s30 + $0xbf8] sm:$0xff] }
 0x1a6   : > { %v6127_v24 = vpop.eup %6126  ;;  %4584 = vst [vmem:[%s7706_s17 + $0xaf0] sm:$0xff] %v3560_v17  ;;  %v3562_v25 = vmul.f32 0.4342945, %v1867_v18  ;;  %v1871_v26 = vmul.f32 0.6931472, %v6125_v20  ;;  %6152 = vlog2.f32 %v506_v15  ;;  %v522_v15 = vld [vmem:[%s7677_s30 + $0xc00] sm:$0xff] }
 0x1a7   : > { %v6129_v28 = vpop.eup %6128  ;;  %4585 = vst [vmem:[%s7706_s17 + $0xaf8] sm:$0xff] %v3561_v21  ;;  %v3563_v29 = vmul.f32 0.4342945, %v1869_v22  ;;  %v1873_v30 = vmul.f32 0.6931472, %v6127_v24  ;;  %6154 = vlog2.f32 %v507_v19  ;;  %v523_v19 = vld [vmem:[%s7677_s30 + $0xc08] sm:$0xff] }
 0x1a8   : > { %v6131_v32 = vpop.eup %6130  ;;  %4586 = vst [vmem:[%s7706_s17 + $0xb00] sm:$0xff] %v3562_v25  ;;  %v3564_v33 = vmul.f32 0.4342945, %v1871_v26  ;;  %v1875_v34 = vmul.f32 0.6931472, %v6129_v28  ;;  %6156 = vlog2.f32 %v508_v23  ;;  %v524_v23 = vld [vmem:[%s7677_s30 + $0xc10] sm:$0xff] }
 0x1a9   : > { %v6133_v36 = vpop.eup %6132  ;;  %4587 = vst [vmem:[%s7706_s17 + $0xb08] sm:$0xff] %v3563_v29  ;;  %v3565_v37 = vmul.f32 0.4342945, %v1873_v30  ;;  %v1877_v38 = vmul.f32 0.6931472, %v6131_v32  ;;  %6158 = vlog2.f32 %v509_v27  ;;  %v525_v27 = vld [vmem:[%s7677_s30 + $0xc18] sm:$0xff] }
 0x1aa   : > { %v6135_v40 = vpop.eup %6134  ;;  %4588 = vst [vmem:[%s7706_s17 + $0xb10] sm:$0xff] %v3564_v33  ;;  %v3566_v41 = vmul.f32 0.4342945, %v1875_v34  ;;  %v1879_v42 = vmul.f32 0.6931472, %v6133_v36  ;;  %6160 = vlog2.f32 %v510_v31  ;;  %v526_v31 = vld [vmem:[%s7677_s30 + $0xc20] sm:$0xff] }
 0x1ab   : > { %v6137_v44 = vpop.eup %6136  ;;  %4589 = vst [vmem:[%s7706_s17 + $0xb18] sm:$0xff] %v3565_v37  ;;  %v3567_v45 = vmul.f32 0.4342945, %v1877_v38  ;;  %v1881_v46 = vmul.f32 0.6931472, %v6135_v40  ;;  %6162 = vlog2.f32 %v511_v35  ;;  %v527_v35 = vld [vmem:[%s7677_s30 + $0xc28] sm:$0xff] }
 0x1ac   : > { %v6139_v48 = vpop.eup %6138  ;;  %4590 = vst [vmem:[%s7706_s17 + $0xb20] sm:$0xff] %v3566_v41  ;;  %v3568_v49 = vmul.f32 0.4342945, %v1879_v42  ;;  %v1883_v50 = vmul.f32 0.6931472, %v6137_v44  ;;  %6164 = vlog2.f32 %v512_v39  ;;  %v528_v39 = vld [vmem:[%s7677_s30 + $0xc30] sm:$0xff] }
 0x1ad   : > { %v6141_v52 = vpop.eup %6140  ;;  %4591 = vst [vmem:[%s7706_s17 + $0xb28] sm:$0xff] %v3567_v45  ;;  %v3569_v53 = vmul.f32 0.4342945, %v1881_v46  ;;  %v1885_v54 = vmul.f32 0.6931472, %v6139_v48  ;;  %6166 = vlog2.f32 %v513_v43  ;;  %v529_v43 = vld [vmem:[%s7677_s30 + $0xc38] sm:$0xff] }
 0x1ae   : > { %v6143_v56 = vpop.eup %6142  ;;  %4592 = vst [vmem:[%s7706_s17 + $0xb30] sm:$0xff] %v3568_v49  ;;  %v3570_v57 = vmul.f32 0.4342945, %v1883_v50  ;;  %v1887_v58 = vmul.f32 0.6931472, %v6141_v52  ;;  %6168 = vlog2.f32 %v514_v47  ;;  %v530_v47 = vld [vmem:[%s7677_s30 + $0xc40] sm:$0xff] }
 0x1af   : > { %v6145_v60 = vpop.eup %6144  ;;  %4593 = vst [vmem:[%s7706_s17 + $0xb38] sm:$0xff] %v3569_v53  ;;  %v3571_v61 = vmul.f32 0.4342945, %v1885_v54  ;;  %v1889_v62 = vmul.f32 0.6931472, %v6143_v56  ;;  %6170 = vlog2.f32 %v515_v51  ;;  %v531_v51 = vld [vmem:[%s7677_s30 + $0xc48] sm:$0xff] }
 0x1b0   : > { %v6147_v0 = vpop.eup %6146  ;;  %4594 = vst [vmem:[%s7706_s17 + $0xb40] sm:$0xff] %v3570_v57  ;;  %v3572_v1 = vmul.f32 0.4342945, %v1887_v58  ;;  %v1891_v2 = vmul.f32 0.6931472, %v6145_v60  ;;  %6172 = vlog2.f32 %v516_v55  ;;  %v532_v55 = vld [vmem:[%s7677_s30 + $0xc50] sm:$0xff] }
 0x1b1   : > { %v6149_v4 = vpop.eup %6148  ;;  %4595 = vst [vmem:[%s7706_s17 + $0xb48] sm:$0xff] %v3571_v61  ;;  %v3573_v5 = vmul.f32 0.4342945, %v1889_v62  ;;  %v1893_v6 = vmul.f32 0.6931472, %v6147_v0  ;;  %6174 = vlog2.f32 %v517_v59  ;;  %v533_v59 = vld [vmem:[%s7677_s30 + $0xc58] sm:$0xff] }
 0x1b2   : > { %v6151_v8 = vpop.eup %6150  ;;  %4596 = vst [vmem:[%s7706_s17 + $0xb50] sm:$0xff] %v3572_v1  ;;  %v3574_v9 = vmul.f32 0.4342945, %v1891_v2  ;;  %v1895_v10 = vmul.f32 0.6931472, %v6149_v4  ;;  %6176 = vlog2.f32 %v518_v63  ;;  %v534_v63 = vld [vmem:[%s7677_s30 + $0xc60] sm:$0xff] }
 0x1b3   : > { %v6153_v12 = vpop.eup %6152  ;;  %4597 = vst [vmem:[%s7706_s17 + $0xb58] sm:$0xff] %v3573_v5  ;;  %v3575_v13 = vmul.f32 0.4342945, %v1893_v6  ;;  %v1897_v14 = vmul.f32 0.6931472, %v6151_v8  ;;  %6178 = vlog2.f32 %v519_v3  ;;  %v535_v3 = vld [vmem:[%s7677_s30 + $0xc68] sm:$0xff] }
 0x1b4   : > { %v6155_v16 = vpop.eup %6154  ;;  %4598 = vst [vmem:[%s7706_s17 + $0xb60] sm:$0xff] %v3574_v9  ;;  %v3576_v17 = vmul.f32 0.4342945, %v1895_v10  ;;  %v1899_v18 = vmul.f32 0.6931472, %v6153_v12  ;;  %6180 = vlog2.f32 %v520_v7  ;;  %v536_v7 = vld [vmem:[%s7677_s30 + $0xc70] sm:$0xff] }
 0x1b5   : > { %v6157_v20 = vpop.eup %6156  ;;  %4599 = vst [vmem:[%s7706_s17 + $0xb68] sm:$0xff] %v3575_v13  ;;  %v3577_v21 = vmul.f32 0.4342945, %v1897_v14  ;;  %v1901_v22 = vmul.f32 0.6931472, %v6155_v16  ;;  %6182 = vlog2.f32 %v521_v11  ;;  %v537_v11 = vld [vmem:[%s7677_s30 + $0xc78] sm:$0xff] }
 0x1b6   : > { %v6159_v24 = vpop.eup %6158  ;;  %4600 = vst [vmem:[%s7706_s17 + $0xb70] sm:$0xff] %v3576_v17  ;;  %v3578_v25 = vmul.f32 0.4342945, %v1899_v18  ;;  %v1903_v26 = vmul.f32 0.6931472, %v6157_v20  ;;  %6184 = vlog2.f32 %v522_v15  ;;  %v538_v15 = vld [vmem:[%s7677_s30 + $0xc80] sm:$0xff] }
 0x1b7   : > { %v6161_v28 = vpop.eup %6160  ;;  %4601 = vst [vmem:[%s7706_s17 + $0xb78] sm:$0xff] %v3577_v21  ;;  %v3579_v29 = vmul.f32 0.4342945, %v1901_v22  ;;  %v1905_v30 = vmul.f32 0.6931472, %v6159_v24  ;;  %6186 = vlog2.f32 %v523_v19  ;;  %v539_v19 = vld [vmem:[%s7677_s30 + $0xc88] sm:$0xff] }
 0x1b8   : > { %v6163_v32 = vpop.eup %6162  ;;  %4602 = vst [vmem:[%s7706_s17 + $0xb80] sm:$0xff] %v3578_v25  ;;  %v3580_v33 = vmul.f32 0.4342945, %v1903_v26  ;;  %v1907_v34 = vmul.f32 0.6931472, %v6161_v28  ;;  %6188 = vlog2.f32 %v524_v23  ;;  %v540_v23 = vld [vmem:[%s7677_s30 + $0xc90] sm:$0xff] }
 0x1b9   : > { %v6165_v36 = vpop.eup %6164  ;;  %4603 = vst [vmem:[%s7706_s17 + $0xb88] sm:$0xff] %v3579_v29  ;;  %v3581_v37 = vmul.f32 0.4342945, %v1905_v30  ;;  %v1909_v38 = vmul.f32 0.6931472, %v6163_v32  ;;  %6190 = vlog2.f32 %v525_v27  ;;  %v541_v27 = vld [vmem:[%s7677_s30 + $0xc98] sm:$0xff] }
 0x1ba   : > { %v6167_v40 = vpop.eup %6166  ;;  %4604 = vst [vmem:[%s7706_s17 + $0xb90] sm:$0xff] %v3580_v33  ;;  %v3582_v41 = vmul.f32 0.4342945, %v1907_v34  ;;  %v1911_v42 = vmul.f32 0.6931472, %v6165_v36  ;;  %6192 = vlog2.f32 %v526_v31  ;;  %v542_v31 = vld [vmem:[%s7677_s30 + $0xca0] sm:$0xff] }
 0x1bb   : > { %v6169_v44 = vpop.eup %6168  ;;  %4605 = vst [vmem:[%s7706_s17 + $0xb98] sm:$0xff] %v3581_v37  ;;  %v3583_v45 = vmul.f32 0.4342945, %v1909_v38  ;;  %v1913_v46 = vmul.f32 0.6931472, %v6167_v40  ;;  %6194 = vlog2.f32 %v527_v35  ;;  %v543_v35 = vld [vmem:[%s7677_s30 + $0xca8] sm:$0xff] }
 0x1bc   : > { %v6171_v48 = vpop.eup %6170  ;;  %4606 = vst [vmem:[%s7706_s17 + $0xba0] sm:$0xff] %v3582_v41  ;;  %v3584_v49 = vmul.f32 0.4342945, %v1911_v42  ;;  %v1915_v50 = vmul.f32 0.6931472, %v6169_v44  ;;  %6196 = vlog2.f32 %v528_v39  ;;  %v544_v39 = vld [vmem:[%s7677_s30 + $0xcb0] sm:$0xff] }
 0x1bd   : > { %v6173_v52 = vpop.eup %6172  ;;  %4607 = vst [vmem:[%s7706_s17 + $0xba8] sm:$0xff] %v3583_v45  ;;  %v3585_v53 = vmul.f32 0.4342945, %v1913_v46  ;;  %v1917_v54 = vmul.f32 0.6931472, %v6171_v48  ;;  %6198 = vlog2.f32 %v529_v43  ;;  %v545_v43 = vld [vmem:[%s7677_s30 + $0xcb8] sm:$0xff] }
 0x1be   : > { %v6175_v56 = vpop.eup %6174  ;;  %4608 = vst [vmem:[%s7706_s17 + $0xbb0] sm:$0xff] %v3584_v49  ;;  %v3586_v57 = vmul.f32 0.4342945, %v1915_v50  ;;  %v1919_v58 = vmul.f32 0.6931472, %v6173_v52  ;;  %6200 = vlog2.f32 %v530_v47  ;;  %v546_v47 = vld [vmem:[%s7677_s30 + $0xcc0] sm:$0xff] }
 0x1bf   : > { %v6177_v60 = vpop.eup %6176  ;;  %4609 = vst [vmem:[%s7706_s17 + $0xbb8] sm:$0xff] %v3585_v53  ;;  %v3587_v61 = vmul.f32 0.4342945, %v1917_v54  ;;  %v1921_v62 = vmul.f32 0.6931472, %v6175_v56  ;;  %6202 = vlog2.f32 %v531_v51  ;;  %v547_v51 = vld [vmem:[%s7677_s30 + $0xcc8] sm:$0xff] }
 0x1c0   : > { %v6179_v0 = vpop.eup %6178  ;;  %4610 = vst [vmem:[%s7706_s17 + $0xbc0] sm:$0xff] %v3586_v57  ;;  %v3588_v1 = vmul.f32 0.4342945, %v1919_v58  ;;  %v1923_v2 = vmul.f32 0.6931472, %v6177_v60  ;;  %6204 = vlog2.f32 %v532_v55  ;;  %v548_v55 = vld [vmem:[%s7677_s30 + $0xcd0] sm:$0xff] }
 0x1c1   : > { %v6181_v4 = vpop.eup %6180  ;;  %4611 = vst [vmem:[%s7706_s17 + $0xbc8] sm:$0xff] %v3587_v61  ;;  %v3589_v5 = vmul.f32 0.4342945, %v1921_v62  ;;  %v1925_v6 = vmul.f32 0.6931472, %v6179_v0  ;;  %6206 = vlog2.f32 %v533_v59  ;;  %v549_v59 = vld [vmem:[%s7677_s30 + $0xcd8] sm:$0xff] }
 0x1c2   : > { %v6183_v8 = vpop.eup %6182  ;;  %4612 = vst [vmem:[%s7706_s17 + $0xbd0] sm:$0xff] %v3588_v1  ;;  %v3590_v9 = vmul.f32 0.4342945, %v1923_v2  ;;  %v1927_v10 = vmul.f32 0.6931472, %v6181_v4  ;;  %6208 = vlog2.f32 %v534_v63  ;;  %v550_v63 = vld [vmem:[%s7677_s30 + $0xce0] sm:$0xff] }
 0x1c3   : > { %v6185_v12 = vpop.eup %6184  ;;  %4613 = vst [vmem:[%s7706_s17 + $0xbd8] sm:$0xff] %v3589_v5  ;;  %v3591_v13 = vmul.f32 0.4342945, %v1925_v6  ;;  %v1929_v14 = vmul.f32 0.6931472, %v6183_v8  ;;  %6210 = vlog2.f32 %v535_v3  ;;  %v551_v3 = vld [vmem:[%s7677_s30 + $0xce8] sm:$0xff] }
 0x1c4   : > { %v6187_v16 = vpop.eup %6186  ;;  %4614 = vst [vmem:[%s7706_s17 + $0xbe0] sm:$0xff] %v3590_v9  ;;  %v3592_v17 = vmul.f32 0.4342945, %v1927_v10  ;;  %v1931_v18 = vmul.f32 0.6931472, %v6185_v12  ;;  %6212 = vlog2.f32 %v536_v7  ;;  %v552_v7 = vld [vmem:[%s7677_s30 + $0xcf0] sm:$0xff] }
 0x1c5   : > { %v6189_v20 = vpop.eup %6188  ;;  %4615 = vst [vmem:[%s7706_s17 + $0xbe8] sm:$0xff] %v3591_v13  ;;  %v3593_v21 = vmul.f32 0.4342945, %v1929_v14  ;;  %v1933_v22 = vmul.f32 0.6931472, %v6187_v16  ;;  %6214 = vlog2.f32 %v537_v11  ;;  %v553_v11 = vld [vmem:[%s7677_s30 + $0xcf8] sm:$0xff] }
 0x1c6   : > { %v6191_v24 = vpop.eup %6190  ;;  %4616 = vst [vmem:[%s7706_s17 + $0xbf0] sm:$0xff] %v3592_v17  ;;  %v3594_v25 = vmul.f32 0.4342945, %v1931_v18  ;;  %v1935_v26 = vmul.f32 0.6931472, %v6189_v20  ;;  %6216 = vlog2.f32 %v538_v15  ;;  %v554_v15 = vld [vmem:[%s7677_s30 + $0xd00] sm:$0xff] }
 0x1c7   : > { %v6193_v28 = vpop.eup %6192  ;;  %4617 = vst [vmem:[%s7706_s17 + $0xbf8] sm:$0xff] %v3593_v21  ;;  %v3595_v29 = vmul.f32 0.4342945, %v1933_v22  ;;  %v1937_v30 = vmul.f32 0.6931472, %v6191_v24  ;;  %6218 = vlog2.f32 %v539_v19  ;;  %v555_v19 = vld [vmem:[%s7677_s30 + $0xd08] sm:$0xff] }
 0x1c8   : > { %v6195_v32 = vpop.eup %6194  ;;  %4618 = vst [vmem:[%s7706_s17 + $0xc00] sm:$0xff] %v3594_v25  ;;  %v3596_v33 = vmul.f32 0.4342945, %v1935_v26  ;;  %v1939_v34 = vmul.f32 0.6931472, %v6193_v28  ;;  %6220 = vlog2.f32 %v540_v23  ;;  %v556_v23 = vld [vmem:[%s7677_s30 + $0xd10] sm:$0xff] }
 0x1c9   : > { %v6197_v36 = vpop.eup %6196  ;;  %4619 = vst [vmem:[%s7706_s17 + $0xc08] sm:$0xff] %v3595_v29  ;;  %v3597_v37 = vmul.f32 0.4342945, %v1937_v30  ;;  %v1941_v38 = vmul.f32 0.6931472, %v6195_v32  ;;  %6222 = vlog2.f32 %v541_v27  ;;  %v557_v27 = vld [vmem:[%s7677_s30 + $0xd18] sm:$0xff] }
 0x1ca   : > { %v6199_v40 = vpop.eup %6198  ;;  %4620 = vst [vmem:[%s7706_s17 + $0xc10] sm:$0xff] %v3596_v33  ;;  %v3598_v41 = vmul.f32 0.4342945, %v1939_v34  ;;  %v1943_v42 = vmul.f32 0.6931472, %v6197_v36  ;;  %6224 = vlog2.f32 %v542_v31  ;;  %v558_v31 = vld [vmem:[%s7677_s30 + $0xd20] sm:$0xff] }
 0x1cb   : > { %v6201_v44 = vpop.eup %6200  ;;  %4621 = vst [vmem:[%s7706_s17 + $0xc18] sm:$0xff] %v3597_v37  ;;  %v3599_v45 = vmul.f32 0.4342945, %v1941_v38  ;;  %v1945_v46 = vmul.f32 0.6931472, %v6199_v40  ;;  %6226 = vlog2.f32 %v543_v35  ;;  %v559_v35 = vld [vmem:[%s7677_s30 + $0xd28] sm:$0xff] }
 0x1cc   : > { %v6203_v48 = vpop.eup %6202  ;;  %4622 = vst [vmem:[%s7706_s17 + $0xc20] sm:$0xff] %v3598_v41  ;;  %v3600_v49 = vmul.f32 0.4342945, %v1943_v42  ;;  %v1947_v50 = vmul.f32 0.6931472, %v6201_v44  ;;  %6228 = vlog2.f32 %v544_v39  ;;  %v560_v39 = vld [vmem:[%s7677_s30 + $0xd30] sm:$0xff] }
 0x1cd   : > { %v6205_v52 = vpop.eup %6204  ;;  %4623 = vst [vmem:[%s7706_s17 + $0xc28] sm:$0xff] %v3599_v45  ;;  %v3601_v53 = vmul.f32 0.4342945, %v1945_v46  ;;  %v1949_v54 = vmul.f32 0.6931472, %v6203_v48  ;;  %6230 = vlog2.f32 %v545_v43  ;;  %v561_v43 = vld [vmem:[%s7677_s30 + $0xd38] sm:$0xff] }
 0x1ce   : > { %v6207_v56 = vpop.eup %6206  ;;  %4624 = vst [vmem:[%s7706_s17 + $0xc30] sm:$0xff] %v3600_v49  ;;  %v3602_v57 = vmul.f32 0.4342945, %v1947_v50  ;;  %v1951_v58 = vmul.f32 0.6931472, %v6205_v52  ;;  %6232 = vlog2.f32 %v546_v47  ;;  %v562_v47 = vld [vmem:[%s7677_s30 + $0xd40] sm:$0xff] }
 0x1cf   : > { %v6209_v60 = vpop.eup %6208  ;;  %4625 = vst [vmem:[%s7706_s17 + $0xc38] sm:$0xff] %v3601_v53  ;;  %v3603_v61 = vmul.f32 0.4342945, %v1949_v54  ;;  %v1953_v62 = vmul.f32 0.6931472, %v6207_v56  ;;  %6234 = vlog2.f32 %v547_v51  ;;  %v563_v51 = vld [vmem:[%s7677_s30 + $0xd48] sm:$0xff] }
 0x1d0   : > { %v6211_v0 = vpop.eup %6210  ;;  %4626 = vst [vmem:[%s7706_s17 + $0xc40] sm:$0xff] %v3602_v57  ;;  %v3604_v1 = vmul.f32 0.4342945, %v1951_v58  ;;  %v1955_v2 = vmul.f32 0.6931472, %v6209_v60  ;;  %6236 = vlog2.f32 %v548_v55  ;;  %v564_v55 = vld [vmem:[%s7677_s30 + $0xd50] sm:$0xff] }
 0x1d1   : > { %v6213_v4 = vpop.eup %6212  ;;  %4627 = vst [vmem:[%s7706_s17 + $0xc48] sm:$0xff] %v3603_v61  ;;  %v3605_v5 = vmul.f32 0.4342945, %v1953_v62  ;;  %v1957_v6 = vmul.f32 0.6931472, %v6211_v0  ;;  %6238 = vlog2.f32 %v549_v59  ;;  %v565_v59 = vld [vmem:[%s7677_s30 + $0xd58] sm:$0xff] }
 0x1d2   : > { %v6215_v8 = vpop.eup %6214  ;;  %4628 = vst [vmem:[%s7706_s17 + $0xc50] sm:$0xff] %v3604_v1  ;;  %v3606_v9 = vmul.f32 0.4342945, %v1955_v2  ;;  %v1959_v10 = vmul.f32 0.6931472, %v6213_v4  ;;  %6240 = vlog2.f32 %v550_v63  ;;  %v566_v63 = vld [vmem:[%s7677_s30 + $0xd60] sm:$0xff] }
 0x1d3   : > { %v6217_v12 = vpop.eup %6216  ;;  %4629 = vst [vmem:[%s7706_s17 + $0xc58] sm:$0xff] %v3605_v5  ;;  %v3607_v13 = vmul.f32 0.4342945, %v1957_v6  ;;  %v1961_v14 = vmul.f32 0.6931472, %v6215_v8  ;;  %6242 = vlog2.f32 %v551_v3  ;;  %v567_v3 = vld [vmem:[%s7677_s30 + $0xd68] sm:$0xff] }
 0x1d4   : > { %v6219_v16 = vpop.eup %6218  ;;  %4630 = vst [vmem:[%s7706_s17 + $0xc60] sm:$0xff] %v3606_v9  ;;  %v3608_v17 = vmul.f32 0.4342945, %v1959_v10  ;;  %v1963_v18 = vmul.f32 0.6931472, %v6217_v12  ;;  %6244 = vlog2.f32 %v552_v7  ;;  %v568_v7 = vld [vmem:[%s7677_s30 + $0xd70] sm:$0xff] }
 0x1d5   : > { %v6221_v20 = vpop.eup %6220  ;;  %4631 = vst [vmem:[%s7706_s17 + $0xc68] sm:$0xff] %v3607_v13  ;;  %v3609_v21 = vmul.f32 0.4342945, %v1961_v14  ;;  %v1965_v22 = vmul.f32 0.6931472, %v6219_v16  ;;  %6246 = vlog2.f32 %v553_v11  ;;  %v569_v11 = vld [vmem:[%s7677_s30 + $0xd78] sm:$0xff] }
 0x1d6   : > { %v6223_v24 = vpop.eup %6222  ;;  %4632 = vst [vmem:[%s7706_s17 + $0xc70] sm:$0xff] %v3608_v17  ;;  %v3610_v25 = vmul.f32 0.4342945, %v1963_v18  ;;  %v1967_v26 = vmul.f32 0.6931472, %v6221_v20  ;;  %6248 = vlog2.f32 %v554_v15  ;;  %v570_v15 = vld [vmem:[%s7677_s30 + $0xd80] sm:$0xff] }
 0x1d7   : > { %v6225_v28 = vpop.eup %6224  ;;  %4633 = vst [vmem:[%s7706_s17 + $0xc78] sm:$0xff] %v3609_v21  ;;  %v3611_v29 = vmul.f32 0.4342945, %v1965_v22  ;;  %v1969_v30 = vmul.f32 0.6931472, %v6223_v24  ;;  %6250 = vlog2.f32 %v555_v19  ;;  %v571_v19 = vld [vmem:[%s7677_s30 + $0xd88] sm:$0xff] }
 0x1d8   : > { %v6227_v32 = vpop.eup %6226  ;;  %4634 = vst [vmem:[%s7706_s17 + $0xc80] sm:$0xff] %v3610_v25  ;;  %v3612_v33 = vmul.f32 0.4342945, %v1967_v26  ;;  %v1971_v34 = vmul.f32 0.6931472, %v6225_v28  ;;  %6252 = vlog2.f32 %v556_v23  ;;  %v572_v23 = vld [vmem:[%s7677_s30 + $0xd90] sm:$0xff] }
 0x1d9   : > { %v6229_v36 = vpop.eup %6228  ;;  %4635 = vst [vmem:[%s7706_s17 + $0xc88] sm:$0xff] %v3611_v29  ;;  %v3613_v37 = vmul.f32 0.4342945, %v1969_v30  ;;  %v1973_v38 = vmul.f32 0.6931472, %v6227_v32  ;;  %6254 = vlog2.f32 %v557_v27  ;;  %v573_v27 = vld [vmem:[%s7677_s30 + $0xd98] sm:$0xff] }
 0x1da   : > { %v6231_v40 = vpop.eup %6230  ;;  %4636 = vst [vmem:[%s7706_s17 + $0xc90] sm:$0xff] %v3612_v33  ;;  %v3614_v41 = vmul.f32 0.4342945, %v1971_v34  ;;  %v1975_v42 = vmul.f32 0.6931472, %v6229_v36  ;;  %6256 = vlog2.f32 %v558_v31  ;;  %v574_v31 = vld [vmem:[%s7677_s30 + $0xda0] sm:$0xff] }
 0x1db   : > { %v6233_v44 = vpop.eup %6232  ;;  %4637 = vst [vmem:[%s7706_s17 + $0xc98] sm:$0xff] %v3613_v37  ;;  %v3615_v45 = vmul.f32 0.4342945, %v1973_v38  ;;  %v1977_v46 = vmul.f32 0.6931472, %v6231_v40  ;;  %6258 = vlog2.f32 %v559_v35  ;;  %v575_v35 = vld [vmem:[%s7677_s30 + $0xda8] sm:$0xff] }
 0x1dc   : > { %v6235_v48 = vpop.eup %6234  ;;  %4638 = vst [vmem:[%s7706_s17 + $0xca0] sm:$0xff] %v3614_v41  ;;  %v3616_v49 = vmul.f32 0.4342945, %v1975_v42  ;;  %v1979_v50 = vmul.f32 0.6931472, %v6233_v44  ;;  %6260 = vlog2.f32 %v560_v39  ;;  %v576_v39 = vld [vmem:[%s7677_s30 + $0xdb0] sm:$0xff] }
 0x1dd   : > { %v6237_v52 = vpop.eup %6236  ;;  %4639 = vst [vmem:[%s7706_s17 + $0xca8] sm:$0xff] %v3615_v45  ;;  %v3617_v53 = vmul.f32 0.4342945, %v1977_v46  ;;  %v1981_v54 = vmul.f32 0.6931472, %v6235_v48  ;;  %6262 = vlog2.f32 %v561_v43  ;;  %v577_v43 = vld [vmem:[%s7677_s30 + $0xdb8] sm:$0xff] }
 0x1de   : > { %v6239_v56 = vpop.eup %6238  ;;  %4640 = vst [vmem:[%s7706_s17 + $0xcb0] sm:$0xff] %v3616_v49  ;;  %v3618_v57 = vmul.f32 0.4342945, %v1979_v50  ;;  %v1983_v58 = vmul.f32 0.6931472, %v6237_v52  ;;  %6264 = vlog2.f32 %v562_v47  ;;  %v578_v47 = vld [vmem:[%s7677_s30 + $0xdc0] sm:$0xff] }
 0x1df   : > { %v6241_v60 = vpop.eup %6240  ;;  %4641 = vst [vmem:[%s7706_s17 + $0xcb8] sm:$0xff] %v3617_v53  ;;  %v3619_v61 = vmul.f32 0.4342945, %v1981_v54  ;;  %v1985_v62 = vmul.f32 0.6931472, %v6239_v56  ;;  %6266 = vlog2.f32 %v563_v51  ;;  %v579_v51 = vld [vmem:[%s7677_s30 + $0xdc8] sm:$0xff] }
 0x1e0   : > { %v6243_v0 = vpop.eup %6242  ;;  %4642 = vst [vmem:[%s7706_s17 + $0xcc0] sm:$0xff] %v3618_v57  ;;  %v3620_v1 = vmul.f32 0.4342945, %v1983_v58  ;;  %v1987_v2 = vmul.f32 0.6931472, %v6241_v60  ;;  %6268 = vlog2.f32 %v564_v55  ;;  %v580_v55 = vld [vmem:[%s7677_s30 + $0xdd0] sm:$0xff] }
 0x1e1   : > { %v6245_v4 = vpop.eup %6244  ;;  %4643 = vst [vmem:[%s7706_s17 + $0xcc8] sm:$0xff] %v3619_v61  ;;  %v3621_v5 = vmul.f32 0.4342945, %v1985_v62  ;;  %v1989_v6 = vmul.f32 0.6931472, %v6243_v0  ;;  %6270 = vlog2.f32 %v565_v59  ;;  %v581_v59 = vld [vmem:[%s7677_s30 + $0xdd8] sm:$0xff] }
 0x1e2   : > { %v6247_v8 = vpop.eup %6246  ;;  %4644 = vst [vmem:[%s7706_s17 + $0xcd0] sm:$0xff] %v3620_v1  ;;  %v3622_v9 = vmul.f32 0.4342945, %v1987_v2  ;;  %v1991_v10 = vmul.f32 0.6931472, %v6245_v4  ;;  %6272 = vlog2.f32 %v566_v63  ;;  %v582_v63 = vld [vmem:[%s7677_s30 + $0xde0] sm:$0xff] }
 0x1e3   : > { %v6249_v12 = vpop.eup %6248  ;;  %4645 = vst [vmem:[%s7706_s17 + $0xcd8] sm:$0xff] %v3621_v5  ;;  %v3623_v13 = vmul.f32 0.4342945, %v1989_v6  ;;  %v1993_v14 = vmul.f32 0.6931472, %v6247_v8  ;;  %6274 = vlog2.f32 %v567_v3  ;;  %v583_v3 = vld [vmem:[%s7677_s30 + $0xde8] sm:$0xff] }
 0x1e4   : > { %v6251_v16 = vpop.eup %6250  ;;  %4646 = vst [vmem:[%s7706_s17 + $0xce0] sm:$0xff] %v3622_v9  ;;  %v3624_v17 = vmul.f32 0.4342945, %v1991_v10  ;;  %v1995_v18 = vmul.f32 0.6931472, %v6249_v12  ;;  %6276 = vlog2.f32 %v568_v7  ;;  %v584_v7 = vld [vmem:[%s7677_s30 + $0xdf0] sm:$0xff] }
 0x1e5   : > { %v6253_v20 = vpop.eup %6252  ;;  %4647 = vst [vmem:[%s7706_s17 + $0xce8] sm:$0xff] %v3623_v13  ;;  %v3625_v21 = vmul.f32 0.4342945, %v1993_v14  ;;  %v1997_v22 = vmul.f32 0.6931472, %v6251_v16  ;;  %6278 = vlog2.f32 %v569_v11  ;;  %v585_v11 = vld [vmem:[%s7677_s30 + $0xdf8] sm:$0xff] }
 0x1e6   : > { %v6255_v24 = vpop.eup %6254  ;;  %4648 = vst [vmem:[%s7706_s17 + $0xcf0] sm:$0xff] %v3624_v17  ;;  %v3626_v25 = vmul.f32 0.4342945, %v1995_v18  ;;  %v1999_v26 = vmul.f32 0.6931472, %v6253_v20  ;;  %6280 = vlog2.f32 %v570_v15  ;;  %v586_v15 = vld [vmem:[%s7677_s30 + $0xe00] sm:$0xff] }
 0x1e7   : > { %v6257_v28 = vpop.eup %6256  ;;  %4649 = vst [vmem:[%s7706_s17 + $0xcf8] sm:$0xff] %v3625_v21  ;;  %v3627_v29 = vmul.f32 0.4342945, %v1997_v22  ;;  %v2001_v30 = vmul.f32 0.6931472, %v6255_v24  ;;  %6282 = vlog2.f32 %v571_v19  ;;  %v587_v19 = vld [vmem:[%s7677_s30 + $0xe08] sm:$0xff] }
 0x1e8   : > { %v6259_v32 = vpop.eup %6258  ;;  %4650 = vst [vmem:[%s7706_s17 + $0xd00] sm:$0xff] %v3626_v25  ;;  %v3628_v33 = vmul.f32 0.4342945, %v1999_v26  ;;  %v2003_v34 = vmul.f32 0.6931472, %v6257_v28  ;;  %6284 = vlog2.f32 %v572_v23  ;;  %v588_v23 = vld [vmem:[%s7677_s30 + $0xe10] sm:$0xff] }
 0x1e9   : > { %v6261_v36 = vpop.eup %6260  ;;  %4651 = vst [vmem:[%s7706_s17 + $0xd08] sm:$0xff] %v3627_v29  ;;  %v3629_v37 = vmul.f32 0.4342945, %v2001_v30  ;;  %v2005_v38 = vmul.f32 0.6931472, %v6259_v32  ;;  %6286 = vlog2.f32 %v573_v27  ;;  %v589_v27 = vld [vmem:[%s7677_s30 + $0xe18] sm:$0xff] }
 0x1ea   : > { %v6263_v40 = vpop.eup %6262  ;;  %4652 = vst [vmem:[%s7706_s17 + $0xd10] sm:$0xff] %v3628_v33  ;;  %v3630_v41 = vmul.f32 0.4342945, %v2003_v34  ;;  %v2007_v42 = vmul.f32 0.6931472, %v6261_v36  ;;  %6288 = vlog2.f32 %v574_v31  ;;  %v590_v31 = vld [vmem:[%s7677_s30 + $0xe20] sm:$0xff] }
 0x1eb   : > { %v6265_v44 = vpop.eup %6264  ;;  %4653 = vst [vmem:[%s7706_s17 + $0xd18] sm:$0xff] %v3629_v37  ;;  %v3631_v45 = vmul.f32 0.4342945, %v2005_v38  ;;  %v2009_v46 = vmul.f32 0.6931472, %v6263_v40  ;;  %6290 = vlog2.f32 %v575_v35  ;;  %v591_v35 = vld [vmem:[%s7677_s30 + $0xe28] sm:$0xff] }
 0x1ec   : > { %v6267_v48 = vpop.eup %6266  ;;  %4654 = vst [vmem:[%s7706_s17 + $0xd20] sm:$0xff] %v3630_v41  ;;  %v3632_v49 = vmul.f32 0.4342945, %v2007_v42  ;;  %v2011_v50 = vmul.f32 0.6931472, %v6265_v44  ;;  %6292 = vlog2.f32 %v576_v39  ;;  %v592_v39 = vld [vmem:[%s7677_s30 + $0xe30] sm:$0xff] }
 0x1ed   : > { %v6269_v52 = vpop.eup %6268  ;;  %4655 = vst [vmem:[%s7706_s17 + $0xd28] sm:$0xff] %v3631_v45  ;;  %v3633_v53 = vmul.f32 0.4342945, %v2009_v46  ;;  %v2013_v54 = vmul.f32 0.6931472, %v6267_v48  ;;  %6294 = vlog2.f32 %v577_v43  ;;  %v593_v43 = vld [vmem:[%s7677_s30 + $0xe38] sm:$0xff] }
 0x1ee   : > { %v6271_v56 = vpop.eup %6270  ;;  %4656 = vst [vmem:[%s7706_s17 + $0xd30] sm:$0xff] %v3632_v49  ;;  %v3634_v57 = vmul.f32 0.4342945, %v2011_v50  ;;  %v2015_v58 = vmul.f32 0.6931472, %v6269_v52  ;;  %6296 = vlog2.f32 %v578_v47  ;;  %v594_v47 = vld [vmem:[%s7677_s30 + $0xe40] sm:$0xff] }
 0x1ef   : > { %v6273_v60 = vpop.eup %6272  ;;  %4657 = vst [vmem:[%s7706_s17 + $0xd38] sm:$0xff] %v3633_v53  ;;  %v3635_v61 = vmul.f32 0.4342945, %v2013_v54  ;;  %v2017_v62 = vmul.f32 0.6931472, %v6271_v56  ;;  %6298 = vlog2.f32 %v579_v51  ;;  %v595_v51 = vld [vmem:[%s7677_s30 + $0xe48] sm:$0xff] }
 0x1f0   : > { %v6275_v0 = vpop.eup %6274  ;;  %4658 = vst [vmem:[%s7706_s17 + $0xd40] sm:$0xff] %v3634_v57  ;;  %v3636_v1 = vmul.f32 0.4342945, %v2015_v58  ;;  %v2019_v2 = vmul.f32 0.6931472, %v6273_v60  ;;  %6300 = vlog2.f32 %v580_v55  ;;  %v596_v55 = vld [vmem:[%s7677_s30 + $0xe50] sm:$0xff] }
 0x1f1   : > { %v6277_v4 = vpop.eup %6276  ;;  %4659 = vst [vmem:[%s7706_s17 + $0xd48] sm:$0xff] %v3635_v61  ;;  %v3637_v5 = vmul.f32 0.4342945, %v2017_v62  ;;  %v2021_v6 = vmul.f32 0.6931472, %v6275_v0  ;;  %6302 = vlog2.f32 %v581_v59  ;;  %v597_v59 = vld [vmem:[%s7677_s30 + $0xe58] sm:$0xff] }
 0x1f2   : > { %v6279_v8 = vpop.eup %6278  ;;  %4660 = vst [vmem:[%s7706_s17 + $0xd50] sm:$0xff] %v3636_v1  ;;  %v3638_v9 = vmul.f32 0.4342945, %v2019_v2  ;;  %v2023_v10 = vmul.f32 0.6931472, %v6277_v4  ;;  %6304 = vlog2.f32 %v582_v63  ;;  %v598_v63 = vld [vmem:[%s7677_s30 + $0xe60] sm:$0xff] }
 0x1f3   : > { %v6281_v12 = vpop.eup %6280  ;;  %4661 = vst [vmem:[%s7706_s17 + $0xd58] sm:$0xff] %v3637_v5  ;;  %v3639_v13 = vmul.f32 0.4342945, %v2021_v6  ;;  %v2025_v14 = vmul.f32 0.6931472, %v6279_v8  ;;  %6306 = vlog2.f32 %v583_v3  ;;  %v599_v3 = vld [vmem:[%s7677_s30 + $0xe68] sm:$0xff] }
 0x1f4   : > { %v6283_v16 = vpop.eup %6282  ;;  %4662 = vst [vmem:[%s7706_s17 + $0xd60] sm:$0xff] %v3638_v9  ;;  %v3640_v17 = vmul.f32 0.4342945, %v2023_v10  ;;  %v2027_v18 = vmul.f32 0.6931472, %v6281_v12  ;;  %6308 = vlog2.f32 %v584_v7  ;;  %v600_v7 = vld [vmem:[%s7677_s30 + $0xe70] sm:$0xff] }
 0x1f5   : > { %v6285_v20 = vpop.eup %6284  ;;  %4663 = vst [vmem:[%s7706_s17 + $0xd68] sm:$0xff] %v3639_v13  ;;  %v3641_v21 = vmul.f32 0.4342945, %v2025_v14  ;;  %v2029_v22 = vmul.f32 0.6931472, %v6283_v16  ;;  %6310 = vlog2.f32 %v585_v11  ;;  %v601_v11 = vld [vmem:[%s7677_s30 + $0xe78] sm:$0xff] }
 0x1f6   : > { %v6287_v24 = vpop.eup %6286  ;;  %4664 = vst [vmem:[%s7706_s17 + $0xd70] sm:$0xff] %v3640_v17  ;;  %v3642_v25 = vmul.f32 0.4342945, %v2027_v18  ;;  %v2031_v26 = vmul.f32 0.6931472, %v6285_v20  ;;  %6312 = vlog2.f32 %v586_v15  ;;  %v602_v15 = vld [vmem:[%s7677_s30 + $0xe80] sm:$0xff] }
 0x1f7   : > { %v6289_v28 = vpop.eup %6288  ;;  %4665 = vst [vmem:[%s7706_s17 + $0xd78] sm:$0xff] %v3641_v21  ;;  %v3643_v29 = vmul.f32 0.4342945, %v2029_v22  ;;  %v2033_v30 = vmul.f32 0.6931472, %v6287_v24  ;;  %6314 = vlog2.f32 %v587_v19  ;;  %v603_v19 = vld [vmem:[%s7677_s30 + $0xe88] sm:$0xff] }
 0x1f8   : > { %v6291_v32 = vpop.eup %6290  ;;  %4666 = vst [vmem:[%s7706_s17 + $0xd80] sm:$0xff] %v3642_v25  ;;  %v3644_v33 = vmul.f32 0.4342945, %v2031_v26  ;;  %v2035_v34 = vmul.f32 0.6931472, %v6289_v28  ;;  %6316 = vlog2.f32 %v588_v23  ;;  %v604_v23 = vld [vmem:[%s7677_s30 + $0xe90] sm:$0xff] }
 0x1f9   : > { %v6293_v36 = vpop.eup %6292  ;;  %4667 = vst [vmem:[%s7706_s17 + $0xd88] sm:$0xff] %v3643_v29  ;;  %v3645_v37 = vmul.f32 0.4342945, %v2033_v30  ;;  %v2037_v38 = vmul.f32 0.6931472, %v6291_v32  ;;  %6318 = vlog2.f32 %v589_v27  ;;  %v605_v27 = vld [vmem:[%s7677_s30 + $0xe98] sm:$0xff] }
 0x1fa   : > { %v6295_v40 = vpop.eup %6294  ;;  %4668 = vst [vmem:[%s7706_s17 + $0xd90] sm:$0xff] %v3644_v33  ;;  %v3646_v41 = vmul.f32 0.4342945, %v2035_v34  ;;  %v2039_v42 = vmul.f32 0.6931472, %v6293_v36  ;;  %6320 = vlog2.f32 %v590_v31  ;;  %v606_v31 = vld [vmem:[%s7677_s30 + $0xea0] sm:$0xff] }
 0x1fb   : > { %v6297_v44 = vpop.eup %6296  ;;  %4669 = vst [vmem:[%s7706_s17 + $0xd98] sm:$0xff] %v3645_v37  ;;  %v3647_v45 = vmul.f32 0.4342945, %v2037_v38  ;;  %v2041_v46 = vmul.f32 0.6931472, %v6295_v40  ;;  %6322 = vlog2.f32 %v591_v35  ;;  %v607_v35 = vld [vmem:[%s7677_s30 + $0xea8] sm:$0xff] }
 0x1fc   : > { %v6299_v48 = vpop.eup %6298  ;;  %4670 = vst [vmem:[%s7706_s17 + $0xda0] sm:$0xff] %v3646_v41  ;;  %v3648_v49 = vmul.f32 0.4342945, %v2039_v42  ;;  %v2043_v50 = vmul.f32 0.6931472, %v6297_v44  ;;  %6324 = vlog2.f32 %v592_v39  ;;  %v608_v39 = vld [vmem:[%s7677_s30 + $0xeb0] sm:$0xff] }
 0x1fd   : > { %v6301_v52 = vpop.eup %6300  ;;  %4671 = vst [vmem:[%s7706_s17 + $0xda8] sm:$0xff] %v3647_v45  ;;  %v3649_v53 = vmul.f32 0.4342945, %v2041_v46  ;;  %v2045_v54 = vmul.f32 0.6931472, %v6299_v48  ;;  %6326 = vlog2.f32 %v593_v43  ;;  %v609_v43 = vld [vmem:[%s7677_s30 + $0xeb8] sm:$0xff] }
 0x1fe   : > { %v6303_v56 = vpop.eup %6302  ;;  %4672 = vst [vmem:[%s7706_s17 + $0xdb0] sm:$0xff] %v3648_v49  ;;  %v3650_v57 = vmul.f32 0.4342945, %v2043_v50  ;;  %v2047_v58 = vmul.f32 0.6931472, %v6301_v52  ;;  %6328 = vlog2.f32 %v594_v47  ;;  %v610_v47 = vld [vmem:[%s7677_s30 + $0xec0] sm:$0xff] }
 0x1ff   : > { %v6305_v60 = vpop.eup %6304  ;;  %4673 = vst [vmem:[%s7706_s17 + $0xdb8] sm:$0xff] %v3649_v53  ;;  %v3651_v61 = vmul.f32 0.4342945, %v2045_v54  ;;  %v2049_v62 = vmul.f32 0.6931472, %v6303_v56  ;;  %6330 = vlog2.f32 %v595_v51  ;;  %v611_v51 = vld [vmem:[%s7677_s30 + $0xec8] sm:$0xff] }
 0x200   : > { %v6307_v0 = vpop.eup %6306  ;;  %4674 = vst [vmem:[%s7706_s17 + $0xdc0] sm:$0xff] %v3650_v57  ;;  %v3652_v1 = vmul.f32 0.4342945, %v2047_v58  ;;  %v2051_v2 = vmul.f32 0.6931472, %v6305_v60  ;;  %6332 = vlog2.f32 %v596_v55  ;;  %v612_v55 = vld [vmem:[%s7677_s30 + $0xed0] sm:$0xff] }
 0x201   : > { %v6309_v4 = vpop.eup %6308  ;;  %4675 = vst [vmem:[%s7706_s17 + $0xdc8] sm:$0xff] %v3651_v61  ;;  %v3653_v5 = vmul.f32 0.4342945, %v2049_v62  ;;  %v2053_v6 = vmul.f32 0.6931472, %v6307_v0  ;;  %6334 = vlog2.f32 %v597_v59  ;;  %v613_v59 = vld [vmem:[%s7677_s30 + $0xed8] sm:$0xff] }
 0x202   : > { %v6311_v8 = vpop.eup %6310  ;;  %4676 = vst [vmem:[%s7706_s17 + $0xdd0] sm:$0xff] %v3652_v1  ;;  %v3654_v9 = vmul.f32 0.4342945, %v2051_v2  ;;  %v2055_v10 = vmul.f32 0.6931472, %v6309_v4  ;;  %6336 = vlog2.f32 %v598_v63  ;;  %v614_v63 = vld [vmem:[%s7677_s30 + $0xee0] sm:$0xff] }
 0x203   : > { %v6313_v12 = vpop.eup %6312  ;;  %4677 = vst [vmem:[%s7706_s17 + $0xdd8] sm:$0xff] %v3653_v5  ;;  %v3655_v13 = vmul.f32 0.4342945, %v2053_v6  ;;  %v2057_v14 = vmul.f32 0.6931472, %v6311_v8  ;;  %6338 = vlog2.f32 %v599_v3  ;;  %v615_v3 = vld [vmem:[%s7677_s30 + $0xee8] sm:$0xff] }
 0x204   : > { %v6315_v16 = vpop.eup %6314  ;;  %4678 = vst [vmem:[%s7706_s17 + $0xde0] sm:$0xff] %v3654_v9  ;;  %v3656_v17 = vmul.f32 0.4342945, %v2055_v10  ;;  %v2059_v18 = vmul.f32 0.6931472, %v6313_v12  ;;  %6340 = vlog2.f32 %v600_v7  ;;  %v616_v7 = vld [vmem:[%s7677_s30 + $0xef0] sm:$0xff] }
 0x205   : > { %v6317_v20 = vpop.eup %6316  ;;  %4679 = vst [vmem:[%s7706_s17 + $0xde8] sm:$0xff] %v3655_v13  ;;  %v3657_v21 = vmul.f32 0.4342945, %v2057_v14  ;;  %v2061_v22 = vmul.f32 0.6931472, %v6315_v16  ;;  %6342 = vlog2.f32 %v601_v11  ;;  %v617_v11 = vld [vmem:[%s7677_s30 + $0xef8] sm:$0xff] }
 0x206   : > { %v6319_v24 = vpop.eup %6318  ;;  %4680 = vst [vmem:[%s7706_s17 + $0xdf0] sm:$0xff] %v3656_v17  ;;  %v3658_v25 = vmul.f32 0.4342945, %v2059_v18  ;;  %v2063_v26 = vmul.f32 0.6931472, %v6317_v20  ;;  %6344 = vlog2.f32 %v602_v15  ;;  %v618_v15 = vld [vmem:[%s7677_s30 + $0xf00] sm:$0xff] }
 0x207   : > { %v6321_v28 = vpop.eup %6320  ;;  %4681 = vst [vmem:[%s7706_s17 + $0xdf8] sm:$0xff] %v3657_v21  ;;  %v3659_v29 = vmul.f32 0.4342945, %v2061_v22  ;;  %v2065_v30 = vmul.f32 0.6931472, %v6319_v24  ;;  %6346 = vlog2.f32 %v603_v19  ;;  %v619_v19 = vld [vmem:[%s7677_s30 + $0xf08] sm:$0xff] }
 0x208   : > { %v6323_v32 = vpop.eup %6322  ;;  %4682 = vst [vmem:[%s7706_s17 + $0xe00] sm:$0xff] %v3658_v25  ;;  %v3660_v33 = vmul.f32 0.4342945, %v2063_v26  ;;  %v2067_v34 = vmul.f32 0.6931472, %v6321_v28  ;;  %6348 = vlog2.f32 %v604_v23  ;;  %v620_v23 = vld [vmem:[%s7677_s30 + $0xf10] sm:$0xff] }
 0x209   : > { %v6325_v36 = vpop.eup %6324  ;;  %4683 = vst [vmem:[%s7706_s17 + $0xe08] sm:$0xff] %v3659_v29  ;;  %v3661_v37 = vmul.f32 0.4342945, %v2065_v30  ;;  %v2069_v38 = vmul.f32 0.6931472, %v6323_v32  ;;  %6350 = vlog2.f32 %v605_v27  ;;  %v621_v27 = vld [vmem:[%s7677_s30 + $0xf18] sm:$0xff] }
 0x20a   : > { %v6327_v40 = vpop.eup %6326  ;;  %4684 = vst [vmem:[%s7706_s17 + $0xe10] sm:$0xff] %v3660_v33  ;;  %v3662_v41 = vmul.f32 0.4342945, %v2067_v34  ;;  %v2071_v42 = vmul.f32 0.6931472, %v6325_v36  ;;  %6352 = vlog2.f32 %v606_v31  ;;  %v622_v31 = vld [vmem:[%s7677_s30 + $0xf20] sm:$0xff] }
 0x20b   : > { %v6329_v44 = vpop.eup %6328  ;;  %4685 = vst [vmem:[%s7706_s17 + $0xe18] sm:$0xff] %v3661_v37  ;;  %v3663_v45 = vmul.f32 0.4342945, %v2069_v38  ;;  %v2073_v46 = vmul.f32 0.6931472, %v6327_v40  ;;  %6354 = vlog2.f32 %v607_v35  ;;  %v623_v35 = vld [vmem:[%s7677_s30 + $0xf28] sm:$0xff] }
 0x20c   : > { %v6331_v48 = vpop.eup %6330  ;;  %4686 = vst [vmem:[%s7706_s17 + $0xe20] sm:$0xff] %v3662_v41  ;;  %v3664_v49 = vmul.f32 0.4342945, %v2071_v42  ;;  %v2075_v50 = vmul.f32 0.6931472, %v6329_v44  ;;  %6356 = vlog2.f32 %v608_v39  ;;  %v624_v39 = vld [vmem:[%s7677_s30 + $0xf30] sm:$0xff] }
 0x20d   : > { %v6333_v52 = vpop.eup %6332  ;;  %4687 = vst [vmem:[%s7706_s17 + $0xe28] sm:$0xff] %v3663_v45  ;;  %v3665_v53 = vmul.f32 0.4342945, %v2073_v46  ;;  %v2077_v54 = vmul.f32 0.6931472, %v6331_v48  ;;  %6358 = vlog2.f32 %v609_v43  ;;  %v625_v43 = vld [vmem:[%s7677_s30 + $0xf38] sm:$0xff] }
 0x20e   : > { %v6335_v56 = vpop.eup %6334  ;;  %4688 = vst [vmem:[%s7706_s17 + $0xe30] sm:$0xff] %v3664_v49  ;;  %v3666_v57 = vmul.f32 0.4342945, %v2075_v50  ;;  %v2079_v58 = vmul.f32 0.6931472, %v6333_v52  ;;  %6360 = vlog2.f32 %v610_v47  ;;  %v626_v47 = vld [vmem:[%s7677_s30 + $0xf40] sm:$0xff] }
 0x20f   : > { %v6337_v60 = vpop.eup %6336  ;;  %4689 = vst [vmem:[%s7706_s17 + $0xe38] sm:$0xff] %v3665_v53  ;;  %v3667_v61 = vmul.f32 0.4342945, %v2077_v54  ;;  %v2081_v62 = vmul.f32 0.6931472, %v6335_v56  ;;  %6362 = vlog2.f32 %v611_v51  ;;  %v627_v51 = vld [vmem:[%s7677_s30 + $0xf48] sm:$0xff] }
 0x210   : > { %v6339_v0 = vpop.eup %6338  ;;  %4690 = vst [vmem:[%s7706_s17 + $0xe40] sm:$0xff] %v3666_v57  ;;  %v3668_v1 = vmul.f32 0.4342945, %v2079_v58  ;;  %v2083_v2 = vmul.f32 0.6931472, %v6337_v60  ;;  %6364 = vlog2.f32 %v612_v55  ;;  %v628_v55 = vld [vmem:[%s7677_s30 + $0xf50] sm:$0xff] }
 0x211   : > { %v6341_v4 = vpop.eup %6340  ;;  %4691 = vst [vmem:[%s7706_s17 + $0xe48] sm:$0xff] %v3667_v61  ;;  %v3669_v5 = vmul.f32 0.4342945, %v2081_v62  ;;  %v2085_v6 = vmul.f32 0.6931472, %v6339_v0  ;;  %6366 = vlog2.f32 %v613_v59  ;;  %v629_v59 = vld [vmem:[%s7677_s30 + $0xf58] sm:$0xff] }
 0x212   : > { %v6343_v8 = vpop.eup %6342  ;;  %4692 = vst [vmem:[%s7706_s17 + $0xe50] sm:$0xff] %v3668_v1  ;;  %v3670_v9 = vmul.f32 0.4342945, %v2083_v2  ;;  %v2087_v10 = vmul.f32 0.6931472, %v6341_v4  ;;  %6368 = vlog2.f32 %v614_v63  ;;  %v630_v63 = vld [vmem:[%s7677_s30 + $0xf60] sm:$0xff] }
 0x213   : > { %v6345_v12 = vpop.eup %6344  ;;  %4693 = vst [vmem:[%s7706_s17 + $0xe58] sm:$0xff] %v3669_v5  ;;  %v3671_v13 = vmul.f32 0.4342945, %v2085_v6  ;;  %v2089_v14 = vmul.f32 0.6931472, %v6343_v8  ;;  %6370 = vlog2.f32 %v615_v3  ;;  %v631_v3 = vld [vmem:[%s7677_s30 + $0xf68] sm:$0xff] }
 0x214   : > { %v6347_v16 = vpop.eup %6346  ;;  %4694 = vst [vmem:[%s7706_s17 + $0xe60] sm:$0xff] %v3670_v9  ;;  %v3672_v17 = vmul.f32 0.4342945, %v2087_v10  ;;  %v2091_v18 = vmul.f32 0.6931472, %v6345_v12  ;;  %6372 = vlog2.f32 %v616_v7  ;;  %v632_v7 = vld [vmem:[%s7677_s30 + $0xf70] sm:$0xff] }
 0x215   : > { %v6349_v20 = vpop.eup %6348  ;;  %4695 = vst [vmem:[%s7706_s17 + $0xe68] sm:$0xff] %v3671_v13  ;;  %v3673_v21 = vmul.f32 0.4342945, %v2089_v14  ;;  %v2093_v22 = vmul.f32 0.6931472, %v6347_v16  ;;  %6374 = vlog2.f32 %v617_v11  ;;  %v633_v11 = vld [vmem:[%s7677_s30 + $0xf78] sm:$0xff] }
 0x216   : > { %v6351_v24 = vpop.eup %6350  ;;  %4696 = vst [vmem:[%s7706_s17 + $0xe70] sm:$0xff] %v3672_v17  ;;  %v3674_v25 = vmul.f32 0.4342945, %v2091_v18  ;;  %v2095_v26 = vmul.f32 0.6931472, %v6349_v20  ;;  %6376 = vlog2.f32 %v618_v15  ;;  %v634_v15 = vld [vmem:[%s7677_s30 + $0xf80] sm:$0xff] }
 0x217   : > { %v6353_v28 = vpop.eup %6352  ;;  %4697 = vst [vmem:[%s7706_s17 + $0xe78] sm:$0xff] %v3673_v21  ;;  %v3675_v29 = vmul.f32 0.4342945, %v2093_v22  ;;  %v2097_v30 = vmul.f32 0.6931472, %v6351_v24  ;;  %6378 = vlog2.f32 %v619_v19  ;;  %v635_v19 = vld [vmem:[%s7677_s30 + $0xf88] sm:$0xff] }
 0x218   : > { %v6355_v32 = vpop.eup %6354  ;;  %4698 = vst [vmem:[%s7706_s17 + $0xe80] sm:$0xff] %v3674_v25  ;;  %v3676_v33 = vmul.f32 0.4342945, %v2095_v26  ;;  %v2099_v34 = vmul.f32 0.6931472, %v6353_v28  ;;  %6380 = vlog2.f32 %v620_v23  ;;  %v636_v23 = vld [vmem:[%s7677_s30 + $0xf90] sm:$0xff] }
 0x219   : > { %v6357_v36 = vpop.eup %6356  ;;  %4699 = vst [vmem:[%s7706_s17 + $0xe88] sm:$0xff] %v3675_v29  ;;  %v3677_v37 = vmul.f32 0.4342945, %v2097_v30  ;;  %v2101_v38 = vmul.f32 0.6931472, %v6355_v32  ;;  %6382 = vlog2.f32 %v621_v27  ;;  %v637_v27 = vld [vmem:[%s7677_s30 + $0xf98] sm:$0xff] }
 0x21a   : > { %v6359_v40 = vpop.eup %6358  ;;  %4700 = vst [vmem:[%s7706_s17 + $0xe90] sm:$0xff] %v3676_v33  ;;  %v3678_v41 = vmul.f32 0.4342945, %v2099_v34  ;;  %v2103_v42 = vmul.f32 0.6931472, %v6357_v36  ;;  %6384 = vlog2.f32 %v622_v31  ;;  %v638_v31 = vld [vmem:[%s7677_s30 + $0xfa0] sm:$0xff] }
 0x21b   : > { %v6361_v44 = vpop.eup %6360  ;;  %4701 = vst [vmem:[%s7706_s17 + $0xe98] sm:$0xff] %v3677_v37  ;;  %v3679_v45 = vmul.f32 0.4342945, %v2101_v38  ;;  %v2105_v46 = vmul.f32 0.6931472, %v6359_v40  ;;  %6386 = vlog2.f32 %v623_v35  ;;  %v639_v35 = vld [vmem:[%s7677_s30 + $0xfa8] sm:$0xff] }
 0x21c   : > { %v6363_v48 = vpop.eup %6362  ;;  %4702 = vst [vmem:[%s7706_s17 + $0xea0] sm:$0xff] %v3678_v41  ;;  %v3680_v49 = vmul.f32 0.4342945, %v2103_v42  ;;  %v2107_v50 = vmul.f32 0.6931472, %v6361_v44  ;;  %6388 = vlog2.f32 %v624_v39  ;;  %v640_v39 = vld [vmem:[%s7677_s30 + $0xfb0] sm:$0xff] }
 0x21d   : > { %v6365_v52 = vpop.eup %6364  ;;  %4703 = vst [vmem:[%s7706_s17 + $0xea8] sm:$0xff] %v3679_v45  ;;  %v3681_v53 = vmul.f32 0.4342945, %v2105_v46  ;;  %v2109_v54 = vmul.f32 0.6931472, %v6363_v48  ;;  %6390 = vlog2.f32 %v625_v43  ;;  %v641_v43 = vld [vmem:[%s7677_s30 + $0xfb8] sm:$0xff] }
 0x21e   : > { %v6367_v56 = vpop.eup %6366  ;;  %4704 = vst [vmem:[%s7706_s17 + $0xeb0] sm:$0xff] %v3680_v49  ;;  %v3682_v57 = vmul.f32 0.4342945, %v2107_v50  ;;  %v2111_v58 = vmul.f32 0.6931472, %v6365_v52  ;;  %6392 = vlog2.f32 %v626_v47  ;;  %v642_v47 = vld [vmem:[%s7677_s30 + $0xfc0] sm:$0xff] }
 0x21f   : > { %v6369_v60 = vpop.eup %6368  ;;  %4705 = vst [vmem:[%s7706_s17 + $0xeb8] sm:$0xff] %v3681_v53  ;;  %v3683_v61 = vmul.f32 0.4342945, %v2109_v54  ;;  %v2113_v62 = vmul.f32 0.6931472, %v6367_v56  ;;  %6394 = vlog2.f32 %v627_v51  ;;  %v643_v51 = vld [vmem:[%s7677_s30 + $0xfc8] sm:$0xff] }
 0x220   : > { %v6371_v0 = vpop.eup %6370  ;;  %4706 = vst [vmem:[%s7706_s17 + $0xec0] sm:$0xff] %v3682_v57  ;;  %v3684_v1 = vmul.f32 0.4342945, %v2111_v58  ;;  %v2115_v2 = vmul.f32 0.6931472, %v6369_v60  ;;  %6396 = vlog2.f32 %v628_v55  ;;  %v644_v55 = vld [vmem:[%s7677_s30 + $0xfd0] sm:$0xff] }
 0x221   : > { %v6373_v4 = vpop.eup %6372  ;;  %4707 = vst [vmem:[%s7706_s17 + $0xec8] sm:$0xff] %v3683_v61  ;;  %v3685_v5 = vmul.f32 0.4342945, %v2113_v62  ;;  %v2117_v6 = vmul.f32 0.6931472, %v6371_v0  ;;  %6398 = vlog2.f32 %v629_v59  ;;  %v645_v59 = vld [vmem:[%s7677_s30 + $0xfd8] sm:$0xff] }
 0x222   : > { %v6375_v8 = vpop.eup %6374  ;;  %4708 = vst [vmem:[%s7706_s17 + $0xed0] sm:$0xff] %v3684_v1  ;;  %v3686_v9 = vmul.f32 0.4342945, %v2115_v2  ;;  %v2119_v10 = vmul.f32 0.6931472, %v6373_v4  ;;  %6400 = vlog2.f32 %v630_v63  ;;  %v646_v63 = vld [vmem:[%s7677_s30 + $0xfe0] sm:$0xff] }
 0x223   : > { %v6377_v12 = vpop.eup %6376  ;;  %4709 = vst [vmem:[%s7706_s17 + $0xed8] sm:$0xff] %v3685_v5  ;;  %v3687_v13 = vmul.f32 0.4342945, %v2117_v6  ;;  %v2121_v14 = vmul.f32 0.6931472, %v6375_v8  ;;  %6402 = vlog2.f32 %v631_v3  ;;  %v647_v3 = vld [vmem:[%s7677_s30 + $0xfe8] sm:$0xff] }
 0x224   : > { %v6379_v16 = vpop.eup %6378  ;;  %4710 = vst [vmem:[%s7706_s17 + $0xee0] sm:$0xff] %v3686_v9  ;;  %v3688_v17 = vmul.f32 0.4342945, %v2119_v10  ;;  %v2123_v18 = vmul.f32 0.6931472, %v6377_v12  ;;  %6404 = vlog2.f32 %v632_v7  ;;  %v648_v7 = vld [vmem:[%s7677_s30 + $0xff0] sm:$0xff] }
 0x225   : > { %v6381_v20 = vpop.eup %6380  ;;  %4711 = vst [vmem:[%s7706_s17 + $0xee8] sm:$0xff] %v3687_v13  ;;  %v3689_v21 = vmul.f32 0.4342945, %v2121_v14  ;;  %v2125_v22 = vmul.f32 0.6931472, %v6379_v16  ;;  %6406 = vlog2.f32 %v633_v11  ;;  %v649_v11 = vld [vmem:[%s7677_s30 + $0xff8] sm:$0xff] }
 0x226   : > { %v6383_v24 = vpop.eup %6382  ;;  %4712 = vst [vmem:[%s7706_s17 + $0xef0] sm:$0xff] %v3688_v17  ;;  %v3690_v25 = vmul.f32 0.4342945, %v2123_v18  ;;  %v2127_v26 = vmul.f32 0.6931472, %v6381_v20  ;;  %6408 = vlog2.f32 %v634_v15  ;;  %v650_v15 = vld [vmem:[%s7677_s30 + $0x1000] sm:$0xff] }
 0x227   : > { %v6385_v28 = vpop.eup %6384  ;;  %4713 = vst [vmem:[%s7706_s17 + $0xef8] sm:$0xff] %v3689_v21  ;;  %v3691_v29 = vmul.f32 0.4342945, %v2125_v22  ;;  %v2129_v30 = vmul.f32 0.6931472, %v6383_v24  ;;  %6410 = vlog2.f32 %v635_v19  ;;  %v651_v19 = vld [vmem:[%s7677_s30 + $0x1008] sm:$0xff] }
 0x228   : > { %v6387_v32 = vpop.eup %6386  ;;  %4714 = vst [vmem:[%s7706_s17 + $0xf00] sm:$0xff] %v3690_v25  ;;  %v3692_v33 = vmul.f32 0.4342945, %v2127_v26  ;;  %v2131_v34 = vmul.f32 0.6931472, %v6385_v28  ;;  %6412 = vlog2.f32 %v636_v23  ;;  %v652_v23 = vld [vmem:[%s7677_s30 + $0x1010] sm:$0xff] }
 0x229   : > { %v6389_v36 = vpop.eup %6388  ;;  %4715 = vst [vmem:[%s7706_s17 + $0xf08] sm:$0xff] %v3691_v29  ;;  %v3693_v37 = vmul.f32 0.4342945, %v2129_v30  ;;  %v2133_v38 = vmul.f32 0.6931472, %v6387_v32  ;;  %6414 = vlog2.f32 %v637_v27  ;;  %v653_v27 = vld [vmem:[%s7677_s30 + $0x1018] sm:$0xff] }
 0x22a   : > { %v6391_v40 = vpop.eup %6390  ;;  %4716 = vst [vmem:[%s7706_s17 + $0xf10] sm:$0xff] %v3692_v33  ;;  %v3694_v41 = vmul.f32 0.4342945, %v2131_v34  ;;  %v2135_v42 = vmul.f32 0.6931472, %v6389_v36  ;;  %6416 = vlog2.f32 %v638_v31  ;;  %v654_v31 = vld [vmem:[%s7677_s30 + $0x1020] sm:$0xff] }
 0x22b   : > { %v6393_v44 = vpop.eup %6392  ;;  %4717 = vst [vmem:[%s7706_s17 + $0xf18] sm:$0xff] %v3693_v37  ;;  %v3695_v45 = vmul.f32 0.4342945, %v2133_v38  ;;  %v2137_v46 = vmul.f32 0.6931472, %v6391_v40  ;;  %6418 = vlog2.f32 %v639_v35  ;;  %v655_v35 = vld [vmem:[%s7677_s30 + $0x1028] sm:$0xff] }
 0x22c   : > { %v6395_v48 = vpop.eup %6394  ;;  %4718 = vst [vmem:[%s7706_s17 + $0xf20] sm:$0xff] %v3694_v41  ;;  %v3696_v49 = vmul.f32 0.4342945, %v2135_v42  ;;  %v2139_v50 = vmul.f32 0.6931472, %v6393_v44  ;;  %6420 = vlog2.f32 %v640_v39  ;;  %v656_v39 = vld [vmem:[%s7677_s30 + $0x1030] sm:$0xff] }
 0x22d   : > { %v6397_v52 = vpop.eup %6396  ;;  %4719 = vst [vmem:[%s7706_s17 + $0xf28] sm:$0xff] %v3695_v45  ;;  %v3697_v53 = vmul.f32 0.4342945, %v2137_v46  ;;  %v2141_v54 = vmul.f32 0.6931472, %v6395_v48  ;;  %6422 = vlog2.f32 %v641_v43  ;;  %v657_v43 = vld [vmem:[%s7677_s30 + $0x1038] sm:$0xff] }
 0x22e   : > { %v6399_v56 = vpop.eup %6398  ;;  %4720 = vst [vmem:[%s7706_s17 + $0xf30] sm:$0xff] %v3696_v49  ;;  %v3698_v57 = vmul.f32 0.4342945, %v2139_v50  ;;  %v2143_v58 = vmul.f32 0.6931472, %v6397_v52  ;;  %6424 = vlog2.f32 %v642_v47  ;;  %v658_v47 = vld [vmem:[%s7677_s30 + $0x1040] sm:$0xff] }
 0x22f   : > { %v6401_v60 = vpop.eup %6400  ;;  %4721 = vst [vmem:[%s7706_s17 + $0xf38] sm:$0xff] %v3697_v53  ;;  %v3699_v61 = vmul.f32 0.4342945, %v2141_v54  ;;  %v2145_v62 = vmul.f32 0.6931472, %v6399_v56  ;;  %6426 = vlog2.f32 %v643_v51  ;;  %v659_v51 = vld [vmem:[%s7677_s30 + $0x1048] sm:$0xff] }
 0x230   : > { %v6403_v0 = vpop.eup %6402  ;;  %4722 = vst [vmem:[%s7706_s17 + $0xf40] sm:$0xff] %v3698_v57  ;;  %v3700_v1 = vmul.f32 0.4342945, %v2143_v58  ;;  %v2147_v2 = vmul.f32 0.6931472, %v6401_v60  ;;  %6428 = vlog2.f32 %v644_v55  ;;  %v660_v55 = vld [vmem:[%s7677_s30 + $0x1050] sm:$0xff] }
 0x231   : > { %v6405_v4 = vpop.eup %6404  ;;  %4723 = vst [vmem:[%s7706_s17 + $0xf48] sm:$0xff] %v3699_v61  ;;  %v3701_v5 = vmul.f32 0.4342945, %v2145_v62  ;;  %v2149_v6 = vmul.f32 0.6931472, %v6403_v0  ;;  %6430 = vlog2.f32 %v645_v59  ;;  %v661_v59 = vld [vmem:[%s7677_s30 + $0x1058] sm:$0xff] }
 0x232   : > { %v6407_v8 = vpop.eup %6406  ;;  %4724 = vst [vmem:[%s7706_s17 + $0xf50] sm:$0xff] %v3700_v1  ;;  %v3702_v9 = vmul.f32 0.4342945, %v2147_v2  ;;  %v2151_v10 = vmul.f32 0.6931472, %v6405_v4  ;;  %6432 = vlog2.f32 %v646_v63  ;;  %v662_v63 = vld [vmem:[%s7677_s30 + $0x1060] sm:$0xff] }
 0x233   : > { %v6409_v12 = vpop.eup %6408  ;;  %4725 = vst [vmem:[%s7706_s17 + $0xf58] sm:$0xff] %v3701_v5  ;;  %v3703_v13 = vmul.f32 0.4342945, %v2149_v6  ;;  %v2153_v14 = vmul.f32 0.6931472, %v6407_v8  ;;  %6434 = vlog2.f32 %v647_v3  ;;  %v663_v3 = vld [vmem:[%s7677_s30 + $0x1068] sm:$0xff] }
 0x234   : > { %v6411_v16 = vpop.eup %6410  ;;  %4726 = vst [vmem:[%s7706_s17 + $0xf60] sm:$0xff] %v3702_v9  ;;  %v3704_v17 = vmul.f32 0.4342945, %v2151_v10  ;;  %v2155_v18 = vmul.f32 0.6931472, %v6409_v12  ;;  %6436 = vlog2.f32 %v648_v7  ;;  %v664_v7 = vld [vmem:[%s7677_s30 + $0x1070] sm:$0xff] }
 0x235   : > { %v6413_v20 = vpop.eup %6412  ;;  %4727 = vst [vmem:[%s7706_s17 + $0xf68] sm:$0xff] %v3703_v13  ;;  %v3705_v21 = vmul.f32 0.4342945, %v2153_v14  ;;  %v2157_v22 = vmul.f32 0.6931472, %v6411_v16  ;;  %6438 = vlog2.f32 %v649_v11  ;;  %v665_v11 = vld [vmem:[%s7677_s30 + $0x1078] sm:$0xff] }
 0x236   : > { %v6415_v24 = vpop.eup %6414  ;;  %4728 = vst [vmem:[%s7706_s17 + $0xf70] sm:$0xff] %v3704_v17  ;;  %v3706_v25 = vmul.f32 0.4342945, %v2155_v18  ;;  %v2159_v26 = vmul.f32 0.6931472, %v6413_v20  ;;  %6440 = vlog2.f32 %v650_v15  ;;  %v666_v15 = vld [vmem:[%s7677_s30 + $0x1080] sm:$0xff] }
 0x237   : > { %v6417_v28 = vpop.eup %6416  ;;  %4729 = vst [vmem:[%s7706_s17 + $0xf78] sm:$0xff] %v3705_v21  ;;  %v3707_v29 = vmul.f32 0.4342945, %v2157_v22  ;;  %v2161_v30 = vmul.f32 0.6931472, %v6415_v24  ;;  %6442 = vlog2.f32 %v651_v19  ;;  %v667_v19 = vld [vmem:[%s7677_s30 + $0x1088] sm:$0xff] }
 0x238   : > { %v6419_v32 = vpop.eup %6418  ;;  %4730 = vst [vmem:[%s7706_s17 + $0xf80] sm:$0xff] %v3706_v25  ;;  %v3708_v33 = vmul.f32 0.4342945, %v2159_v26  ;;  %v2163_v34 = vmul.f32 0.6931472, %v6417_v28  ;;  %6444 = vlog2.f32 %v652_v23  ;;  %v668_v23 = vld [vmem:[%s7677_s30 + $0x1090] sm:$0xff] }
 0x239   : > { %v6421_v36 = vpop.eup %6420  ;;  %4731 = vst [vmem:[%s7706_s17 + $0xf88] sm:$0xff] %v3707_v29  ;;  %v3709_v37 = vmul.f32 0.4342945, %v2161_v30  ;;  %v2165_v38 = vmul.f32 0.6931472, %v6419_v32  ;;  %6446 = vlog2.f32 %v653_v27  ;;  %v669_v27 = vld [vmem:[%s7677_s30 + $0x1098] sm:$0xff] }
 0x23a   : > { %v6423_v40 = vpop.eup %6422  ;;  %4732 = vst [vmem:[%s7706_s17 + $0xf90] sm:$0xff] %v3708_v33  ;;  %v3710_v41 = vmul.f32 0.4342945, %v2163_v34  ;;  %v2167_v42 = vmul.f32 0.6931472, %v6421_v36  ;;  %6448 = vlog2.f32 %v654_v31  ;;  %v670_v31 = vld [vmem:[%s7677_s30 + $0x10a0] sm:$0xff] }
 0x23b   : > { %v6425_v44 = vpop.eup %6424  ;;  %4733 = vst [vmem:[%s7706_s17 + $0xf98] sm:$0xff] %v3709_v37  ;;  %v3711_v45 = vmul.f32 0.4342945, %v2165_v38  ;;  %v2169_v46 = vmul.f32 0.6931472, %v6423_v40  ;;  %6450 = vlog2.f32 %v655_v35  ;;  %v671_v35 = vld [vmem:[%s7677_s30 + $0x10a8] sm:$0xff] }
 0x23c   : > { %v6427_v48 = vpop.eup %6426  ;;  %4734 = vst [vmem:[%s7706_s17 + $0xfa0] sm:$0xff] %v3710_v41  ;;  %v3712_v49 = vmul.f32 0.4342945, %v2167_v42  ;;  %v2171_v50 = vmul.f32 0.6931472, %v6425_v44  ;;  %6452 = vlog2.f32 %v656_v39  ;;  %v672_v39 = vld [vmem:[%s7677_s30 + $0x10b0] sm:$0xff] }
 0x23d   : > { %v6429_v52 = vpop.eup %6428  ;;  %4735 = vst [vmem:[%s7706_s17 + $0xfa8] sm:$0xff] %v3711_v45  ;;  %v3713_v53 = vmul.f32 0.4342945, %v2169_v46  ;;  %v2173_v54 = vmul.f32 0.6931472, %v6427_v48  ;;  %6454 = vlog2.f32 %v657_v43  ;;  %v673_v43 = vld [vmem:[%s7677_s30 + $0x10b8] sm:$0xff] }
 0x23e   : > { %v6431_v56 = vpop.eup %6430  ;;  %4736 = vst [vmem:[%s7706_s17 + $0xfb0] sm:$0xff] %v3712_v49  ;;  %v3714_v57 = vmul.f32 0.4342945, %v2171_v50  ;;  %v2175_v58 = vmul.f32 0.6931472, %v6429_v52  ;;  %6456 = vlog2.f32 %v658_v47  ;;  %v674_v47 = vld [vmem:[%s7677_s30 + $0x10c0] sm:$0xff] }
 0x23f   : > { %v6433_v60 = vpop.eup %6432  ;;  %4737 = vst [vmem:[%s7706_s17 + $0xfb8] sm:$0xff] %v3713_v53  ;;  %v3715_v61 = vmul.f32 0.4342945, %v2173_v54  ;;  %v2177_v62 = vmul.f32 0.6931472, %v6431_v56  ;;  %6458 = vlog2.f32 %v659_v51  ;;  %v675_v51 = vld [vmem:[%s7677_s30 + $0x10c8] sm:$0xff] }
 0x240   : > { %v6435_v0 = vpop.eup %6434  ;;  %4738 = vst [vmem:[%s7706_s17 + $0xfc0] sm:$0xff] %v3714_v57  ;;  %v3716_v1 = vmul.f32 0.4342945, %v2175_v58  ;;  %v2179_v2 = vmul.f32 0.6931472, %v6433_v60  ;;  %6460 = vlog2.f32 %v660_v55  ;;  %v676_v55 = vld [vmem:[%s7677_s30 + $0x10d0] sm:$0xff] }
 0x241   : > { %v6437_v4 = vpop.eup %6436  ;;  %4739 = vst [vmem:[%s7706_s17 + $0xfc8] sm:$0xff] %v3715_v61  ;;  %v3717_v5 = vmul.f32 0.4342945, %v2177_v62  ;;  %v2181_v6 = vmul.f32 0.6931472, %v6435_v0  ;;  %6462 = vlog2.f32 %v661_v59  ;;  %v677_v59 = vld [vmem:[%s7677_s30 + $0x10d8] sm:$0xff] }
 0x242   : > { %v6439_v8 = vpop.eup %6438  ;;  %4740 = vst [vmem:[%s7706_s17 + $0xfd0] sm:$0xff] %v3716_v1  ;;  %v3718_v9 = vmul.f32 0.4342945, %v2179_v2  ;;  %v2183_v10 = vmul.f32 0.6931472, %v6437_v4  ;;  %6464 = vlog2.f32 %v662_v63  ;;  %v678_v63 = vld [vmem:[%s7677_s30 + $0x10e0] sm:$0xff] }
 0x243   : > { %v6441_v12 = vpop.eup %6440  ;;  %4741 = vst [vmem:[%s7706_s17 + $0xfd8] sm:$0xff] %v3717_v5  ;;  %v3719_v13 = vmul.f32 0.4342945, %v2181_v6  ;;  %v2185_v14 = vmul.f32 0.6931472, %v6439_v8  ;;  %6466 = vlog2.f32 %v663_v3  ;;  %v679_v3 = vld [vmem:[%s7677_s30 + $0x10e8] sm:$0xff] }
 0x244   : > { %v6443_v16 = vpop.eup %6442  ;;  %4742 = vst [vmem:[%s7706_s17 + $0xfe0] sm:$0xff] %v3718_v9  ;;  %v3720_v17 = vmul.f32 0.4342945, %v2183_v10  ;;  %v2187_v18 = vmul.f32 0.6931472, %v6441_v12  ;;  %6468 = vlog2.f32 %v664_v7  ;;  %v680_v7 = vld [vmem:[%s7677_s30 + $0x10f0] sm:$0xff] }
 0x245   : > { %v6445_v20 = vpop.eup %6444  ;;  %4743 = vst [vmem:[%s7706_s17 + $0xfe8] sm:$0xff] %v3719_v13  ;;  %v3721_v21 = vmul.f32 0.4342945, %v2185_v14  ;;  %v2189_v22 = vmul.f32 0.6931472, %v6443_v16  ;;  %6470 = vlog2.f32 %v665_v11  ;;  %v681_v11 = vld [vmem:[%s7677_s30 + $0x10f8] sm:$0xff] }
 0x246   : > { %v6447_v24 = vpop.eup %6446  ;;  %4744 = vst [vmem:[%s7706_s17 + $0xff0] sm:$0xff] %v3720_v17  ;;  %v3722_v25 = vmul.f32 0.4342945, %v2187_v18  ;;  %v2191_v26 = vmul.f32 0.6931472, %v6445_v20  ;;  %6472 = vlog2.f32 %v666_v15  ;;  %v682_v15 = vld [vmem:[%s7677_s30 + $0x1100] sm:$0xff] }
 0x247   : > { %v6449_v28 = vpop.eup %6448  ;;  %4745 = vst [vmem:[%s7706_s17 + $0xff8] sm:$0xff] %v3721_v21  ;;  %v3723_v29 = vmul.f32 0.4342945, %v2189_v22  ;;  %v2193_v30 = vmul.f32 0.6931472, %v6447_v24  ;;  %6474 = vlog2.f32 %v667_v19  ;;  %v683_v19 = vld [vmem:[%s7677_s30 + $0x1108] sm:$0xff] }
 0x248   : > { %v6451_v32 = vpop.eup %6450  ;;  %4746 = vst [vmem:[%s7706_s17 + $0x1000] sm:$0xff] %v3722_v25  ;;  %v3724_v33 = vmul.f32 0.4342945, %v2191_v26  ;;  %v2195_v34 = vmul.f32 0.6931472, %v6449_v28  ;;  %6476 = vlog2.f32 %v668_v23  ;;  %v684_v23 = vld [vmem:[%s7677_s30 + $0x1110] sm:$0xff] }
 0x249   : > { %v6453_v36 = vpop.eup %6452  ;;  %4747 = vst [vmem:[%s7706_s17 + $0x1008] sm:$0xff] %v3723_v29  ;;  %v3725_v37 = vmul.f32 0.4342945, %v2193_v30  ;;  %v2197_v38 = vmul.f32 0.6931472, %v6451_v32  ;;  %6478 = vlog2.f32 %v669_v27  ;;  %v685_v27 = vld [vmem:[%s7677_s30 + $0x1118] sm:$0xff] }
 0x24a   : > { %v6455_v40 = vpop.eup %6454  ;;  %4748 = vst [vmem:[%s7706_s17 + $0x1010] sm:$0xff] %v3724_v33  ;;  %v3726_v41 = vmul.f32 0.4342945, %v2195_v34  ;;  %v2199_v42 = vmul.f32 0.6931472, %v6453_v36  ;;  %6480 = vlog2.f32 %v670_v31  ;;  %v686_v31 = vld [vmem:[%s7677_s30 + $0x1120] sm:$0xff] }
 0x24b   : > { %v6457_v44 = vpop.eup %6456  ;;  %4749 = vst [vmem:[%s7706_s17 + $0x1018] sm:$0xff] %v3725_v37  ;;  %v3727_v45 = vmul.f32 0.4342945, %v2197_v38  ;;  %v2201_v46 = vmul.f32 0.6931472, %v6455_v40  ;;  %6482 = vlog2.f32 %v671_v35  ;;  %v687_v35 = vld [vmem:[%s7677_s30 + $0x1128] sm:$0xff] }
 0x24c   : > { %v6459_v48 = vpop.eup %6458  ;;  %4750 = vst [vmem:[%s7706_s17 + $0x1020] sm:$0xff] %v3726_v41  ;;  %v3728_v49 = vmul.f32 0.4342945, %v2199_v42  ;;  %v2203_v50 = vmul.f32 0.6931472, %v6457_v44  ;;  %6484 = vlog2.f32 %v672_v39  ;;  %v688_v39 = vld [vmem:[%s7677_s30 + $0x1130] sm:$0xff] }
 0x24d   : > { %v6461_v52 = vpop.eup %6460  ;;  %4751 = vst [vmem:[%s7706_s17 + $0x1028] sm:$0xff] %v3727_v45  ;;  %v3729_v53 = vmul.f32 0.4342945, %v2201_v46  ;;  %v2205_v54 = vmul.f32 0.6931472, %v6459_v48  ;;  %6486 = vlog2.f32 %v673_v43  ;;  %v689_v43 = vld [vmem:[%s7677_s30 + $0x1138] sm:$0xff] }
 0x24e   : > { %v6463_v56 = vpop.eup %6462  ;;  %4752 = vst [vmem:[%s7706_s17 + $0x1030] sm:$0xff] %v3728_v49  ;;  %v3730_v57 = vmul.f32 0.4342945, %v2203_v50  ;;  %v2207_v58 = vmul.f32 0.6931472, %v6461_v52  ;;  %6488 = vlog2.f32 %v674_v47  ;;  %v690_v47 = vld [vmem:[%s7677_s30 + $0x1140] sm:$0xff] }
 0x24f   : > { %v6465_v60 = vpop.eup %6464  ;;  %4753 = vst [vmem:[%s7706_s17 + $0x1038] sm:$0xff] %v3729_v53  ;;  %v3731_v61 = vmul.f32 0.4342945, %v2205_v54  ;;  %v2209_v62 = vmul.f32 0.6931472, %v6463_v56  ;;  %6490 = vlog2.f32 %v675_v51  ;;  %v691_v51 = vld [vmem:[%s7677_s30 + $0x1148] sm:$0xff] }
 0x250   : > { %v6467_v0 = vpop.eup %6466  ;;  %4754 = vst [vmem:[%s7706_s17 + $0x1040] sm:$0xff] %v3730_v57  ;;  %v3732_v1 = vmul.f32 0.4342945, %v2207_v58  ;;  %v2211_v2 = vmul.f32 0.6931472, %v6465_v60  ;;  %6492 = vlog2.f32 %v676_v55  ;;  %v692_v55 = vld [vmem:[%s7677_s30 + $0x1150] sm:$0xff] }
 0x251   : > { %v6469_v4 = vpop.eup %6468  ;;  %4755 = vst [vmem:[%s7706_s17 + $0x1048] sm:$0xff] %v3731_v61  ;;  %v3733_v5 = vmul.f32 0.4342945, %v2209_v62  ;;  %v2213_v6 = vmul.f32 0.6931472, %v6467_v0  ;;  %6494 = vlog2.f32 %v677_v59  ;;  %v693_v59 = vld [vmem:[%s7677_s30 + $0x1158] sm:$0xff] }
 0x252   : > { %v6471_v8 = vpop.eup %6470  ;;  %4756 = vst [vmem:[%s7706_s17 + $0x1050] sm:$0xff] %v3732_v1  ;;  %v3734_v9 = vmul.f32 0.4342945, %v2211_v2  ;;  %v2215_v10 = vmul.f32 0.6931472, %v6469_v4  ;;  %6496 = vlog2.f32 %v678_v63  ;;  %v694_v63 = vld [vmem:[%s7677_s30 + $0x1160] sm:$0xff] }
 0x253   : > { %v6473_v12 = vpop.eup %6472  ;;  %4757 = vst [vmem:[%s7706_s17 + $0x1058] sm:$0xff] %v3733_v5  ;;  %v3735_v13 = vmul.f32 0.4342945, %v2213_v6  ;;  %v2217_v14 = vmul.f32 0.6931472, %v6471_v8  ;;  %6498 = vlog2.f32 %v679_v3  ;;  %v695_v3 = vld [vmem:[%s7677_s30 + $0x1168] sm:$0xff] }
 0x254   : > { %v6475_v16 = vpop.eup %6474  ;;  %4758 = vst [vmem:[%s7706_s17 + $0x1060] sm:$0xff] %v3734_v9  ;;  %v3736_v17 = vmul.f32 0.4342945, %v2215_v10  ;;  %v2219_v18 = vmul.f32 0.6931472, %v6473_v12  ;;  %6500 = vlog2.f32 %v680_v7  ;;  %v696_v7 = vld [vmem:[%s7677_s30 + $0x1170] sm:$0xff] }
 0x255   : > { %v6477_v20 = vpop.eup %6476  ;;  %4759 = vst [vmem:[%s7706_s17 + $0x1068] sm:$0xff] %v3735_v13  ;;  %v3737_v21 = vmul.f32 0.4342945, %v2217_v14  ;;  %v2221_v22 = vmul.f32 0.6931472, %v6475_v16  ;;  %6502 = vlog2.f32 %v681_v11  ;;  %v697_v11 = vld [vmem:[%s7677_s30 + $0x1178] sm:$0xff] }
 0x256   : > { %v6479_v24 = vpop.eup %6478  ;;  %4760 = vst [vmem:[%s7706_s17 + $0x1070] sm:$0xff] %v3736_v17  ;;  %v3738_v25 = vmul.f32 0.4342945, %v2219_v18  ;;  %v2223_v26 = vmul.f32 0.6931472, %v6477_v20  ;;  %6504 = vlog2.f32 %v682_v15  ;;  %v698_v15 = vld [vmem:[%s7677_s30 + $0x1180] sm:$0xff] }
 0x257   : > { %v6481_v28 = vpop.eup %6480  ;;  %4761 = vst [vmem:[%s7706_s17 + $0x1078] sm:$0xff] %v3737_v21  ;;  %v3739_v29 = vmul.f32 0.4342945, %v2221_v22  ;;  %v2225_v30 = vmul.f32 0.6931472, %v6479_v24  ;;  %6506 = vlog2.f32 %v683_v19  ;;  %v699_v19 = vld [vmem:[%s7677_s30 + $0x1188] sm:$0xff] }
 0x258   : > { %v6483_v32 = vpop.eup %6482  ;;  %4762 = vst [vmem:[%s7706_s17 + $0x1080] sm:$0xff] %v3738_v25  ;;  %v3740_v33 = vmul.f32 0.4342945, %v2223_v26  ;;  %v2227_v34 = vmul.f32 0.6931472, %v6481_v28  ;;  %6508 = vlog2.f32 %v684_v23  ;;  %v700_v23 = vld [vmem:[%s7677_s30 + $0x1190] sm:$0xff] }
 0x259   : > { %v6485_v36 = vpop.eup %6484  ;;  %4763 = vst [vmem:[%s7706_s17 + $0x1088] sm:$0xff] %v3739_v29  ;;  %v3741_v37 = vmul.f32 0.4342945, %v2225_v30  ;;  %v2229_v38 = vmul.f32 0.6931472, %v6483_v32  ;;  %6510 = vlog2.f32 %v685_v27  ;;  %v701_v27 = vld [vmem:[%s7677_s30 + $0x1198] sm:$0xff] }
 0x25a   : > { %v6487_v40 = vpop.eup %6486  ;;  %4764 = vst [vmem:[%s7706_s17 + $0x1090] sm:$0xff] %v3740_v33  ;;  %v3742_v41 = vmul.f32 0.4342945, %v2227_v34  ;;  %v2231_v42 = vmul.f32 0.6931472, %v6485_v36  ;;  %6512 = vlog2.f32 %v686_v31  ;;  %v702_v31 = vld [vmem:[%s7677_s30 + $0x11a0] sm:$0xff] }
 0x25b   : > { %v6489_v44 = vpop.eup %6488  ;;  %4765 = vst [vmem:[%s7706_s17 + $0x1098] sm:$0xff] %v3741_v37  ;;  %v3743_v45 = vmul.f32 0.4342945, %v2229_v38  ;;  %v2233_v46 = vmul.f32 0.6931472, %v6487_v40  ;;  %6514 = vlog2.f32 %v687_v35  ;;  %v703_v35 = vld [vmem:[%s7677_s30 + $0x11a8] sm:$0xff] }
 0x25c   : > { %v6491_v48 = vpop.eup %6490  ;;  %4766 = vst [vmem:[%s7706_s17 + $0x10a0] sm:$0xff] %v3742_v41  ;;  %v3744_v49 = vmul.f32 0.4342945, %v2231_v42  ;;  %v2235_v50 = vmul.f32 0.6931472, %v6489_v44  ;;  %6516 = vlog2.f32 %v688_v39  ;;  %v704_v39 = vld [vmem:[%s7677_s30 + $0x11b0] sm:$0xff] }
 0x25d   : > { %v6493_v52 = vpop.eup %6492  ;;  %4767 = vst [vmem:[%s7706_s17 + $0x10a8] sm:$0xff] %v3743_v45  ;;  %v3745_v53 = vmul.f32 0.4342945, %v2233_v46  ;;  %v2237_v54 = vmul.f32 0.6931472, %v6491_v48  ;;  %6518 = vlog2.f32 %v689_v43  ;;  %v705_v43 = vld [vmem:[%s7677_s30 + $0x11b8] sm:$0xff] }
 0x25e   : > { %v6495_v56 = vpop.eup %6494  ;;  %4768 = vst [vmem:[%s7706_s17 + $0x10b0] sm:$0xff] %v3744_v49  ;;  %v3746_v57 = vmul.f32 0.4342945, %v2235_v50  ;;  %v2239_v58 = vmul.f32 0.6931472, %v6493_v52  ;;  %6520 = vlog2.f32 %v690_v47  ;;  %v706_v47 = vld [vmem:[%s7677_s30 + $0x11c0] sm:$0xff] }
 0x25f   : > { %v6497_v60 = vpop.eup %6496  ;;  %4769 = vst [vmem:[%s7706_s17 + $0x10b8] sm:$0xff] %v3745_v53  ;;  %v3747_v61 = vmul.f32 0.4342945, %v2237_v54  ;;  %v2241_v62 = vmul.f32 0.6931472, %v6495_v56  ;;  %6522 = vlog2.f32 %v691_v51  ;;  %v707_v51 = vld [vmem:[%s7677_s30 + $0x11c8] sm:$0xff] }
 0x260   : > { %v6499_v0 = vpop.eup %6498  ;;  %4770 = vst [vmem:[%s7706_s17 + $0x10c0] sm:$0xff] %v3746_v57  ;;  %v3748_v1 = vmul.f32 0.4342945, %v2239_v58  ;;  %v2243_v2 = vmul.f32 0.6931472, %v6497_v60  ;;  %6524 = vlog2.f32 %v692_v55  ;;  %v708_v55 = vld [vmem:[%s7677_s30 + $0x11d0] sm:$0xff] }
 0x261   : > { %v6501_v4 = vpop.eup %6500  ;;  %4771 = vst [vmem:[%s7706_s17 + $0x10c8] sm:$0xff] %v3747_v61  ;;  %v3749_v5 = vmul.f32 0.4342945, %v2241_v62  ;;  %v2245_v6 = vmul.f32 0.6931472, %v6499_v0  ;;  %6526 = vlog2.f32 %v693_v59  ;;  %v709_v59 = vld [vmem:[%s7677_s30 + $0x11d8] sm:$0xff] }
 0x262   : > { %v6503_v8 = vpop.eup %6502  ;;  %4772 = vst [vmem:[%s7706_s17 + $0x10d0] sm:$0xff] %v3748_v1  ;;  %v3750_v9 = vmul.f32 0.4342945, %v2243_v2  ;;  %v2247_v10 = vmul.f32 0.6931472, %v6501_v4  ;;  %6528 = vlog2.f32 %v694_v63  ;;  %v710_v63 = vld [vmem:[%s7677_s30 + $0x11e0] sm:$0xff] }
 0x263   : > { %v6505_v12 = vpop.eup %6504  ;;  %4773 = vst [vmem:[%s7706_s17 + $0x10d8] sm:$0xff] %v3749_v5  ;;  %v3751_v13 = vmul.f32 0.4342945, %v2245_v6  ;;  %v2249_v14 = vmul.f32 0.6931472, %v6503_v8  ;;  %6530 = vlog2.f32 %v695_v3  ;;  %v711_v3 = vld [vmem:[%s7677_s30 + $0x11e8] sm:$0xff] }
 0x264   : > { %v6507_v16 = vpop.eup %6506  ;;  %4774 = vst [vmem:[%s7706_s17 + $0x10e0] sm:$0xff] %v3750_v9  ;;  %v3752_v17 = vmul.f32 0.4342945, %v2247_v10  ;;  %v2251_v18 = vmul.f32 0.6931472, %v6505_v12  ;;  %6532 = vlog2.f32 %v696_v7  ;;  %v712_v7 = vld [vmem:[%s7677_s30 + $0x11f0] sm:$0xff] }
 0x265   : > { %v6509_v20 = vpop.eup %6508  ;;  %4775 = vst [vmem:[%s7706_s17 + $0x10e8] sm:$0xff] %v3751_v13  ;;  %v3753_v21 = vmul.f32 0.4342945, %v2249_v14  ;;  %v2253_v22 = vmul.f32 0.6931472, %v6507_v16  ;;  %6534 = vlog2.f32 %v697_v11  ;;  %v713_v11 = vld [vmem:[%s7677_s30 + $0x11f8] sm:$0xff] }
 0x266   : > { %v6511_v24 = vpop.eup %6510  ;;  %4776 = vst [vmem:[%s7706_s17 + $0x10f0] sm:$0xff] %v3752_v17  ;;  %v3754_v25 = vmul.f32 0.4342945, %v2251_v18  ;;  %v2255_v26 = vmul.f32 0.6931472, %v6509_v20  ;;  %6536 = vlog2.f32 %v698_v15  ;;  %v714_v15 = vld [vmem:[%s7677_s30 + $0x1200] sm:$0xff] }
 0x267   : > { %v6513_v28 = vpop.eup %6512  ;;  %4777 = vst [vmem:[%s7706_s17 + $0x10f8] sm:$0xff] %v3753_v21  ;;  %v3755_v29 = vmul.f32 0.4342945, %v2253_v22  ;;  %v2257_v30 = vmul.f32 0.6931472, %v6511_v24  ;;  %6538 = vlog2.f32 %v699_v19  ;;  %v715_v19 = vld [vmem:[%s7677_s30 + $0x1208] sm:$0xff] }
 0x268   : > { %v6515_v32 = vpop.eup %6514  ;;  %4778 = vst [vmem:[%s7706_s17 + $0x1100] sm:$0xff] %v3754_v25  ;;  %v3756_v33 = vmul.f32 0.4342945, %v2255_v26  ;;  %v2259_v34 = vmul.f32 0.6931472, %v6513_v28  ;;  %6540 = vlog2.f32 %v700_v23  ;;  %v716_v23 = vld [vmem:[%s7677_s30 + $0x1210] sm:$0xff] }
 0x269   : > { %v6517_v36 = vpop.eup %6516  ;;  %4779 = vst [vmem:[%s7706_s17 + $0x1108] sm:$0xff] %v3755_v29  ;;  %v3757_v37 = vmul.f32 0.4342945, %v2257_v30  ;;  %v2261_v38 = vmul.f32 0.6931472, %v6515_v32  ;;  %6542 = vlog2.f32 %v701_v27  ;;  %v717_v27 = vld [vmem:[%s7677_s30 + $0x1218] sm:$0xff] }
 0x26a   : > { %v6519_v40 = vpop.eup %6518  ;;  %4780 = vst [vmem:[%s7706_s17 + $0x1110] sm:$0xff] %v3756_v33  ;;  %v3758_v41 = vmul.f32 0.4342945, %v2259_v34  ;;  %v2263_v42 = vmul.f32 0.6931472, %v6517_v36  ;;  %6544 = vlog2.f32 %v702_v31  ;;  %v718_v31 = vld [vmem:[%s7677_s30 + $0x1220] sm:$0xff] }
 0x26b   : > { %v6521_v44 = vpop.eup %6520  ;;  %4781 = vst [vmem:[%s7706_s17 + $0x1118] sm:$0xff] %v3757_v37  ;;  %v3759_v45 = vmul.f32 0.4342945, %v2261_v38  ;;  %v2265_v46 = vmul.f32 0.6931472, %v6519_v40  ;;  %6546 = vlog2.f32 %v703_v35  ;;  %v719_v35 = vld [vmem:[%s7677_s30 + $0x1228] sm:$0xff] }
 0x26c   : > { %v6523_v48 = vpop.eup %6522  ;;  %4782 = vst [vmem:[%s7706_s17 + $0x1120] sm:$0xff] %v3758_v41  ;;  %v3760_v49 = vmul.f32 0.4342945, %v2263_v42  ;;  %v2267_v50 = vmul.f32 0.6931472, %v6521_v44  ;;  %6548 = vlog2.f32 %v704_v39  ;;  %v720_v39 = vld [vmem:[%s7677_s30 + $0x1230] sm:$0xff] }
 0x26d   : > { %v6525_v52 = vpop.eup %6524  ;;  %4783 = vst [vmem:[%s7706_s17 + $0x1128] sm:$0xff] %v3759_v45  ;;  %v3761_v53 = vmul.f32 0.4342945, %v2265_v46  ;;  %v2269_v54 = vmul.f32 0.6931472, %v6523_v48  ;;  %6550 = vlog2.f32 %v705_v43  ;;  %v721_v43 = vld [vmem:[%s7677_s30 + $0x1238] sm:$0xff] }
 0x26e   : > { %v6527_v56 = vpop.eup %6526  ;;  %4784 = vst [vmem:[%s7706_s17 + $0x1130] sm:$0xff] %v3760_v49  ;;  %v3762_v57 = vmul.f32 0.4342945, %v2267_v50  ;;  %v2271_v58 = vmul.f32 0.6931472, %v6525_v52  ;;  %6552 = vlog2.f32 %v706_v47  ;;  %v722_v47 = vld [vmem:[%s7677_s30 + $0x1240] sm:$0xff] }
 0x26f   : > { %v6529_v60 = vpop.eup %6528  ;;  %4785 = vst [vmem:[%s7706_s17 + $0x1138] sm:$0xff] %v3761_v53  ;;  %v3763_v61 = vmul.f32 0.4342945, %v2269_v54  ;;  %v2273_v62 = vmul.f32 0.6931472, %v6527_v56  ;;  %6554 = vlog2.f32 %v707_v51  ;;  %v723_v51 = vld [vmem:[%s7677_s30 + $0x1248] sm:$0xff] }
 0x270   : > { %v6531_v0 = vpop.eup %6530  ;;  %4786 = vst [vmem:[%s7706_s17 + $0x1140] sm:$0xff] %v3762_v57  ;;  %v3764_v1 = vmul.f32 0.4342945, %v2271_v58  ;;  %v2275_v2 = vmul.f32 0.6931472, %v6529_v60  ;;  %6556 = vlog2.f32 %v708_v55  ;;  %v724_v55 = vld [vmem:[%s7677_s30 + $0x1250] sm:$0xff] }
 0x271   : > { %v6533_v4 = vpop.eup %6532  ;;  %4787 = vst [vmem:[%s7706_s17 + $0x1148] sm:$0xff] %v3763_v61  ;;  %v3765_v5 = vmul.f32 0.4342945, %v2273_v62  ;;  %v2277_v6 = vmul.f32 0.6931472, %v6531_v0  ;;  %6558 = vlog2.f32 %v709_v59  ;;  %v725_v59 = vld [vmem:[%s7677_s30 + $0x1258] sm:$0xff] }
 0x272   : > { %v6535_v8 = vpop.eup %6534  ;;  %4788 = vst [vmem:[%s7706_s17 + $0x1150] sm:$0xff] %v3764_v1  ;;  %v3766_v9 = vmul.f32 0.4342945, %v2275_v2  ;;  %v2279_v10 = vmul.f32 0.6931472, %v6533_v4  ;;  %6560 = vlog2.f32 %v710_v63  ;;  %v726_v63 = vld [vmem:[%s7677_s30 + $0x1260] sm:$0xff] }
 0x273   : > { %v6537_v12 = vpop.eup %6536  ;;  %4789 = vst [vmem:[%s7706_s17 + $0x1158] sm:$0xff] %v3765_v5  ;;  %v3767_v13 = vmul.f32 0.4342945, %v2277_v6  ;;  %v2281_v14 = vmul.f32 0.6931472, %v6535_v8  ;;  %6562 = vlog2.f32 %v711_v3  ;;  %v727_v3 = vld [vmem:[%s7677_s30 + $0x1268] sm:$0xff] }
 0x274   : > { %v6539_v16 = vpop.eup %6538  ;;  %4790 = vst [vmem:[%s7706_s17 + $0x1160] sm:$0xff] %v3766_v9  ;;  %v3768_v17 = vmul.f32 0.4342945, %v2279_v10  ;;  %v2283_v18 = vmul.f32 0.6931472, %v6537_v12  ;;  %6564 = vlog2.f32 %v712_v7  ;;  %v728_v7 = vld [vmem:[%s7677_s30 + $0x1270] sm:$0xff] }
 0x275   : > { %v6541_v20 = vpop.eup %6540  ;;  %4791 = vst [vmem:[%s7706_s17 + $0x1168] sm:$0xff] %v3767_v13  ;;  %v3769_v21 = vmul.f32 0.4342945, %v2281_v14  ;;  %v2285_v22 = vmul.f32 0.6931472, %v6539_v16  ;;  %6566 = vlog2.f32 %v713_v11  ;;  %v729_v11 = vld [vmem:[%s7677_s30 + $0x1278] sm:$0xff] }
 0x276   : > { %v6543_v24 = vpop.eup %6542  ;;  %4792 = vst [vmem:[%s7706_s17 + $0x1170] sm:$0xff] %v3768_v17  ;;  %v3770_v25 = vmul.f32 0.4342945, %v2283_v18  ;;  %v2287_v26 = vmul.f32 0.6931472, %v6541_v20  ;;  %6568 = vlog2.f32 %v714_v15  ;;  %v730_v15 = vld [vmem:[%s7677_s30 + $0x1280] sm:$0xff] }
 0x277   : > { %v6545_v28 = vpop.eup %6544  ;;  %4793 = vst [vmem:[%s7706_s17 + $0x1178] sm:$0xff] %v3769_v21  ;;  %v3771_v29 = vmul.f32 0.4342945, %v2285_v22  ;;  %v2289_v30 = vmul.f32 0.6931472, %v6543_v24  ;;  %6570 = vlog2.f32 %v715_v19  ;;  %v731_v19 = vld [vmem:[%s7677_s30 + $0x1288] sm:$0xff] }
 0x278   : > { %v6547_v32 = vpop.eup %6546  ;;  %4794 = vst [vmem:[%s7706_s17 + $0x1180] sm:$0xff] %v3770_v25  ;;  %v3772_v33 = vmul.f32 0.4342945, %v2287_v26  ;;  %v2291_v34 = vmul.f32 0.6931472, %v6545_v28  ;;  %6572 = vlog2.f32 %v716_v23  ;;  %v732_v23 = vld [vmem:[%s7677_s30 + $0x1290] sm:$0xff] }
 0x279   : > { %v6549_v36 = vpop.eup %6548  ;;  %4795 = vst [vmem:[%s7706_s17 + $0x1188] sm:$0xff] %v3771_v29  ;;  %v3773_v37 = vmul.f32 0.4342945, %v2289_v30  ;;  %v2293_v38 = vmul.f32 0.6931472, %v6547_v32  ;;  %6574 = vlog2.f32 %v717_v27  ;;  %v733_v27 = vld [vmem:[%s7677_s30 + $0x1298] sm:$0xff] }
 0x27a   : > { %v6551_v40 = vpop.eup %6550  ;;  %4796 = vst [vmem:[%s7706_s17 + $0x1190] sm:$0xff] %v3772_v33  ;;  %v3774_v41 = vmul.f32 0.4342945, %v2291_v34  ;;  %v2295_v42 = vmul.f32 0.6931472, %v6549_v36  ;;  %6576 = vlog2.f32 %v718_v31  ;;  %v734_v31 = vld [vmem:[%s7677_s30 + $0x12a0] sm:$0xff] }
 0x27b   : > { %v6553_v44 = vpop.eup %6552  ;;  %4797 = vst [vmem:[%s7706_s17 + $0x1198] sm:$0xff] %v3773_v37  ;;  %v3775_v45 = vmul.f32 0.4342945, %v2293_v38  ;;  %v2297_v46 = vmul.f32 0.6931472, %v6551_v40  ;;  %6578 = vlog2.f32 %v719_v35  ;;  %v735_v35 = vld [vmem:[%s7677_s30 + $0x12a8] sm:$0xff] }
 0x27c   : > { %v6555_v48 = vpop.eup %6554  ;;  %4798 = vst [vmem:[%s7706_s17 + $0x11a0] sm:$0xff] %v3774_v41  ;;  %v3776_v49 = vmul.f32 0.4342945, %v2295_v42  ;;  %v2299_v50 = vmul.f32 0.6931472, %v6553_v44  ;;  %6580 = vlog2.f32 %v720_v39  ;;  %v736_v39 = vld [vmem:[%s7677_s30 + $0x12b0] sm:$0xff] }
 0x27d   : > { %v6557_v52 = vpop.eup %6556  ;;  %4799 = vst [vmem:[%s7706_s17 + $0x11a8] sm:$0xff] %v3775_v45  ;;  %v3777_v53 = vmul.f32 0.4342945, %v2297_v46  ;;  %v2301_v54 = vmul.f32 0.6931472, %v6555_v48  ;;  %6582 = vlog2.f32 %v721_v43  ;;  %v737_v43 = vld [vmem:[%s7677_s30 + $0x12b8] sm:$0xff] }
 0x27e   : > { %v6559_v56 = vpop.eup %6558  ;;  %4800 = vst [vmem:[%s7706_s17 + $0x11b0] sm:$0xff] %v3776_v49  ;;  %v3778_v57 = vmul.f32 0.4342945, %v2299_v50  ;;  %v2303_v58 = vmul.f32 0.6931472, %v6557_v52  ;;  %6584 = vlog2.f32 %v722_v47  ;;  %v738_v47 = vld [vmem:[%s7677_s30 + $0x12c0] sm:$0xff] }
 0x27f   : > { %v6561_v60 = vpop.eup %6560  ;;  %4801 = vst [vmem:[%s7706_s17 + $0x11b8] sm:$0xff] %v3777_v53  ;;  %v3779_v61 = vmul.f32 0.4342945, %v2301_v54  ;;  %v2305_v62 = vmul.f32 0.6931472, %v6559_v56  ;;  %6586 = vlog2.f32 %v723_v51  ;;  %v739_v51 = vld [vmem:[%s7677_s30 + $0x12c8] sm:$0xff] }
 0x280   : > { %v6563_v0 = vpop.eup %6562  ;;  %4802 = vst [vmem:[%s7706_s17 + $0x11c0] sm:$0xff] %v3778_v57  ;;  %v3780_v1 = vmul.f32 0.4342945, %v2303_v58  ;;  %v2307_v2 = vmul.f32 0.6931472, %v6561_v60  ;;  %6588 = vlog2.f32 %v724_v55  ;;  %v740_v55 = vld [vmem:[%s7677_s30 + $0x12d0] sm:$0xff] }
 0x281   : > { %v6565_v4 = vpop.eup %6564  ;;  %4803 = vst [vmem:[%s7706_s17 + $0x11c8] sm:$0xff] %v3779_v61  ;;  %v3781_v5 = vmul.f32 0.4342945, %v2305_v62  ;;  %v2309_v6 = vmul.f32 0.6931472, %v6563_v0  ;;  %6590 = vlog2.f32 %v725_v59  ;;  %v741_v59 = vld [vmem:[%s7677_s30 + $0x12d8] sm:$0xff] }
 0x282   : > { %v6567_v8 = vpop.eup %6566  ;;  %4804 = vst [vmem:[%s7706_s17 + $0x11d0] sm:$0xff] %v3780_v1  ;;  %v3782_v9 = vmul.f32 0.4342945, %v2307_v2  ;;  %v2311_v10 = vmul.f32 0.6931472, %v6565_v4  ;;  %6592 = vlog2.f32 %v726_v63  ;;  %v742_v63 = vld [vmem:[%s7677_s30 + $0x12e0] sm:$0xff] }
 0x283   : > { %v6569_v12 = vpop.eup %6568  ;;  %4805 = vst [vmem:[%s7706_s17 + $0x11d8] sm:$0xff] %v3781_v5  ;;  %v3783_v13 = vmul.f32 0.4342945, %v2309_v6  ;;  %v2313_v14 = vmul.f32 0.6931472, %v6567_v8  ;;  %6594 = vlog2.f32 %v727_v3  ;;  %v743_v3 = vld [vmem:[%s7677_s30 + $0x12e8] sm:$0xff] }
 0x284   : > { %v6571_v16 = vpop.eup %6570  ;;  %4806 = vst [vmem:[%s7706_s17 + $0x11e0] sm:$0xff] %v3782_v9  ;;  %v3784_v17 = vmul.f32 0.4342945, %v2311_v10  ;;  %v2315_v18 = vmul.f32 0.6931472, %v6569_v12  ;;  %6596 = vlog2.f32 %v728_v7  ;;  %v744_v7 = vld [vmem:[%s7677_s30 + $0x12f0] sm:$0xff] }
 0x285   : > { %v6573_v20 = vpop.eup %6572  ;;  %4807 = vst [vmem:[%s7706_s17 + $0x11e8] sm:$0xff] %v3783_v13  ;;  %v3785_v21 = vmul.f32 0.4342945, %v2313_v14  ;;  %v2317_v22 = vmul.f32 0.6931472, %v6571_v16  ;;  %6598 = vlog2.f32 %v729_v11  ;;  %v745_v11 = vld [vmem:[%s7677_s30 + $0x12f8] sm:$0xff] }
 0x286   : > { %v6575_v24 = vpop.eup %6574  ;;  %4808 = vst [vmem:[%s7706_s17 + $0x11f0] sm:$0xff] %v3784_v17  ;;  %v3786_v25 = vmul.f32 0.4342945, %v2315_v18  ;;  %v2319_v26 = vmul.f32 0.6931472, %v6573_v20  ;;  %6600 = vlog2.f32 %v730_v15  ;;  %v746_v15 = vld [vmem:[%s7677_s30 + $0x1300] sm:$0xff] }
 0x287   : > { %v6577_v28 = vpop.eup %6576  ;;  %4809 = vst [vmem:[%s7706_s17 + $0x11f8] sm:$0xff] %v3785_v21  ;;  %v3787_v29 = vmul.f32 0.4342945, %v2317_v22  ;;  %v2321_v30 = vmul.f32 0.6931472, %v6575_v24  ;;  %6602 = vlog2.f32 %v731_v19  ;;  %v747_v19 = vld [vmem:[%s7677_s30 + $0x1308] sm:$0xff] }
 0x288   : > { %v6579_v32 = vpop.eup %6578  ;;  %4810 = vst [vmem:[%s7706_s17 + $0x1200] sm:$0xff] %v3786_v25  ;;  %v3788_v33 = vmul.f32 0.4342945, %v2319_v26  ;;  %v2323_v34 = vmul.f32 0.6931472, %v6577_v28  ;;  %6604 = vlog2.f32 %v732_v23  ;;  %v748_v23 = vld [vmem:[%s7677_s30 + $0x1310] sm:$0xff] }
 0x289   : > { %v6581_v36 = vpop.eup %6580  ;;  %4811 = vst [vmem:[%s7706_s17 + $0x1208] sm:$0xff] %v3787_v29  ;;  %v3789_v37 = vmul.f32 0.4342945, %v2321_v30  ;;  %v2325_v38 = vmul.f32 0.6931472, %v6579_v32  ;;  %6606 = vlog2.f32 %v733_v27  ;;  %v749_v27 = vld [vmem:[%s7677_s30 + $0x1318] sm:$0xff] }
 0x28a   : > { %v6583_v40 = vpop.eup %6582  ;;  %4812 = vst [vmem:[%s7706_s17 + $0x1210] sm:$0xff] %v3788_v33  ;;  %v3790_v41 = vmul.f32 0.4342945, %v2323_v34  ;;  %v2327_v42 = vmul.f32 0.6931472, %v6581_v36  ;;  %6608 = vlog2.f32 %v734_v31  ;;  %v750_v31 = vld [vmem:[%s7677_s30 + $0x1320] sm:$0xff] }
 0x28b   : > { %v6585_v44 = vpop.eup %6584  ;;  %4813 = vst [vmem:[%s7706_s17 + $0x1218] sm:$0xff] %v3789_v37  ;;  %v3791_v45 = vmul.f32 0.4342945, %v2325_v38  ;;  %v2329_v46 = vmul.f32 0.6931472, %v6583_v40  ;;  %6610 = vlog2.f32 %v735_v35  ;;  %v751_v35 = vld [vmem:[%s7677_s30 + $0x1328] sm:$0xff] }
 0x28c   : > { %v6587_v48 = vpop.eup %6586  ;;  %4814 = vst [vmem:[%s7706_s17 + $0x1220] sm:$0xff] %v3790_v41  ;;  %v3792_v49 = vmul.f32 0.4342945, %v2327_v42  ;;  %v2331_v50 = vmul.f32 0.6931472, %v6585_v44  ;;  %6612 = vlog2.f32 %v736_v39  ;;  %v752_v39 = vld [vmem:[%s7677_s30 + $0x1330] sm:$0xff] }
 0x28d   : > { %v6589_v52 = vpop.eup %6588  ;;  %4815 = vst [vmem:[%s7706_s17 + $0x1228] sm:$0xff] %v3791_v45  ;;  %v3793_v53 = vmul.f32 0.4342945, %v2329_v46  ;;  %v2333_v54 = vmul.f32 0.6931472, %v6587_v48  ;;  %6614 = vlog2.f32 %v737_v43  ;;  %v753_v43 = vld [vmem:[%s7677_s30 + $0x1338] sm:$0xff] }
 0x28e   : > { %v6591_v56 = vpop.eup %6590  ;;  %4816 = vst [vmem:[%s7706_s17 + $0x1230] sm:$0xff] %v3792_v49  ;;  %v3794_v57 = vmul.f32 0.4342945, %v2331_v50  ;;  %v2335_v58 = vmul.f32 0.6931472, %v6589_v52  ;;  %6616 = vlog2.f32 %v738_v47  ;;  %v754_v47 = vld [vmem:[%s7677_s30 + $0x1340] sm:$0xff] }
 0x28f   : > { %v6593_v60 = vpop.eup %6592  ;;  %4817 = vst [vmem:[%s7706_s17 + $0x1238] sm:$0xff] %v3793_v53  ;;  %v3795_v61 = vmul.f32 0.4342945, %v2333_v54  ;;  %v2337_v62 = vmul.f32 0.6931472, %v6591_v56  ;;  %6618 = vlog2.f32 %v739_v51  ;;  %v755_v51 = vld [vmem:[%s7677_s30 + $0x1348] sm:$0xff] }
 0x290   : > { %v6595_v0 = vpop.eup %6594  ;;  %4818 = vst [vmem:[%s7706_s17 + $0x1240] sm:$0xff] %v3794_v57  ;;  %v3796_v1 = vmul.f32 0.4342945, %v2335_v58  ;;  %v2339_v2 = vmul.f32 0.6931472, %v6593_v60  ;;  %6620 = vlog2.f32 %v740_v55  ;;  %v756_v55 = vld [vmem:[%s7677_s30 + $0x1350] sm:$0xff] }
 0x291   : > { %v6597_v4 = vpop.eup %6596  ;;  %4819 = vst [vmem:[%s7706_s17 + $0x1248] sm:$0xff] %v3795_v61  ;;  %v3797_v5 = vmul.f32 0.4342945, %v2337_v62  ;;  %v2341_v6 = vmul.f32 0.6931472, %v6595_v0  ;;  %6622 = vlog2.f32 %v741_v59  ;;  %v757_v59 = vld [vmem:[%s7677_s30 + $0x1358] sm:$0xff] }
 0x292   : > { %v6599_v8 = vpop.eup %6598  ;;  %4820 = vst [vmem:[%s7706_s17 + $0x1250] sm:$0xff] %v3796_v1  ;;  %v3798_v9 = vmul.f32 0.4342945, %v2339_v2  ;;  %v2343_v10 = vmul.f32 0.6931472, %v6597_v4  ;;  %6624 = vlog2.f32 %v742_v63  ;;  %v758_v63 = vld [vmem:[%s7677_s30 + $0x1360] sm:$0xff] }
 0x293   : > { %v6601_v12 = vpop.eup %6600  ;;  %4821 = vst [vmem:[%s7706_s17 + $0x1258] sm:$0xff] %v3797_v5  ;;  %v3799_v13 = vmul.f32 0.4342945, %v2341_v6  ;;  %v2345_v14 = vmul.f32 0.6931472, %v6599_v8  ;;  %6626 = vlog2.f32 %v743_v3  ;;  %v759_v3 = vld [vmem:[%s7677_s30 + $0x1368] sm:$0xff] }
 0x294   : > { %v6603_v16 = vpop.eup %6602  ;;  %4822 = vst [vmem:[%s7706_s17 + $0x1260] sm:$0xff] %v3798_v9  ;;  %v3800_v17 = vmul.f32 0.4342945, %v2343_v10  ;;  %v2347_v18 = vmul.f32 0.6931472, %v6601_v12  ;;  %6628 = vlog2.f32 %v744_v7  ;;  %v760_v7 = vld [vmem:[%s7677_s30 + $0x1370] sm:$0xff] }
 0x295   : > { %v6605_v20 = vpop.eup %6604  ;;  %4823 = vst [vmem:[%s7706_s17 + $0x1268] sm:$0xff] %v3799_v13  ;;  %v3801_v21 = vmul.f32 0.4342945, %v2345_v14  ;;  %v2349_v22 = vmul.f32 0.6931472, %v6603_v16  ;;  %6630 = vlog2.f32 %v745_v11  ;;  %v761_v11 = vld [vmem:[%s7677_s30 + $0x1378] sm:$0xff] }
 0x296   : > { %v6607_v24 = vpop.eup %6606  ;;  %4824 = vst [vmem:[%s7706_s17 + $0x1270] sm:$0xff] %v3800_v17  ;;  %v3802_v25 = vmul.f32 0.4342945, %v2347_v18  ;;  %v2351_v26 = vmul.f32 0.6931472, %v6605_v20  ;;  %6632 = vlog2.f32 %v746_v15  ;;  %v762_v15 = vld [vmem:[%s7677_s30 + $0x1380] sm:$0xff] }
 0x297   : > { %v6609_v28 = vpop.eup %6608  ;;  %4825 = vst [vmem:[%s7706_s17 + $0x1278] sm:$0xff] %v3801_v21  ;;  %v3803_v29 = vmul.f32 0.4342945, %v2349_v22  ;;  %v2353_v30 = vmul.f32 0.6931472, %v6607_v24  ;;  %6634 = vlog2.f32 %v747_v19  ;;  %v763_v19 = vld [vmem:[%s7677_s30 + $0x1388] sm:$0xff] }
 0x298   : > { %v6611_v32 = vpop.eup %6610  ;;  %4826 = vst [vmem:[%s7706_s17 + $0x1280] sm:$0xff] %v3802_v25  ;;  %v3804_v33 = vmul.f32 0.4342945, %v2351_v26  ;;  %v2355_v34 = vmul.f32 0.6931472, %v6609_v28  ;;  %6636 = vlog2.f32 %v748_v23  ;;  %v764_v23 = vld [vmem:[%s7677_s30 + $0x1390] sm:$0xff] }
 0x299   : > { %v6613_v36 = vpop.eup %6612  ;;  %4827 = vst [vmem:[%s7706_s17 + $0x1288] sm:$0xff] %v3803_v29  ;;  %v3805_v37 = vmul.f32 0.4342945, %v2353_v30  ;;  %v2357_v38 = vmul.f32 0.6931472, %v6611_v32  ;;  %6638 = vlog2.f32 %v749_v27  ;;  %v765_v27 = vld [vmem:[%s7677_s30 + $0x1398] sm:$0xff] }
 0x29a   : > { %v6615_v40 = vpop.eup %6614  ;;  %4828 = vst [vmem:[%s7706_s17 + $0x1290] sm:$0xff] %v3804_v33  ;;  %v3806_v41 = vmul.f32 0.4342945, %v2355_v34  ;;  %v2359_v42 = vmul.f32 0.6931472, %v6613_v36  ;;  %6640 = vlog2.f32 %v750_v31  ;;  %v766_v31 = vld [vmem:[%s7677_s30 + $0x13a0] sm:$0xff] }
 0x29b   : > { %v6617_v44 = vpop.eup %6616  ;;  %4829 = vst [vmem:[%s7706_s17 + $0x1298] sm:$0xff] %v3805_v37  ;;  %v3807_v45 = vmul.f32 0.4342945, %v2357_v38  ;;  %v2361_v46 = vmul.f32 0.6931472, %v6615_v40  ;;  %6642 = vlog2.f32 %v751_v35  ;;  %v767_v35 = vld [vmem:[%s7677_s30 + $0x13a8] sm:$0xff] }
 0x29c   : > { %v6619_v48 = vpop.eup %6618  ;;  %4830 = vst [vmem:[%s7706_s17 + $0x12a0] sm:$0xff] %v3806_v41  ;;  %v3808_v49 = vmul.f32 0.4342945, %v2359_v42  ;;  %v2363_v50 = vmul.f32 0.6931472, %v6617_v44  ;;  %6644 = vlog2.f32 %v752_v39  ;;  %v768_v39 = vld [vmem:[%s7677_s30 + $0x13b0] sm:$0xff] }
 0x29d   : > { %v6621_v52 = vpop.eup %6620  ;;  %4831 = vst [vmem:[%s7706_s17 + $0x12a8] sm:$0xff] %v3807_v45  ;;  %v3809_v53 = vmul.f32 0.4342945, %v2361_v46  ;;  %v2365_v54 = vmul.f32 0.6931472, %v6619_v48  ;;  %6646 = vlog2.f32 %v753_v43  ;;  %v769_v43 = vld [vmem:[%s7677_s30 + $0x13b8] sm:$0xff] }
 0x29e   : > { %v6623_v56 = vpop.eup %6622  ;;  %4832 = vst [vmem:[%s7706_s17 + $0x12b0] sm:$0xff] %v3808_v49  ;;  %v3810_v57 = vmul.f32 0.4342945, %v2363_v50  ;;  %v2367_v58 = vmul.f32 0.6931472, %v6621_v52  ;;  %6648 = vlog2.f32 %v754_v47  ;;  %v770_v47 = vld [vmem:[%s7677_s30 + $0x13c0] sm:$0xff] }
 0x29f   : > { %v6625_v60 = vpop.eup %6624  ;;  %4833 = vst [vmem:[%s7706_s17 + $0x12b8] sm:$0xff] %v3809_v53  ;;  %v3811_v61 = vmul.f32 0.4342945, %v2365_v54  ;;  %v2369_v62 = vmul.f32 0.6931472, %v6623_v56  ;;  %6650 = vlog2.f32 %v755_v51  ;;  %v771_v51 = vld [vmem:[%s7677_s30 + $0x13c8] sm:$0xff] }
 0x2a0   : > { %v6627_v0 = vpop.eup %6626  ;;  %4834 = vst [vmem:[%s7706_s17 + $0x12c0] sm:$0xff] %v3810_v57  ;;  %v3812_v1 = vmul.f32 0.4342945, %v2367_v58  ;;  %v2371_v2 = vmul.f32 0.6931472, %v6625_v60  ;;  %6652 = vlog2.f32 %v756_v55  ;;  %v772_v55 = vld [vmem:[%s7677_s30 + $0x13d0] sm:$0xff] }
 0x2a1   : > { %v6629_v4 = vpop.eup %6628  ;;  %4835 = vst [vmem:[%s7706_s17 + $0x12c8] sm:$0xff] %v3811_v61  ;;  %v3813_v5 = vmul.f32 0.4342945, %v2369_v62  ;;  %v2373_v6 = vmul.f32 0.6931472, %v6627_v0  ;;  %6654 = vlog2.f32 %v757_v59  ;;  %v773_v59 = vld [vmem:[%s7677_s30 + $0x13d8] sm:$0xff] }
 0x2a2   : > { %v6631_v8 = vpop.eup %6630  ;;  %4836 = vst [vmem:[%s7706_s17 + $0x12d0] sm:$0xff] %v3812_v1  ;;  %v3814_v9 = vmul.f32 0.4342945, %v2371_v2  ;;  %v2375_v10 = vmul.f32 0.6931472, %v6629_v4  ;;  %6656 = vlog2.f32 %v758_v63  ;;  %v774_v63 = vld [vmem:[%s7677_s30 + $0x13e0] sm:$0xff] }
 0x2a3   : > { %v6633_v12 = vpop.eup %6632  ;;  %4837 = vst [vmem:[%s7706_s17 + $0x12d8] sm:$0xff] %v3813_v5  ;;  %v3815_v13 = vmul.f32 0.4342945, %v2373_v6  ;;  %v2377_v14 = vmul.f32 0.6931472, %v6631_v8  ;;  %6658 = vlog2.f32 %v759_v3  ;;  %v775_v3 = vld [vmem:[%s7677_s30 + $0x13e8] sm:$0xff] }
 0x2a4   : > { %v6635_v16 = vpop.eup %6634  ;;  %4838 = vst [vmem:[%s7706_s17 + $0x12e0] sm:$0xff] %v3814_v9  ;;  %v3816_v17 = vmul.f32 0.4342945, %v2375_v10  ;;  %v2379_v18 = vmul.f32 0.6931472, %v6633_v12  ;;  %6660 = vlog2.f32 %v760_v7  ;;  %v776_v7 = vld [vmem:[%s7677_s30 + $0x13f0] sm:$0xff] }
 0x2a5   : > { %v6637_v20 = vpop.eup %6636  ;;  %4839 = vst [vmem:[%s7706_s17 + $0x12e8] sm:$0xff] %v3815_v13  ;;  %v3817_v21 = vmul.f32 0.4342945, %v2377_v14  ;;  %v2381_v22 = vmul.f32 0.6931472, %v6635_v16  ;;  %6662 = vlog2.f32 %v761_v11  ;;  %v777_v11 = vld [vmem:[%s7677_s30 + $0x13f8] sm:$0xff] }
 0x2a6   : > { %v6639_v24 = vpop.eup %6638  ;;  %4840 = vst [vmem:[%s7706_s17 + $0x12f0] sm:$0xff] %v3816_v17  ;;  %v3818_v25 = vmul.f32 0.4342945, %v2379_v18  ;;  %v2383_v26 = vmul.f32 0.6931472, %v6637_v20  ;;  %6664 = vlog2.f32 %v762_v15  ;;  %v778_v15 = vld [vmem:[%s7677_s30 + $0x1400] sm:$0xff] }
 0x2a7   : > { %v6641_v28 = vpop.eup %6640  ;;  %4841 = vst [vmem:[%s7706_s17 + $0x12f8] sm:$0xff] %v3817_v21  ;;  %v3819_v29 = vmul.f32 0.4342945, %v2381_v22  ;;  %v2385_v30 = vmul.f32 0.6931472, %v6639_v24  ;;  %6666 = vlog2.f32 %v763_v19  ;;  %v779_v19 = vld [vmem:[%s7677_s30 + $0x1408] sm:$0xff] }
 0x2a8   : > { %v6643_v32 = vpop.eup %6642  ;;  %4842 = vst [vmem:[%s7706_s17 + $0x1300] sm:$0xff] %v3818_v25  ;;  %v3820_v33 = vmul.f32 0.4342945, %v2383_v26  ;;  %v2387_v34 = vmul.f32 0.6931472, %v6641_v28  ;;  %6668 = vlog2.f32 %v764_v23  ;;  %v780_v23 = vld [vmem:[%s7677_s30 + $0x1410] sm:$0xff] }
 0x2a9   : > { %v6645_v36 = vpop.eup %6644  ;;  %4843 = vst [vmem:[%s7706_s17 + $0x1308] sm:$0xff] %v3819_v29  ;;  %v3821_v37 = vmul.f32 0.4342945, %v2385_v30  ;;  %v2389_v38 = vmul.f32 0.6931472, %v6643_v32  ;;  %6670 = vlog2.f32 %v765_v27  ;;  %v781_v27 = vld [vmem:[%s7677_s30 + $0x1418] sm:$0xff] }
 0x2aa   : > { %v6647_v40 = vpop.eup %6646  ;;  %4844 = vst [vmem:[%s7706_s17 + $0x1310] sm:$0xff] %v3820_v33  ;;  %v3822_v41 = vmul.f32 0.4342945, %v2387_v34  ;;  %v2391_v42 = vmul.f32 0.6931472, %v6645_v36  ;;  %6672 = vlog2.f32 %v766_v31  ;;  %v782_v31 = vld [vmem:[%s7677_s30 + $0x1420] sm:$0xff] }
 0x2ab   : > { %v6649_v44 = vpop.eup %6648  ;;  %4845 = vst [vmem:[%s7706_s17 + $0x1318] sm:$0xff] %v3821_v37  ;;  %v3823_v45 = vmul.f32 0.4342945, %v2389_v38  ;;  %v2393_v46 = vmul.f32 0.6931472, %v6647_v40  ;;  %6674 = vlog2.f32 %v767_v35  ;;  %v783_v35 = vld [vmem:[%s7677_s30 + $0x1428] sm:$0xff] }
 0x2ac   : > { %v6651_v48 = vpop.eup %6650  ;;  %4846 = vst [vmem:[%s7706_s17 + $0x1320] sm:$0xff] %v3822_v41  ;;  %v3824_v49 = vmul.f32 0.4342945, %v2391_v42  ;;  %v2395_v50 = vmul.f32 0.6931472, %v6649_v44  ;;  %6676 = vlog2.f32 %v768_v39  ;;  %v784_v39 = vld [vmem:[%s7677_s30 + $0x1430] sm:$0xff] }
 0x2ad   : > { %v6653_v52 = vpop.eup %6652  ;;  %4847 = vst [vmem:[%s7706_s17 + $0x1328] sm:$0xff] %v3823_v45  ;;  %v3825_v53 = vmul.f32 0.4342945, %v2393_v46  ;;  %v2397_v54 = vmul.f32 0.6931472, %v6651_v48  ;;  %6678 = vlog2.f32 %v769_v43  ;;  %v785_v43 = vld [vmem:[%s7677_s30 + $0x1438] sm:$0xff] }
 0x2ae   : > { %v6655_v56 = vpop.eup %6654  ;;  %4848 = vst [vmem:[%s7706_s17 + $0x1330] sm:$0xff] %v3824_v49  ;;  %v3826_v57 = vmul.f32 0.4342945, %v2395_v50  ;;  %v2399_v58 = vmul.f32 0.6931472, %v6653_v52  ;;  %6680 = vlog2.f32 %v770_v47  ;;  %v786_v47 = vld [vmem:[%s7677_s30 + $0x1440] sm:$0xff] }
 0x2af   : > { %v6657_v60 = vpop.eup %6656  ;;  %4849 = vst [vmem:[%s7706_s17 + $0x1338] sm:$0xff] %v3825_v53  ;;  %v3827_v61 = vmul.f32 0.4342945, %v2397_v54  ;;  %v2401_v62 = vmul.f32 0.6931472, %v6655_v56  ;;  %6682 = vlog2.f32 %v771_v51  ;;  %v787_v51 = vld [vmem:[%s7677_s30 + $0x1448] sm:$0xff] }
 0x2b0   : > { %v6659_v0 = vpop.eup %6658  ;;  %4850 = vst [vmem:[%s7706_s17 + $0x1340] sm:$0xff] %v3826_v57  ;;  %v3828_v1 = vmul.f32 0.4342945, %v2399_v58  ;;  %v2403_v2 = vmul.f32 0.6931472, %v6657_v60  ;;  %6684 = vlog2.f32 %v772_v55  ;;  %v788_v55 = vld [vmem:[%s7677_s30 + $0x1450] sm:$0xff] }
 0x2b1   : > { %v6661_v4 = vpop.eup %6660  ;;  %4851 = vst [vmem:[%s7706_s17 + $0x1348] sm:$0xff] %v3827_v61  ;;  %v3829_v5 = vmul.f32 0.4342945, %v2401_v62  ;;  %v2405_v6 = vmul.f32 0.6931472, %v6659_v0  ;;  %6686 = vlog2.f32 %v773_v59  ;;  %v789_v59 = vld [vmem:[%s7677_s30 + $0x1458] sm:$0xff] }
 0x2b2   : > { %v6663_v8 = vpop.eup %6662  ;;  %4852 = vst [vmem:[%s7706_s17 + $0x1350] sm:$0xff] %v3828_v1  ;;  %v3830_v9 = vmul.f32 0.4342945, %v2403_v2  ;;  %v2407_v10 = vmul.f32 0.6931472, %v6661_v4  ;;  %6688 = vlog2.f32 %v774_v63  ;;  %v790_v63 = vld [vmem:[%s7677_s30 + $0x1460] sm:$0xff] }
 0x2b3   : > { %v6665_v12 = vpop.eup %6664  ;;  %4853 = vst [vmem:[%s7706_s17 + $0x1358] sm:$0xff] %v3829_v5  ;;  %v3831_v13 = vmul.f32 0.4342945, %v2405_v6  ;;  %v2409_v14 = vmul.f32 0.6931472, %v6663_v8  ;;  %6690 = vlog2.f32 %v775_v3  ;;  %v791_v3 = vld [vmem:[%s7677_s30 + $0x1468] sm:$0xff] }
 0x2b4   : > { %v6667_v16 = vpop.eup %6666  ;;  %4854 = vst [vmem:[%s7706_s17 + $0x1360] sm:$0xff] %v3830_v9  ;;  %v3832_v17 = vmul.f32 0.4342945, %v2407_v10  ;;  %v2411_v18 = vmul.f32 0.6931472, %v6665_v12  ;;  %6692 = vlog2.f32 %v776_v7  ;;  %v792_v7 = vld [vmem:[%s7677_s30 + $0x1470] sm:$0xff] }
 0x2b5   : > { %v6669_v20 = vpop.eup %6668  ;;  %4855 = vst [vmem:[%s7706_s17 + $0x1368] sm:$0xff] %v3831_v13  ;;  %v3833_v21 = vmul.f32 0.4342945, %v2409_v14  ;;  %v2413_v22 = vmul.f32 0.6931472, %v6667_v16  ;;  %6694 = vlog2.f32 %v777_v11  ;;  %v793_v11 = vld [vmem:[%s7677_s30 + $0x1478] sm:$0xff] }
 0x2b6   : > { %v6671_v24 = vpop.eup %6670  ;;  %4856 = vst [vmem:[%s7706_s17 + $0x1370] sm:$0xff] %v3832_v17  ;;  %v3834_v25 = vmul.f32 0.4342945, %v2411_v18  ;;  %v2415_v26 = vmul.f32 0.6931472, %v6669_v20  ;;  %6696 = vlog2.f32 %v778_v15  ;;  %v794_v15 = vld [vmem:[%s7677_s30 + $0x1480] sm:$0xff] }
 0x2b7   : > { %v6673_v28 = vpop.eup %6672  ;;  %4857 = vst [vmem:[%s7706_s17 + $0x1378] sm:$0xff] %v3833_v21  ;;  %v3835_v29 = vmul.f32 0.4342945, %v2413_v22  ;;  %v2417_v30 = vmul.f32 0.6931472, %v6671_v24  ;;  %6698 = vlog2.f32 %v779_v19  ;;  %v795_v19 = vld [vmem:[%s7677_s30 + $0x1488] sm:$0xff] }
 0x2b8   : > { %v6675_v32 = vpop.eup %6674  ;;  %4858 = vst [vmem:[%s7706_s17 + $0x1380] sm:$0xff] %v3834_v25  ;;  %v3836_v33 = vmul.f32 0.4342945, %v2415_v26  ;;  %v2419_v34 = vmul.f32 0.6931472, %v6673_v28  ;;  %6700 = vlog2.f32 %v780_v23  ;;  %v796_v23 = vld [vmem:[%s7677_s30 + $0x1490] sm:$0xff] }
 0x2b9   : > { %v6677_v36 = vpop.eup %6676  ;;  %4859 = vst [vmem:[%s7706_s17 + $0x1388] sm:$0xff] %v3835_v29  ;;  %v3837_v37 = vmul.f32 0.4342945, %v2417_v30  ;;  %v2421_v38 = vmul.f32 0.6931472, %v6675_v32  ;;  %6702 = vlog2.f32 %v781_v27  ;;  %v797_v27 = vld [vmem:[%s7677_s30 + $0x1498] sm:$0xff] }
 0x2ba   : > { %v6679_v40 = vpop.eup %6678  ;;  %4860 = vst [vmem:[%s7706_s17 + $0x1390] sm:$0xff] %v3836_v33  ;;  %v3838_v41 = vmul.f32 0.4342945, %v2419_v34  ;;  %v2423_v42 = vmul.f32 0.6931472, %v6677_v36  ;;  %6704 = vlog2.f32 %v782_v31  ;;  %v798_v31 = vld [vmem:[%s7677_s30 + $0x14a0] sm:$0xff] }
 0x2bb   : > { %v6681_v44 = vpop.eup %6680  ;;  %4861 = vst [vmem:[%s7706_s17 + $0x1398] sm:$0xff] %v3837_v37  ;;  %v3839_v45 = vmul.f32 0.4342945, %v2421_v38  ;;  %v2425_v46 = vmul.f32 0.6931472, %v6679_v40  ;;  %6706 = vlog2.f32 %v783_v35  ;;  %v799_v35 = vld [vmem:[%s7677_s30 + $0x14a8] sm:$0xff] }
 0x2bc   : > { %v6683_v48 = vpop.eup %6682  ;;  %4862 = vst [vmem:[%s7706_s17 + $0x13a0] sm:$0xff] %v3838_v41  ;;  %v3840_v49 = vmul.f32 0.4342945, %v2423_v42  ;;  %v2427_v50 = vmul.f32 0.6931472, %v6681_v44  ;;  %6708 = vlog2.f32 %v784_v39  ;;  %v800_v39 = vld [vmem:[%s7677_s30 + $0x14b0] sm:$0xff] }
 0x2bd   : > { %v6685_v52 = vpop.eup %6684  ;;  %4863 = vst [vmem:[%s7706_s17 + $0x13a8] sm:$0xff] %v3839_v45  ;;  %v3841_v53 = vmul.f32 0.4342945, %v2425_v46  ;;  %v2429_v54 = vmul.f32 0.6931472, %v6683_v48  ;;  %6710 = vlog2.f32 %v785_v43  ;;  %v801_v43 = vld [vmem:[%s7677_s30 + $0x14b8] sm:$0xff] }
 0x2be   : > { %v6687_v56 = vpop.eup %6686  ;;  %4864 = vst [vmem:[%s7706_s17 + $0x13b0] sm:$0xff] %v3840_v49  ;;  %v3842_v57 = vmul.f32 0.4342945, %v2427_v50  ;;  %v2431_v58 = vmul.f32 0.6931472, %v6685_v52  ;;  %6712 = vlog2.f32 %v786_v47  ;;  %v802_v47 = vld [vmem:[%s7677_s30 + $0x14c0] sm:$0xff] }
 0x2bf   : > { %v6689_v60 = vpop.eup %6688  ;;  %4865 = vst [vmem:[%s7706_s17 + $0x13b8] sm:$0xff] %v3841_v53  ;;  %v3843_v61 = vmul.f32 0.4342945, %v2429_v54  ;;  %v2433_v62 = vmul.f32 0.6931472, %v6687_v56  ;;  %6714 = vlog2.f32 %v787_v51  ;;  %v803_v51 = vld [vmem:[%s7677_s30 + $0x14c8] sm:$0xff] }
 0x2c0   : > { %v6691_v0 = vpop.eup %6690  ;;  %4866 = vst [vmem:[%s7706_s17 + $0x13c0] sm:$0xff] %v3842_v57  ;;  %v3844_v1 = vmul.f32 0.4342945, %v2431_v58  ;;  %v2435_v2 = vmul.f32 0.6931472, %v6689_v60  ;;  %6716 = vlog2.f32 %v788_v55  ;;  %v804_v55 = vld [vmem:[%s7677_s30 + $0x14d0] sm:$0xff] }
 0x2c1   : > { %v6693_v4 = vpop.eup %6692  ;;  %4867 = vst [vmem:[%s7706_s17 + $0x13c8] sm:$0xff] %v3843_v61  ;;  %v3845_v5 = vmul.f32 0.4342945, %v2433_v62  ;;  %v2437_v6 = vmul.f32 0.6931472, %v6691_v0  ;;  %6718 = vlog2.f32 %v789_v59  ;;  %v805_v59 = vld [vmem:[%s7677_s30 + $0x14d8] sm:$0xff] }
 0x2c2   : > { %v6695_v8 = vpop.eup %6694  ;;  %4868 = vst [vmem:[%s7706_s17 + $0x13d0] sm:$0xff] %v3844_v1  ;;  %v3846_v9 = vmul.f32 0.4342945, %v2435_v2  ;;  %v2439_v10 = vmul.f32 0.6931472, %v6693_v4  ;;  %6720 = vlog2.f32 %v790_v63  ;;  %v806_v63 = vld [vmem:[%s7677_s30 + $0x14e0] sm:$0xff] }
 0x2c3   : > { %v6697_v12 = vpop.eup %6696  ;;  %4869 = vst [vmem:[%s7706_s17 + $0x13d8] sm:$0xff] %v3845_v5  ;;  %v3847_v13 = vmul.f32 0.4342945, %v2437_v6  ;;  %v2441_v14 = vmul.f32 0.6931472, %v6695_v8  ;;  %6722 = vlog2.f32 %v791_v3  ;;  %v807_v3 = vld [vmem:[%s7677_s30 + $0x14e8] sm:$0xff] }
 0x2c4   : > { %v6699_v16 = vpop.eup %6698  ;;  %4870 = vst [vmem:[%s7706_s17 + $0x13e0] sm:$0xff] %v3846_v9  ;;  %v3848_v17 = vmul.f32 0.4342945, %v2439_v10  ;;  %v2443_v18 = vmul.f32 0.6931472, %v6697_v12  ;;  %6724 = vlog2.f32 %v792_v7  ;;  %v808_v7 = vld [vmem:[%s7677_s30 + $0x14f0] sm:$0xff] }
 0x2c5   : > { %v6701_v20 = vpop.eup %6700  ;;  %4871 = vst [vmem:[%s7706_s17 + $0x13e8] sm:$0xff] %v3847_v13  ;;  %v3849_v21 = vmul.f32 0.4342945, %v2441_v14  ;;  %v2445_v22 = vmul.f32 0.6931472, %v6699_v16  ;;  %6726 = vlog2.f32 %v793_v11  ;;  %v809_v11 = vld [vmem:[%s7677_s30 + $0x14f8] sm:$0xff] }
 0x2c6   : > { %v6703_v24 = vpop.eup %6702  ;;  %4872 = vst [vmem:[%s7706_s17 + $0x13f0] sm:$0xff] %v3848_v17  ;;  %v3850_v25 = vmul.f32 0.4342945, %v2443_v18  ;;  %v2447_v26 = vmul.f32 0.6931472, %v6701_v20  ;;  %6728 = vlog2.f32 %v794_v15  ;;  %v810_v15 = vld [vmem:[%s7677_s30 + $0x1500] sm:$0xff] }
 0x2c7   : > { %v6705_v28 = vpop.eup %6704  ;;  %4873 = vst [vmem:[%s7706_s17 + $0x13f8] sm:$0xff] %v3849_v21  ;;  %v3851_v29 = vmul.f32 0.4342945, %v2445_v22  ;;  %v2449_v30 = vmul.f32 0.6931472, %v6703_v24  ;;  %6730 = vlog2.f32 %v795_v19  ;;  %v811_v19 = vld [vmem:[%s7677_s30 + $0x1508] sm:$0xff] }
 0x2c8   : > { %v6707_v32 = vpop.eup %6706  ;;  %4874 = vst [vmem:[%s7706_s17 + $0x1400] sm:$0xff] %v3850_v25  ;;  %v3852_v33 = vmul.f32 0.4342945, %v2447_v26  ;;  %v2451_v34 = vmul.f32 0.6931472, %v6705_v28  ;;  %6732 = vlog2.f32 %v796_v23  ;;  %v812_v23 = vld [vmem:[%s7677_s30 + $0x1510] sm:$0xff] }
 0x2c9   : > { %v6709_v36 = vpop.eup %6708  ;;  %4875 = vst [vmem:[%s7706_s17 + $0x1408] sm:$0xff] %v3851_v29  ;;  %v3853_v37 = vmul.f32 0.4342945, %v2449_v30  ;;  %v2453_v38 = vmul.f32 0.6931472, %v6707_v32  ;;  %6734 = vlog2.f32 %v797_v27  ;;  %v813_v27 = vld [vmem:[%s7677_s30 + $0x1518] sm:$0xff] }
 0x2ca   : > { %v6711_v40 = vpop.eup %6710  ;;  %4876 = vst [vmem:[%s7706_s17 + $0x1410] sm:$0xff] %v3852_v33  ;;  %v3854_v41 = vmul.f32 0.4342945, %v2451_v34  ;;  %v2455_v42 = vmul.f32 0.6931472, %v6709_v36  ;;  %6736 = vlog2.f32 %v798_v31  ;;  %v814_v31 = vld [vmem:[%s7677_s30 + $0x1520] sm:$0xff] }
 0x2cb   : > { %v6713_v44 = vpop.eup %6712  ;;  %4877 = vst [vmem:[%s7706_s17 + $0x1418] sm:$0xff] %v3853_v37  ;;  %v3855_v45 = vmul.f32 0.4342945, %v2453_v38  ;;  %v2457_v46 = vmul.f32 0.6931472, %v6711_v40  ;;  %6738 = vlog2.f32 %v799_v35  ;;  %v815_v35 = vld [vmem:[%s7677_s30 + $0x1528] sm:$0xff] }
 0x2cc   : > { %v6715_v48 = vpop.eup %6714  ;;  %4878 = vst [vmem:[%s7706_s17 + $0x1420] sm:$0xff] %v3854_v41  ;;  %v3856_v49 = vmul.f32 0.4342945, %v2455_v42  ;;  %v2459_v50 = vmul.f32 0.6931472, %v6713_v44  ;;  %6740 = vlog2.f32 %v800_v39  ;;  %v816_v39 = vld [vmem:[%s7677_s30 + $0x1530] sm:$0xff] }
 0x2cd   : > { %v6717_v52 = vpop.eup %6716  ;;  %4879 = vst [vmem:[%s7706_s17 + $0x1428] sm:$0xff] %v3855_v45  ;;  %v3857_v53 = vmul.f32 0.4342945, %v2457_v46  ;;  %v2461_v54 = vmul.f32 0.6931472, %v6715_v48  ;;  %6742 = vlog2.f32 %v801_v43  ;;  %v817_v43 = vld [vmem:[%s7677_s30 + $0x1538] sm:$0xff] }
 0x2ce   : > { %v6719_v56 = vpop.eup %6718  ;;  %4880 = vst [vmem:[%s7706_s17 + $0x1430] sm:$0xff] %v3856_v49  ;;  %v3858_v57 = vmul.f32 0.4342945, %v2459_v50  ;;  %v2463_v58 = vmul.f32 0.6931472, %v6717_v52  ;;  %6744 = vlog2.f32 %v802_v47  ;;  %v818_v47 = vld [vmem:[%s7677_s30 + $0x1540] sm:$0xff] }
 0x2cf   : > { %v6721_v60 = vpop.eup %6720  ;;  %4881 = vst [vmem:[%s7706_s17 + $0x1438] sm:$0xff] %v3857_v53  ;;  %v3859_v61 = vmul.f32 0.4342945, %v2461_v54  ;;  %v2465_v62 = vmul.f32 0.6931472, %v6719_v56  ;;  %6746 = vlog2.f32 %v803_v51  ;;  %v819_v51 = vld [vmem:[%s7677_s30 + $0x1548] sm:$0xff] }
 0x2d0   : > { %v6723_v0 = vpop.eup %6722  ;;  %4882 = vst [vmem:[%s7706_s17 + $0x1440] sm:$0xff] %v3858_v57  ;;  %v3860_v1 = vmul.f32 0.4342945, %v2463_v58  ;;  %v2467_v2 = vmul.f32 0.6931472, %v6721_v60  ;;  %6748 = vlog2.f32 %v804_v55  ;;  %v820_v55 = vld [vmem:[%s7677_s30 + $0x1550] sm:$0xff] }
 0x2d1   : > { %v6725_v4 = vpop.eup %6724  ;;  %4883 = vst [vmem:[%s7706_s17 + $0x1448] sm:$0xff] %v3859_v61  ;;  %v3861_v5 = vmul.f32 0.4342945, %v2465_v62  ;;  %v2469_v6 = vmul.f32 0.6931472, %v6723_v0  ;;  %6750 = vlog2.f32 %v805_v59  ;;  %v821_v59 = vld [vmem:[%s7677_s30 + $0x1558] sm:$0xff] }
 0x2d2   : > { %v6727_v8 = vpop.eup %6726  ;;  %4884 = vst [vmem:[%s7706_s17 + $0x1450] sm:$0xff] %v3860_v1  ;;  %v3862_v9 = vmul.f32 0.4342945, %v2467_v2  ;;  %v2471_v10 = vmul.f32 0.6931472, %v6725_v4  ;;  %6752 = vlog2.f32 %v806_v63  ;;  %v822_v63 = vld [vmem:[%s7677_s30 + $0x1560] sm:$0xff] }
 0x2d3   : > { %v6729_v12 = vpop.eup %6728  ;;  %4885 = vst [vmem:[%s7706_s17 + $0x1458] sm:$0xff] %v3861_v5  ;;  %v3863_v13 = vmul.f32 0.4342945, %v2469_v6  ;;  %v2473_v14 = vmul.f32 0.6931472, %v6727_v8  ;;  %6754 = vlog2.f32 %v807_v3  ;;  %v823_v3 = vld [vmem:[%s7677_s30 + $0x1568] sm:$0xff] }
 0x2d4   : > { %v6731_v16 = vpop.eup %6730  ;;  %4886 = vst [vmem:[%s7706_s17 + $0x1460] sm:$0xff] %v3862_v9  ;;  %v3864_v17 = vmul.f32 0.4342945, %v2471_v10  ;;  %v2475_v18 = vmul.f32 0.6931472, %v6729_v12  ;;  %6756 = vlog2.f32 %v808_v7  ;;  %v824_v7 = vld [vmem:[%s7677_s30 + $0x1570] sm:$0xff] }
 0x2d5   : > { %v6733_v20 = vpop.eup %6732  ;;  %4887 = vst [vmem:[%s7706_s17 + $0x1468] sm:$0xff] %v3863_v13  ;;  %v3865_v21 = vmul.f32 0.4342945, %v2473_v14  ;;  %v2477_v22 = vmul.f32 0.6931472, %v6731_v16  ;;  %6758 = vlog2.f32 %v809_v11  ;;  %v825_v11 = vld [vmem:[%s7677_s30 + $0x1578] sm:$0xff] }
 0x2d6   : > { %v6735_v24 = vpop.eup %6734  ;;  %4888 = vst [vmem:[%s7706_s17 + $0x1470] sm:$0xff] %v3864_v17  ;;  %v3866_v25 = vmul.f32 0.4342945, %v2475_v18  ;;  %v2479_v26 = vmul.f32 0.6931472, %v6733_v20  ;;  %6760 = vlog2.f32 %v810_v15  ;;  %v826_v15 = vld [vmem:[%s7677_s30 + $0x1580] sm:$0xff] }
 0x2d7   : > { %v6737_v28 = vpop.eup %6736  ;;  %4889 = vst [vmem:[%s7706_s17 + $0x1478] sm:$0xff] %v3865_v21  ;;  %v3867_v29 = vmul.f32 0.4342945, %v2477_v22  ;;  %v2481_v30 = vmul.f32 0.6931472, %v6735_v24  ;;  %6762 = vlog2.f32 %v811_v19  ;;  %v827_v19 = vld [vmem:[%s7677_s30 + $0x1588] sm:$0xff] }
 0x2d8   : > { %v6739_v32 = vpop.eup %6738  ;;  %4890 = vst [vmem:[%s7706_s17 + $0x1480] sm:$0xff] %v3866_v25  ;;  %v3868_v33 = vmul.f32 0.4342945, %v2479_v26  ;;  %v2483_v34 = vmul.f32 0.6931472, %v6737_v28  ;;  %6764 = vlog2.f32 %v812_v23  ;;  %v828_v23 = vld [vmem:[%s7677_s30 + $0x1590] sm:$0xff] }
 0x2d9   : > { %v6741_v36 = vpop.eup %6740  ;;  %4891 = vst [vmem:[%s7706_s17 + $0x1488] sm:$0xff] %v3867_v29  ;;  %v3869_v37 = vmul.f32 0.4342945, %v2481_v30  ;;  %v2485_v38 = vmul.f32 0.6931472, %v6739_v32  ;;  %6766 = vlog2.f32 %v813_v27  ;;  %v829_v27 = vld [vmem:[%s7677_s30 + $0x1598] sm:$0xff] }
 0x2da   : > { %v6743_v40 = vpop.eup %6742  ;;  %4892 = vst [vmem:[%s7706_s17 + $0x1490] sm:$0xff] %v3868_v33  ;;  %v3870_v41 = vmul.f32 0.4342945, %v2483_v34  ;;  %v2487_v42 = vmul.f32 0.6931472, %v6741_v36  ;;  %6768 = vlog2.f32 %v814_v31  ;;  %v830_v31 = vld [vmem:[%s7677_s30 + $0x15a0] sm:$0xff] }
 0x2db   : > { %v6745_v44 = vpop.eup %6744  ;;  %4893 = vst [vmem:[%s7706_s17 + $0x1498] sm:$0xff] %v3869_v37  ;;  %v3871_v45 = vmul.f32 0.4342945, %v2485_v38  ;;  %v2489_v46 = vmul.f32 0.6931472, %v6743_v40  ;;  %6770 = vlog2.f32 %v815_v35  ;;  %v831_v35 = vld [vmem:[%s7677_s30 + $0x15a8] sm:$0xff] }
 0x2dc   : > { %v6747_v48 = vpop.eup %6746  ;;  %4894 = vst [vmem:[%s7706_s17 + $0x14a0] sm:$0xff] %v3870_v41  ;;  %v3872_v49 = vmul.f32 0.4342945, %v2487_v42  ;;  %v2491_v50 = vmul.f32 0.6931472, %v6745_v44  ;;  %6772 = vlog2.f32 %v816_v39  ;;  %v832_v39 = vld [vmem:[%s7677_s30 + $0x15b0] sm:$0xff] }
 0x2dd   : > { %v6749_v52 = vpop.eup %6748  ;;  %4895 = vst [vmem:[%s7706_s17 + $0x14a8] sm:$0xff] %v3871_v45  ;;  %v3873_v53 = vmul.f32 0.4342945, %v2489_v46  ;;  %v2493_v54 = vmul.f32 0.6931472, %v6747_v48  ;;  %6774 = vlog2.f32 %v817_v43  ;;  %v833_v43 = vld [vmem:[%s7677_s30 + $0x15b8] sm:$0xff] }
 0x2de   : > { %v6751_v56 = vpop.eup %6750  ;;  %4896 = vst [vmem:[%s7706_s17 + $0x14b0] sm:$0xff] %v3872_v49  ;;  %v3874_v57 = vmul.f32 0.4342945, %v2491_v50  ;;  %v2495_v58 = vmul.f32 0.6931472, %v6749_v52  ;;  %6776 = vlog2.f32 %v818_v47  ;;  %v834_v47 = vld [vmem:[%s7677_s30 + $0x15c0] sm:$0xff] }
 0x2df   : > { %v6753_v60 = vpop.eup %6752  ;;  %4897 = vst [vmem:[%s7706_s17 + $0x14b8] sm:$0xff] %v3873_v53  ;;  %v3875_v61 = vmul.f32 0.4342945, %v2493_v54  ;;  %v2497_v62 = vmul.f32 0.6931472, %v6751_v56  ;;  %6778 = vlog2.f32 %v819_v51  ;;  %v835_v51 = vld [vmem:[%s7677_s30 + $0x15c8] sm:$0xff] }
 0x2e0   : > { %v6755_v0 = vpop.eup %6754  ;;  %4898 = vst [vmem:[%s7706_s17 + $0x14c0] sm:$0xff] %v3874_v57  ;;  %v3876_v1 = vmul.f32 0.4342945, %v2495_v58  ;;  %v2499_v2 = vmul.f32 0.6931472, %v6753_v60  ;;  %6780 = vlog2.f32 %v820_v55  ;;  %v836_v55 = vld [vmem:[%s7677_s30 + $0x15d0] sm:$0xff] }
 0x2e1   : > { %v6757_v4 = vpop.eup %6756  ;;  %4899 = vst [vmem:[%s7706_s17 + $0x14c8] sm:$0xff] %v3875_v61  ;;  %v3877_v5 = vmul.f32 0.4342945, %v2497_v62  ;;  %v2501_v6 = vmul.f32 0.6931472, %v6755_v0  ;;  %6782 = vlog2.f32 %v821_v59  ;;  %v837_v59 = vld [vmem:[%s7677_s30 + $0x15d8] sm:$0xff] }
 0x2e2   : > { %v6759_v8 = vpop.eup %6758  ;;  %4900 = vst [vmem:[%s7706_s17 + $0x14d0] sm:$0xff] %v3876_v1  ;;  %v3878_v9 = vmul.f32 0.4342945, %v2499_v2  ;;  %v2503_v10 = vmul.f32 0.6931472, %v6757_v4  ;;  %6784 = vlog2.f32 %v822_v63  ;;  %v838_v63 = vld [vmem:[%s7677_s30 + $0x15e0] sm:$0xff] }
 0x2e3   : > { %v6761_v12 = vpop.eup %6760  ;;  %4901 = vst [vmem:[%s7706_s17 + $0x14d8] sm:$0xff] %v3877_v5  ;;  %v3879_v13 = vmul.f32 0.4342945, %v2501_v6  ;;  %v2505_v14 = vmul.f32 0.6931472, %v6759_v8  ;;  %6786 = vlog2.f32 %v823_v3  ;;  %v839_v3 = vld [vmem:[%s7677_s30 + $0x15e8] sm:$0xff] }
 0x2e4   : > { %v6763_v16 = vpop.eup %6762  ;;  %4902 = vst [vmem:[%s7706_s17 + $0x14e0] sm:$0xff] %v3878_v9  ;;  %v3880_v17 = vmul.f32 0.4342945, %v2503_v10  ;;  %v2507_v18 = vmul.f32 0.6931472, %v6761_v12  ;;  %6788 = vlog2.f32 %v824_v7  ;;  %v840_v7 = vld [vmem:[%s7677_s30 + $0x15f0] sm:$0xff] }
 0x2e5   : > { %v6765_v20 = vpop.eup %6764  ;;  %4903 = vst [vmem:[%s7706_s17 + $0x14e8] sm:$0xff] %v3879_v13  ;;  %v3881_v21 = vmul.f32 0.4342945, %v2505_v14  ;;  %v2509_v22 = vmul.f32 0.6931472, %v6763_v16  ;;  %6790 = vlog2.f32 %v825_v11  ;;  %v841_v11 = vld [vmem:[%s7677_s30 + $0x15f8] sm:$0xff] }
 0x2e6   : > { %v6767_v24 = vpop.eup %6766  ;;  %4904 = vst [vmem:[%s7706_s17 + $0x14f0] sm:$0xff] %v3880_v17  ;;  %v3882_v25 = vmul.f32 0.4342945, %v2507_v18  ;;  %v2511_v26 = vmul.f32 0.6931472, %v6765_v20  ;;  %6792 = vlog2.f32 %v826_v15  ;;  %v842_v15 = vld [vmem:[%s7677_s30 + $0x1600] sm:$0xff] }
 0x2e7   : > { %v6769_v28 = vpop.eup %6768  ;;  %4905 = vst [vmem:[%s7706_s17 + $0x14f8] sm:$0xff] %v3881_v21  ;;  %v3883_v29 = vmul.f32 0.4342945, %v2509_v22  ;;  %v2513_v30 = vmul.f32 0.6931472, %v6767_v24  ;;  %6794 = vlog2.f32 %v827_v19  ;;  %v843_v19 = vld [vmem:[%s7677_s30 + $0x1608] sm:$0xff] }
 0x2e8   : > { %v6771_v32 = vpop.eup %6770  ;;  %4906 = vst [vmem:[%s7706_s17 + $0x1500] sm:$0xff] %v3882_v25  ;;  %v3884_v33 = vmul.f32 0.4342945, %v2511_v26  ;;  %v2515_v34 = vmul.f32 0.6931472, %v6769_v28  ;;  %6796 = vlog2.f32 %v828_v23  ;;  %v844_v23 = vld [vmem:[%s7677_s30 + $0x1610] sm:$0xff] }
 0x2e9   : > { %v6773_v36 = vpop.eup %6772  ;;  %4907 = vst [vmem:[%s7706_s17 + $0x1508] sm:$0xff] %v3883_v29  ;;  %v3885_v37 = vmul.f32 0.4342945, %v2513_v30  ;;  %v2517_v38 = vmul.f32 0.6931472, %v6771_v32  ;;  %6798 = vlog2.f32 %v829_v27  ;;  %v845_v27 = vld [vmem:[%s7677_s30 + $0x1618] sm:$0xff] }
 0x2ea   : > { %v6775_v40 = vpop.eup %6774  ;;  %4908 = vst [vmem:[%s7706_s17 + $0x1510] sm:$0xff] %v3884_v33  ;;  %v3886_v41 = vmul.f32 0.4342945, %v2515_v34  ;;  %v2519_v42 = vmul.f32 0.6931472, %v6773_v36  ;;  %6800 = vlog2.f32 %v830_v31  ;;  %v846_v31 = vld [vmem:[%s7677_s30 + $0x1620] sm:$0xff] }
 0x2eb   : > { %v6777_v44 = vpop.eup %6776  ;;  %4909 = vst [vmem:[%s7706_s17 + $0x1518] sm:$0xff] %v3885_v37  ;;  %v3887_v45 = vmul.f32 0.4342945, %v2517_v38  ;;  %v2521_v46 = vmul.f32 0.6931472, %v6775_v40  ;;  %6802 = vlog2.f32 %v831_v35  ;;  %v847_v35 = vld [vmem:[%s7677_s30 + $0x1628] sm:$0xff] }
 0x2ec   : > { %v6779_v48 = vpop.eup %6778  ;;  %4910 = vst [vmem:[%s7706_s17 + $0x1520] sm:$0xff] %v3886_v41  ;;  %v3888_v49 = vmul.f32 0.4342945, %v2519_v42  ;;  %v2523_v50 = vmul.f32 0.6931472, %v6777_v44  ;;  %6804 = vlog2.f32 %v832_v39  ;;  %v848_v39 = vld [vmem:[%s7677_s30 + $0x1630] sm:$0xff] }
 0x2ed   : > { %v6781_v52 = vpop.eup %6780  ;;  %4911 = vst [vmem:[%s7706_s17 + $0x1528] sm:$0xff] %v3887_v45  ;;  %v3889_v53 = vmul.f32 0.4342945, %v2521_v46  ;;  %v2525_v54 = vmul.f32 0.6931472, %v6779_v48  ;;  %6806 = vlog2.f32 %v833_v43  ;;  %v849_v43 = vld [vmem:[%s7677_s30 + $0x1638] sm:$0xff] }
 0x2ee   : > { %v6783_v56 = vpop.eup %6782  ;;  %4912 = vst [vmem:[%s7706_s17 + $0x1530] sm:$0xff] %v3888_v49  ;;  %v3890_v57 = vmul.f32 0.4342945, %v2523_v50  ;;  %v2527_v58 = vmul.f32 0.6931472, %v6781_v52  ;;  %6808 = vlog2.f32 %v834_v47  ;;  %v850_v47 = vld [vmem:[%s7677_s30 + $0x1640] sm:$0xff] }
 0x2ef   : > { %v6785_v60 = vpop.eup %6784  ;;  %4913 = vst [vmem:[%s7706_s17 + $0x1538] sm:$0xff] %v3889_v53  ;;  %v3891_v61 = vmul.f32 0.4342945, %v2525_v54  ;;  %v2529_v62 = vmul.f32 0.6931472, %v6783_v56  ;;  %6810 = vlog2.f32 %v835_v51  ;;  %v851_v51 = vld [vmem:[%s7677_s30 + $0x1648] sm:$0xff] }
 0x2f0   : > { %v6787_v0 = vpop.eup %6786  ;;  %4914 = vst [vmem:[%s7706_s17 + $0x1540] sm:$0xff] %v3890_v57  ;;  %v3892_v1 = vmul.f32 0.4342945, %v2527_v58  ;;  %v2531_v2 = vmul.f32 0.6931472, %v6785_v60  ;;  %6812 = vlog2.f32 %v836_v55  ;;  %v852_v55 = vld [vmem:[%s7677_s30 + $0x1650] sm:$0xff] }
 0x2f1   : > { %v6789_v4 = vpop.eup %6788  ;;  %4915 = vst [vmem:[%s7706_s17 + $0x1548] sm:$0xff] %v3891_v61  ;;  %v3893_v5 = vmul.f32 0.4342945, %v2529_v62  ;;  %v2533_v6 = vmul.f32 0.6931472, %v6787_v0  ;;  %6814 = vlog2.f32 %v837_v59  ;;  %v853_v59 = vld [vmem:[%s7677_s30 + $0x1658] sm:$0xff] }
 0x2f2   : > { %v6791_v8 = vpop.eup %6790  ;;  %4916 = vst [vmem:[%s7706_s17 + $0x1550] sm:$0xff] %v3892_v1  ;;  %v3894_v9 = vmul.f32 0.4342945, %v2531_v2  ;;  %v2535_v10 = vmul.f32 0.6931472, %v6789_v4  ;;  %6816 = vlog2.f32 %v838_v63  ;;  %v854_v63 = vld [vmem:[%s7677_s30 + $0x1660] sm:$0xff] }
 0x2f3   : > { %v6793_v12 = vpop.eup %6792  ;;  %4917 = vst [vmem:[%s7706_s17 + $0x1558] sm:$0xff] %v3893_v5  ;;  %v3895_v13 = vmul.f32 0.4342945, %v2533_v6  ;;  %v2537_v14 = vmul.f32 0.6931472, %v6791_v8  ;;  %6818 = vlog2.f32 %v839_v3  ;;  %v855_v3 = vld [vmem:[%s7677_s30 + $0x1668] sm:$0xff] }
 0x2f4   : > { %v6795_v16 = vpop.eup %6794  ;;  %4918 = vst [vmem:[%s7706_s17 + $0x1560] sm:$0xff] %v3894_v9  ;;  %v3896_v17 = vmul.f32 0.4342945, %v2535_v10  ;;  %v2539_v18 = vmul.f32 0.6931472, %v6793_v12  ;;  %6820 = vlog2.f32 %v840_v7  ;;  %v856_v7 = vld [vmem:[%s7677_s30 + $0x1670] sm:$0xff] }
 0x2f5   : > { %v6797_v20 = vpop.eup %6796  ;;  %4919 = vst [vmem:[%s7706_s17 + $0x1568] sm:$0xff] %v3895_v13  ;;  %v3897_v21 = vmul.f32 0.4342945, %v2537_v14  ;;  %v2541_v22 = vmul.f32 0.6931472, %v6795_v16  ;;  %6822 = vlog2.f32 %v841_v11  ;;  %v857_v11 = vld [vmem:[%s7677_s30 + $0x1678] sm:$0xff] }
 0x2f6   : > { %v6799_v24 = vpop.eup %6798  ;;  %4920 = vst [vmem:[%s7706_s17 + $0x1570] sm:$0xff] %v3896_v17  ;;  %v3898_v25 = vmul.f32 0.4342945, %v2539_v18  ;;  %v2543_v26 = vmul.f32 0.6931472, %v6797_v20  ;;  %6824 = vlog2.f32 %v842_v15  ;;  %v858_v15 = vld [vmem:[%s7677_s30 + $0x1680] sm:$0xff] }
 0x2f7   : > { %v6801_v28 = vpop.eup %6800  ;;  %4921 = vst [vmem:[%s7706_s17 + $0x1578] sm:$0xff] %v3897_v21  ;;  %v3899_v29 = vmul.f32 0.4342945, %v2541_v22  ;;  %v2545_v30 = vmul.f32 0.6931472, %v6799_v24  ;;  %6826 = vlog2.f32 %v843_v19  ;;  %v859_v19 = vld [vmem:[%s7677_s30 + $0x1688] sm:$0xff] }
 0x2f8   : > { %v6803_v32 = vpop.eup %6802  ;;  %4922 = vst [vmem:[%s7706_s17 + $0x1580] sm:$0xff] %v3898_v25  ;;  %v3900_v33 = vmul.f32 0.4342945, %v2543_v26  ;;  %v2547_v34 = vmul.f32 0.6931472, %v6801_v28  ;;  %6828 = vlog2.f32 %v844_v23  ;;  %v860_v23 = vld [vmem:[%s7677_s30 + $0x1690] sm:$0xff] }
 0x2f9   : > { %v6805_v36 = vpop.eup %6804  ;;  %4923 = vst [vmem:[%s7706_s17 + $0x1588] sm:$0xff] %v3899_v29  ;;  %v3901_v37 = vmul.f32 0.4342945, %v2545_v30  ;;  %v2549_v38 = vmul.f32 0.6931472, %v6803_v32  ;;  %6830 = vlog2.f32 %v845_v27  ;;  %v861_v27 = vld [vmem:[%s7677_s30 + $0x1698] sm:$0xff] }
 0x2fa   : > { %v6807_v40 = vpop.eup %6806  ;;  %4924 = vst [vmem:[%s7706_s17 + $0x1590] sm:$0xff] %v3900_v33  ;;  %v3902_v41 = vmul.f32 0.4342945, %v2547_v34  ;;  %v2551_v42 = vmul.f32 0.6931472, %v6805_v36  ;;  %6832 = vlog2.f32 %v846_v31  ;;  %v862_v31 = vld [vmem:[%s7677_s30 + $0x16a0] sm:$0xff] }
 0x2fb   : > { %v6809_v44 = vpop.eup %6808  ;;  %4925 = vst [vmem:[%s7706_s17 + $0x1598] sm:$0xff] %v3901_v37  ;;  %v3903_v45 = vmul.f32 0.4342945, %v2549_v38  ;;  %v2553_v46 = vmul.f32 0.6931472, %v6807_v40  ;;  %6834 = vlog2.f32 %v847_v35  ;;  %v863_v35 = vld [vmem:[%s7677_s30 + $0x16a8] sm:$0xff] }
 0x2fc   : > { %v6811_v48 = vpop.eup %6810  ;;  %4926 = vst [vmem:[%s7706_s17 + $0x15a0] sm:$0xff] %v3902_v41  ;;  %v3904_v49 = vmul.f32 0.4342945, %v2551_v42  ;;  %v2555_v50 = vmul.f32 0.6931472, %v6809_v44  ;;  %6836 = vlog2.f32 %v848_v39  ;;  %v864_v39 = vld [vmem:[%s7677_s30 + $0x16b0] sm:$0xff] }
 0x2fd   : > { %v6813_v52 = vpop.eup %6812  ;;  %4927 = vst [vmem:[%s7706_s17 + $0x15a8] sm:$0xff] %v3903_v45  ;;  %v3905_v53 = vmul.f32 0.4342945, %v2553_v46  ;;  %v2557_v54 = vmul.f32 0.6931472, %v6811_v48  ;;  %6838 = vlog2.f32 %v849_v43  ;;  %v865_v43 = vld [vmem:[%s7677_s30 + $0x16b8] sm:$0xff] }
 0x2fe   : > { %v6815_v56 = vpop.eup %6814  ;;  %4928 = vst [vmem:[%s7706_s17 + $0x15b0] sm:$0xff] %v3904_v49  ;;  %v3906_v57 = vmul.f32 0.4342945, %v2555_v50  ;;  %v2559_v58 = vmul.f32 0.6931472, %v6813_v52  ;;  %6840 = vlog2.f32 %v850_v47  ;;  %v866_v47 = vld [vmem:[%s7677_s30 + $0x16c0] sm:$0xff] }
 0x2ff   : > { %v6817_v60 = vpop.eup %6816  ;;  %4929 = vst [vmem:[%s7706_s17 + $0x15b8] sm:$0xff] %v3905_v53  ;;  %v3907_v61 = vmul.f32 0.4342945, %v2557_v54  ;;  %v2561_v62 = vmul.f32 0.6931472, %v6815_v56  ;;  %6842 = vlog2.f32 %v851_v51  ;;  %v867_v51 = vld [vmem:[%s7677_s30 + $0x16c8] sm:$0xff] }
 0x300   : > { %v6819_v0 = vpop.eup %6818  ;;  %4930 = vst [vmem:[%s7706_s17 + $0x15c0] sm:$0xff] %v3906_v57  ;;  %v3908_v1 = vmul.f32 0.4342945, %v2559_v58  ;;  %v2563_v2 = vmul.f32 0.6931472, %v6817_v60  ;;  %6844 = vlog2.f32 %v852_v55  ;;  %v868_v55 = vld [vmem:[%s7677_s30 + $0x16d0] sm:$0xff] }
 0x301   : > { %v6821_v4 = vpop.eup %6820  ;;  %4931 = vst [vmem:[%s7706_s17 + $0x15c8] sm:$0xff] %v3907_v61  ;;  %v3909_v5 = vmul.f32 0.4342945, %v2561_v62  ;;  %v2565_v6 = vmul.f32 0.6931472, %v6819_v0  ;;  %6846 = vlog2.f32 %v853_v59  ;;  %v869_v59 = vld [vmem:[%s7677_s30 + $0x16d8] sm:$0xff] }
 0x302   : > { %v6823_v8 = vpop.eup %6822  ;;  %4932 = vst [vmem:[%s7706_s17 + $0x15d0] sm:$0xff] %v3908_v1  ;;  %v3910_v9 = vmul.f32 0.4342945, %v2563_v2  ;;  %v2567_v10 = vmul.f32 0.6931472, %v6821_v4  ;;  %6848 = vlog2.f32 %v854_v63  ;;  %v870_v63 = vld [vmem:[%s7677_s30 + $0x16e0] sm:$0xff] }
 0x303   : > { %v6825_v12 = vpop.eup %6824  ;;  %4933 = vst [vmem:[%s7706_s17 + $0x15d8] sm:$0xff] %v3909_v5  ;;  %v3911_v13 = vmul.f32 0.4342945, %v2565_v6  ;;  %v2569_v14 = vmul.f32 0.6931472, %v6823_v8  ;;  %6850 = vlog2.f32 %v855_v3  ;;  %v871_v3 = vld [vmem:[%s7677_s30 + $0x16e8] sm:$0xff] }
 0x304   : > { %v6827_v16 = vpop.eup %6826  ;;  %4934 = vst [vmem:[%s7706_s17 + $0x15e0] sm:$0xff] %v3910_v9  ;;  %v3912_v17 = vmul.f32 0.4342945, %v2567_v10  ;;  %v2571_v18 = vmul.f32 0.6931472, %v6825_v12  ;;  %6852 = vlog2.f32 %v856_v7  ;;  %v872_v7 = vld [vmem:[%s7677_s30 + $0x16f0] sm:$0xff] }
 0x305   : > { %v6829_v20 = vpop.eup %6828  ;;  %4935 = vst [vmem:[%s7706_s17 + $0x15e8] sm:$0xff] %v3911_v13  ;;  %v3913_v21 = vmul.f32 0.4342945, %v2569_v14  ;;  %v2573_v22 = vmul.f32 0.6931472, %v6827_v16  ;;  %6854 = vlog2.f32 %v857_v11  ;;  %v873_v11 = vld [vmem:[%s7677_s30 + $0x16f8] sm:$0xff] }
 0x306   : > { %v6831_v24 = vpop.eup %6830  ;;  %4936 = vst [vmem:[%s7706_s17 + $0x15f0] sm:$0xff] %v3912_v17  ;;  %v3914_v25 = vmul.f32 0.4342945, %v2571_v18  ;;  %v2575_v26 = vmul.f32 0.6931472, %v6829_v20  ;;  %6856 = vlog2.f32 %v858_v15  ;;  %v874_v15 = vld [vmem:[%s7677_s30 + $0x1700] sm:$0xff] }
 0x307   : > { %v6833_v28 = vpop.eup %6832  ;;  %4937 = vst [vmem:[%s7706_s17 + $0x15f8] sm:$0xff] %v3913_v21  ;;  %v3915_v29 = vmul.f32 0.4342945, %v2573_v22  ;;  %v2577_v30 = vmul.f32 0.6931472, %v6831_v24  ;;  %6858 = vlog2.f32 %v859_v19  ;;  %v875_v19 = vld [vmem:[%s7677_s30 + $0x1708] sm:$0xff] }
 0x308   : > { %v6835_v32 = vpop.eup %6834  ;;  %4938 = vst [vmem:[%s7706_s17 + $0x1600] sm:$0xff] %v3914_v25  ;;  %v3916_v33 = vmul.f32 0.4342945, %v2575_v26  ;;  %v2579_v34 = vmul.f32 0.6931472, %v6833_v28  ;;  %6860 = vlog2.f32 %v860_v23  ;;  %v876_v23 = vld [vmem:[%s7677_s30 + $0x1710] sm:$0xff] }
 0x309   : > { %v6837_v36 = vpop.eup %6836  ;;  %4939 = vst [vmem:[%s7706_s17 + $0x1608] sm:$0xff] %v3915_v29  ;;  %v3917_v37 = vmul.f32 0.4342945, %v2577_v30  ;;  %v2581_v38 = vmul.f32 0.6931472, %v6835_v32  ;;  %6862 = vlog2.f32 %v861_v27  ;;  %v877_v27 = vld [vmem:[%s7677_s30 + $0x1718] sm:$0xff] }
 0x30a   : > { %v6839_v40 = vpop.eup %6838  ;;  %4940 = vst [vmem:[%s7706_s17 + $0x1610] sm:$0xff] %v3916_v33  ;;  %v3918_v41 = vmul.f32 0.4342945, %v2579_v34  ;;  %v2583_v42 = vmul.f32 0.6931472, %v6837_v36  ;;  %6864 = vlog2.f32 %v862_v31  ;;  %v878_v31 = vld [vmem:[%s7677_s30 + $0x1720] sm:$0xff] }
 0x30b   : > { %v6841_v44 = vpop.eup %6840  ;;  %4941 = vst [vmem:[%s7706_s17 + $0x1618] sm:$0xff] %v3917_v37  ;;  %v3919_v45 = vmul.f32 0.4342945, %v2581_v38  ;;  %v2585_v46 = vmul.f32 0.6931472, %v6839_v40  ;;  %6866 = vlog2.f32 %v863_v35  ;;  %v879_v35 = vld [vmem:[%s7677_s30 + $0x1728] sm:$0xff] }
 0x30c   : > { %v6843_v48 = vpop.eup %6842  ;;  %4942 = vst [vmem:[%s7706_s17 + $0x1620] sm:$0xff] %v3918_v41  ;;  %v3920_v49 = vmul.f32 0.4342945, %v2583_v42  ;;  %v2587_v50 = vmul.f32 0.6931472, %v6841_v44  ;;  %6868 = vlog2.f32 %v864_v39  ;;  %v880_v39 = vld [vmem:[%s7677_s30 + $0x1730] sm:$0xff] }
 0x30d   : > { %v6845_v52 = vpop.eup %6844  ;;  %4943 = vst [vmem:[%s7706_s17 + $0x1628] sm:$0xff] %v3919_v45  ;;  %v3921_v53 = vmul.f32 0.4342945, %v2585_v46  ;;  %v2589_v54 = vmul.f32 0.6931472, %v6843_v48  ;;  %6870 = vlog2.f32 %v865_v43  ;;  %v881_v43 = vld [vmem:[%s7677_s30 + $0x1738] sm:$0xff] }
 0x30e   : > { %v6847_v56 = vpop.eup %6846  ;;  %4944 = vst [vmem:[%s7706_s17 + $0x1630] sm:$0xff] %v3920_v49  ;;  %v3922_v57 = vmul.f32 0.4342945, %v2587_v50  ;;  %v2591_v58 = vmul.f32 0.6931472, %v6845_v52  ;;  %6872 = vlog2.f32 %v866_v47  ;;  %v882_v47 = vld [vmem:[%s7677_s30 + $0x1740] sm:$0xff] }
 0x30f   : > { %v6849_v60 = vpop.eup %6848  ;;  %4945 = vst [vmem:[%s7706_s17 + $0x1638] sm:$0xff] %v3921_v53  ;;  %v3923_v61 = vmul.f32 0.4342945, %v2589_v54  ;;  %v2593_v62 = vmul.f32 0.6931472, %v6847_v56  ;;  %6874 = vlog2.f32 %v867_v51  ;;  %v883_v51 = vld [vmem:[%s7677_s30 + $0x1748] sm:$0xff] }
 0x310   : > { %v6851_v0 = vpop.eup %6850  ;;  %4946 = vst [vmem:[%s7706_s17 + $0x1640] sm:$0xff] %v3922_v57  ;;  %v3924_v1 = vmul.f32 0.4342945, %v2591_v58  ;;  %v2595_v2 = vmul.f32 0.6931472, %v6849_v60  ;;  %6876 = vlog2.f32 %v868_v55  ;;  %v884_v55 = vld [vmem:[%s7677_s30 + $0x1750] sm:$0xff] }
 0x311   : > { %v6853_v4 = vpop.eup %6852  ;;  %4947 = vst [vmem:[%s7706_s17 + $0x1648] sm:$0xff] %v3923_v61  ;;  %v3925_v5 = vmul.f32 0.4342945, %v2593_v62  ;;  %v2597_v6 = vmul.f32 0.6931472, %v6851_v0  ;;  %6878 = vlog2.f32 %v869_v59  ;;  %v885_v59 = vld [vmem:[%s7677_s30 + $0x1758] sm:$0xff] }
 0x312   : > { %v6855_v8 = vpop.eup %6854  ;;  %4948 = vst [vmem:[%s7706_s17 + $0x1650] sm:$0xff] %v3924_v1  ;;  %v3926_v9 = vmul.f32 0.4342945, %v2595_v2  ;;  %v2599_v10 = vmul.f32 0.6931472, %v6853_v4  ;;  %6880 = vlog2.f32 %v870_v63  ;;  %v886_v63 = vld [vmem:[%s7677_s30 + $0x1760] sm:$0xff] }
 0x313   : > { %v6857_v12 = vpop.eup %6856  ;;  %4949 = vst [vmem:[%s7706_s17 + $0x1658] sm:$0xff] %v3925_v5  ;;  %v3927_v13 = vmul.f32 0.4342945, %v2597_v6  ;;  %v2601_v14 = vmul.f32 0.6931472, %v6855_v8  ;;  %6882 = vlog2.f32 %v871_v3  ;;  %v887_v3 = vld [vmem:[%s7677_s30 + $0x1768] sm:$0xff] }
 0x314   : > { %v6859_v16 = vpop.eup %6858  ;;  %4950 = vst [vmem:[%s7706_s17 + $0x1660] sm:$0xff] %v3926_v9  ;;  %v3928_v17 = vmul.f32 0.4342945, %v2599_v10  ;;  %v2603_v18 = vmul.f32 0.6931472, %v6857_v12  ;;  %6884 = vlog2.f32 %v872_v7  ;;  %v888_v7 = vld [vmem:[%s7677_s30 + $0x1770] sm:$0xff] }
 0x315   : > { %v6861_v20 = vpop.eup %6860  ;;  %4951 = vst [vmem:[%s7706_s17 + $0x1668] sm:$0xff] %v3927_v13  ;;  %v3929_v21 = vmul.f32 0.4342945, %v2601_v14  ;;  %v2605_v22 = vmul.f32 0.6931472, %v6859_v16  ;;  %6886 = vlog2.f32 %v873_v11  ;;  %v889_v11 = vld [vmem:[%s7677_s30 + $0x1778] sm:$0xff] }
 0x316   : > { %v6863_v24 = vpop.eup %6862  ;;  %4952 = vst [vmem:[%s7706_s17 + $0x1670] sm:$0xff] %v3928_v17  ;;  %v3930_v25 = vmul.f32 0.4342945, %v2603_v18  ;;  %v2607_v26 = vmul.f32 0.6931472, %v6861_v20  ;;  %6888 = vlog2.f32 %v874_v15  ;;  %v890_v15 = vld [vmem:[%s7677_s30 + $0x1780] sm:$0xff] }
 0x317   : > { %v6865_v28 = vpop.eup %6864  ;;  %4953 = vst [vmem:[%s7706_s17 + $0x1678] sm:$0xff] %v3929_v21  ;;  %v3931_v29 = vmul.f32 0.4342945, %v2605_v22  ;;  %v2609_v30 = vmul.f32 0.6931472, %v6863_v24  ;;  %6890 = vlog2.f32 %v875_v19  ;;  %v891_v19 = vld [vmem:[%s7677_s30 + $0x1788] sm:$0xff] }
 0x318   : > { %v6867_v32 = vpop.eup %6866  ;;  %4954 = vst [vmem:[%s7706_s17 + $0x1680] sm:$0xff] %v3930_v25  ;;  %v3932_v33 = vmul.f32 0.4342945, %v2607_v26  ;;  %v2611_v34 = vmul.f32 0.6931472, %v6865_v28  ;;  %6892 = vlog2.f32 %v876_v23  ;;  %v892_v23 = vld [vmem:[%s7677_s30 + $0x1790] sm:$0xff] }
 0x319   : > { %v6869_v36 = vpop.eup %6868  ;;  %4955 = vst [vmem:[%s7706_s17 + $0x1688] sm:$0xff] %v3931_v29  ;;  %v3933_v37 = vmul.f32 0.4342945, %v2609_v30  ;;  %v2613_v38 = vmul.f32 0.6931472, %v6867_v32  ;;  %6894 = vlog2.f32 %v877_v27  ;;  %v893_v27 = vld [vmem:[%s7677_s30 + $0x1798] sm:$0xff] }
 0x31a   : > { %v6871_v40 = vpop.eup %6870  ;;  %4956 = vst [vmem:[%s7706_s17 + $0x1690] sm:$0xff] %v3932_v33  ;;  %v3934_v41 = vmul.f32 0.4342945, %v2611_v34  ;;  %v2615_v42 = vmul.f32 0.6931472, %v6869_v36  ;;  %6896 = vlog2.f32 %v878_v31  ;;  %v894_v31 = vld [vmem:[%s7677_s30 + $0x17a0] sm:$0xff] }
 0x31b   : > { %v6873_v44 = vpop.eup %6872  ;;  %4957 = vst [vmem:[%s7706_s17 + $0x1698] sm:$0xff] %v3933_v37  ;;  %v3935_v45 = vmul.f32 0.4342945, %v2613_v38  ;;  %v2617_v46 = vmul.f32 0.6931472, %v6871_v40  ;;  %6898 = vlog2.f32 %v879_v35  ;;  %v895_v35 = vld [vmem:[%s7677_s30 + $0x17a8] sm:$0xff] }
 0x31c   : > { %v6875_v48 = vpop.eup %6874  ;;  %4958 = vst [vmem:[%s7706_s17 + $0x16a0] sm:$0xff] %v3934_v41  ;;  %v3936_v49 = vmul.f32 0.4342945, %v2615_v42  ;;  %v2619_v50 = vmul.f32 0.6931472, %v6873_v44  ;;  %6900 = vlog2.f32 %v880_v39  ;;  %v896_v39 = vld [vmem:[%s7677_s30 + $0x17b0] sm:$0xff] }
 0x31d   : > { %v6877_v52 = vpop.eup %6876  ;;  %4959 = vst [vmem:[%s7706_s17 + $0x16a8] sm:$0xff] %v3935_v45  ;;  %v3937_v53 = vmul.f32 0.4342945, %v2617_v46  ;;  %v2621_v54 = vmul.f32 0.6931472, %v6875_v48  ;;  %6902 = vlog2.f32 %v881_v43  ;;  %v897_v43 = vld [vmem:[%s7677_s30 + $0x17b8] sm:$0xff] }
 0x31e   : > { %v6879_v56 = vpop.eup %6878  ;;  %4960 = vst [vmem:[%s7706_s17 + $0x16b0] sm:$0xff] %v3936_v49  ;;  %v3938_v57 = vmul.f32 0.4342945, %v2619_v50  ;;  %v2623_v58 = vmul.f32 0.6931472, %v6877_v52  ;;  %6904 = vlog2.f32 %v882_v47  ;;  %v898_v47 = vld [vmem:[%s7677_s30 + $0x17c0] sm:$0xff] }
 0x31f   : > { %v6881_v60 = vpop.eup %6880  ;;  %4961 = vst [vmem:[%s7706_s17 + $0x16b8] sm:$0xff] %v3937_v53  ;;  %v3939_v61 = vmul.f32 0.4342945, %v2621_v54  ;;  %v2625_v62 = vmul.f32 0.6931472, %v6879_v56  ;;  %6906 = vlog2.f32 %v883_v51  ;;  %v899_v51 = vld [vmem:[%s7677_s30 + $0x17c8] sm:$0xff] }
 0x320   : > { %v6883_v0 = vpop.eup %6882  ;;  %4962 = vst [vmem:[%s7706_s17 + $0x16c0] sm:$0xff] %v3938_v57  ;;  %v3940_v1 = vmul.f32 0.4342945, %v2623_v58  ;;  %v2627_v2 = vmul.f32 0.6931472, %v6881_v60  ;;  %6908 = vlog2.f32 %v884_v55  ;;  %v900_v55 = vld [vmem:[%s7677_s30 + $0x17d0] sm:$0xff] }
 0x321   : > { %v6885_v4 = vpop.eup %6884  ;;  %4963 = vst [vmem:[%s7706_s17 + $0x16c8] sm:$0xff] %v3939_v61  ;;  %v3941_v5 = vmul.f32 0.4342945, %v2625_v62  ;;  %v2629_v6 = vmul.f32 0.6931472, %v6883_v0  ;;  %6910 = vlog2.f32 %v885_v59  ;;  %v901_v59 = vld [vmem:[%s7677_s30 + $0x17d8] sm:$0xff] }
 0x322   : > { %v6887_v8 = vpop.eup %6886  ;;  %4964 = vst [vmem:[%s7706_s17 + $0x16d0] sm:$0xff] %v3940_v1  ;;  %v3942_v9 = vmul.f32 0.4342945, %v2627_v2  ;;  %v2631_v10 = vmul.f32 0.6931472, %v6885_v4  ;;  %6912 = vlog2.f32 %v886_v63  ;;  %v902_v63 = vld [vmem:[%s7677_s30 + $0x17e0] sm:$0xff] }
 0x323   : > { %v6889_v12 = vpop.eup %6888  ;;  %4965 = vst [vmem:[%s7706_s17 + $0x16d8] sm:$0xff] %v3941_v5  ;;  %v3943_v13 = vmul.f32 0.4342945, %v2629_v6  ;;  %v2633_v14 = vmul.f32 0.6931472, %v6887_v8  ;;  %6914 = vlog2.f32 %v887_v3  ;;  %v903_v3 = vld [vmem:[%s7677_s30 + $0x17e8] sm:$0xff] }
 0x324   : > { %v6891_v16 = vpop.eup %6890  ;;  %4966 = vst [vmem:[%s7706_s17 + $0x16e0] sm:$0xff] %v3942_v9  ;;  %v3944_v17 = vmul.f32 0.4342945, %v2631_v10  ;;  %v2635_v18 = vmul.f32 0.6931472, %v6889_v12  ;;  %6916 = vlog2.f32 %v888_v7  ;;  %v904_v7 = vld [vmem:[%s7677_s30 + $0x17f0] sm:$0xff] }
 0x325   : > { %v6893_v20 = vpop.eup %6892  ;;  %4967 = vst [vmem:[%s7706_s17 + $0x16e8] sm:$0xff] %v3943_v13  ;;  %v3945_v21 = vmul.f32 0.4342945, %v2633_v14  ;;  %v2637_v22 = vmul.f32 0.6931472, %v6891_v16  ;;  %6918 = vlog2.f32 %v889_v11  ;;  %v905_v11 = vld [vmem:[%s7677_s30 + $0x17f8] sm:$0xff] }
 0x326   : > { %v6895_v24 = vpop.eup %6894  ;;  %4968 = vst [vmem:[%s7706_s17 + $0x16f0] sm:$0xff] %v3944_v17  ;;  %v3946_v25 = vmul.f32 0.4342945, %v2635_v18  ;;  %v2639_v26 = vmul.f32 0.6931472, %v6893_v20  ;;  %6920 = vlog2.f32 %v890_v15  ;;  %v906_v15 = vld [vmem:[%s7677_s30 + $0x1800] sm:$0xff] }
 0x327   : > { %v6897_v28 = vpop.eup %6896  ;;  %4969 = vst [vmem:[%s7706_s17 + $0x16f8] sm:$0xff] %v3945_v21  ;;  %v3947_v29 = vmul.f32 0.4342945, %v2637_v22  ;;  %v2641_v30 = vmul.f32 0.6931472, %v6895_v24  ;;  %6922 = vlog2.f32 %v891_v19  ;;  %v907_v19 = vld [vmem:[%s7677_s30 + $0x1808] sm:$0xff] }
 0x328   : > { %v6899_v32 = vpop.eup %6898  ;;  %4970 = vst [vmem:[%s7706_s17 + $0x1700] sm:$0xff] %v3946_v25  ;;  %v3948_v33 = vmul.f32 0.4342945, %v2639_v26  ;;  %v2643_v34 = vmul.f32 0.6931472, %v6897_v28  ;;  %6924 = vlog2.f32 %v892_v23  ;;  %v908_v23 = vld [vmem:[%s7677_s30 + $0x1810] sm:$0xff] }
 0x329   : > { %v6901_v36 = vpop.eup %6900  ;;  %4971 = vst [vmem:[%s7706_s17 + $0x1708] sm:$0xff] %v3947_v29  ;;  %v3949_v37 = vmul.f32 0.4342945, %v2641_v30  ;;  %v2645_v38 = vmul.f32 0.6931472, %v6899_v32  ;;  %6926 = vlog2.f32 %v893_v27  ;;  %v909_v27 = vld [vmem:[%s7677_s30 + $0x1818] sm:$0xff] }
 0x32a   : > { %v6903_v40 = vpop.eup %6902  ;;  %4972 = vst [vmem:[%s7706_s17 + $0x1710] sm:$0xff] %v3948_v33  ;;  %v3950_v41 = vmul.f32 0.4342945, %v2643_v34  ;;  %v2647_v42 = vmul.f32 0.6931472, %v6901_v36  ;;  %6928 = vlog2.f32 %v894_v31  ;;  %v910_v31 = vld [vmem:[%s7677_s30 + $0x1820] sm:$0xff] }
 0x32b   : > { %v6905_v44 = vpop.eup %6904  ;;  %4973 = vst [vmem:[%s7706_s17 + $0x1718] sm:$0xff] %v3949_v37  ;;  %v3951_v45 = vmul.f32 0.4342945, %v2645_v38  ;;  %v2649_v46 = vmul.f32 0.6931472, %v6903_v40  ;;  %6930 = vlog2.f32 %v895_v35  ;;  %v911_v35 = vld [vmem:[%s7677_s30 + $0x1828] sm:$0xff] }
 0x32c   : > { %v6907_v48 = vpop.eup %6906  ;;  %4974 = vst [vmem:[%s7706_s17 + $0x1720] sm:$0xff] %v3950_v41  ;;  %v3952_v49 = vmul.f32 0.4342945, %v2647_v42  ;;  %v2651_v50 = vmul.f32 0.6931472, %v6905_v44  ;;  %6932 = vlog2.f32 %v896_v39  ;;  %v912_v39 = vld [vmem:[%s7677_s30 + $0x1830] sm:$0xff] }
 0x32d   : > { %v6909_v52 = vpop.eup %6908  ;;  %4975 = vst [vmem:[%s7706_s17 + $0x1728] sm:$0xff] %v3951_v45  ;;  %v3953_v53 = vmul.f32 0.4342945, %v2649_v46  ;;  %v2653_v54 = vmul.f32 0.6931472, %v6907_v48  ;;  %6934 = vlog2.f32 %v897_v43  ;;  %v913_v43 = vld [vmem:[%s7677_s30 + $0x1838] sm:$0xff] }
 0x32e   : > { %v6911_v56 = vpop.eup %6910  ;;  %4976 = vst [vmem:[%s7706_s17 + $0x1730] sm:$0xff] %v3952_v49  ;;  %v3954_v57 = vmul.f32 0.4342945, %v2651_v50  ;;  %v2655_v58 = vmul.f32 0.6931472, %v6909_v52  ;;  %6936 = vlog2.f32 %v898_v47  ;;  %v914_v47 = vld [vmem:[%s7677_s30 + $0x1840] sm:$0xff] }
 0x32f   : > { %v6913_v60 = vpop.eup %6912  ;;  %4977 = vst [vmem:[%s7706_s17 + $0x1738] sm:$0xff] %v3953_v53  ;;  %v3955_v61 = vmul.f32 0.4342945, %v2653_v54  ;;  %v2657_v62 = vmul.f32 0.6931472, %v6911_v56  ;;  %6938 = vlog2.f32 %v899_v51  ;;  %v915_v51 = vld [vmem:[%s7677_s30 + $0x1848] sm:$0xff] }
 0x330   : > { %v6915_v0 = vpop.eup %6914  ;;  %4978 = vst [vmem:[%s7706_s17 + $0x1740] sm:$0xff] %v3954_v57  ;;  %v3956_v1 = vmul.f32 0.4342945, %v2655_v58  ;;  %v2659_v2 = vmul.f32 0.6931472, %v6913_v60  ;;  %6940 = vlog2.f32 %v900_v55  ;;  %v916_v55 = vld [vmem:[%s7677_s30 + $0x1850] sm:$0xff] }
 0x331   : > { %v6917_v4 = vpop.eup %6916  ;;  %4979 = vst [vmem:[%s7706_s17 + $0x1748] sm:$0xff] %v3955_v61  ;;  %v3957_v5 = vmul.f32 0.4342945, %v2657_v62  ;;  %v2661_v6 = vmul.f32 0.6931472, %v6915_v0  ;;  %6942 = vlog2.f32 %v901_v59  ;;  %v917_v59 = vld [vmem:[%s7677_s30 + $0x1858] sm:$0xff] }
 0x332   : > { %v6919_v8 = vpop.eup %6918  ;;  %4980 = vst [vmem:[%s7706_s17 + $0x1750] sm:$0xff] %v3956_v1  ;;  %v3958_v9 = vmul.f32 0.4342945, %v2659_v2  ;;  %v2663_v10 = vmul.f32 0.6931472, %v6917_v4  ;;  %6944 = vlog2.f32 %v902_v63  ;;  %v918_v63 = vld [vmem:[%s7677_s30 + $0x1860] sm:$0xff] }
 0x333   : > { %v6921_v12 = vpop.eup %6920  ;;  %4981 = vst [vmem:[%s7706_s17 + $0x1758] sm:$0xff] %v3957_v5  ;;  %v3959_v13 = vmul.f32 0.4342945, %v2661_v6  ;;  %v2665_v14 = vmul.f32 0.6931472, %v6919_v8  ;;  %6946 = vlog2.f32 %v903_v3  ;;  %v919_v3 = vld [vmem:[%s7677_s30 + $0x1868] sm:$0xff] }
 0x334   : > { %v6923_v16 = vpop.eup %6922  ;;  %4982 = vst [vmem:[%s7706_s17 + $0x1760] sm:$0xff] %v3958_v9  ;;  %v3960_v17 = vmul.f32 0.4342945, %v2663_v10  ;;  %v2667_v18 = vmul.f32 0.6931472, %v6921_v12  ;;  %6948 = vlog2.f32 %v904_v7  ;;  %v920_v7 = vld [vmem:[%s7677_s30 + $0x1870] sm:$0xff] }
 0x335   : > { %v6925_v20 = vpop.eup %6924  ;;  %4983 = vst [vmem:[%s7706_s17 + $0x1768] sm:$0xff] %v3959_v13  ;;  %v3961_v21 = vmul.f32 0.4342945, %v2665_v14  ;;  %v2669_v22 = vmul.f32 0.6931472, %v6923_v16  ;;  %6950 = vlog2.f32 %v905_v11  ;;  %v921_v11 = vld [vmem:[%s7677_s30 + $0x1878] sm:$0xff] }
 0x336   : > { %v6927_v24 = vpop.eup %6926  ;;  %4984 = vst [vmem:[%s7706_s17 + $0x1770] sm:$0xff] %v3960_v17  ;;  %v3962_v25 = vmul.f32 0.4342945, %v2667_v18  ;;  %v2671_v26 = vmul.f32 0.6931472, %v6925_v20  ;;  %6952 = vlog2.f32 %v906_v15  ;;  %v922_v15 = vld [vmem:[%s7677_s30 + $0x1880] sm:$0xff] }
 0x337   : > { %v6929_v28 = vpop.eup %6928  ;;  %4985 = vst [vmem:[%s7706_s17 + $0x1778] sm:$0xff] %v3961_v21  ;;  %v3963_v29 = vmul.f32 0.4342945, %v2669_v22  ;;  %v2673_v30 = vmul.f32 0.6931472, %v6927_v24  ;;  %6954 = vlog2.f32 %v907_v19  ;;  %v923_v19 = vld [vmem:[%s7677_s30 + $0x1888] sm:$0xff] }
 0x338   : > { %v6931_v32 = vpop.eup %6930  ;;  %4986 = vst [vmem:[%s7706_s17 + $0x1780] sm:$0xff] %v3962_v25  ;;  %v3964_v33 = vmul.f32 0.4342945, %v2671_v26  ;;  %v2675_v34 = vmul.f32 0.6931472, %v6929_v28  ;;  %6956 = vlog2.f32 %v908_v23  ;;  %v924_v23 = vld [vmem:[%s7677_s30 + $0x1890] sm:$0xff] }
 0x339   : > { %v6933_v36 = vpop.eup %6932  ;;  %4987 = vst [vmem:[%s7706_s17 + $0x1788] sm:$0xff] %v3963_v29  ;;  %v3965_v37 = vmul.f32 0.4342945, %v2673_v30  ;;  %v2677_v38 = vmul.f32 0.6931472, %v6931_v32  ;;  %6958 = vlog2.f32 %v909_v27  ;;  %v925_v27 = vld [vmem:[%s7677_s30 + $0x1898] sm:$0xff] }
 0x33a   : > { %v6935_v40 = vpop.eup %6934  ;;  %4988 = vst [vmem:[%s7706_s17 + $0x1790] sm:$0xff] %v3964_v33  ;;  %v3966_v41 = vmul.f32 0.4342945, %v2675_v34  ;;  %v2679_v42 = vmul.f32 0.6931472, %v6933_v36  ;;  %6960 = vlog2.f32 %v910_v31  ;;  %v926_v31 = vld [vmem:[%s7677_s30 + $0x18a0] sm:$0xff] }
 0x33b   : > { %v6937_v44 = vpop.eup %6936  ;;  %4989 = vst [vmem:[%s7706_s17 + $0x1798] sm:$0xff] %v3965_v37  ;;  %v3967_v45 = vmul.f32 0.4342945, %v2677_v38  ;;  %v2681_v46 = vmul.f32 0.6931472, %v6935_v40  ;;  %6962 = vlog2.f32 %v911_v35  ;;  %v927_v35 = vld [vmem:[%s7677_s30 + $0x18a8] sm:$0xff] }
 0x33c   : > { %v6939_v48 = vpop.eup %6938  ;;  %4990 = vst [vmem:[%s7706_s17 + $0x17a0] sm:$0xff] %v3966_v41  ;;  %v3968_v49 = vmul.f32 0.4342945, %v2679_v42  ;;  %v2683_v50 = vmul.f32 0.6931472, %v6937_v44  ;;  %6964 = vlog2.f32 %v912_v39  ;;  %v928_v39 = vld [vmem:[%s7677_s30 + $0x18b0] sm:$0xff] }
 0x33d   : > { %v6941_v52 = vpop.eup %6940  ;;  %4991 = vst [vmem:[%s7706_s17 + $0x17a8] sm:$0xff] %v3967_v45  ;;  %v3969_v53 = vmul.f32 0.4342945, %v2681_v46  ;;  %v2685_v54 = vmul.f32 0.6931472, %v6939_v48  ;;  %6966 = vlog2.f32 %v913_v43  ;;  %v929_v43 = vld [vmem:[%s7677_s30 + $0x18b8] sm:$0xff] }
 0x33e   : > { %v6943_v56 = vpop.eup %6942  ;;  %4992 = vst [vmem:[%s7706_s17 + $0x17b0] sm:$0xff] %v3968_v49  ;;  %v3970_v57 = vmul.f32 0.4342945, %v2683_v50  ;;  %v2687_v58 = vmul.f32 0.6931472, %v6941_v52  ;;  %6968 = vlog2.f32 %v914_v47  ;;  %v930_v47 = vld [vmem:[%s7677_s30 + $0x18c0] sm:$0xff] }
 0x33f   : > { %v6945_v60 = vpop.eup %6944  ;;  %4993 = vst [vmem:[%s7706_s17 + $0x17b8] sm:$0xff] %v3969_v53  ;;  %v3971_v61 = vmul.f32 0.4342945, %v2685_v54  ;;  %v2689_v62 = vmul.f32 0.6931472, %v6943_v56  ;;  %6970 = vlog2.f32 %v915_v51  ;;  %v931_v51 = vld [vmem:[%s7677_s30 + $0x18c8] sm:$0xff] }
 0x340   : > { %v6947_v0 = vpop.eup %6946  ;;  %4994 = vst [vmem:[%s7706_s17 + $0x17c0] sm:$0xff] %v3970_v57  ;;  %v3972_v1 = vmul.f32 0.4342945, %v2687_v58  ;;  %v2691_v2 = vmul.f32 0.6931472, %v6945_v60  ;;  %6972 = vlog2.f32 %v916_v55  ;;  %v932_v55 = vld [vmem:[%s7677_s30 + $0x18d0] sm:$0xff] }
 0x341   : > { %v6949_v4 = vpop.eup %6948  ;;  %4995 = vst [vmem:[%s7706_s17 + $0x17c8] sm:$0xff] %v3971_v61  ;;  %v3973_v5 = vmul.f32 0.4342945, %v2689_v62  ;;  %v2693_v6 = vmul.f32 0.6931472, %v6947_v0  ;;  %6974 = vlog2.f32 %v917_v59  ;;  %v933_v59 = vld [vmem:[%s7677_s30 + $0x18d8] sm:$0xff] }
 0x342   : > { %v6951_v8 = vpop.eup %6950  ;;  %4996 = vst [vmem:[%s7706_s17 + $0x17d0] sm:$0xff] %v3972_v1  ;;  %v3974_v9 = vmul.f32 0.4342945, %v2691_v2  ;;  %v2695_v10 = vmul.f32 0.6931472, %v6949_v4  ;;  %6976 = vlog2.f32 %v918_v63  ;;  %v934_v63 = vld [vmem:[%s7677_s30 + $0x18e0] sm:$0xff] }
 0x343   : > { %v6953_v12 = vpop.eup %6952  ;;  %4997 = vst [vmem:[%s7706_s17 + $0x17d8] sm:$0xff] %v3973_v5  ;;  %v3975_v13 = vmul.f32 0.4342945, %v2693_v6  ;;  %v2697_v14 = vmul.f32 0.6931472, %v6951_v8  ;;  %6978 = vlog2.f32 %v919_v3  ;;  %v935_v3 = vld [vmem:[%s7677_s30 + $0x18e8] sm:$0xff] }
 0x344   : > { %v6955_v16 = vpop.eup %6954  ;;  %4998 = vst [vmem:[%s7706_s17 + $0x17e0] sm:$0xff] %v3974_v9  ;;  %v3976_v17 = vmul.f32 0.4342945, %v2695_v10  ;;  %v2699_v18 = vmul.f32 0.6931472, %v6953_v12  ;;  %6980 = vlog2.f32 %v920_v7  ;;  %v936_v7 = vld [vmem:[%s7677_s30 + $0x18f0] sm:$0xff] }
 0x345   : > { %v6957_v20 = vpop.eup %6956  ;;  %4999 = vst [vmem:[%s7706_s17 + $0x17e8] sm:$0xff] %v3975_v13  ;;  %v3977_v21 = vmul.f32 0.4342945, %v2697_v14  ;;  %v2701_v22 = vmul.f32 0.6931472, %v6955_v16  ;;  %6982 = vlog2.f32 %v921_v11  ;;  %v937_v11 = vld [vmem:[%s7677_s30 + $0x18f8] sm:$0xff] }
 0x346   : > { %v6959_v24 = vpop.eup %6958  ;;  %5000 = vst [vmem:[%s7706_s17 + $0x17f0] sm:$0xff] %v3976_v17  ;;  %v3978_v25 = vmul.f32 0.4342945, %v2699_v18  ;;  %v2703_v26 = vmul.f32 0.6931472, %v6957_v20  ;;  %6984 = vlog2.f32 %v922_v15  ;;  %v938_v15 = vld [vmem:[%s7677_s30 + $0x1900] sm:$0xff] }
 0x347   : > { %v6961_v28 = vpop.eup %6960  ;;  %5001 = vst [vmem:[%s7706_s17 + $0x17f8] sm:$0xff] %v3977_v21  ;;  %v3979_v29 = vmul.f32 0.4342945, %v2701_v22  ;;  %v2705_v30 = vmul.f32 0.6931472, %v6959_v24  ;;  %6986 = vlog2.f32 %v923_v19  ;;  %v939_v19 = vld [vmem:[%s7677_s30 + $0x1908] sm:$0xff] }
 0x348   : > { %v6963_v32 = vpop.eup %6962  ;;  %5002 = vst [vmem:[%s7706_s17 + $0x1800] sm:$0xff] %v3978_v25  ;;  %v3980_v33 = vmul.f32 0.4342945, %v2703_v26  ;;  %v2707_v34 = vmul.f32 0.6931472, %v6961_v28  ;;  %6988 = vlog2.f32 %v924_v23  ;;  %v940_v23 = vld [vmem:[%s7677_s30 + $0x1910] sm:$0xff] }
 0x349   : > { %v6965_v36 = vpop.eup %6964  ;;  %5003 = vst [vmem:[%s7706_s17 + $0x1808] sm:$0xff] %v3979_v29  ;;  %v3981_v37 = vmul.f32 0.4342945, %v2705_v30  ;;  %v2709_v38 = vmul.f32 0.6931472, %v6963_v32  ;;  %6990 = vlog2.f32 %v925_v27  ;;  %v941_v27 = vld [vmem:[%s7677_s30 + $0x1918] sm:$0xff] }
 0x34a   : > { %v6967_v40 = vpop.eup %6966  ;;  %5004 = vst [vmem:[%s7706_s17 + $0x1810] sm:$0xff] %v3980_v33  ;;  %v3982_v41 = vmul.f32 0.4342945, %v2707_v34  ;;  %v2711_v42 = vmul.f32 0.6931472, %v6965_v36  ;;  %6992 = vlog2.f32 %v926_v31  ;;  %v942_v31 = vld [vmem:[%s7677_s30 + $0x1920] sm:$0xff] }
 0x34b   : > { %v6969_v44 = vpop.eup %6968  ;;  %5005 = vst [vmem:[%s7706_s17 + $0x1818] sm:$0xff] %v3981_v37  ;;  %v3983_v45 = vmul.f32 0.4342945, %v2709_v38  ;;  %v2713_v46 = vmul.f32 0.6931472, %v6967_v40  ;;  %6994 = vlog2.f32 %v927_v35  ;;  %v943_v35 = vld [vmem:[%s7677_s30 + $0x1928] sm:$0xff] }
 0x34c   : > { %v6971_v48 = vpop.eup %6970  ;;  %5006 = vst [vmem:[%s7706_s17 + $0x1820] sm:$0xff] %v3982_v41  ;;  %v3984_v49 = vmul.f32 0.4342945, %v2711_v42  ;;  %v2715_v50 = vmul.f32 0.6931472, %v6969_v44  ;;  %6996 = vlog2.f32 %v928_v39  ;;  %v944_v39 = vld [vmem:[%s7677_s30 + $0x1930] sm:$0xff] }
 0x34d   : > { %v6973_v52 = vpop.eup %6972  ;;  %5007 = vst [vmem:[%s7706_s17 + $0x1828] sm:$0xff] %v3983_v45  ;;  %v3985_v53 = vmul.f32 0.4342945, %v2713_v46  ;;  %v2717_v54 = vmul.f32 0.6931472, %v6971_v48  ;;  %6998 = vlog2.f32 %v929_v43  ;;  %v945_v43 = vld [vmem:[%s7677_s30 + $0x1938] sm:$0xff] }
 0x34e   : > { %v6975_v56 = vpop.eup %6974  ;;  %5008 = vst [vmem:[%s7706_s17 + $0x1830] sm:$0xff] %v3984_v49  ;;  %v3986_v57 = vmul.f32 0.4342945, %v2715_v50  ;;  %v2719_v58 = vmul.f32 0.6931472, %v6973_v52  ;;  %7000 = vlog2.f32 %v930_v47  ;;  %v946_v47 = vld [vmem:[%s7677_s30 + $0x1940] sm:$0xff] }
 0x34f   : > { %v6977_v60 = vpop.eup %6976  ;;  %5009 = vst [vmem:[%s7706_s17 + $0x1838] sm:$0xff] %v3985_v53  ;;  %v3987_v61 = vmul.f32 0.4342945, %v2717_v54  ;;  %v2721_v62 = vmul.f32 0.6931472, %v6975_v56  ;;  %7002 = vlog2.f32 %v931_v51  ;;  %v947_v51 = vld [vmem:[%s7677_s30 + $0x1948] sm:$0xff] }
 0x350   : > { %v6979_v0 = vpop.eup %6978  ;;  %5010 = vst [vmem:[%s7706_s17 + $0x1840] sm:$0xff] %v3986_v57  ;;  %v3988_v1 = vmul.f32 0.4342945, %v2719_v58  ;;  %v2723_v2 = vmul.f32 0.6931472, %v6977_v60  ;;  %7004 = vlog2.f32 %v932_v55  ;;  %v948_v55 = vld [vmem:[%s7677_s30 + $0x1950] sm:$0xff] }
 0x351   : > { %v6981_v4 = vpop.eup %6980  ;;  %5011 = vst [vmem:[%s7706_s17 + $0x1848] sm:$0xff] %v3987_v61  ;;  %v3989_v5 = vmul.f32 0.4342945, %v2721_v62  ;;  %v2725_v6 = vmul.f32 0.6931472, %v6979_v0  ;;  %7006 = vlog2.f32 %v933_v59  ;;  %v949_v59 = vld [vmem:[%s7677_s30 + $0x1958] sm:$0xff] }
 0x352   : > { %v6983_v8 = vpop.eup %6982  ;;  %5012 = vst [vmem:[%s7706_s17 + $0x1850] sm:$0xff] %v3988_v1  ;;  %v3990_v9 = vmul.f32 0.4342945, %v2723_v2  ;;  %v2727_v10 = vmul.f32 0.6931472, %v6981_v4  ;;  %7008 = vlog2.f32 %v934_v63  ;;  %v950_v63 = vld [vmem:[%s7677_s30 + $0x1960] sm:$0xff] }
 0x353   : > { %v6985_v12 = vpop.eup %6984  ;;  %5013 = vst [vmem:[%s7706_s17 + $0x1858] sm:$0xff] %v3989_v5  ;;  %v3991_v13 = vmul.f32 0.4342945, %v2725_v6  ;;  %v2729_v14 = vmul.f32 0.6931472, %v6983_v8  ;;  %7010 = vlog2.f32 %v935_v3  ;;  %v951_v3 = vld [vmem:[%s7677_s30 + $0x1968] sm:$0xff] }
 0x354   : > { %v6987_v16 = vpop.eup %6986  ;;  %5014 = vst [vmem:[%s7706_s17 + $0x1860] sm:$0xff] %v3990_v9  ;;  %v3992_v17 = vmul.f32 0.4342945, %v2727_v10  ;;  %v2731_v18 = vmul.f32 0.6931472, %v6985_v12  ;;  %7012 = vlog2.f32 %v936_v7  ;;  %v952_v7 = vld [vmem:[%s7677_s30 + $0x1970] sm:$0xff] }
 0x355   : > { %v6989_v20 = vpop.eup %6988  ;;  %5015 = vst [vmem:[%s7706_s17 + $0x1868] sm:$0xff] %v3991_v13  ;;  %v3993_v21 = vmul.f32 0.4342945, %v2729_v14  ;;  %v2733_v22 = vmul.f32 0.6931472, %v6987_v16  ;;  %7014 = vlog2.f32 %v937_v11  ;;  %v953_v11 = vld [vmem:[%s7677_s30 + $0x1978] sm:$0xff] }
 0x356   : > { %v6991_v24 = vpop.eup %6990  ;;  %5016 = vst [vmem:[%s7706_s17 + $0x1870] sm:$0xff] %v3992_v17  ;;  %v3994_v25 = vmul.f32 0.4342945, %v2731_v18  ;;  %v2735_v26 = vmul.f32 0.6931472, %v6989_v20  ;;  %7016 = vlog2.f32 %v938_v15  ;;  %v954_v15 = vld [vmem:[%s7677_s30 + $0x1980] sm:$0xff] }
 0x357   : > { %v6993_v28 = vpop.eup %6992  ;;  %5017 = vst [vmem:[%s7706_s17 + $0x1878] sm:$0xff] %v3993_v21  ;;  %v3995_v29 = vmul.f32 0.4342945, %v2733_v22  ;;  %v2737_v30 = vmul.f32 0.6931472, %v6991_v24  ;;  %7018 = vlog2.f32 %v939_v19  ;;  %v955_v19 = vld [vmem:[%s7677_s30 + $0x1988] sm:$0xff] }
 0x358   : > { %v6995_v32 = vpop.eup %6994  ;;  %5018 = vst [vmem:[%s7706_s17 + $0x1880] sm:$0xff] %v3994_v25  ;;  %v3996_v33 = vmul.f32 0.4342945, %v2735_v26  ;;  %v2739_v34 = vmul.f32 0.6931472, %v6993_v28  ;;  %7020 = vlog2.f32 %v940_v23  ;;  %v956_v23 = vld [vmem:[%s7677_s30 + $0x1990] sm:$0xff] }
 0x359   : > { %v6997_v36 = vpop.eup %6996  ;;  %5019 = vst [vmem:[%s7706_s17 + $0x1888] sm:$0xff] %v3995_v29  ;;  %v3997_v37 = vmul.f32 0.4342945, %v2737_v30  ;;  %v2741_v38 = vmul.f32 0.6931472, %v6995_v32  ;;  %7022 = vlog2.f32 %v941_v27  ;;  %v957_v27 = vld [vmem:[%s7677_s30 + $0x1998] sm:$0xff] }
 0x35a   : > { %v6999_v40 = vpop.eup %6998  ;;  %5020 = vst [vmem:[%s7706_s17 + $0x1890] sm:$0xff] %v3996_v33  ;;  %v3998_v41 = vmul.f32 0.4342945, %v2739_v34  ;;  %v2743_v42 = vmul.f32 0.6931472, %v6997_v36  ;;  %7024 = vlog2.f32 %v942_v31  ;;  %v958_v31 = vld [vmem:[%s7677_s30 + $0x19a0] sm:$0xff] }
 0x35b   : > { %v7001_v44 = vpop.eup %7000  ;;  %5021 = vst [vmem:[%s7706_s17 + $0x1898] sm:$0xff] %v3997_v37  ;;  %v3999_v45 = vmul.f32 0.4342945, %v2741_v38  ;;  %v2745_v46 = vmul.f32 0.6931472, %v6999_v40  ;;  %7026 = vlog2.f32 %v943_v35  ;;  %v959_v35 = vld [vmem:[%s7677_s30 + $0x19a8] sm:$0xff] }
 0x35c   : > { %v7003_v48 = vpop.eup %7002  ;;  %5022 = vst [vmem:[%s7706_s17 + $0x18a0] sm:$0xff] %v3998_v41  ;;  %v4000_v49 = vmul.f32 0.4342945, %v2743_v42  ;;  %v2747_v50 = vmul.f32 0.6931472, %v7001_v44  ;;  %7028 = vlog2.f32 %v944_v39  ;;  %v960_v39 = vld [vmem:[%s7677_s30 + $0x19b0] sm:$0xff] }
 0x35d   : > { %v7005_v52 = vpop.eup %7004  ;;  %5023 = vst [vmem:[%s7706_s17 + $0x18a8] sm:$0xff] %v3999_v45  ;;  %v4001_v53 = vmul.f32 0.4342945, %v2745_v46  ;;  %v2749_v54 = vmul.f32 0.6931472, %v7003_v48  ;;  %7030 = vlog2.f32 %v945_v43  ;;  %v961_v43 = vld [vmem:[%s7677_s30 + $0x19b8] sm:$0xff] }
 0x35e   : > { %v7007_v56 = vpop.eup %7006  ;;  %5024 = vst [vmem:[%s7706_s17 + $0x18b0] sm:$0xff] %v4000_v49  ;;  %v4002_v57 = vmul.f32 0.4342945, %v2747_v50  ;;  %v2751_v58 = vmul.f32 0.6931472, %v7005_v52  ;;  %7032 = vlog2.f32 %v946_v47  ;;  %v962_v47 = vld [vmem:[%s7677_s30 + $0x19c0] sm:$0xff] }
 0x35f   : > { %v7009_v60 = vpop.eup %7008  ;;  %5025 = vst [vmem:[%s7706_s17 + $0x18b8] sm:$0xff] %v4001_v53  ;;  %v4003_v61 = vmul.f32 0.4342945, %v2749_v54  ;;  %v2753_v62 = vmul.f32 0.6931472, %v7007_v56  ;;  %7034 = vlog2.f32 %v947_v51  ;;  %v963_v51 = vld [vmem:[%s7677_s30 + $0x19c8] sm:$0xff] }
 0x360   : > { %v7011_v0 = vpop.eup %7010  ;;  %5026 = vst [vmem:[%s7706_s17 + $0x18c0] sm:$0xff] %v4002_v57  ;;  %v4004_v1 = vmul.f32 0.4342945, %v2751_v58  ;;  %v2755_v2 = vmul.f32 0.6931472, %v7009_v60  ;;  %7036 = vlog2.f32 %v948_v55  ;;  %v964_v55 = vld [vmem:[%s7677_s30 + $0x19d0] sm:$0xff] }
 0x361   : > { %v7013_v4 = vpop.eup %7012  ;;  %5027 = vst [vmem:[%s7706_s17 + $0x18c8] sm:$0xff] %v4003_v61  ;;  %v4005_v5 = vmul.f32 0.4342945, %v2753_v62  ;;  %v2757_v6 = vmul.f32 0.6931472, %v7011_v0  ;;  %7038 = vlog2.f32 %v949_v59  ;;  %v965_v59 = vld [vmem:[%s7677_s30 + $0x19d8] sm:$0xff] }
 0x362   : > { %v7015_v8 = vpop.eup %7014  ;;  %5028 = vst [vmem:[%s7706_s17 + $0x18d0] sm:$0xff] %v4004_v1  ;;  %v4006_v9 = vmul.f32 0.4342945, %v2755_v2  ;;  %v2759_v10 = vmul.f32 0.6931472, %v7013_v4  ;;  %7040 = vlog2.f32 %v950_v63  ;;  %v966_v63 = vld [vmem:[%s7677_s30 + $0x19e0] sm:$0xff] }
 0x363   : > { %v7017_v12 = vpop.eup %7016  ;;  %5029 = vst [vmem:[%s7706_s17 + $0x18d8] sm:$0xff] %v4005_v5  ;;  %v4007_v13 = vmul.f32 0.4342945, %v2757_v6  ;;  %v2761_v14 = vmul.f32 0.6931472, %v7015_v8  ;;  %7042 = vlog2.f32 %v951_v3  ;;  %v967_v3 = vld [vmem:[%s7677_s30 + $0x19e8] sm:$0xff] }
 0x364   : > { %v7019_v16 = vpop.eup %7018  ;;  %5030 = vst [vmem:[%s7706_s17 + $0x18e0] sm:$0xff] %v4006_v9  ;;  %v4008_v17 = vmul.f32 0.4342945, %v2759_v10  ;;  %v2763_v18 = vmul.f32 0.6931472, %v7017_v12  ;;  %7044 = vlog2.f32 %v952_v7  ;;  %v968_v7 = vld [vmem:[%s7677_s30 + $0x19f0] sm:$0xff] }
 0x365   : > { %v7021_v20 = vpop.eup %7020  ;;  %5031 = vst [vmem:[%s7706_s17 + $0x18e8] sm:$0xff] %v4007_v13  ;;  %v4009_v21 = vmul.f32 0.4342945, %v2761_v14  ;;  %v2765_v22 = vmul.f32 0.6931472, %v7019_v16  ;;  %7046 = vlog2.f32 %v953_v11  ;;  %v969_v11 = vld [vmem:[%s7677_s30 + $0x19f8] sm:$0xff] }
 0x366   : > { %v7023_v24 = vpop.eup %7022  ;;  %5032 = vst [vmem:[%s7706_s17 + $0x18f0] sm:$0xff] %v4008_v17  ;;  %v4010_v25 = vmul.f32 0.4342945, %v2763_v18  ;;  %v2767_v26 = vmul.f32 0.6931472, %v7021_v20  ;;  %7048 = vlog2.f32 %v954_v15  ;;  %v970_v15 = vld [vmem:[%s7677_s30 + $0x1a00] sm:$0xff] }
 0x367   : > { %v7025_v28 = vpop.eup %7024  ;;  %5033 = vst [vmem:[%s7706_s17 + $0x18f8] sm:$0xff] %v4009_v21  ;;  %v4011_v29 = vmul.f32 0.4342945, %v2765_v22  ;;  %v2769_v30 = vmul.f32 0.6931472, %v7023_v24  ;;  %7050 = vlog2.f32 %v955_v19  ;;  %v971_v19 = vld [vmem:[%s7677_s30 + $0x1a08] sm:$0xff] }
 0x368   : > { %v7027_v32 = vpop.eup %7026  ;;  %5034 = vst [vmem:[%s7706_s17 + $0x1900] sm:$0xff] %v4010_v25  ;;  %v4012_v33 = vmul.f32 0.4342945, %v2767_v26  ;;  %v2771_v34 = vmul.f32 0.6931472, %v7025_v28  ;;  %7052 = vlog2.f32 %v956_v23  ;;  %v972_v23 = vld [vmem:[%s7677_s30 + $0x1a10] sm:$0xff] }
 0x369   : > { %v7029_v36 = vpop.eup %7028  ;;  %5035 = vst [vmem:[%s7706_s17 + $0x1908] sm:$0xff] %v4011_v29  ;;  %v4013_v37 = vmul.f32 0.4342945, %v2769_v30  ;;  %v2773_v38 = vmul.f32 0.6931472, %v7027_v32  ;;  %7054 = vlog2.f32 %v957_v27  ;;  %v973_v27 = vld [vmem:[%s7677_s30 + $0x1a18] sm:$0xff] }
 0x36a   : > { %v7031_v40 = vpop.eup %7030  ;;  %5036 = vst [vmem:[%s7706_s17 + $0x1910] sm:$0xff] %v4012_v33  ;;  %v4014_v41 = vmul.f32 0.4342945, %v2771_v34  ;;  %v2775_v42 = vmul.f32 0.6931472, %v7029_v36  ;;  %7056 = vlog2.f32 %v958_v31  ;;  %v974_v31 = vld [vmem:[%s7677_s30 + $0x1a20] sm:$0xff] }
 0x36b   : > { %v7033_v44 = vpop.eup %7032  ;;  %5037 = vst [vmem:[%s7706_s17 + $0x1918] sm:$0xff] %v4013_v37  ;;  %v4015_v45 = vmul.f32 0.4342945, %v2773_v38  ;;  %v2777_v46 = vmul.f32 0.6931472, %v7031_v40  ;;  %7058 = vlog2.f32 %v959_v35  ;;  %v975_v35 = vld [vmem:[%s7677_s30 + $0x1a28] sm:$0xff] }
 0x36c   : > { %v7035_v48 = vpop.eup %7034  ;;  %5038 = vst [vmem:[%s7706_s17 + $0x1920] sm:$0xff] %v4014_v41  ;;  %v4016_v49 = vmul.f32 0.4342945, %v2775_v42  ;;  %v2779_v50 = vmul.f32 0.6931472, %v7033_v44  ;;  %7060 = vlog2.f32 %v960_v39  ;;  %v976_v39 = vld [vmem:[%s7677_s30 + $0x1a30] sm:$0xff] }
 0x36d   : > { %v7037_v52 = vpop.eup %7036  ;;  %5039 = vst [vmem:[%s7706_s17 + $0x1928] sm:$0xff] %v4015_v45  ;;  %v4017_v53 = vmul.f32 0.4342945, %v2777_v46  ;;  %v2781_v54 = vmul.f32 0.6931472, %v7035_v48  ;;  %7062 = vlog2.f32 %v961_v43  ;;  %v977_v43 = vld [vmem:[%s7677_s30 + $0x1a38] sm:$0xff] }
 0x36e   : > { %v7039_v56 = vpop.eup %7038  ;;  %5040 = vst [vmem:[%s7706_s17 + $0x1930] sm:$0xff] %v4016_v49  ;;  %v4018_v57 = vmul.f32 0.4342945, %v2779_v50  ;;  %v2783_v58 = vmul.f32 0.6931472, %v7037_v52  ;;  %7064 = vlog2.f32 %v962_v47  ;;  %v978_v47 = vld [vmem:[%s7677_s30 + $0x1a40] sm:$0xff] }
 0x36f   : > { %v7041_v60 = vpop.eup %7040  ;;  %5041 = vst [vmem:[%s7706_s17 + $0x1938] sm:$0xff] %v4017_v53  ;;  %v4019_v61 = vmul.f32 0.4342945, %v2781_v54  ;;  %v2785_v62 = vmul.f32 0.6931472, %v7039_v56  ;;  %7066 = vlog2.f32 %v963_v51  ;;  %v979_v51 = vld [vmem:[%s7677_s30 + $0x1a48] sm:$0xff] }
 0x370   : > { %v7043_v0 = vpop.eup %7042  ;;  %5042 = vst [vmem:[%s7706_s17 + $0x1940] sm:$0xff] %v4018_v57  ;;  %v4020_v1 = vmul.f32 0.4342945, %v2783_v58  ;;  %v2787_v2 = vmul.f32 0.6931472, %v7041_v60  ;;  %7068 = vlog2.f32 %v964_v55  ;;  %v980_v55 = vld [vmem:[%s7677_s30 + $0x1a50] sm:$0xff] }
 0x371   : > { %v7045_v4 = vpop.eup %7044  ;;  %5043 = vst [vmem:[%s7706_s17 + $0x1948] sm:$0xff] %v4019_v61  ;;  %v4021_v5 = vmul.f32 0.4342945, %v2785_v62  ;;  %v2789_v6 = vmul.f32 0.6931472, %v7043_v0  ;;  %7070 = vlog2.f32 %v965_v59  ;;  %v981_v59 = vld [vmem:[%s7677_s30 + $0x1a58] sm:$0xff] }
 0x372   : > { %v7047_v8 = vpop.eup %7046  ;;  %5044 = vst [vmem:[%s7706_s17 + $0x1950] sm:$0xff] %v4020_v1  ;;  %v4022_v9 = vmul.f32 0.4342945, %v2787_v2  ;;  %v2791_v10 = vmul.f32 0.6931472, %v7045_v4  ;;  %7072 = vlog2.f32 %v966_v63  ;;  %v982_v63 = vld [vmem:[%s7677_s30 + $0x1a60] sm:$0xff] }
 0x373   : > { %v7049_v12 = vpop.eup %7048  ;;  %5045 = vst [vmem:[%s7706_s17 + $0x1958] sm:$0xff] %v4021_v5  ;;  %v4023_v13 = vmul.f32 0.4342945, %v2789_v6  ;;  %v2793_v14 = vmul.f32 0.6931472, %v7047_v8  ;;  %7074 = vlog2.f32 %v967_v3  ;;  %v983_v3 = vld [vmem:[%s7677_s30 + $0x1a68] sm:$0xff] }
 0x374   : > { %v7051_v16 = vpop.eup %7050  ;;  %5046 = vst [vmem:[%s7706_s17 + $0x1960] sm:$0xff] %v4022_v9  ;;  %v4024_v17 = vmul.f32 0.4342945, %v2791_v10  ;;  %v2795_v18 = vmul.f32 0.6931472, %v7049_v12  ;;  %7076 = vlog2.f32 %v968_v7  ;;  %v984_v7 = vld [vmem:[%s7677_s30 + $0x1a70] sm:$0xff] }
 0x375   : > { %v7053_v20 = vpop.eup %7052  ;;  %5047 = vst [vmem:[%s7706_s17 + $0x1968] sm:$0xff] %v4023_v13  ;;  %v4025_v21 = vmul.f32 0.4342945, %v2793_v14  ;;  %v2797_v22 = vmul.f32 0.6931472, %v7051_v16  ;;  %7078 = vlog2.f32 %v969_v11  ;;  %v985_v11 = vld [vmem:[%s7677_s30 + $0x1a78] sm:$0xff] }
 0x376   : > { %v7055_v24 = vpop.eup %7054  ;;  %5048 = vst [vmem:[%s7706_s17 + $0x1970] sm:$0xff] %v4024_v17  ;;  %v4026_v25 = vmul.f32 0.4342945, %v2795_v18  ;;  %v2799_v26 = vmul.f32 0.6931472, %v7053_v20  ;;  %7080 = vlog2.f32 %v970_v15  ;;  %v986_v15 = vld [vmem:[%s7677_s30 + $0x1a80] sm:$0xff] }
 0x377   : > { %v7057_v28 = vpop.eup %7056  ;;  %5049 = vst [vmem:[%s7706_s17 + $0x1978] sm:$0xff] %v4025_v21  ;;  %v4027_v29 = vmul.f32 0.4342945, %v2797_v22  ;;  %v2801_v30 = vmul.f32 0.6931472, %v7055_v24  ;;  %7082 = vlog2.f32 %v971_v19  ;;  %v987_v19 = vld [vmem:[%s7677_s30 + $0x1a88] sm:$0xff] }
 0x378   : > { %v7059_v32 = vpop.eup %7058  ;;  %5050 = vst [vmem:[%s7706_s17 + $0x1980] sm:$0xff] %v4026_v25  ;;  %v4028_v33 = vmul.f32 0.4342945, %v2799_v26  ;;  %v2803_v34 = vmul.f32 0.6931472, %v7057_v28  ;;  %7084 = vlog2.f32 %v972_v23  ;;  %v988_v23 = vld [vmem:[%s7677_s30 + $0x1a90] sm:$0xff] }
 0x379   : > { %v7061_v36 = vpop.eup %7060  ;;  %5051 = vst [vmem:[%s7706_s17 + $0x1988] sm:$0xff] %v4027_v29  ;;  %v4029_v37 = vmul.f32 0.4342945, %v2801_v30  ;;  %v2805_v38 = vmul.f32 0.6931472, %v7059_v32  ;;  %7086 = vlog2.f32 %v973_v27  ;;  %v989_v27 = vld [vmem:[%s7677_s30 + $0x1a98] sm:$0xff] }
 0x37a   : > { %v7063_v40 = vpop.eup %7062  ;;  %5052 = vst [vmem:[%s7706_s17 + $0x1990] sm:$0xff] %v4028_v33  ;;  %v4030_v41 = vmul.f32 0.4342945, %v2803_v34  ;;  %v2807_v42 = vmul.f32 0.6931472, %v7061_v36  ;;  %7088 = vlog2.f32 %v974_v31  ;;  %v990_v31 = vld [vmem:[%s7677_s30 + $0x1aa0] sm:$0xff] }
 0x37b   : > { %v7065_v44 = vpop.eup %7064  ;;  %5053 = vst [vmem:[%s7706_s17 + $0x1998] sm:$0xff] %v4029_v37  ;;  %v4031_v45 = vmul.f32 0.4342945, %v2805_v38  ;;  %v2809_v46 = vmul.f32 0.6931472, %v7063_v40  ;;  %7090 = vlog2.f32 %v975_v35  ;;  %v991_v35 = vld [vmem:[%s7677_s30 + $0x1aa8] sm:$0xff] }
 0x37c   : > { %v7067_v48 = vpop.eup %7066  ;;  %5054 = vst [vmem:[%s7706_s17 + $0x19a0] sm:$0xff] %v4030_v41  ;;  %v4032_v49 = vmul.f32 0.4342945, %v2807_v42  ;;  %v2811_v50 = vmul.f32 0.6931472, %v7065_v44  ;;  %7092 = vlog2.f32 %v976_v39  ;;  %v992_v39 = vld [vmem:[%s7677_s30 + $0x1ab0] sm:$0xff] }
 0x37d   : > { %v7069_v52 = vpop.eup %7068  ;;  %5055 = vst [vmem:[%s7706_s17 + $0x19a8] sm:$0xff] %v4031_v45  ;;  %v4033_v53 = vmul.f32 0.4342945, %v2809_v46  ;;  %v2813_v54 = vmul.f32 0.6931472, %v7067_v48  ;;  %7094 = vlog2.f32 %v977_v43  ;;  %v993_v43 = vld [vmem:[%s7677_s30 + $0x1ab8] sm:$0xff] }
 0x37e   : > { %v7071_v56 = vpop.eup %7070  ;;  %5056 = vst [vmem:[%s7706_s17 + $0x19b0] sm:$0xff] %v4032_v49  ;;  %v4034_v57 = vmul.f32 0.4342945, %v2811_v50  ;;  %v2815_v58 = vmul.f32 0.6931472, %v7069_v52  ;;  %7096 = vlog2.f32 %v978_v47  ;;  %v994_v47 = vld [vmem:[%s7677_s30 + $0x1ac0] sm:$0xff] }
 0x37f   : > { %v7073_v60 = vpop.eup %7072  ;;  %5057 = vst [vmem:[%s7706_s17 + $0x19b8] sm:$0xff] %v4033_v53  ;;  %v4035_v61 = vmul.f32 0.4342945, %v2813_v54  ;;  %v2817_v62 = vmul.f32 0.6931472, %v7071_v56  ;;  %7098 = vlog2.f32 %v979_v51  ;;  %v995_v51 = vld [vmem:[%s7677_s30 + $0x1ac8] sm:$0xff] }
 0x380   : > { %v7075_v0 = vpop.eup %7074  ;;  %5058 = vst [vmem:[%s7706_s17 + $0x19c0] sm:$0xff] %v4034_v57  ;;  %v4036_v1 = vmul.f32 0.4342945, %v2815_v58  ;;  %v2819_v2 = vmul.f32 0.6931472, %v7073_v60  ;;  %7100 = vlog2.f32 %v980_v55  ;;  %v996_v55 = vld [vmem:[%s7677_s30 + $0x1ad0] sm:$0xff] }
 0x381   : > { %v7077_v4 = vpop.eup %7076  ;;  %5059 = vst [vmem:[%s7706_s17 + $0x19c8] sm:$0xff] %v4035_v61  ;;  %v4037_v5 = vmul.f32 0.4342945, %v2817_v62  ;;  %v2821_v6 = vmul.f32 0.6931472, %v7075_v0  ;;  %7102 = vlog2.f32 %v981_v59  ;;  %v997_v59 = vld [vmem:[%s7677_s30 + $0x1ad8] sm:$0xff] }
 0x382   : > { %v7079_v8 = vpop.eup %7078  ;;  %5060 = vst [vmem:[%s7706_s17 + $0x19d0] sm:$0xff] %v4036_v1  ;;  %v4038_v9 = vmul.f32 0.4342945, %v2819_v2  ;;  %v2823_v10 = vmul.f32 0.6931472, %v7077_v4  ;;  %7104 = vlog2.f32 %v982_v63  ;;  %v998_v63 = vld [vmem:[%s7677_s30 + $0x1ae0] sm:$0xff] }
 0x383   : > { %v7081_v12 = vpop.eup %7080  ;;  %5061 = vst [vmem:[%s7706_s17 + $0x19d8] sm:$0xff] %v4037_v5  ;;  %v4039_v13 = vmul.f32 0.4342945, %v2821_v6  ;;  %v2825_v14 = vmul.f32 0.6931472, %v7079_v8  ;;  %7106 = vlog2.f32 %v983_v3  ;;  %v999_v3 = vld [vmem:[%s7677_s30 + $0x1ae8] sm:$0xff] }
 0x384   : > { %v7083_v16 = vpop.eup %7082  ;;  %5062 = vst [vmem:[%s7706_s17 + $0x19e0] sm:$0xff] %v4038_v9  ;;  %v4040_v17 = vmul.f32 0.4342945, %v2823_v10  ;;  %v2827_v18 = vmul.f32 0.6931472, %v7081_v12  ;;  %7108 = vlog2.f32 %v984_v7  ;;  %v1000_v7 = vld [vmem:[%s7677_s30 + $0x1af0] sm:$0xff] }
 0x385   : > { %v7085_v20 = vpop.eup %7084  ;;  %5063 = vst [vmem:[%s7706_s17 + $0x19e8] sm:$0xff] %v4039_v13  ;;  %v4041_v21 = vmul.f32 0.4342945, %v2825_v14  ;;  %v2829_v22 = vmul.f32 0.6931472, %v7083_v16  ;;  %7110 = vlog2.f32 %v985_v11  ;;  %v1001_v11 = vld [vmem:[%s7677_s30 + $0x1af8] sm:$0xff] }
 0x386   : > { %v7087_v24 = vpop.eup %7086  ;;  %5064 = vst [vmem:[%s7706_s17 + $0x19f0] sm:$0xff] %v4040_v17  ;;  %v4042_v25 = vmul.f32 0.4342945, %v2827_v18  ;;  %v2831_v26 = vmul.f32 0.6931472, %v7085_v20  ;;  %7112 = vlog2.f32 %v986_v15  ;;  %v1002_v15 = vld [vmem:[%s7677_s30 + $0x1b00] sm:$0xff] }
 0x387   : > { %v7089_v28 = vpop.eup %7088  ;;  %5065 = vst [vmem:[%s7706_s17 + $0x19f8] sm:$0xff] %v4041_v21  ;;  %v4043_v29 = vmul.f32 0.4342945, %v2829_v22  ;;  %v2833_v30 = vmul.f32 0.6931472, %v7087_v24  ;;  %7114 = vlog2.f32 %v987_v19  ;;  %v1003_v19 = vld [vmem:[%s7677_s30 + $0x1b08] sm:$0xff] }
 0x388   : > { %v7091_v32 = vpop.eup %7090  ;;  %5066 = vst [vmem:[%s7706_s17 + $0x1a00] sm:$0xff] %v4042_v25  ;;  %v4044_v33 = vmul.f32 0.4342945, %v2831_v26  ;;  %v2835_v34 = vmul.f32 0.6931472, %v7089_v28  ;;  %7116 = vlog2.f32 %v988_v23  ;;  %v1004_v23 = vld [vmem:[%s7677_s30 + $0x1b10] sm:$0xff] }
 0x389   : > { %v7093_v36 = vpop.eup %7092  ;;  %5067 = vst [vmem:[%s7706_s17 + $0x1a08] sm:$0xff] %v4043_v29  ;;  %v4045_v37 = vmul.f32 0.4342945, %v2833_v30  ;;  %v2837_v38 = vmul.f32 0.6931472, %v7091_v32  ;;  %7118 = vlog2.f32 %v989_v27  ;;  %v1005_v27 = vld [vmem:[%s7677_s30 + $0x1b18] sm:$0xff] }
 0x38a   : > { %v7095_v40 = vpop.eup %7094  ;;  %5068 = vst [vmem:[%s7706_s17 + $0x1a10] sm:$0xff] %v4044_v33  ;;  %v4046_v41 = vmul.f32 0.4342945, %v2835_v34  ;;  %v2839_v42 = vmul.f32 0.6931472, %v7093_v36  ;;  %7120 = vlog2.f32 %v990_v31  ;;  %v1006_v31 = vld [vmem:[%s7677_s30 + $0x1b20] sm:$0xff] }
 0x38b   : > { %v7097_v44 = vpop.eup %7096  ;;  %5069 = vst [vmem:[%s7706_s17 + $0x1a18] sm:$0xff] %v4045_v37  ;;  %v4047_v45 = vmul.f32 0.4342945, %v2837_v38  ;;  %v2841_v46 = vmul.f32 0.6931472, %v7095_v40  ;;  %7122 = vlog2.f32 %v991_v35  ;;  %v1007_v35 = vld [vmem:[%s7677_s30 + $0x1b28] sm:$0xff] }
 0x38c   : > { %v7099_v48 = vpop.eup %7098  ;;  %5070 = vst [vmem:[%s7706_s17 + $0x1a20] sm:$0xff] %v4046_v41  ;;  %v4048_v49 = vmul.f32 0.4342945, %v2839_v42  ;;  %v2843_v50 = vmul.f32 0.6931472, %v7097_v44  ;;  %7124 = vlog2.f32 %v992_v39  ;;  %v1008_v39 = vld [vmem:[%s7677_s30 + $0x1b30] sm:$0xff] }
 0x38d   : > { %v7101_v52 = vpop.eup %7100  ;;  %5071 = vst [vmem:[%s7706_s17 + $0x1a28] sm:$0xff] %v4047_v45  ;;  %v4049_v53 = vmul.f32 0.4342945, %v2841_v46  ;;  %v2845_v54 = vmul.f32 0.6931472, %v7099_v48  ;;  %7126 = vlog2.f32 %v993_v43  ;;  %v1009_v43 = vld [vmem:[%s7677_s30 + $0x1b38] sm:$0xff] }
 0x38e   : > { %v7103_v56 = vpop.eup %7102  ;;  %5072 = vst [vmem:[%s7706_s17 + $0x1a30] sm:$0xff] %v4048_v49  ;;  %v4050_v57 = vmul.f32 0.4342945, %v2843_v50  ;;  %v2847_v58 = vmul.f32 0.6931472, %v7101_v52  ;;  %7128 = vlog2.f32 %v994_v47  ;;  %v1010_v47 = vld [vmem:[%s7677_s30 + $0x1b40] sm:$0xff] }
 0x38f   : > { %v7105_v60 = vpop.eup %7104  ;;  %5073 = vst [vmem:[%s7706_s17 + $0x1a38] sm:$0xff] %v4049_v53  ;;  %v4051_v61 = vmul.f32 0.4342945, %v2845_v54  ;;  %v2849_v62 = vmul.f32 0.6931472, %v7103_v56  ;;  %7130 = vlog2.f32 %v995_v51  ;;  %v1011_v51 = vld [vmem:[%s7677_s30 + $0x1b48] sm:$0xff] }
 0x390   : > { %v7107_v0 = vpop.eup %7106  ;;  %5074 = vst [vmem:[%s7706_s17 + $0x1a40] sm:$0xff] %v4050_v57  ;;  %v4052_v1 = vmul.f32 0.4342945, %v2847_v58  ;;  %v2851_v2 = vmul.f32 0.6931472, %v7105_v60  ;;  %7132 = vlog2.f32 %v996_v55  ;;  %v1012_v55 = vld [vmem:[%s7677_s30 + $0x1b50] sm:$0xff] }
 0x391   : > { %v7109_v4 = vpop.eup %7108  ;;  %5075 = vst [vmem:[%s7706_s17 + $0x1a48] sm:$0xff] %v4051_v61  ;;  %v4053_v5 = vmul.f32 0.4342945, %v2849_v62  ;;  %v2853_v6 = vmul.f32 0.6931472, %v7107_v0  ;;  %7134 = vlog2.f32 %v997_v59  ;;  %v1013_v59 = vld [vmem:[%s7677_s30 + $0x1b58] sm:$0xff] }
 0x392   : > { %v7111_v8 = vpop.eup %7110  ;;  %5076 = vst [vmem:[%s7706_s17 + $0x1a50] sm:$0xff] %v4052_v1  ;;  %v4054_v9 = vmul.f32 0.4342945, %v2851_v2  ;;  %v2855_v10 = vmul.f32 0.6931472, %v7109_v4  ;;  %7136 = vlog2.f32 %v998_v63  ;;  %v1014_v63 = vld [vmem:[%s7677_s30 + $0x1b60] sm:$0xff] }
 0x393   : > { %v7113_v12 = vpop.eup %7112  ;;  %5077 = vst [vmem:[%s7706_s17 + $0x1a58] sm:$0xff] %v4053_v5  ;;  %v4055_v13 = vmul.f32 0.4342945, %v2853_v6  ;;  %v2857_v14 = vmul.f32 0.6931472, %v7111_v8  ;;  %7138 = vlog2.f32 %v999_v3  ;;  %v1015_v3 = vld [vmem:[%s7677_s30 + $0x1b68] sm:$0xff] }
 0x394   : > { %v7115_v16 = vpop.eup %7114  ;;  %5078 = vst [vmem:[%s7706_s17 + $0x1a60] sm:$0xff] %v4054_v9  ;;  %v4056_v17 = vmul.f32 0.4342945, %v2855_v10  ;;  %v2859_v18 = vmul.f32 0.6931472, %v7113_v12  ;;  %7140 = vlog2.f32 %v1000_v7  ;;  %v1016_v7 = vld [vmem:[%s7677_s30 + $0x1b70] sm:$0xff] }
 0x395   : > { %v7117_v20 = vpop.eup %7116  ;;  %5079 = vst [vmem:[%s7706_s17 + $0x1a68] sm:$0xff] %v4055_v13  ;;  %v4057_v21 = vmul.f32 0.4342945, %v2857_v14  ;;  %v2861_v22 = vmul.f32 0.6931472, %v7115_v16  ;;  %7142 = vlog2.f32 %v1001_v11  ;;  %v1017_v11 = vld [vmem:[%s7677_s30 + $0x1b78] sm:$0xff] }
 0x396   : > { %v7119_v24 = vpop.eup %7118  ;;  %5080 = vst [vmem:[%s7706_s17 + $0x1a70] sm:$0xff] %v4056_v17  ;;  %v4058_v25 = vmul.f32 0.4342945, %v2859_v18  ;;  %v2863_v26 = vmul.f32 0.6931472, %v7117_v20  ;;  %7144 = vlog2.f32 %v1002_v15  ;;  %v1018_v15 = vld [vmem:[%s7677_s30 + $0x1b80] sm:$0xff] }
 0x397   : > { %v7121_v28 = vpop.eup %7120  ;;  %5081 = vst [vmem:[%s7706_s17 + $0x1a78] sm:$0xff] %v4057_v21  ;;  %v4059_v29 = vmul.f32 0.4342945, %v2861_v22  ;;  %v2865_v30 = vmul.f32 0.6931472, %v7119_v24  ;;  %7146 = vlog2.f32 %v1003_v19  ;;  %v1019_v19 = vld [vmem:[%s7677_s30 + $0x1b88] sm:$0xff] }
 0x398   : > { %v7123_v32 = vpop.eup %7122  ;;  %5082 = vst [vmem:[%s7706_s17 + $0x1a80] sm:$0xff] %v4058_v25  ;;  %v4060_v33 = vmul.f32 0.4342945, %v2863_v26  ;;  %v2867_v34 = vmul.f32 0.6931472, %v7121_v28  ;;  %7148 = vlog2.f32 %v1004_v23  ;;  %v1020_v23 = vld [vmem:[%s7677_s30 + $0x1b90] sm:$0xff] }
 0x399   : > { %v7125_v36 = vpop.eup %7124  ;;  %5083 = vst [vmem:[%s7706_s17 + $0x1a88] sm:$0xff] %v4059_v29  ;;  %v4061_v37 = vmul.f32 0.4342945, %v2865_v30  ;;  %v2869_v38 = vmul.f32 0.6931472, %v7123_v32  ;;  %7150 = vlog2.f32 %v1005_v27  ;;  %v1021_v27 = vld [vmem:[%s7677_s30 + $0x1b98] sm:$0xff] }
 0x39a   : > { %v7127_v40 = vpop.eup %7126  ;;  %5084 = vst [vmem:[%s7706_s17 + $0x1a90] sm:$0xff] %v4060_v33  ;;  %v4062_v41 = vmul.f32 0.4342945, %v2867_v34  ;;  %v2871_v42 = vmul.f32 0.6931472, %v7125_v36  ;;  %7152 = vlog2.f32 %v1006_v31  ;;  %v1022_v31 = vld [vmem:[%s7677_s30 + $0x1ba0] sm:$0xff] }
 0x39b   : > { %v7129_v44 = vpop.eup %7128  ;;  %5085 = vst [vmem:[%s7706_s17 + $0x1a98] sm:$0xff] %v4061_v37  ;;  %v4063_v45 = vmul.f32 0.4342945, %v2869_v38  ;;  %v2873_v46 = vmul.f32 0.6931472, %v7127_v40  ;;  %7154 = vlog2.f32 %v1007_v35  ;;  %v1023_v35 = vld [vmem:[%s7677_s30 + $0x1ba8] sm:$0xff] }
 0x39c   : > { %v7131_v48 = vpop.eup %7130  ;;  %5086 = vst [vmem:[%s7706_s17 + $0x1aa0] sm:$0xff] %v4062_v41  ;;  %v4064_v49 = vmul.f32 0.4342945, %v2871_v42  ;;  %v2875_v50 = vmul.f32 0.6931472, %v7129_v44  ;;  %7156 = vlog2.f32 %v1008_v39  ;;  %v1024_v39 = vld [vmem:[%s7677_s30 + $0x1bb0] sm:$0xff] }
 0x39d   : > { %v7133_v52 = vpop.eup %7132  ;;  %5087 = vst [vmem:[%s7706_s17 + $0x1aa8] sm:$0xff] %v4063_v45  ;;  %v4065_v53 = vmul.f32 0.4342945, %v2873_v46  ;;  %v2877_v54 = vmul.f32 0.6931472, %v7131_v48  ;;  %7158 = vlog2.f32 %v1009_v43  ;;  %v1025_v43 = vld [vmem:[%s7677_s30 + $0x1bb8] sm:$0xff] }
 0x39e   : > { %v7135_v56 = vpop.eup %7134  ;;  %5088 = vst [vmem:[%s7706_s17 + $0x1ab0] sm:$0xff] %v4064_v49  ;;  %v4066_v57 = vmul.f32 0.4342945, %v2875_v50  ;;  %v2879_v58 = vmul.f32 0.6931472, %v7133_v52  ;;  %7160 = vlog2.f32 %v1010_v47  ;;  %v1026_v47 = vld [vmem:[%s7677_s30 + $0x1bc0] sm:$0xff] }
 0x39f   : > { %v7137_v60 = vpop.eup %7136  ;;  %5089 = vst [vmem:[%s7706_s17 + $0x1ab8] sm:$0xff] %v4065_v53  ;;  %v4067_v61 = vmul.f32 0.4342945, %v2877_v54  ;;  %v2881_v62 = vmul.f32 0.6931472, %v7135_v56  ;;  %7162 = vlog2.f32 %v1011_v51  ;;  %v1027_v51 = vld [vmem:[%s7677_s30 + $0x1bc8] sm:$0xff] }
 0x3a0   : > { %v7139_v0 = vpop.eup %7138  ;;  %5090 = vst [vmem:[%s7706_s17 + $0x1ac0] sm:$0xff] %v4066_v57  ;;  %v4068_v1 = vmul.f32 0.4342945, %v2879_v58  ;;  %v2883_v2 = vmul.f32 0.6931472, %v7137_v60  ;;  %7164 = vlog2.f32 %v1012_v55  ;;  %v1028_v55 = vld [vmem:[%s7677_s30 + $0x1bd0] sm:$0xff] }
 0x3a1   : > { %v7141_v4 = vpop.eup %7140  ;;  %5091 = vst [vmem:[%s7706_s17 + $0x1ac8] sm:$0xff] %v4067_v61  ;;  %v4069_v5 = vmul.f32 0.4342945, %v2881_v62  ;;  %v2885_v6 = vmul.f32 0.6931472, %v7139_v0  ;;  %7166 = vlog2.f32 %v1013_v59  ;;  %v1029_v59 = vld [vmem:[%s7677_s30 + $0x1bd8] sm:$0xff] }
 0x3a2   : > { %v7143_v8 = vpop.eup %7142  ;;  %5092 = vst [vmem:[%s7706_s17 + $0x1ad0] sm:$0xff] %v4068_v1  ;;  %v4070_v9 = vmul.f32 0.4342945, %v2883_v2  ;;  %v2887_v10 = vmul.f32 0.6931472, %v7141_v4  ;;  %7168 = vlog2.f32 %v1014_v63  ;;  %v1030_v63 = vld [vmem:[%s7677_s30 + $0x1be0] sm:$0xff] }
 0x3a3   : > { %v7145_v12 = vpop.eup %7144  ;;  %5093 = vst [vmem:[%s7706_s17 + $0x1ad8] sm:$0xff] %v4069_v5  ;;  %v4071_v13 = vmul.f32 0.4342945, %v2885_v6  ;;  %v2889_v14 = vmul.f32 0.6931472, %v7143_v8  ;;  %7170 = vlog2.f32 %v1015_v3  ;;  %v1031_v3 = vld [vmem:[%s7677_s30 + $0x1be8] sm:$0xff] }
 0x3a4   : > { %v7147_v16 = vpop.eup %7146  ;;  %5094 = vst [vmem:[%s7706_s17 + $0x1ae0] sm:$0xff] %v4070_v9  ;;  %v4072_v17 = vmul.f32 0.4342945, %v2887_v10  ;;  %v2891_v18 = vmul.f32 0.6931472, %v7145_v12  ;;  %7172 = vlog2.f32 %v1016_v7  ;;  %v1032_v7 = vld [vmem:[%s7677_s30 + $0x1bf0] sm:$0xff] }
 0x3a5   : > { %v7149_v20 = vpop.eup %7148  ;;  %5095 = vst [vmem:[%s7706_s17 + $0x1ae8] sm:$0xff] %v4071_v13  ;;  %v4073_v21 = vmul.f32 0.4342945, %v2889_v14  ;;  %v2893_v22 = vmul.f32 0.6931472, %v7147_v16  ;;  %7174 = vlog2.f32 %v1017_v11  ;;  %v1033_v11 = vld [vmem:[%s7677_s30 + $0x1bf8] sm:$0xff] }
 0x3a6   : > { %v7151_v24 = vpop.eup %7150  ;;  %5096 = vst [vmem:[%s7706_s17 + $0x1af0] sm:$0xff] %v4072_v17  ;;  %v4074_v25 = vmul.f32 0.4342945, %v2891_v18  ;;  %v2895_v26 = vmul.f32 0.6931472, %v7149_v20  ;;  %7176 = vlog2.f32 %v1018_v15  ;;  %v1034_v15 = vld [vmem:[%s7677_s30 + $0x1c00] sm:$0xff] }
 0x3a7   : > { %v7153_v28 = vpop.eup %7152  ;;  %5097 = vst [vmem:[%s7706_s17 + $0x1af8] sm:$0xff] %v4073_v21  ;;  %v4075_v29 = vmul.f32 0.4342945, %v2893_v22  ;;  %v2897_v30 = vmul.f32 0.6931472, %v7151_v24  ;;  %7178 = vlog2.f32 %v1019_v19  ;;  %v1035_v19 = vld [vmem:[%s7677_s30 + $0x1c08] sm:$0xff] }
 0x3a8   : > { %v7155_v32 = vpop.eup %7154  ;;  %5098 = vst [vmem:[%s7706_s17 + $0x1b00] sm:$0xff] %v4074_v25  ;;  %v4076_v33 = vmul.f32 0.4342945, %v2895_v26  ;;  %v2899_v34 = vmul.f32 0.6931472, %v7153_v28  ;;  %7180 = vlog2.f32 %v1020_v23  ;;  %v1036_v23 = vld [vmem:[%s7677_s30 + $0x1c10] sm:$0xff] }
 0x3a9   : > { %v7157_v36 = vpop.eup %7156  ;;  %5099 = vst [vmem:[%s7706_s17 + $0x1b08] sm:$0xff] %v4075_v29  ;;  %v4077_v37 = vmul.f32 0.4342945, %v2897_v30  ;;  %v2901_v38 = vmul.f32 0.6931472, %v7155_v32  ;;  %7182 = vlog2.f32 %v1021_v27  ;;  %v1037_v27 = vld [vmem:[%s7677_s30 + $0x1c18] sm:$0xff] }
 0x3aa   : > { %v7159_v40 = vpop.eup %7158  ;;  %5100 = vst [vmem:[%s7706_s17 + $0x1b10] sm:$0xff] %v4076_v33  ;;  %v4078_v41 = vmul.f32 0.4342945, %v2899_v34  ;;  %v2903_v42 = vmul.f32 0.6931472, %v7157_v36  ;;  %7184 = vlog2.f32 %v1022_v31  ;;  %v1038_v31 = vld [vmem:[%s7677_s30 + $0x1c20] sm:$0xff] }
 0x3ab   : > { %v7161_v44 = vpop.eup %7160  ;;  %5101 = vst [vmem:[%s7706_s17 + $0x1b18] sm:$0xff] %v4077_v37  ;;  %v4079_v45 = vmul.f32 0.4342945, %v2901_v38  ;;  %v2905_v46 = vmul.f32 0.6931472, %v7159_v40  ;;  %7186 = vlog2.f32 %v1023_v35  ;;  %v1039_v35 = vld [vmem:[%s7677_s30 + $0x1c28] sm:$0xff] }
 0x3ac   : > { %v7163_v48 = vpop.eup %7162  ;;  %5102 = vst [vmem:[%s7706_s17 + $0x1b20] sm:$0xff] %v4078_v41  ;;  %v4080_v49 = vmul.f32 0.4342945, %v2903_v42  ;;  %v2907_v50 = vmul.f32 0.6931472, %v7161_v44  ;;  %7188 = vlog2.f32 %v1024_v39  ;;  %v1040_v39 = vld [vmem:[%s7677_s30 + $0x1c30] sm:$0xff] }
 0x3ad   : > { %v7165_v52 = vpop.eup %7164  ;;  %5103 = vst [vmem:[%s7706_s17 + $0x1b28] sm:$0xff] %v4079_v45  ;;  %v4081_v53 = vmul.f32 0.4342945, %v2905_v46  ;;  %v2909_v54 = vmul.f32 0.6931472, %v7163_v48  ;;  %7190 = vlog2.f32 %v1025_v43  ;;  %v1041_v43 = vld [vmem:[%s7677_s30 + $0x1c38] sm:$0xff] }
 0x3ae   : > { %v7167_v56 = vpop.eup %7166  ;;  %5104 = vst [vmem:[%s7706_s17 + $0x1b30] sm:$0xff] %v4080_v49  ;;  %v4082_v57 = vmul.f32 0.4342945, %v2907_v50  ;;  %v2911_v58 = vmul.f32 0.6931472, %v7165_v52  ;;  %7192 = vlog2.f32 %v1026_v47  ;;  %v1042_v47 = vld [vmem:[%s7677_s30 + $0x1c40] sm:$0xff] }
 0x3af   : > { %v7169_v60 = vpop.eup %7168  ;;  %5105 = vst [vmem:[%s7706_s17 + $0x1b38] sm:$0xff] %v4081_v53  ;;  %v4083_v61 = vmul.f32 0.4342945, %v2909_v54  ;;  %v2913_v62 = vmul.f32 0.6931472, %v7167_v56  ;;  %7194 = vlog2.f32 %v1027_v51  ;;  %v1043_v51 = vld [vmem:[%s7677_s30 + $0x1c48] sm:$0xff] }
 0x3b0   : > { %v7171_v0 = vpop.eup %7170  ;;  %5106 = vst [vmem:[%s7706_s17 + $0x1b40] sm:$0xff] %v4082_v57  ;;  %v4084_v1 = vmul.f32 0.4342945, %v2911_v58  ;;  %v2915_v2 = vmul.f32 0.6931472, %v7169_v60  ;;  %7196 = vlog2.f32 %v1028_v55  ;;  %v1044_v55 = vld [vmem:[%s7677_s30 + $0x1c50] sm:$0xff] }
 0x3b1   : > { %v7173_v4 = vpop.eup %7172  ;;  %5107 = vst [vmem:[%s7706_s17 + $0x1b48] sm:$0xff] %v4083_v61  ;;  %v4085_v5 = vmul.f32 0.4342945, %v2913_v62  ;;  %v2917_v6 = vmul.f32 0.6931472, %v7171_v0  ;;  %7198 = vlog2.f32 %v1029_v59  ;;  %v1045_v59 = vld [vmem:[%s7677_s30 + $0x1c58] sm:$0xff] }
 0x3b2   : > { %v7175_v8 = vpop.eup %7174  ;;  %5108 = vst [vmem:[%s7706_s17 + $0x1b50] sm:$0xff] %v4084_v1  ;;  %v4086_v9 = vmul.f32 0.4342945, %v2915_v2  ;;  %v2919_v10 = vmul.f32 0.6931472, %v7173_v4  ;;  %7200 = vlog2.f32 %v1030_v63  ;;  %v1046_v63 = vld [vmem:[%s7677_s30 + $0x1c60] sm:$0xff] }
 0x3b3   : > { %v7177_v12 = vpop.eup %7176  ;;  %5109 = vst [vmem:[%s7706_s17 + $0x1b58] sm:$0xff] %v4085_v5  ;;  %v4087_v13 = vmul.f32 0.4342945, %v2917_v6  ;;  %v2921_v14 = vmul.f32 0.6931472, %v7175_v8  ;;  %7202 = vlog2.f32 %v1031_v3  ;;  %v1047_v3 = vld [vmem:[%s7677_s30 + $0x1c68] sm:$0xff] }
 0x3b4   : > { %v7179_v16 = vpop.eup %7178  ;;  %5110 = vst [vmem:[%s7706_s17 + $0x1b60] sm:$0xff] %v4086_v9  ;;  %v4088_v17 = vmul.f32 0.4342945, %v2919_v10  ;;  %v2923_v18 = vmul.f32 0.6931472, %v7177_v12  ;;  %7204 = vlog2.f32 %v1032_v7  ;;  %v1048_v7 = vld [vmem:[%s7677_s30 + $0x1c70] sm:$0xff] }
 0x3b5   : > { %v7181_v20 = vpop.eup %7180  ;;  %5111 = vst [vmem:[%s7706_s17 + $0x1b68] sm:$0xff] %v4087_v13  ;;  %v4089_v21 = vmul.f32 0.4342945, %v2921_v14  ;;  %v2925_v22 = vmul.f32 0.6931472, %v7179_v16  ;;  %7206 = vlog2.f32 %v1033_v11  ;;  %v1049_v11 = vld [vmem:[%s7677_s30 + $0x1c78] sm:$0xff] }
 0x3b6   : > { %v7183_v24 = vpop.eup %7182  ;;  %5112 = vst [vmem:[%s7706_s17 + $0x1b70] sm:$0xff] %v4088_v17  ;;  %v4090_v25 = vmul.f32 0.4342945, %v2923_v18  ;;  %v2927_v26 = vmul.f32 0.6931472, %v7181_v20  ;;  %7208 = vlog2.f32 %v1034_v15  ;;  %v1050_v15 = vld [vmem:[%s7677_s30 + $0x1c80] sm:$0xff] }
 0x3b7   : > { %v7185_v28 = vpop.eup %7184  ;;  %5113 = vst [vmem:[%s7706_s17 + $0x1b78] sm:$0xff] %v4089_v21  ;;  %v4091_v29 = vmul.f32 0.4342945, %v2925_v22  ;;  %v2929_v30 = vmul.f32 0.6931472, %v7183_v24  ;;  %7210 = vlog2.f32 %v1035_v19  ;;  %v1051_v19 = vld [vmem:[%s7677_s30 + $0x1c88] sm:$0xff] }
 0x3b8   : > { %v7187_v32 = vpop.eup %7186  ;;  %5114 = vst [vmem:[%s7706_s17 + $0x1b80] sm:$0xff] %v4090_v25  ;;  %v4092_v33 = vmul.f32 0.4342945, %v2927_v26  ;;  %v2931_v34 = vmul.f32 0.6931472, %v7185_v28  ;;  %7212 = vlog2.f32 %v1036_v23  ;;  %v1052_v23 = vld [vmem:[%s7677_s30 + $0x1c90] sm:$0xff] }
 0x3b9   : > { %v7189_v36 = vpop.eup %7188  ;;  %5115 = vst [vmem:[%s7706_s17 + $0x1b88] sm:$0xff] %v4091_v29  ;;  %v4093_v37 = vmul.f32 0.4342945, %v2929_v30  ;;  %v2933_v38 = vmul.f32 0.6931472, %v7187_v32  ;;  %7214 = vlog2.f32 %v1037_v27  ;;  %v1053_v27 = vld [vmem:[%s7677_s30 + $0x1c98] sm:$0xff] }
 0x3ba   : > { %v7191_v40 = vpop.eup %7190  ;;  %5116 = vst [vmem:[%s7706_s17 + $0x1b90] sm:$0xff] %v4092_v33  ;;  %v4094_v41 = vmul.f32 0.4342945, %v2931_v34  ;;  %v2935_v42 = vmul.f32 0.6931472, %v7189_v36  ;;  %7216 = vlog2.f32 %v1038_v31  ;;  %v1054_v31 = vld [vmem:[%s7677_s30 + $0x1ca0] sm:$0xff] }
 0x3bb   : > { %v7193_v44 = vpop.eup %7192  ;;  %5117 = vst [vmem:[%s7706_s17 + $0x1b98] sm:$0xff] %v4093_v37  ;;  %v4095_v45 = vmul.f32 0.4342945, %v2933_v38  ;;  %v2937_v46 = vmul.f32 0.6931472, %v7191_v40  ;;  %7218 = vlog2.f32 %v1039_v35  ;;  %v1055_v35 = vld [vmem:[%s7677_s30 + $0x1ca8] sm:$0xff] }
 0x3bc   : > { %v7195_v48 = vpop.eup %7194  ;;  %5118 = vst [vmem:[%s7706_s17 + $0x1ba0] sm:$0xff] %v4094_v41  ;;  %v4096_v49 = vmul.f32 0.4342945, %v2935_v42  ;;  %v2939_v50 = vmul.f32 0.6931472, %v7193_v44  ;;  %7220 = vlog2.f32 %v1040_v39  ;;  %v1056_v39 = vld [vmem:[%s7677_s30 + $0x1cb0] sm:$0xff] }
 0x3bd   : > { %v7197_v52 = vpop.eup %7196  ;;  %5119 = vst [vmem:[%s7706_s17 + $0x1ba8] sm:$0xff] %v4095_v45  ;;  %v4097_v53 = vmul.f32 0.4342945, %v2937_v46  ;;  %v2941_v54 = vmul.f32 0.6931472, %v7195_v48  ;;  %7222 = vlog2.f32 %v1041_v43  ;;  %v1057_v43 = vld [vmem:[%s7677_s30 + $0x1cb8] sm:$0xff] }
 0x3be   : > { %v7199_v56 = vpop.eup %7198  ;;  %5120 = vst [vmem:[%s7706_s17 + $0x1bb0] sm:$0xff] %v4096_v49  ;;  %v4098_v57 = vmul.f32 0.4342945, %v2939_v50  ;;  %v2943_v58 = vmul.f32 0.6931472, %v7197_v52  ;;  %7224 = vlog2.f32 %v1042_v47  ;;  %v1058_v47 = vld [vmem:[%s7677_s30 + $0x1cc0] sm:$0xff] }
 0x3bf   : > { %v7201_v60 = vpop.eup %7200  ;;  %5121 = vst [vmem:[%s7706_s17 + $0x1bb8] sm:$0xff] %v4097_v53  ;;  %v4099_v61 = vmul.f32 0.4342945, %v2941_v54  ;;  %v2945_v62 = vmul.f32 0.6931472, %v7199_v56  ;;  %7226 = vlog2.f32 %v1043_v51  ;;  %v1059_v51 = vld [vmem:[%s7677_s30 + $0x1cc8] sm:$0xff] }
 0x3c0   : > { %v7203_v0 = vpop.eup %7202  ;;  %5122 = vst [vmem:[%s7706_s17 + $0x1bc0] sm:$0xff] %v4098_v57  ;;  %v4100_v1 = vmul.f32 0.4342945, %v2943_v58  ;;  %v2947_v2 = vmul.f32 0.6931472, %v7201_v60  ;;  %7228 = vlog2.f32 %v1044_v55  ;;  %v1060_v55 = vld [vmem:[%s7677_s30 + $0x1cd0] sm:$0xff] }
 0x3c1   : > { %v7205_v4 = vpop.eup %7204  ;;  %5123 = vst [vmem:[%s7706_s17 + $0x1bc8] sm:$0xff] %v4099_v61  ;;  %v4101_v5 = vmul.f32 0.4342945, %v2945_v62  ;;  %v2949_v6 = vmul.f32 0.6931472, %v7203_v0  ;;  %7230 = vlog2.f32 %v1045_v59  ;;  %v1061_v59 = vld [vmem:[%s7677_s30 + $0x1cd8] sm:$0xff] }
 0x3c2   : > { %v7207_v8 = vpop.eup %7206  ;;  %5124 = vst [vmem:[%s7706_s17 + $0x1bd0] sm:$0xff] %v4100_v1  ;;  %v4102_v9 = vmul.f32 0.4342945, %v2947_v2  ;;  %v2951_v10 = vmul.f32 0.6931472, %v7205_v4  ;;  %7232 = vlog2.f32 %v1046_v63  ;;  %v1062_v63 = vld [vmem:[%s7677_s30 + $0x1ce0] sm:$0xff] }
 0x3c3   : > { %v7209_v12 = vpop.eup %7208  ;;  %5125 = vst [vmem:[%s7706_s17 + $0x1bd8] sm:$0xff] %v4101_v5  ;;  %v4103_v13 = vmul.f32 0.4342945, %v2949_v6  ;;  %v2953_v14 = vmul.f32 0.6931472, %v7207_v8  ;;  %7234 = vlog2.f32 %v1047_v3  ;;  %v1063_v3 = vld [vmem:[%s7677_s30 + $0x1ce8] sm:$0xff] }
 0x3c4   : > { %v7211_v16 = vpop.eup %7210  ;;  %5126 = vst [vmem:[%s7706_s17 + $0x1be0] sm:$0xff] %v4102_v9  ;;  %v4104_v17 = vmul.f32 0.4342945, %v2951_v10  ;;  %v2955_v18 = vmul.f32 0.6931472, %v7209_v12  ;;  %7236 = vlog2.f32 %v1048_v7  ;;  %v1064_v7 = vld [vmem:[%s7677_s30 + $0x1cf0] sm:$0xff] }
 0x3c5   : > { %v7213_v20 = vpop.eup %7212  ;;  %5127 = vst [vmem:[%s7706_s17 + $0x1be8] sm:$0xff] %v4103_v13  ;;  %v4105_v21 = vmul.f32 0.4342945, %v2953_v14  ;;  %v2957_v22 = vmul.f32 0.6931472, %v7211_v16  ;;  %7238 = vlog2.f32 %v1049_v11  ;;  %v1065_v11 = vld [vmem:[%s7677_s30 + $0x1cf8] sm:$0xff] }
 0x3c6   : > { %v7215_v24 = vpop.eup %7214  ;;  %5128 = vst [vmem:[%s7706_s17 + $0x1bf0] sm:$0xff] %v4104_v17  ;;  %v4106_v25 = vmul.f32 0.4342945, %v2955_v18  ;;  %v2959_v26 = vmul.f32 0.6931472, %v7213_v20  ;;  %7240 = vlog2.f32 %v1050_v15  ;;  %v1066_v15 = vld [vmem:[%s7677_s30 + $0x1d00] sm:$0xff] }
 0x3c7   : > { %v7217_v28 = vpop.eup %7216  ;;  %5129 = vst [vmem:[%s7706_s17 + $0x1bf8] sm:$0xff] %v4105_v21  ;;  %v4107_v29 = vmul.f32 0.4342945, %v2957_v22  ;;  %v2961_v30 = vmul.f32 0.6931472, %v7215_v24  ;;  %7242 = vlog2.f32 %v1051_v19  ;;  %v1067_v19 = vld [vmem:[%s7677_s30 + $0x1d08] sm:$0xff] }
 0x3c8   : > { %v7219_v32 = vpop.eup %7218  ;;  %5130 = vst [vmem:[%s7706_s17 + $0x1c00] sm:$0xff] %v4106_v25  ;;  %v4108_v33 = vmul.f32 0.4342945, %v2959_v26  ;;  %v2963_v34 = vmul.f32 0.6931472, %v7217_v28  ;;  %7244 = vlog2.f32 %v1052_v23  ;;  %v1068_v23 = vld [vmem:[%s7677_s30 + $0x1d10] sm:$0xff] }
 0x3c9   : > { %v7221_v36 = vpop.eup %7220  ;;  %5131 = vst [vmem:[%s7706_s17 + $0x1c08] sm:$0xff] %v4107_v29  ;;  %v4109_v37 = vmul.f32 0.4342945, %v2961_v30  ;;  %v2965_v38 = vmul.f32 0.6931472, %v7219_v32  ;;  %7246 = vlog2.f32 %v1053_v27  ;;  %v1069_v27 = vld [vmem:[%s7677_s30 + $0x1d18] sm:$0xff] }
 0x3ca   : > { %v7223_v40 = vpop.eup %7222  ;;  %5132 = vst [vmem:[%s7706_s17 + $0x1c10] sm:$0xff] %v4108_v33  ;;  %v4110_v41 = vmul.f32 0.4342945, %v2963_v34  ;;  %v2967_v42 = vmul.f32 0.6931472, %v7221_v36  ;;  %7248 = vlog2.f32 %v1054_v31  ;;  %v1070_v31 = vld [vmem:[%s7677_s30 + $0x1d20] sm:$0xff] }
 0x3cb   : > { %v7225_v44 = vpop.eup %7224  ;;  %5133 = vst [vmem:[%s7706_s17 + $0x1c18] sm:$0xff] %v4109_v37  ;;  %v4111_v45 = vmul.f32 0.4342945, %v2965_v38  ;;  %v2969_v46 = vmul.f32 0.6931472, %v7223_v40  ;;  %7250 = vlog2.f32 %v1055_v35  ;;  %v1071_v35 = vld [vmem:[%s7677_s30 + $0x1d28] sm:$0xff] }
 0x3cc   : > { %v7227_v48 = vpop.eup %7226  ;;  %5134 = vst [vmem:[%s7706_s17 + $0x1c20] sm:$0xff] %v4110_v41  ;;  %v4112_v49 = vmul.f32 0.4342945, %v2967_v42  ;;  %v2971_v50 = vmul.f32 0.6931472, %v7225_v44  ;;  %7252 = vlog2.f32 %v1056_v39  ;;  %v1072_v39 = vld [vmem:[%s7677_s30 + $0x1d30] sm:$0xff] }
 0x3cd   : > { %v7229_v52 = vpop.eup %7228  ;;  %5135 = vst [vmem:[%s7706_s17 + $0x1c28] sm:$0xff] %v4111_v45  ;;  %v4113_v53 = vmul.f32 0.4342945, %v2969_v46  ;;  %v2973_v54 = vmul.f32 0.6931472, %v7227_v48  ;;  %7254 = vlog2.f32 %v1057_v43  ;;  %v1073_v43 = vld [vmem:[%s7677_s30 + $0x1d38] sm:$0xff] }
 0x3ce   : > { %v7231_v56 = vpop.eup %7230  ;;  %5136 = vst [vmem:[%s7706_s17 + $0x1c30] sm:$0xff] %v4112_v49  ;;  %v4114_v57 = vmul.f32 0.4342945, %v2971_v50  ;;  %v2975_v58 = vmul.f32 0.6931472, %v7229_v52  ;;  %7256 = vlog2.f32 %v1058_v47  ;;  %v1074_v47 = vld [vmem:[%s7677_s30 + $0x1d40] sm:$0xff] }
 0x3cf   : > { %v7233_v60 = vpop.eup %7232  ;;  %5137 = vst [vmem:[%s7706_s17 + $0x1c38] sm:$0xff] %v4113_v53  ;;  %v4115_v61 = vmul.f32 0.4342945, %v2973_v54  ;;  %v2977_v62 = vmul.f32 0.6931472, %v7231_v56  ;;  %7258 = vlog2.f32 %v1059_v51  ;;  %v1075_v51 = vld [vmem:[%s7677_s30 + $0x1d48] sm:$0xff] }
 0x3d0   : > { %v7235_v0 = vpop.eup %7234  ;;  %5138 = vst [vmem:[%s7706_s17 + $0x1c40] sm:$0xff] %v4114_v57  ;;  %v4116_v1 = vmul.f32 0.4342945, %v2975_v58  ;;  %v2979_v2 = vmul.f32 0.6931472, %v7233_v60  ;;  %7260 = vlog2.f32 %v1060_v55  ;;  %v1076_v55 = vld [vmem:[%s7677_s30 + $0x1d50] sm:$0xff] }
 0x3d1   : > { %v7237_v4 = vpop.eup %7236  ;;  %5139 = vst [vmem:[%s7706_s17 + $0x1c48] sm:$0xff] %v4115_v61  ;;  %v4117_v5 = vmul.f32 0.4342945, %v2977_v62  ;;  %v2981_v6 = vmul.f32 0.6931472, %v7235_v0  ;;  %7262 = vlog2.f32 %v1061_v59  ;;  %v1077_v59 = vld [vmem:[%s7677_s30 + $0x1d58] sm:$0xff] }
 0x3d2   : > { %v7239_v8 = vpop.eup %7238  ;;  %5140 = vst [vmem:[%s7706_s17 + $0x1c50] sm:$0xff] %v4116_v1  ;;  %v4118_v9 = vmul.f32 0.4342945, %v2979_v2  ;;  %v2983_v10 = vmul.f32 0.6931472, %v7237_v4  ;;  %7264 = vlog2.f32 %v1062_v63  ;;  %v1078_v63 = vld [vmem:[%s7677_s30 + $0x1d60] sm:$0xff] }
 0x3d3   : > { %v7241_v12 = vpop.eup %7240  ;;  %5141 = vst [vmem:[%s7706_s17 + $0x1c58] sm:$0xff] %v4117_v5  ;;  %v4119_v13 = vmul.f32 0.4342945, %v2981_v6  ;;  %v2985_v14 = vmul.f32 0.6931472, %v7239_v8  ;;  %7266 = vlog2.f32 %v1063_v3  ;;  %v1079_v3 = vld [vmem:[%s7677_s30 + $0x1d68] sm:$0xff] }
 0x3d4   : > { %v7243_v16 = vpop.eup %7242  ;;  %5142 = vst [vmem:[%s7706_s17 + $0x1c60] sm:$0xff] %v4118_v9  ;;  %v4120_v17 = vmul.f32 0.4342945, %v2983_v10  ;;  %v2987_v18 = vmul.f32 0.6931472, %v7241_v12  ;;  %7268 = vlog2.f32 %v1064_v7  ;;  %v1080_v7 = vld [vmem:[%s7677_s30 + $0x1d70] sm:$0xff] }
 0x3d5   : > { %v7245_v20 = vpop.eup %7244  ;;  %5143 = vst [vmem:[%s7706_s17 + $0x1c68] sm:$0xff] %v4119_v13  ;;  %v4121_v21 = vmul.f32 0.4342945, %v2985_v14  ;;  %v2989_v22 = vmul.f32 0.6931472, %v7243_v16  ;;  %7270 = vlog2.f32 %v1065_v11  ;;  %v1081_v11 = vld [vmem:[%s7677_s30 + $0x1d78] sm:$0xff] }
 0x3d6   : > { %v7247_v24 = vpop.eup %7246  ;;  %5144 = vst [vmem:[%s7706_s17 + $0x1c70] sm:$0xff] %v4120_v17  ;;  %v4122_v25 = vmul.f32 0.4342945, %v2987_v18  ;;  %v2991_v26 = vmul.f32 0.6931472, %v7245_v20  ;;  %7272 = vlog2.f32 %v1066_v15  ;;  %v1082_v15 = vld [vmem:[%s7677_s30 + $0x1d80] sm:$0xff] }
 0x3d7   : > { %v7249_v28 = vpop.eup %7248  ;;  %5145 = vst [vmem:[%s7706_s17 + $0x1c78] sm:$0xff] %v4121_v21  ;;  %v4123_v29 = vmul.f32 0.4342945, %v2989_v22  ;;  %v2993_v30 = vmul.f32 0.6931472, %v7247_v24  ;;  %7274 = vlog2.f32 %v1067_v19  ;;  %v1083_v19 = vld [vmem:[%s7677_s30 + $0x1d88] sm:$0xff] }
 0x3d8   : > { %v7251_v32 = vpop.eup %7250  ;;  %5146 = vst [vmem:[%s7706_s17 + $0x1c80] sm:$0xff] %v4122_v25  ;;  %v4124_v33 = vmul.f32 0.4342945, %v2991_v26  ;;  %v2995_v34 = vmul.f32 0.6931472, %v7249_v28  ;;  %7276 = vlog2.f32 %v1068_v23  ;;  %v1084_v23 = vld [vmem:[%s7677_s30 + $0x1d90] sm:$0xff] }
 0x3d9   : > { %v7253_v36 = vpop.eup %7252  ;;  %5147 = vst [vmem:[%s7706_s17 + $0x1c88] sm:$0xff] %v4123_v29  ;;  %v4125_v37 = vmul.f32 0.4342945, %v2993_v30  ;;  %v2997_v38 = vmul.f32 0.6931472, %v7251_v32  ;;  %7278 = vlog2.f32 %v1069_v27  ;;  %v1085_v27 = vld [vmem:[%s7677_s30 + $0x1d98] sm:$0xff] }
 0x3da   : > { %v7255_v40 = vpop.eup %7254  ;;  %5148 = vst [vmem:[%s7706_s17 + $0x1c90] sm:$0xff] %v4124_v33  ;;  %v4126_v41 = vmul.f32 0.4342945, %v2995_v34  ;;  %v2999_v42 = vmul.f32 0.6931472, %v7253_v36  ;;  %7280 = vlog2.f32 %v1070_v31  ;;  %v1086_v31 = vld [vmem:[%s7677_s30 + $0x1da0] sm:$0xff] }
 0x3db   : > { %v7257_v44 = vpop.eup %7256  ;;  %5149 = vst [vmem:[%s7706_s17 + $0x1c98] sm:$0xff] %v4125_v37  ;;  %v4127_v45 = vmul.f32 0.4342945, %v2997_v38  ;;  %v3001_v46 = vmul.f32 0.6931472, %v7255_v40  ;;  %7282 = vlog2.f32 %v1071_v35  ;;  %v1087_v35 = vld [vmem:[%s7677_s30 + $0x1da8] sm:$0xff] }
 0x3dc   : > { %v7259_v48 = vpop.eup %7258  ;;  %5150 = vst [vmem:[%s7706_s17 + $0x1ca0] sm:$0xff] %v4126_v41  ;;  %v4128_v49 = vmul.f32 0.4342945, %v2999_v42  ;;  %v3003_v50 = vmul.f32 0.6931472, %v7257_v44  ;;  %7284 = vlog2.f32 %v1072_v39  ;;  %v1088_v39 = vld [vmem:[%s7677_s30 + $0x1db0] sm:$0xff] }
 0x3dd   : > { %v7261_v52 = vpop.eup %7260  ;;  %5151 = vst [vmem:[%s7706_s17 + $0x1ca8] sm:$0xff] %v4127_v45  ;;  %v4129_v53 = vmul.f32 0.4342945, %v3001_v46  ;;  %v3005_v54 = vmul.f32 0.6931472, %v7259_v48  ;;  %7286 = vlog2.f32 %v1073_v43  ;;  %v1089_v43 = vld [vmem:[%s7677_s30 + $0x1db8] sm:$0xff] }
 0x3de   : > { %v7263_v56 = vpop.eup %7262  ;;  %5152 = vst [vmem:[%s7706_s17 + $0x1cb0] sm:$0xff] %v4128_v49  ;;  %v4130_v57 = vmul.f32 0.4342945, %v3003_v50  ;;  %v3007_v58 = vmul.f32 0.6931472, %v7261_v52  ;;  %7288 = vlog2.f32 %v1074_v47  ;;  %v1090_v47 = vld [vmem:[%s7677_s30 + $0x1dc0] sm:$0xff] }
 0x3df   : > { %v7265_v60 = vpop.eup %7264  ;;  %5153 = vst [vmem:[%s7706_s17 + $0x1cb8] sm:$0xff] %v4129_v53  ;;  %v4131_v61 = vmul.f32 0.4342945, %v3005_v54  ;;  %v3009_v62 = vmul.f32 0.6931472, %v7263_v56  ;;  %7290 = vlog2.f32 %v1075_v51  ;;  %v1091_v51 = vld [vmem:[%s7677_s30 + $0x1dc8] sm:$0xff] }
 0x3e0   : > { %v7267_v0 = vpop.eup %7266  ;;  %5154 = vst [vmem:[%s7706_s17 + $0x1cc0] sm:$0xff] %v4130_v57  ;;  %v4132_v1 = vmul.f32 0.4342945, %v3007_v58  ;;  %v3011_v2 = vmul.f32 0.6931472, %v7265_v60  ;;  %7292 = vlog2.f32 %v1076_v55  ;;  %v1092_v55 = vld [vmem:[%s7677_s30 + $0x1dd0] sm:$0xff] }
 0x3e1   : > { %v7269_v4 = vpop.eup %7268  ;;  %5155 = vst [vmem:[%s7706_s17 + $0x1cc8] sm:$0xff] %v4131_v61  ;;  %v4133_v5 = vmul.f32 0.4342945, %v3009_v62  ;;  %v3013_v6 = vmul.f32 0.6931472, %v7267_v0  ;;  %7294 = vlog2.f32 %v1077_v59  ;;  %v1093_v59 = vld [vmem:[%s7677_s30 + $0x1dd8] sm:$0xff] }
 0x3e2   : > { %v7271_v8 = vpop.eup %7270  ;;  %5156 = vst [vmem:[%s7706_s17 + $0x1cd0] sm:$0xff] %v4132_v1  ;;  %v4134_v9 = vmul.f32 0.4342945, %v3011_v2  ;;  %v3015_v10 = vmul.f32 0.6931472, %v7269_v4  ;;  %7296 = vlog2.f32 %v1078_v63  ;;  %v1094_v63 = vld [vmem:[%s7677_s30 + $0x1de0] sm:$0xff] }
 0x3e3   : > { %v7273_v12 = vpop.eup %7272  ;;  %5157 = vst [vmem:[%s7706_s17 + $0x1cd8] sm:$0xff] %v4133_v5  ;;  %v4135_v13 = vmul.f32 0.4342945, %v3013_v6  ;;  %v3017_v14 = vmul.f32 0.6931472, %v7271_v8  ;;  %7298 = vlog2.f32 %v1079_v3  ;;  %v1095_v3 = vld [vmem:[%s7677_s30 + $0x1de8] sm:$0xff] }
 0x3e4   : > { %v7275_v16 = vpop.eup %7274  ;;  %5158 = vst [vmem:[%s7706_s17 + $0x1ce0] sm:$0xff] %v4134_v9  ;;  %v4136_v17 = vmul.f32 0.4342945, %v3015_v10  ;;  %v3019_v18 = vmul.f32 0.6931472, %v7273_v12  ;;  %7300 = vlog2.f32 %v1080_v7  ;;  %v1096_v7 = vld [vmem:[%s7677_s30 + $0x1df0] sm:$0xff] }
 0x3e5   : > { %v7277_v20 = vpop.eup %7276  ;;  %5159 = vst [vmem:[%s7706_s17 + $0x1ce8] sm:$0xff] %v4135_v13  ;;  %v4137_v21 = vmul.f32 0.4342945, %v3017_v14  ;;  %v3021_v22 = vmul.f32 0.6931472, %v7275_v16  ;;  %7302 = vlog2.f32 %v1081_v11  ;;  %v1097_v11 = vld [vmem:[%s7677_s30 + $0x1df8] sm:$0xff] }
 0x3e6   : > { %v7279_v24 = vpop.eup %7278  ;;  %5160 = vst [vmem:[%s7706_s17 + $0x1cf0] sm:$0xff] %v4136_v17  ;;  %v4138_v25 = vmul.f32 0.4342945, %v3019_v18  ;;  %v3023_v26 = vmul.f32 0.6931472, %v7277_v20  ;;  %7304 = vlog2.f32 %v1082_v15  ;;  %v1098_v15 = vld [vmem:[%s7677_s30 + $0x1e00] sm:$0xff] }
 0x3e7   : > { %v7281_v28 = vpop.eup %7280  ;;  %5161 = vst [vmem:[%s7706_s17 + $0x1cf8] sm:$0xff] %v4137_v21  ;;  %v4139_v29 = vmul.f32 0.4342945, %v3021_v22  ;;  %v3025_v30 = vmul.f32 0.6931472, %v7279_v24  ;;  %7306 = vlog2.f32 %v1083_v19  ;;  %v1099_v19 = vld [vmem:[%s7677_s30 + $0x1e08] sm:$0xff] }
 0x3e8   : > { %v7283_v32 = vpop.eup %7282  ;;  %5162 = vst [vmem:[%s7706_s17 + $0x1d00] sm:$0xff] %v4138_v25  ;;  %v4140_v33 = vmul.f32 0.4342945, %v3023_v26  ;;  %v3027_v34 = vmul.f32 0.6931472, %v7281_v28  ;;  %7308 = vlog2.f32 %v1084_v23  ;;  %v1100_v23 = vld [vmem:[%s7677_s30 + $0x1e10] sm:$0xff] }
 0x3e9   : > { %v7285_v36 = vpop.eup %7284  ;;  %5163 = vst [vmem:[%s7706_s17 + $0x1d08] sm:$0xff] %v4139_v29  ;;  %v4141_v37 = vmul.f32 0.4342945, %v3025_v30  ;;  %v3029_v38 = vmul.f32 0.6931472, %v7283_v32  ;;  %7310 = vlog2.f32 %v1085_v27  ;;  %v1101_v27 = vld [vmem:[%s7677_s30 + $0x1e18] sm:$0xff] }
 0x3ea   : > { %v7287_v40 = vpop.eup %7286  ;;  %5164 = vst [vmem:[%s7706_s17 + $0x1d10] sm:$0xff] %v4140_v33  ;;  %v4142_v41 = vmul.f32 0.4342945, %v3027_v34  ;;  %v3031_v42 = vmul.f32 0.6931472, %v7285_v36  ;;  %7312 = vlog2.f32 %v1086_v31  ;;  %v1102_v31 = vld [vmem:[%s7677_s30 + $0x1e20] sm:$0xff] }
 0x3eb   : > { %v7289_v44 = vpop.eup %7288  ;;  %5165 = vst [vmem:[%s7706_s17 + $0x1d18] sm:$0xff] %v4141_v37  ;;  %v4143_v45 = vmul.f32 0.4342945, %v3029_v38  ;;  %v3033_v46 = vmul.f32 0.6931472, %v7287_v40  ;;  %7314 = vlog2.f32 %v1087_v35  ;;  %v1103_v35 = vld [vmem:[%s7677_s30 + $0x1e28] sm:$0xff] }
 0x3ec   : > { %v7291_v48 = vpop.eup %7290  ;;  %5166 = vst [vmem:[%s7706_s17 + $0x1d20] sm:$0xff] %v4142_v41  ;;  %v4144_v49 = vmul.f32 0.4342945, %v3031_v42  ;;  %v3035_v50 = vmul.f32 0.6931472, %v7289_v44  ;;  %7316 = vlog2.f32 %v1088_v39  ;;  %v1104_v39 = vld [vmem:[%s7677_s30 + $0x1e30] sm:$0xff] }
 0x3ed   : > { %v7293_v52 = vpop.eup %7292  ;;  %5167 = vst [vmem:[%s7706_s17 + $0x1d28] sm:$0xff] %v4143_v45  ;;  %v4145_v53 = vmul.f32 0.4342945, %v3033_v46  ;;  %v3037_v54 = vmul.f32 0.6931472, %v7291_v48  ;;  %7318 = vlog2.f32 %v1089_v43  ;;  %v1105_v43 = vld [vmem:[%s7677_s30 + $0x1e38] sm:$0xff] }
 0x3ee   : > { %v7295_v56 = vpop.eup %7294  ;;  %5168 = vst [vmem:[%s7706_s17 + $0x1d30] sm:$0xff] %v4144_v49  ;;  %v4146_v57 = vmul.f32 0.4342945, %v3035_v50  ;;  %v3039_v58 = vmul.f32 0.6931472, %v7293_v52  ;;  %7320 = vlog2.f32 %v1090_v47  ;;  %v1106_v47 = vld [vmem:[%s7677_s30 + $0x1e40] sm:$0xff] }
 0x3ef   : > { %v7297_v60 = vpop.eup %7296  ;;  %5169 = vst [vmem:[%s7706_s17 + $0x1d38] sm:$0xff] %v4145_v53  ;;  %v4147_v61 = vmul.f32 0.4342945, %v3037_v54  ;;  %v3041_v62 = vmul.f32 0.6931472, %v7295_v56  ;;  %7322 = vlog2.f32 %v1091_v51  ;;  %v1107_v51 = vld [vmem:[%s7677_s30 + $0x1e48] sm:$0xff] }
 0x3f0   : > { %v7299_v0 = vpop.eup %7298  ;;  %5170 = vst [vmem:[%s7706_s17 + $0x1d40] sm:$0xff] %v4146_v57  ;;  %v4148_v1 = vmul.f32 0.4342945, %v3039_v58  ;;  %v3043_v2 = vmul.f32 0.6931472, %v7297_v60  ;;  %7324 = vlog2.f32 %v1092_v55  ;;  %v1108_v55 = vld [vmem:[%s7677_s30 + $0x1e50] sm:$0xff] }
 0x3f1   : > { %v7301_v4 = vpop.eup %7300  ;;  %5171 = vst [vmem:[%s7706_s17 + $0x1d48] sm:$0xff] %v4147_v61  ;;  %v4149_v5 = vmul.f32 0.4342945, %v3041_v62  ;;  %v3045_v6 = vmul.f32 0.6931472, %v7299_v0  ;;  %7326 = vlog2.f32 %v1093_v59  ;;  %v1109_v59 = vld [vmem:[%s7677_s30 + $0x1e58] sm:$0xff] }
 0x3f2   : > { %v7303_v8 = vpop.eup %7302  ;;  %5172 = vst [vmem:[%s7706_s17 + $0x1d50] sm:$0xff] %v4148_v1  ;;  %v4150_v9 = vmul.f32 0.4342945, %v3043_v2  ;;  %v3047_v10 = vmul.f32 0.6931472, %v7301_v4  ;;  %7328 = vlog2.f32 %v1094_v63  ;;  %v1110_v63 = vld [vmem:[%s7677_s30 + $0x1e60] sm:$0xff] }
 0x3f3   : > { %v7305_v12 = vpop.eup %7304  ;;  %5173 = vst [vmem:[%s7706_s17 + $0x1d58] sm:$0xff] %v4149_v5  ;;  %v4151_v13 = vmul.f32 0.4342945, %v3045_v6  ;;  %v3049_v14 = vmul.f32 0.6931472, %v7303_v8  ;;  %7330 = vlog2.f32 %v1095_v3  ;;  %v1111_v3 = vld [vmem:[%s7677_s30 + $0x1e68] sm:$0xff] }
 0x3f4   : > { %v7307_v16 = vpop.eup %7306  ;;  %5174 = vst [vmem:[%s7706_s17 + $0x1d60] sm:$0xff] %v4150_v9  ;;  %v4152_v17 = vmul.f32 0.4342945, %v3047_v10  ;;  %v3051_v18 = vmul.f32 0.6931472, %v7305_v12  ;;  %7332 = vlog2.f32 %v1096_v7  ;;  %v1112_v7 = vld [vmem:[%s7677_s30 + $0x1e70] sm:$0xff] }
 0x3f5   : > { %v7309_v20 = vpop.eup %7308  ;;  %5175 = vst [vmem:[%s7706_s17 + $0x1d68] sm:$0xff] %v4151_v13  ;;  %v4153_v21 = vmul.f32 0.4342945, %v3049_v14  ;;  %v3053_v22 = vmul.f32 0.6931472, %v7307_v16  ;;  %7334 = vlog2.f32 %v1097_v11  ;;  %v1113_v11 = vld [vmem:[%s7677_s30 + $0x1e78] sm:$0xff] }
 0x3f6   : > { %v7311_v24 = vpop.eup %7310  ;;  %5176 = vst [vmem:[%s7706_s17 + $0x1d70] sm:$0xff] %v4152_v17  ;;  %v4154_v25 = vmul.f32 0.4342945, %v3051_v18  ;;  %v3055_v26 = vmul.f32 0.6931472, %v7309_v20  ;;  %7336 = vlog2.f32 %v1098_v15  ;;  %v1114_v15 = vld [vmem:[%s7677_s30 + $0x1e80] sm:$0xff] }
 0x3f7   : > { %v7313_v28 = vpop.eup %7312  ;;  %5177 = vst [vmem:[%s7706_s17 + $0x1d78] sm:$0xff] %v4153_v21  ;;  %v4155_v29 = vmul.f32 0.4342945, %v3053_v22  ;;  %v3057_v30 = vmul.f32 0.6931472, %v7311_v24  ;;  %7338 = vlog2.f32 %v1099_v19  ;;  %v1115_v19 = vld [vmem:[%s7677_s30 + $0x1e88] sm:$0xff] }
 0x3f8   : > { %v7315_v32 = vpop.eup %7314  ;;  %5178 = vst [vmem:[%s7706_s17 + $0x1d80] sm:$0xff] %v4154_v25  ;;  %v4156_v33 = vmul.f32 0.4342945, %v3055_v26  ;;  %v3059_v34 = vmul.f32 0.6931472, %v7313_v28  ;;  %7340 = vlog2.f32 %v1100_v23  ;;  %v1116_v23 = vld [vmem:[%s7677_s30 + $0x1e90] sm:$0xff] }
 0x3f9   : > { %v7317_v36 = vpop.eup %7316  ;;  %5179 = vst [vmem:[%s7706_s17 + $0x1d88] sm:$0xff] %v4155_v29  ;;  %v4157_v37 = vmul.f32 0.4342945, %v3057_v30  ;;  %v3061_v38 = vmul.f32 0.6931472, %v7315_v32  ;;  %7342 = vlog2.f32 %v1101_v27  ;;  %v1117_v27 = vld [vmem:[%s7677_s30 + $0x1e98] sm:$0xff] }
 0x3fa   : > { %v7319_v40 = vpop.eup %7318  ;;  %5180 = vst [vmem:[%s7706_s17 + $0x1d90] sm:$0xff] %v4156_v33  ;;  %v4158_v41 = vmul.f32 0.4342945, %v3059_v34  ;;  %v3063_v42 = vmul.f32 0.6931472, %v7317_v36  ;;  %7344 = vlog2.f32 %v1102_v31  ;;  %v1118_v31 = vld [vmem:[%s7677_s30 + $0x1ea0] sm:$0xff] }
 0x3fb   : > { %v7321_v44 = vpop.eup %7320  ;;  %5181 = vst [vmem:[%s7706_s17 + $0x1d98] sm:$0xff] %v4157_v37  ;;  %v4159_v45 = vmul.f32 0.4342945, %v3061_v38  ;;  %v3065_v46 = vmul.f32 0.6931472, %v7319_v40  ;;  %7346 = vlog2.f32 %v1103_v35  ;;  %v1119_v35 = vld [vmem:[%s7677_s30 + $0x1ea8] sm:$0xff] }
 0x3fc   : > { %v7323_v48 = vpop.eup %7322  ;;  %5182 = vst [vmem:[%s7706_s17 + $0x1da0] sm:$0xff] %v4158_v41  ;;  %v4160_v49 = vmul.f32 0.4342945, %v3063_v42  ;;  %v3067_v50 = vmul.f32 0.6931472, %v7321_v44  ;;  %7348 = vlog2.f32 %v1104_v39  ;;  %v1120_v39 = vld [vmem:[%s7677_s30 + $0x1eb0] sm:$0xff] }
 0x3fd   : > { %v7325_v52 = vpop.eup %7324  ;;  %5183 = vst [vmem:[%s7706_s17 + $0x1da8] sm:$0xff] %v4159_v45  ;;  %v4161_v53 = vmul.f32 0.4342945, %v3065_v46  ;;  %v3069_v54 = vmul.f32 0.6931472, %v7323_v48  ;;  %7350 = vlog2.f32 %v1105_v43  ;;  %v1121_v43 = vld [vmem:[%s7677_s30 + $0x1eb8] sm:$0xff] }
 0x3fe   : > { %v7327_v56 = vpop.eup %7326  ;;  %5184 = vst [vmem:[%s7706_s17 + $0x1db0] sm:$0xff] %v4160_v49  ;;  %v4162_v57 = vmul.f32 0.4342945, %v3067_v50  ;;  %v3071_v58 = vmul.f32 0.6931472, %v7325_v52  ;;  %7352 = vlog2.f32 %v1106_v47  ;;  %v1122_v47 = vld [vmem:[%s7677_s30 + $0x1ec0] sm:$0xff] }
 0x3ff   : > { %v7329_v60 = vpop.eup %7328  ;;  %5185 = vst [vmem:[%s7706_s17 + $0x1db8] sm:$0xff] %v4161_v53  ;;  %v4163_v61 = vmul.f32 0.4342945, %v3069_v54  ;;  %v3073_v62 = vmul.f32 0.6931472, %v7327_v56  ;;  %7354 = vlog2.f32 %v1107_v51  ;;  %v1123_v51 = vld [vmem:[%s7677_s30 + $0x1ec8] sm:$0xff] }
 0x400   : > { %v7331_v0 = vpop.eup %7330  ;;  %5186 = vst [vmem:[%s7706_s17 + $0x1dc0] sm:$0xff] %v4162_v57  ;;  %v4164_v1 = vmul.f32 0.4342945, %v3071_v58  ;;  %v3075_v2 = vmul.f32 0.6931472, %v7329_v60  ;;  %7356 = vlog2.f32 %v1108_v55  ;;  %v1124_v55 = vld [vmem:[%s7677_s30 + $0x1ed0] sm:$0xff] }
 0x401   : > { %v7333_v4 = vpop.eup %7332  ;;  %5187 = vst [vmem:[%s7706_s17 + $0x1dc8] sm:$0xff] %v4163_v61  ;;  %v4165_v5 = vmul.f32 0.4342945, %v3073_v62  ;;  %v3077_v6 = vmul.f32 0.6931472, %v7331_v0  ;;  %7358 = vlog2.f32 %v1109_v59  ;;  %v1125_v59 = vld [vmem:[%s7677_s30 + $0x1ed8] sm:$0xff] }
 0x402   : > { %v7335_v8 = vpop.eup %7334  ;;  %5188 = vst [vmem:[%s7706_s17 + $0x1dd0] sm:$0xff] %v4164_v1  ;;  %v4166_v9 = vmul.f32 0.4342945, %v3075_v2  ;;  %v3079_v10 = vmul.f32 0.6931472, %v7333_v4  ;;  %7360 = vlog2.f32 %v1110_v63  ;;  %v1126_v63 = vld [vmem:[%s7677_s30 + $0x1ee0] sm:$0xff] }
 0x403   : > { %v7337_v12 = vpop.eup %7336  ;;  %5189 = vst [vmem:[%s7706_s17 + $0x1dd8] sm:$0xff] %v4165_v5  ;;  %v4167_v13 = vmul.f32 0.4342945, %v3077_v6  ;;  %v3081_v14 = vmul.f32 0.6931472, %v7335_v8  ;;  %7362 = vlog2.f32 %v1111_v3  ;;  %v1127_v3 = vld [vmem:[%s7677_s30 + $0x1ee8] sm:$0xff] }
 0x404   : > { %v7339_v16 = vpop.eup %7338  ;;  %5190 = vst [vmem:[%s7706_s17 + $0x1de0] sm:$0xff] %v4166_v9  ;;  %v4168_v17 = vmul.f32 0.4342945, %v3079_v10  ;;  %v3083_v18 = vmul.f32 0.6931472, %v7337_v12  ;;  %7364 = vlog2.f32 %v1112_v7  ;;  %v1128_v7 = vld [vmem:[%s7677_s30 + $0x1ef0] sm:$0xff] }
 0x405   : > { %v7341_v20 = vpop.eup %7340  ;;  %5191 = vst [vmem:[%s7706_s17 + $0x1de8] sm:$0xff] %v4167_v13  ;;  %v4169_v21 = vmul.f32 0.4342945, %v3081_v14  ;;  %v3085_v22 = vmul.f32 0.6931472, %v7339_v16  ;;  %7366 = vlog2.f32 %v1113_v11  ;;  %v1129_v11 = vld [vmem:[%s7677_s30 + $0x1ef8] sm:$0xff] }
 0x406   : > { %v7343_v24 = vpop.eup %7342  ;;  %5192 = vst [vmem:[%s7706_s17 + $0x1df0] sm:$0xff] %v4168_v17  ;;  %v4170_v25 = vmul.f32 0.4342945, %v3083_v18  ;;  %v3087_v26 = vmul.f32 0.6931472, %v7341_v20  ;;  %7368 = vlog2.f32 %v1114_v15  ;;  %v1130_v15 = vld [vmem:[%s7677_s30 + $0x1f00] sm:$0xff] }
 0x407   : > { %v7345_v28 = vpop.eup %7344  ;;  %5193 = vst [vmem:[%s7706_s17 + $0x1df8] sm:$0xff] %v4169_v21  ;;  %v4171_v29 = vmul.f32 0.4342945, %v3085_v22  ;;  %v3089_v30 = vmul.f32 0.6931472, %v7343_v24  ;;  %7370 = vlog2.f32 %v1115_v19  ;;  %v1131_v19 = vld [vmem:[%s7677_s30 + $0x1f08] sm:$0xff] }
 0x408   : > { %v7347_v32 = vpop.eup %7346  ;;  %5194 = vst [vmem:[%s7706_s17 + $0x1e00] sm:$0xff] %v4170_v25  ;;  %v4172_v33 = vmul.f32 0.4342945, %v3087_v26  ;;  %v3091_v34 = vmul.f32 0.6931472, %v7345_v28  ;;  %7372 = vlog2.f32 %v1116_v23  ;;  %v1132_v23 = vld [vmem:[%s7677_s30 + $0x1f10] sm:$0xff] }
 0x409   : > { %v7349_v36 = vpop.eup %7348  ;;  %5195 = vst [vmem:[%s7706_s17 + $0x1e08] sm:$0xff] %v4171_v29  ;;  %v4173_v37 = vmul.f32 0.4342945, %v3089_v30  ;;  %v3093_v38 = vmul.f32 0.6931472, %v7347_v32  ;;  %7374 = vlog2.f32 %v1117_v27  ;;  %v1133_v27 = vld [vmem:[%s7677_s30 + $0x1f18] sm:$0xff] }
 0x40a   : > { %v7351_v40 = vpop.eup %7350  ;;  %5196 = vst [vmem:[%s7706_s17 + $0x1e10] sm:$0xff] %v4172_v33  ;;  %v4174_v41 = vmul.f32 0.4342945, %v3091_v34  ;;  %v3095_v42 = vmul.f32 0.6931472, %v7349_v36  ;;  %7376 = vlog2.f32 %v1118_v31  ;;  %v1134_v31 = vld [vmem:[%s7677_s30 + $0x1f20] sm:$0xff] }
 0x40b   : > { %v7353_v44 = vpop.eup %7352  ;;  %5197 = vst [vmem:[%s7706_s17 + $0x1e18] sm:$0xff] %v4173_v37  ;;  %v4175_v45 = vmul.f32 0.4342945, %v3093_v38  ;;  %v3097_v46 = vmul.f32 0.6931472, %v7351_v40  ;;  %7378 = vlog2.f32 %v1119_v35  ;;  %v1135_v35 = vld [vmem:[%s7677_s30 + $0x1f28] sm:$0xff] }
 0x40c   : > { %v7355_v48 = vpop.eup %7354  ;;  %5198 = vst [vmem:[%s7706_s17 + $0x1e20] sm:$0xff] %v4174_v41  ;;  %v4176_v49 = vmul.f32 0.4342945, %v3095_v42  ;;  %v3099_v50 = vmul.f32 0.6931472, %v7353_v44  ;;  %7380 = vlog2.f32 %v1120_v39  ;;  %v1136_v39 = vld [vmem:[%s7677_s30 + $0x1f30] sm:$0xff] }
 0x40d   : > { %v7357_v52 = vpop.eup %7356  ;;  %5199 = vst [vmem:[%s7706_s17 + $0x1e28] sm:$0xff] %v4175_v45  ;;  %v4177_v53 = vmul.f32 0.4342945, %v3097_v46  ;;  %v3101_v54 = vmul.f32 0.6931472, %v7355_v48  ;;  %7382 = vlog2.f32 %v1121_v43  ;;  %v1137_v43 = vld [vmem:[%s7677_s30 + $0x1f38] sm:$0xff] }
 0x40e   : > { %v7359_v56 = vpop.eup %7358  ;;  %5200 = vst [vmem:[%s7706_s17 + $0x1e30] sm:$0xff] %v4176_v49  ;;  %v4178_v57 = vmul.f32 0.4342945, %v3099_v50  ;;  %v3103_v58 = vmul.f32 0.6931472, %v7357_v52  ;;  %7384 = vlog2.f32 %v1122_v47  ;;  %v1138_v47 = vld [vmem:[%s7677_s30 + $0x1f40] sm:$0xff] }
 0x40f   : > { %v7361_v60 = vpop.eup %7360  ;;  %5201 = vst [vmem:[%s7706_s17 + $0x1e38] sm:$0xff] %v4177_v53  ;;  %v4179_v61 = vmul.f32 0.4342945, %v3101_v54  ;;  %v3105_v62 = vmul.f32 0.6931472, %v7359_v56  ;;  %7386 = vlog2.f32 %v1123_v51  ;;  %v1139_v51 = vld [vmem:[%s7677_s30 + $0x1f48] sm:$0xff] }
 0x410   : > { %v7363_v0 = vpop.eup %7362  ;;  %5202 = vst [vmem:[%s7706_s17 + $0x1e40] sm:$0xff] %v4178_v57  ;;  %v4180_v1 = vmul.f32 0.4342945, %v3103_v58  ;;  %v3107_v2 = vmul.f32 0.6931472, %v7361_v60  ;;  %7388 = vlog2.f32 %v1124_v55  ;;  %v1140_v55 = vld [vmem:[%s7677_s30 + $0x1f50] sm:$0xff] }
 0x411   : > { %v7365_v4 = vpop.eup %7364  ;;  %5203 = vst [vmem:[%s7706_s17 + $0x1e48] sm:$0xff] %v4179_v61  ;;  %v4181_v5 = vmul.f32 0.4342945, %v3105_v62  ;;  %v3109_v6 = vmul.f32 0.6931472, %v7363_v0  ;;  %7390 = vlog2.f32 %v1125_v59  ;;  %v1141_v59 = vld [vmem:[%s7677_s30 + $0x1f58] sm:$0xff] }
 0x412   : > { %v7367_v8 = vpop.eup %7366  ;;  %5204 = vst [vmem:[%s7706_s17 + $0x1e50] sm:$0xff] %v4180_v1  ;;  %v4182_v9 = vmul.f32 0.4342945, %v3107_v2  ;;  %v3111_v10 = vmul.f32 0.6931472, %v7365_v4  ;;  %7392 = vlog2.f32 %v1126_v63  ;;  %v1142_v63 = vld [vmem:[%s7677_s30 + $0x1f60] sm:$0xff] }
 0x413   : > { %v7369_v12 = vpop.eup %7368  ;;  %5205 = vst [vmem:[%s7706_s17 + $0x1e58] sm:$0xff] %v4181_v5  ;;  %v4183_v13 = vmul.f32 0.4342945, %v3109_v6  ;;  %v3113_v14 = vmul.f32 0.6931472, %v7367_v8  ;;  %7394 = vlog2.f32 %v1127_v3  ;;  %v1143_v3 = vld [vmem:[%s7677_s30 + $0x1f68] sm:$0xff] }
 0x414   : > { %v7371_v16 = vpop.eup %7370  ;;  %5206 = vst [vmem:[%s7706_s17 + $0x1e60] sm:$0xff] %v4182_v9  ;;  %v4184_v17 = vmul.f32 0.4342945, %v3111_v10  ;;  %v3115_v18 = vmul.f32 0.6931472, %v7369_v12  ;;  %7396 = vlog2.f32 %v1128_v7  ;;  %v1144_v7 = vld [vmem:[%s7677_s30 + $0x1f70] sm:$0xff] }
 0x415   : > { %v7373_v20 = vpop.eup %7372  ;;  %5207 = vst [vmem:[%s7706_s17 + $0x1e68] sm:$0xff] %v4183_v13  ;;  %v4185_v21 = vmul.f32 0.4342945, %v3113_v14  ;;  %v3117_v22 = vmul.f32 0.6931472, %v7371_v16  ;;  %7398 = vlog2.f32 %v1129_v11  ;;  %v1145_v11 = vld [vmem:[%s7677_s30 + $0x1f78] sm:$0xff] }
 0x416   : > { %v7375_v24 = vpop.eup %7374  ;;  %5208 = vst [vmem:[%s7706_s17 + $0x1e70] sm:$0xff] %v4184_v17  ;;  %v4186_v25 = vmul.f32 0.4342945, %v3115_v18  ;;  %v3119_v26 = vmul.f32 0.6931472, %v7373_v20  ;;  %7400 = vlog2.f32 %v1130_v15  ;;  %v1146_v15 = vld [vmem:[%s7677_s30 + $0x1f80] sm:$0xff] }
 0x417   : > { %v7377_v28 = vpop.eup %7376  ;;  %5209 = vst [vmem:[%s7706_s17 + $0x1e78] sm:$0xff] %v4185_v21  ;;  %v4187_v29 = vmul.f32 0.4342945, %v3117_v22  ;;  %v3121_v30 = vmul.f32 0.6931472, %v7375_v24  ;;  %7402 = vlog2.f32 %v1131_v19  ;;  %v1147_v19 = vld [vmem:[%s7677_s30 + $0x1f88] sm:$0xff] }
 0x418   : > { %v7379_v32 = vpop.eup %7378  ;;  %5210 = vst [vmem:[%s7706_s17 + $0x1e80] sm:$0xff] %v4186_v25  ;;  %v4188_v33 = vmul.f32 0.4342945, %v3119_v26  ;;  %v3123_v34 = vmul.f32 0.6931472, %v7377_v28  ;;  %7404 = vlog2.f32 %v1132_v23  ;;  %v1148_v23 = vld [vmem:[%s7677_s30 + $0x1f90] sm:$0xff] }
 0x419   : > { %v7381_v36 = vpop.eup %7380  ;;  %5211 = vst [vmem:[%s7706_s17 + $0x1e88] sm:$0xff] %v4187_v29  ;;  %v4189_v37 = vmul.f32 0.4342945, %v3121_v30  ;;  %v3125_v38 = vmul.f32 0.6931472, %v7379_v32  ;;  %7406 = vlog2.f32 %v1133_v27  ;;  %v1149_v27 = vld [vmem:[%s7677_s30 + $0x1f98] sm:$0xff] }
 0x41a   : > { %v7383_v40 = vpop.eup %7382  ;;  %5212 = vst [vmem:[%s7706_s17 + $0x1e90] sm:$0xff] %v4188_v33  ;;  %v4190_v41 = vmul.f32 0.4342945, %v3123_v34  ;;  %v3127_v42 = vmul.f32 0.6931472, %v7381_v36  ;;  %7408 = vlog2.f32 %v1134_v31  ;;  %v1150_v31 = vld [vmem:[%s7677_s30 + $0x1fa0] sm:$0xff] }
 0x41b   : > { %v7385_v44 = vpop.eup %7384  ;;  %5213 = vst [vmem:[%s7706_s17 + $0x1e98] sm:$0xff] %v4189_v37  ;;  %v4191_v45 = vmul.f32 0.4342945, %v3125_v38  ;;  %v3129_v46 = vmul.f32 0.6931472, %v7383_v40  ;;  %7410 = vlog2.f32 %v1135_v35  ;;  %v1151_v35 = vld [vmem:[%s7677_s30 + $0x1fa8] sm:$0xff] }
 0x41c   : > { %v7387_v48 = vpop.eup %7386  ;;  %5214 = vst [vmem:[%s7706_s17 + $0x1ea0] sm:$0xff] %v4190_v41  ;;  %v4192_v49 = vmul.f32 0.4342945, %v3127_v42  ;;  %v3131_v50 = vmul.f32 0.6931472, %v7385_v44  ;;  %7412 = vlog2.f32 %v1136_v39  ;;  %v1152_v39 = vld [vmem:[%s7677_s30 + $0x1fb0] sm:$0xff] }
 0x41d   : > { %v7389_v52 = vpop.eup %7388  ;;  %5215 = vst [vmem:[%s7706_s17 + $0x1ea8] sm:$0xff] %v4191_v45  ;;  %v4193_v53 = vmul.f32 0.4342945, %v3129_v46  ;;  %v3133_v54 = vmul.f32 0.6931472, %v7387_v48  ;;  %7414 = vlog2.f32 %v1137_v43  ;;  %v1153_v43 = vld [vmem:[%s7677_s30 + $0x1fb8] sm:$0xff] }
 0x41e   : > { %v7391_v56 = vpop.eup %7390  ;;  %5216 = vst [vmem:[%s7706_s17 + $0x1eb0] sm:$0xff] %v4192_v49  ;;  %v4194_v57 = vmul.f32 0.4342945, %v3131_v50  ;;  %v3135_v58 = vmul.f32 0.6931472, %v7389_v52  ;;  %7416 = vlog2.f32 %v1138_v47  ;;  %v1154_v47 = vld [vmem:[%s7677_s30 + $0x1fc0] sm:$0xff] }
 0x41f   : > { %v7393_v60 = vpop.eup %7392  ;;  %5217 = vst [vmem:[%s7706_s17 + $0x1eb8] sm:$0xff] %v4193_v53  ;;  %v4195_v61 = vmul.f32 0.4342945, %v3133_v54  ;;  %v3137_v62 = vmul.f32 0.6931472, %v7391_v56  ;;  %7418 = vlog2.f32 %v1139_v51  ;;  %v1155_v51 = vld [vmem:[%s7677_s30 + $0x1fc8] sm:$0xff] }
 0x420   : > { %v7395_v0 = vpop.eup %7394  ;;  %5218 = vst [vmem:[%s7706_s17 + $0x1ec0] sm:$0xff] %v4194_v57  ;;  %v4196_v1 = vmul.f32 0.4342945, %v3135_v58  ;;  %v3139_v2 = vmul.f32 0.6931472, %v7393_v60  ;;  %7420 = vlog2.f32 %v1140_v55  ;;  %v1156_v55 = vld [vmem:[%s7677_s30 + $0x1fd0] sm:$0xff] }
 0x421   : > { %v7397_v4 = vpop.eup %7396  ;;  %5219 = vst [vmem:[%s7706_s17 + $0x1ec8] sm:$0xff] %v4195_v61  ;;  %v4197_v5 = vmul.f32 0.4342945, %v3137_v62  ;;  %v3141_v6 = vmul.f32 0.6931472, %v7395_v0  ;;  %7422 = vlog2.f32 %v1141_v59  ;;  %v1157_v59 = vld [vmem:[%s7677_s30 + $0x1fd8] sm:$0xff] }
 0x422   : > { %v7399_v8 = vpop.eup %7398  ;;  %5220 = vst [vmem:[%s7706_s17 + $0x1ed0] sm:$0xff] %v4196_v1  ;;  %v4198_v9 = vmul.f32 0.4342945, %v3139_v2  ;;  %v3143_v10 = vmul.f32 0.6931472, %v7397_v4  ;;  %7424 = vlog2.f32 %v1142_v63  ;;  %v1158_v63 = vld [vmem:[%s7677_s30 + $0x1fe0] sm:$0xff] }
 0x423   : > { %v7401_v12 = vpop.eup %7400  ;;  %5221 = vst [vmem:[%s7706_s17 + $0x1ed8] sm:$0xff] %v4197_v5  ;;  %v4199_v13 = vmul.f32 0.4342945, %v3141_v6  ;;  %v3145_v14 = vmul.f32 0.6931472, %v7399_v8  ;;  %7426 = vlog2.f32 %v1143_v3  ;;  %v1159_v3 = vld [vmem:[%s7677_s30 + $0x1fe8] sm:$0xff] }
 0x424   : > { %v7403_v16 = vpop.eup %7402  ;;  %5222 = vst [vmem:[%s7706_s17 + $0x1ee0] sm:$0xff] %v4198_v9  ;;  %v4200_v17 = vmul.f32 0.4342945, %v3143_v10  ;;  %v3147_v18 = vmul.f32 0.6931472, %v7401_v12  ;;  %7428 = vlog2.f32 %v1144_v7  ;;  %v1160_v7 = vld [vmem:[%s7677_s30 + $0x1ff0] sm:$0xff] }
 0x425   : > { %v7405_v20 = vpop.eup %7404  ;;  %5223 = vst [vmem:[%s7706_s17 + $0x1ee8] sm:$0xff] %v4199_v13  ;;  %v4201_v21 = vmul.f32 0.4342945, %v3145_v14  ;;  %v3149_v22 = vmul.f32 0.6931472, %v7403_v16  ;;  %7430 = vlog2.f32 %v1145_v11  ;;  %v1161_v11 = vld [vmem:[%s7677_s30 + $0x1ff8] sm:$0xff] }
 0x426   : > { %v7407_v24 = vpop.eup %7406  ;;  %5224 = vst [vmem:[%s7706_s17 + $0x1ef0] sm:$0xff] %v4200_v17  ;;  %v4202_v25 = vmul.f32 0.4342945, %v3147_v18  ;;  %v3151_v26 = vmul.f32 0.6931472, %v7405_v20  ;;  %7432 = vlog2.f32 %v1146_v15 }
 0x427   : > { %v7409_v28 = vpop.eup %7408  ;;  %5225 = vst [vmem:[%s7706_s17 + $0x1ef8] sm:$0xff] %v4201_v21  ;;  %v4203_v29 = vmul.f32 0.4342945, %v3149_v22  ;;  %v3153_v30 = vmul.f32 0.6931472, %v7407_v24  ;;  %7434 = vlog2.f32 %v1147_v19 }
 0x428   : > { %v7411_v32 = vpop.eup %7410  ;;  %5226 = vst [vmem:[%s7706_s17 + $0x1f00] sm:$0xff] %v4202_v25  ;;  %v4204_v33 = vmul.f32 0.4342945, %v3151_v26  ;;  %v3155_v34 = vmul.f32 0.6931472, %v7409_v28  ;;  %7436 = vlog2.f32 %v1148_v23 }
 0x429   : > { %v7413_v36 = vpop.eup %7412  ;;  %5227 = vst [vmem:[%s7706_s17 + $0x1f08] sm:$0xff] %v4203_v29  ;;  %v4205_v37 = vmul.f32 0.4342945, %v3153_v30  ;;  %v3157_v38 = vmul.f32 0.6931472, %v7411_v32  ;;  %7438 = vlog2.f32 %v1149_v27 }
 0x42a   : > { %v7415_v40 = vpop.eup %7414  ;;  %5228 = vst [vmem:[%s7706_s17 + $0x1f10] sm:$0xff] %v4204_v33  ;;  %v4206_v41 = vmul.f32 0.4342945, %v3155_v34  ;;  %v3159_v42 = vmul.f32 0.6931472, %v7413_v36  ;;  %7440 = vlog2.f32 %v1150_v31 }
 0x42b   : > { %v7417_v44 = vpop.eup %7416  ;;  %5229 = vst [vmem:[%s7706_s17 + $0x1f18] sm:$0xff] %v4205_v37  ;;  %v4207_v45 = vmul.f32 0.4342945, %v3157_v38  ;;  %v3161_v46 = vmul.f32 0.6931472, %v7415_v40  ;;  %7442 = vlog2.f32 %v1151_v35 }
 0x42c   : > { %v7419_v48 = vpop.eup %7418  ;;  %5230 = vst [vmem:[%s7706_s17 + $0x1f20] sm:$0xff] %v4206_v41  ;;  %v4208_v49 = vmul.f32 0.4342945, %v3159_v42  ;;  %v3163_v50 = vmul.f32 0.6931472, %v7417_v44  ;;  %7444 = vlog2.f32 %v1152_v39 }
 0x42d   : > { %v7421_v52 = vpop.eup %7420  ;;  %5231 = vst [vmem:[%s7706_s17 + $0x1f28] sm:$0xff] %v4207_v45  ;;  %v4209_v53 = vmul.f32 0.4342945, %v3161_v46  ;;  %v3165_v54 = vmul.f32 0.6931472, %v7419_v48  ;;  %7446 = vlog2.f32 %v1153_v43 }
 0x42e   : > { %v7423_v56 = vpop.eup %7422  ;;  %5232 = vst [vmem:[%s7706_s17 + $0x1f30] sm:$0xff] %v4208_v49  ;;  %v4210_v57 = vmul.f32 0.4342945, %v3163_v50  ;;  %v3167_v58 = vmul.f32 0.6931472, %v7421_v52  ;;  %7448 = vlog2.f32 %v1154_v47 }
 0x42f   : > { %v7425_v60 = vpop.eup %7424  ;;  %5233 = vst [vmem:[%s7706_s17 + $0x1f38] sm:$0xff] %v4209_v53  ;;  %v4211_v61 = vmul.f32 0.4342945, %v3165_v54  ;;  %v3169_v62 = vmul.f32 0.6931472, %v7423_v56  ;;  %7450 = vlog2.f32 %v1155_v51 }
 0x430   : > { %v7427_v0 = vpop.eup %7426  ;;  %5234 = vst [vmem:[%s7706_s17 + $0x1f40] sm:$0xff] %v4210_v57  ;;  %v4212_v1 = vmul.f32 0.4342945, %v3167_v58  ;;  %v3171_v2 = vmul.f32 0.6931472, %v7425_v60  ;;  %7452 = vlog2.f32 %v1156_v55 }
 0x431   : > { %v7429_v4 = vpop.eup %7428  ;;  %5235 = vst [vmem:[%s7706_s17 + $0x1f48] sm:$0xff] %v4211_v61  ;;  %v4213_v5 = vmul.f32 0.4342945, %v3169_v62  ;;  %v3173_v6 = vmul.f32 0.6931472, %v7427_v0  ;;  %7454 = vlog2.f32 %v1157_v59 }
 0x432   : > { %v7431_v8 = vpop.eup %7430  ;;  %5236 = vst [vmem:[%s7706_s17 + $0x1f50] sm:$0xff] %v4212_v1  ;;  %v4214_v9 = vmul.f32 0.4342945, %v3171_v2  ;;  %v3175_v10 = vmul.f32 0.6931472, %v7429_v4  ;;  %7456 = vlog2.f32 %v1158_v63 }
 0x433   : > { %v7433_v12 = vpop.eup %7432  ;;  %5237 = vst [vmem:[%s7706_s17 + $0x1f58] sm:$0xff] %v4213_v5  ;;  %v4215_v13 = vmul.f32 0.4342945, %v3173_v6  ;;  %v3177_v14 = vmul.f32 0.6931472, %v7431_v8  ;;  %7458 = vlog2.f32 %v1159_v3 }
 0x434   : > { %v7435_v15 = vpop.eup %7434  ;;  %5238 = vst [vmem:[%s7706_s17 + $0x1f60] sm:$0xff] %v4214_v9  ;;  %v4216_v16 = vmul.f32 0.4342945, %v3175_v10  ;;  %v3179_v17 = vmul.f32 0.6931472, %v7433_v12  ;;  %7460 = vlog2.f32 %v1160_v7 }
 0x435   : > { %v7437_v18 = vpop.eup %7436  ;;  %5239 = vst [vmem:[%s7706_s17 + $0x1f68] sm:$0xff] %v4215_v13  ;;  %v4217_v19 = vmul.f32 0.4342945, %v3177_v14  ;;  %v3181_v20 = vmul.f32 0.6931472, %v7435_v15  ;;  %7462 = vlog2.f32 %v1161_v11 }
 0x436   : > { %v7439_v21 = vpop.eup %7438  ;;  %5240 = vst [vmem:[%s7706_s17 + $0x1f70] sm:$0xff] %v4216_v16  ;;  %v4218_v22 = vmul.f32 0.4342945, %v3179_v17  ;;  %v3183_v23 = vmul.f32 0.6931472, %v7437_v18 }
 0x437   : > { %v7441_v24 = vpop.eup %7440  ;;  %5241 = vst [vmem:[%s7706_s17 + $0x1f78] sm:$0xff] %v4217_v19  ;;  %v4219_v25 = vmul.f32 0.4342945, %v3181_v20  ;;  %v3185_v26 = vmul.f32 0.6931472, %v7439_v21 }
 0x438   : > { %v7443_v27 = vpop.eup %7442  ;;  %5242 = vst [vmem:[%s7706_s17 + $0x1f80] sm:$0xff] %v4218_v22  ;;  %v4220_v28 = vmul.f32 0.4342945, %v3183_v23  ;;  %v3187_v29 = vmul.f32 0.6931472, %v7441_v24 }
 0x439   : > { %v7445_v30 = vpop.eup %7444  ;;  %5243 = vst [vmem:[%s7706_s17 + $0x1f88] sm:$0xff] %v4219_v25  ;;  %v4221_v31 = vmul.f32 0.4342945, %v3185_v26  ;;  %v3189_v32 = vmul.f32 0.6931472, %v7443_v27 }
 0x43a   : > { %v7447_v33 = vpop.eup %7446  ;;  %5244 = vst [vmem:[%s7706_s17 + $0x1f90] sm:$0xff] %v4220_v28  ;;  %v4222_v34 = vmul.f32 0.4342945, %v3187_v29  ;;  %v3191_v35 = vmul.f32 0.6931472, %v7445_v30 }
 0x43b   : > { %v7449_v36 = vpop.eup %7448  ;;  %5245 = vst [vmem:[%s7706_s17 + $0x1f98] sm:$0xff] %v4221_v31  ;;  %v4223_v37 = vmul.f32 0.4342945, %v3189_v32  ;;  %v3193_v38 = vmul.f32 0.6931472, %v7447_v33 }
 0x43c   : > { %v7451_v39 = vpop.eup %7450  ;;  %5246 = vst [vmem:[%s7706_s17 + $0x1fa0] sm:$0xff] %v4222_v34  ;;  %v4224_v40 = vmul.f32 0.4342945, %v3191_v35  ;;  %v3195_v41 = vmul.f32 0.6931472, %v7449_v36 }
 0x43d   : > { %v7453_v42 = vpop.eup %7452  ;;  %5247 = vst [vmem:[%s7706_s17 + $0x1fa8] sm:$0xff] %v4223_v37  ;;  %v4225_v43 = vmul.f32 0.4342945, %v3193_v38  ;;  %v3197_v44 = vmul.f32 0.6931472, %v7451_v39 }
 0x43e   : > { %v7455_v45 = vpop.eup %7454  ;;  %5248 = vst [vmem:[%s7706_s17 + $0x1fb0] sm:$0xff] %v4224_v40  ;;  %v4226_v46 = vmul.f32 0.4342945, %v3195_v41  ;;  %v3199_v47 = vmul.f32 0.6931472, %v7453_v42 }
 0x43f   : > { %v7457_v48 = vpop.eup %7456  ;;  %5249 = vst [vmem:[%s7706_s17 + $0x1fb8] sm:$0xff] %v4225_v43  ;;  %v4227_v49 = vmul.f32 0.4342945, %v3197_v44  ;;  %v3201_v50 = vmul.f32 0.6931472, %v7455_v45 }
 0x440   : > { %v7459_v51 = vpop.eup %7458  ;;  %5250 = vst [vmem:[%s7706_s17 + $0x1fc0] sm:$0xff] %v4226_v46  ;;  %v4228_v52 = vmul.f32 0.4342945, %v3199_v47  ;;  %v3203_v53 = vmul.f32 0.6931472, %v7457_v48 }
 0x441   : > { %v7461_v54 = vpop.eup %7460  ;;  %5251 = vst [vmem:[%s7706_s17 + $0x1fc8] sm:$0xff] %v4227_v49  ;;  %v4229_v55 = vmul.f32 0.4342945, %v3201_v50  ;;  %v3205_v56 = vmul.f32 0.6931472, %v7459_v51 }
 0x442   : > { %v7463_v57 = vpop.eup %7462  ;;  %5252 = vst [vmem:[%s7706_s17 + $0x1fd0] sm:$0xff] %v4228_v52  ;;  %v4230_v58 = vmul.f32 0.4342945, %v3203_v53  ;;  %v3207_v59 = vmul.f32 0.6931472, %v7461_v54 }
 0x443   : > { %5253 = vst [vmem:[%s7706_s17 + $0x1fd8] sm:$0xff] %v4229_v55  ;;  %v4231_v60 = vmul.f32 0.4342945, %v3205_v56  ;;  %v3209_v61 = vmul.f32 0.6931472, %v7463_v57 }
 0x444   : > { %5254 = vst [vmem:[%s7706_s17 + $0x1fe0] sm:$0xff] %v4230_v58  ;;  %v4232_v62 = vmul.f32 0.4342945, %v3207_v59 }
 0x445   : > { %5255 = vst [vmem:[%s7706_s17 + $0x1fe8] sm:$0xff] %v4231_v60  ;;  %v4233_v63 = vmul.f32 0.4342945, %v3209_v61 }
 0x446   : > { %5256 = vst [vmem:[%s7706_s17 + $0x1ff0] sm:$0xff] %v4232_v62 }
 0x447   : > { %5257 = vst [vmem:[%s7706_s17 + $0x1ff8] sm:$0xff] %v4233_v63 }
 0x448   : > { %7505 = shalt.err (!%p7502_p10)
}
 0x449   : > { %s7506_s13 = scalar_lea.hbm %s9737_s2, 131072  ;;  %s7510_s20 = scalar_lea.hbm %s9786_s1, 262144 }
 0x44a   : > { %p7507_p0 = scmp.ne.s32.totalorder %s9737_s2, %s7506_s13  ;;  %p7511_p1 = scmp.lt.s32.totalorder %s9737_s2, %s9786_s1 }
 0x44b   : > { %p7512_p3 = scmp.lt.s32.totalorder %s7510_s20, %s7506_s13 }
 0x44c   : > { %p7508_p2 = pnand %p7507_p0, %p9795_p12 }
 0x44d   : > { %p7513_p6 = por %p7512_p3, %p7511_p1 }
 0x44e   : > { %p7509_p9 = pneg %p7508_p2 }
 0x450   : > { %p7514_p11 = pnand %p7513_p6, %p7509_p9 }
 0x452   : > { %7517 = shalt.err (!%p7514_p11)
}
 0x453   : > { %s7562_s24 = smov 4096   ;;  %s7563_s26 = smov 256  }
 0x454   : > { %5368 = dma.vmem_to_hbm [thread:$0]  (%p9795_p12), %s9739_s27, 131072, %s9737_s2, %s5259_s10, %s7562_s24, %s7562_s24, %s7563_s26  }
 0x455 PF: > { %s5288_s30 = sand.u32 1, %s7544_s6   ;;  %p9796_p13 = scmp.ne.s32.totalorder %s9792_s19, 0 }
 0x456   : > { %p9797_p4 = scmp.ge.s32.totalorder %s7556_s9, 2  ;;  %s5289_s17 = scalar_lea.sflag [#allocation4], %s5288_s30 }
 0x458   : > { %p5375_p5 = pnand %p9797_p4, %p9796_p13 }
 0x45a   : > { %p5376_p7 = pneg %p5375_p5 }
 0x45c   : > { %7539 = dma.done.wait (%p5376_p7), %s5289_s17, 131072  }
 0x45d   : > { %7541 = vsyncadd (%p5376_p7), %s5289_s17, 4294836224  ;;  %p14_p8 = scmp.ge.s32.totalorder %s7599_s12, 4   ;;  %s9798_s6 = smov %s7548_s7 }
 0x45e   : > { %s9799_s7 = smov %s7552_s8  ;;  %s9800_s8 = smov %s7611_s15 }
 0x45f   : > { %s9801_s9 = smov %s7599_s12  ;;  %16 = sbr.rel (!%p14_p8) target bundleno = 5 (0x5), region = 69 }
 0x464   :  { %5294 = vsyncpa [#allocation3], 1 }
 0x465   :  { %5296 = vsyncpa [#allocation3 + $0x1], 1 }
 0x466   :  { %5297 = vsyncpa [#allocation4], 1 }
 0x467   :  { %5299 = vsyncpa [#allocation4 + $0x1], 1 }

</bundles_post_ra>
